<compile_context>
chip_gen: v6e
topology: v6e:2x2x1
jax: 0.10.0
libtpu: 0.0.40
codegen_flags: <defaults>
</compile_context>

<pallas_src>
import numpy as np

import jax
import jax.numpy as jnp
from jax import lax
from jax.experimental import pallas as pl
from jax.experimental.pallas import tpu as pltpu


# ---------------------------------------------------------------------------
# One-time host-side parameter packing (hoisted out of the hot path)
# ---------------------------------------------------------------------------
def _shift_sel(win, wout, taps, shift):
    """sel[k, w, j] = 1.0 iff w == j + k - shift (out-of-range => zero pad)."""
    k = np.arange(taps)[:, None, None]
    w = np.arange(win)[None, :, None]
    j = np.arange(wout)[None, None, :]
    return (w == j + k - shift).astype(np.float32)


def _pool_cols(width):
    """(width, width//2) matrix with 0.5 where j // 2 == jo (2-wide averaging)."""
    m = np.zeros((width, width // 2), np.float32)
    for j in range(width):
        m[j, j // 2] = 0.5
    return m


def prepare_params(params):
    """Pack PyTorch-layout LeNet params into kernel-ready matrices (called once).

    Each conv becomes 5 block-Toeplitz matrices (one per vertical tap) so that
    inside the kernel every layer is a plain lane-dense 2-D MXU matmul.  Matmul
    weights are stored as bf16 (f32 accumulation in-kernel); pooling matrices
    and biases stay f32.
    """
    f32, bf16 = jnp.float32, jnp.bfloat16
    w1 = params["c1_w"].astype(f32)[:, 0]      # (6, 5, 5)       co, ki, kj
    w3 = params["c3_w"].astype(f32)            # (16, 6, 5, 5)   co, ci, ki, kj
    w5 = params["c5_w"].astype(f32)            # (120, 16, 5, 5)

    sel1 = jnp.asarray(_shift_sel(28, 28, 5, 2))   # c1: padding=2 absorbed
    sel3 = jnp.asarray(_shift_sel(14, 10, 5, 0))   # c3: valid conv

    # Block-Toeplitz conv matrices: one (K_in, C_out*W_out) matmul per vertical tap.
    m1 = jnp.einsum("cik,kwj->iwcj", w1, sel1).reshape(5, 28, 6 * 28)          # (5, 28, 168)
    m3 = jnp.einsum("caik,kwj->iawcj", w3, sel3).reshape(5, 6 * 14, 16 * 10)   # (5, 84, 160)
    m5 = jnp.transpose(w5, (2, 1, 3, 0)).reshape(5, 16 * 5, 120)               # (5, 80, 120)

    b1e = jnp.repeat(params["c1_b"].astype(f32), 28).reshape(1, 168)
    b3e = jnp.repeat(params["c3_b"].astype(f32), 10).reshape(1, 160)
    b5e = params["c5_b"].astype(f32).reshape(1, 120)

    # Constant width-average matmuls (block-diagonal over channels on lanes);
    # the height average is folded into strided reads inside the kernel.
    wp1 = jnp.asarray(np.kron(np.eye(6, dtype=np.float32), _pool_cols(28)))    # (168, 84)
    wp3 = jnp.asarray(np.kron(np.eye(16, dtype=np.float32), _pool_cols(10)))   # (160, 80)

    w6 = params["f6_w"].astype(f32).T           # (120, 84)
    b6 = params["f6_b"].astype(f32).reshape(1, 84)
    w7 = params["f7_w"].astype(f32).T           # (84, 10)
    b7 = params["f7_b"].astype(f32).reshape(1, 10)

    return (m1.astype(bf16), b1e, wp1,
            m3.astype(bf16), b3e, wp3,
            m5.astype(bf16), b5e,
            w6.astype(bf16), b6, w7.astype(bf16), b7)


# ---------------------------------------------------------------------------
# Fused Pallas kernel: the whole LeNet forward for one batch tile (all in VMEM)
# ---------------------------------------------------------------------------
def _lenet_kernel(x_ref, m1_ref, b1_ref, wp1_ref, m3_ref, b3_ref, wp3_ref,
                  m5_ref, b5_ref, w6_ref, b6_ref, w7_ref, b7_ref,
                  out_ref, x_scr, s2_scr, s4_scr):
    f32, bf16 = jnp.float32, jnp.bfloat16
    tb = out_ref.shape[0]          # samples in this tile
    r1 = tb * 32                   # stacked conv1 rows (32 padded rows / sample)
    r3 = tb * 16                   # stacked c3 rows (16 rows / sample, 10 valid)

    # Stage the input tile with 8 zero slack rows so every vertical tap below is
    # a plain offset load (no per-sample copies, never reads out of bounds).
    x_scr[0:r1, :] = x_ref[...]
    x_scr[r1:r1 + 8, :] = jnp.zeros((8, 28), f32)

    # ---- c1 + tanh1: 5 block-Toeplitz taps on batch-stacked rows (M = tb*32).
    #      Layout: row = sample*32 + out_row, lane = co*28 + out_col.
    acc1 = jnp.dot(x_scr[pl.ds(0, r1), :].astype(bf16), m1_ref[0],
                   preferred_element_type=f32)
    for ki in range(1, 5):
        acc1 += jnp.dot(x_scr[pl.ds(ki, r1), :].astype(bf16), m1_ref[ki],
                        preferred_element_type=f32)
    a1 = jnp.tanh(acc1 + b1_ref[...])                     # (tb*32, 168) f32

    # ---- s2: width average via constant matmul; the height average is folded
    #      into the strided tap reads of c3 below.  lane = co*14 + pooled_col.
    s2_scr[0:r1, :] = jnp.dot(a1, wp1_ref[...], preferred_element_type=f32)
    s2_scr[r1:r1 + 8, :] = jnp.zeros((8, 84), f32)        # slack (garbage rows)

    # ---- c3 + tanh3 (M = tb*16): output row j, tap ki needs pooled row j+ki,
    #      i.e. 0.5 * (s2[2*(j+ki)] + s2[2*(j+ki)+1])  -> stride-2 reads.
    acc3 = None
    for ki in range(5):
        lhs = 0.5 * (s2_scr[pl.ds(2 * ki, r3, stride=2), :] +
                     s2_scr[pl.ds(2 * ki + 1, r3, stride=2), :])
        t = jnp.dot(lhs.astype(bf16), m3_ref[ki], preferred_element_type=f32)
        acc3 = t if acc3 is None else acc3 + t
    a3 = jnp.tanh(acc3 + b3_ref[...])                     # (tb*16, 160) f32

    # ---- s4: width average.  lane = co*5 + pooled_col.
    s4_scr[...] = jnp.dot(a3, wp3_ref[...], preferred_element_type=f32)

    # ---- c5 (batched tail, M = tb; flatten is implicit): tap ki needs the
    #      s4-pooled row ki of every sample -> stride-16 reads.
    acc5 = None
    for ki in range(5):
        lhs = 0.5 * (s4_scr[pl.ds(2 * ki, tb, stride=16), :] +
                     s4_scr[pl.ds(2 * ki + 1, tb, stride=16), :])
        t = jnp.dot(lhs.astype(bf16), m5_ref[ki], preferred_element_type=f32)
        acc5 = t if acc5 is None else acc5 + t
    a5 = acc5 + b5_ref[...]                               # (tb, 120) f32

    # ---- f6 + tanh6, f7 + LogSoftmax; one lane-dense (tb, 10) store per tile.
    h6 = jnp.tanh(jnp.dot(a5.astype(bf16), w6_ref[...],
                          preferred_element_type=f32) + b6_ref[...])
    lg = jnp.dot(h6.astype(bf16), w7_ref[...],
                 preferred_element_type=f32) + b7_ref[...]
    mx = jnp.max(lg, axis=-1, keepdims=True)
    lse = mx + jnp.log(jnp.sum(jnp.exp(lg - mx), axis=-1, keepdims=True))
    out_ref[...] = (lg - lse).astype(out_ref.dtype)


def _pick_tile(n):
    # Largest tile from a small menu that divides n (keeps the (tb, 10) output
    # block 8-row aligned); otherwise process the whole batch as one tile.
    for tb in (16, 8):
        if n % tb == 0:
            return tb
    return n


@jax.jit
def lenet_forward(x, prep):
    """x: (N, 1, 28, 28) float32 NCHW; prep: output of prepare_params."""
    (m1, b1e, wp1, m3, b3e, wp3, m5, b5e, w6, b6, w7, b7) = prep
    n = x.shape[0]
    assert x.shape[1:] == (1, 28, 28), x.shape
    tb = _pick_tile(n)
    grid = (n // tb,)

    # conv1's padding=2: height padding on the host (width padding is absorbed
    # into the m1 Toeplitz matrices); pre-stack samples along rows so the kernel
    # block is a plain lane-dense 2-D slab.
    x2 = x.reshape(n, 28, 28).astype(jnp.float32)
    xflat = jnp.pad(x2, ((0, 0), (2, 2), (0, 0))).reshape(n * 32, 28)

    def _resident(a):          # whole array, VMEM-resident across all grid steps
        nd = a.ndim
        return pl.BlockSpec(a.shape, lambda g: (0,) * nd)

    grid_spec = pltpu.PrefetchScalarGridSpec(
        num_scalar_prefetch=0,
        grid=grid,
        in_specs=[pl.BlockSpec((tb * 32, 28), lambda g: (g, 0)),
                  _resident(m1), _resident(b1e), _resident(wp1),
                  _resident(m3), _resident(b3e), _resident(wp3),
                  _resident(m5), _resident(b5e),
                  _resident(w6), _resident(b6), _resident(w7), _resident(b7)],
        out_specs=pl.BlockSpec((tb, 10), lambda g: (g, 0)),
        scratch_shapes=[pltpu.VMEM((tb * 32 + 8, 28), jnp.float32),
                        pltpu.VMEM((tb * 32 + 8, 84), jnp.float32),
                        pltpu.VMEM((tb * 16, 80), jnp.float32)])

    return pl.pallas_call(
        _lenet_kernel,
        out_shape=jax.ShapeDtypeStruct((n, 10), jnp.float32),
        grid_spec=grid_spec,
        compiler_params=pltpu.CompilerParams(
            dimension_semantics=("parallel",)),
    )(xflat, m1, b1e, wp1, m3, b3e, wp3, m5, b5e, w6, b6, w7, b7)


# ---------------------------------------------------------------------------
# Pure-JAX reference and init (for the correctness sanity check)
# ---------------------------------------------------------------------------
def lenet_reference(x, params):
    dn = ("NCHW", "OIHW", "NCHW")

    def conv(z, w, b, pad):
        z = lax.conv_general_dilated(z, w, (1, 1), ((pad, pad), (pad, pad)),
                                     dimension_numbers=dn,
                                     precision=lax.Precision.HIGHEST)
        return z + b[None, :, None, None]

    def pool(z):
        N, C, H, W = z.shape
        return z.reshape(N, C, H // 2, 2, W // 2, 2).mean(axis=(3, 5))

    y = jnp.tanh(conv(x, params["c1_w"], params["c1_b"], 2))
    y = pool(y)
    y = jnp.tanh(conv(y, params["c3_w"], params["c3_b"], 0))
    y = pool(y)
    y = conv(y, params["c5_w"], params["c5_b"], 0)
    y = y.reshape(y.shape[0], -1)
    y = jnp.tanh(y @ params["f6_w"].T + params["f6_b"])
    y = y @ params["f7_w"].T + params["f7_b"]
    return jax.nn.log_softmax(y, axis=-1)


def init_params(key):
    """Deterministic init, PyTorch-default-style uniform(-1/sqrt(fan_in), +)."""
    def u(k, shape, fan_in):
        bound = 1.0 / jnp.sqrt(jnp.float32(fan_in))
        return jax.random.uniform(k, shape, jnp.float32, -bound, bound)

    ks = jax.random.split(key, 10)
    return {
        "c1_w": u(ks[0], (6, 1, 5, 5), 1 * 25),     "c1_b": u(ks[1], (6,), 1 * 25),
        "c3_w": u(ks[2], (16, 6, 5, 5), 6 * 25),    "c3_b": u(ks[3], (16,), 6 * 25),
        "c5_w": u(ks[4], (120, 16, 5, 5), 16 * 25), "c5_b": u(ks[5], (120,), 16 * 25),
        "f6_w": u(ks[6], (84, 120), 120),           "f6_b": u(ks[7], (84,), 120),
        "f7_w": u(ks[8], (10, 84), 84),             "f7_b": u(ks[9], (10,), 84),
    }


if __name__ == "__main__":
    key = jax.random.PRNGKey(0)
    k_x, k_p = jax.random.split(key)
    # LeNet's flatten-to-120 requires 28x28 single-channel input; batch 32
    # exercises the batch grid (two 16-sample tiles, pipelined / megacore-split).
    x = jax.random.normal(k_x, (32, 1, 28, 28), dtype=jnp.float32)
    params = init_params(k_p)
    prep = prepare_params(params)     # one-time packing (out of the hot path)

    out = jax.block_until_ready(lenet_forward(x, prep))
    ref = jax.block_until_ready(lenet_reference(x, params))

    assert out.shape == (32, 10), out.shape
    assert bool(jnp.all(jnp.isfinite(out)))
    max_diff = float(jnp.max(jnp.abs(out - ref)))
    # bf16 matmul inputs with f32 accumulation: expected deviation is ~1e-3.
    assert max_diff < 3e-2, f"mismatch vs reference: {max_diff}"
    print("KERNEL_OK")
</pallas_src>

<mosaic_0001>
module attributes {stable_mosaic.version = 11 : i64} {
  func.func @_lenet_kernel(%arg0: i32, %arg1: memref<512x28xf32, #tpu.memory_space<vmem>>, %arg2: memref<5x28x168xbf16, #tpu.memory_space<vmem>>, %arg3: memref<1x168xf32, #tpu.memory_space<vmem>>, %arg4: memref<168x84xf32, #tpu.memory_space<vmem>>, %arg5: memref<5x84x160xbf16, #tpu.memory_space<vmem>>, %arg6: memref<1x160xf32, #tpu.memory_space<vmem>>, %arg7: memref<160x80xf32, #tpu.memory_space<vmem>>, %arg8: memref<5x80x120xbf16, #tpu.memory_space<vmem>>, %arg9: memref<1x120xf32, #tpu.memory_space<vmem>>, %arg10: memref<120x84xbf16, #tpu.memory_space<vmem>>, %arg11: memref<1x84xf32, #tpu.memory_space<vmem>>, %arg12: memref<84x10xbf16, #tpu.memory_space<vmem>>, %arg13: memref<1x10xf32, #tpu.memory_space<vmem>>, %arg14: memref<16x10xf32, #tpu.memory_space<vmem>>, %arg15: memref<520x28xf32, #tpu.memory_space<vmem>>, %arg16: memref<520x84xf32, #tpu.memory_space<vmem>>, %arg17: memref<256x80xf32, #tpu.memory_space<vmem>>) attributes {dimension_semantics = [#tpu.dimension_semantics<parallel>], iteration_bounds = array<i64: 2>, scalar_prefetch = 0 : i64, scratch_operands = 3 : i64, tpu.core_type = #tpu.core_type<tc>, window_params = [{transform_indices = @transform_0, window_bounds = array<i64: 512, 28>}, {pipeline_mode = #tpu.pipeline_mode<synchronous>, transform_indices = @transform_1, window_bounds = array<i64: 5, 28, 168>}, {pipeline_mode = #tpu.pipeline_mode<synchronous>, transform_indices = @transform_2, window_bounds = array<i64: 1, 168>}, {pipeline_mode = #tpu.pipeline_mode<synchronous>, transform_indices = @transform_3, window_bounds = array<i64: 168, 84>}, {pipeline_mode = #tpu.pipeline_mode<synchronous>, transform_indices = @transform_4, window_bounds = array<i64: 5, 84, 160>}, {pipeline_mode = #tpu.pipeline_mode<synchronous>, transform_indices = @transform_5, window_bounds = array<i64: 1, 160>}, {pipeline_mode = #tpu.pipeline_mode<synchronous>, transform_indices = @transform_6, window_bounds = array<i64: 160, 80>}, {pipeline_mode = #tpu.pipeline_mode<synchronous>, transform_indices = @transform_7, window_bounds = array<i64: 5, 80, 120>}, {pipeline_mode = #tpu.pipeline_mode<synchronous>, transform_indices = @transform_8, window_bounds = array<i64: 1, 120>}, {pipeline_mode = #tpu.pipeline_mode<synchronous>, transform_indices = @transform_9, window_bounds = array<i64: 120, 84>}, {pipeline_mode = #tpu.pipeline_mode<synchronous>, transform_indices = @transform_10, window_bounds = array<i64: 1, 84>}, {pipeline_mode = #tpu.pipeline_mode<synchronous>, transform_indices = @transform_11, window_bounds = array<i64: 84, 10>}, {pipeline_mode = #tpu.pipeline_mode<synchronous>, transform_indices = @transform_12, window_bounds = array<i64: 1, 10>}, {transform_indices = @transform_13, window_bounds = array<i64: 16, 10>}]} {
    %c0 = arith.constant 0 : index
    %c0_0 = arith.constant 0 : index
    %0 = vector.load %arg1[%c0, %c0_0] : memref<512x28xf32, #tpu.memory_space<vmem>>, vector<512x28xf32>
    %c0_1 = arith.constant 0 : index
    %c0_2 = arith.constant 0 : index
    %1 = vector.load %arg15[%c0_1, %c0_2] : memref<520x28xf32, #tpu.memory_space<vmem>>, vector<512x28xf32>
    tpu.vector_store %arg15[%c0_1, %c0_2], %0 {strides = array<i32>} : memref<520x28xf32, #tpu.memory_space<vmem>>, vector<512x28xf32>,
    %cst = arith.constant 0.000000e+00 : f32
    %2 = vector.broadcast %cst : f32 to vector<8x28xf32>
    %c512 = arith.constant 512 : index
    %c0_3 = arith.constant 0 : index
    %3 = vector.load %arg15[%c512, %c0_3] : memref<520x28xf32, #tpu.memory_space<vmem>>, vector<8x28xf32>
    tpu.vector_store %arg15[%c512, %c0_3], %2 {strides = array<i32>} : memref<520x28xf32, #tpu.memory_space<vmem>>, vector<8x28xf32>,
    %c0_4 = arith.constant 0 : index
    %c0_5 = arith.constant 0 : index
    %4 = vector.load %arg15[%c0_4, %c0_5] : memref<520x28xf32, #tpu.memory_space<vmem>>, vector<512x28xf32>
    %5 = arith.truncf %4 : vector<512x28xf32> to vector<512x28xbf16>
    %c0_6 = arith.constant 0 : index
    %c0_7 = arith.constant 0 : index
    %c0_8 = arith.constant 0 : index
    %6 = vector.load %arg2[%c0_6, %c0_7, %c0_8] : memref<5x28x168xbf16, #tpu.memory_space<vmem>>, vector<1x28x168xbf16>
    %7 = vector.shape_cast %6 : vector<1x28x168xbf16> to vector<28x168xbf16>
    %cst_9 = arith.constant dense<0.000000e+00> : vector<512x168xf32>
    %8 = tpu.matmul %5, %7, %cst_9 {dimension_numbers = #tpu.dot_dimension_numbers<[1], [0], [0], [1], [0, 0, 1, 1], [], []>} : vector<512x28xbf16>, vector<28x168xbf16>, vector<512x168xf32> -> vector<512x168xf32>
    %c1 = arith.constant 1 : index
    %c0_10 = arith.constant 0 : index
    %9 = vector.load %arg15[%c1, %c0_10] : memref<520x28xf32, #tpu.memory_space<vmem>>, vector<512x28xf32>
    %10 = arith.truncf %9 : vector<512x28xf32> to vector<512x28xbf16>
    %c1_11 = arith.constant 1 : index
    %c0_12 = arith.constant 0 : index
    %c0_13 = arith.constant 0 : index
    %11 = vector.load %arg2[%c1_11, %c0_12, %c0_13] : memref<5x28x168xbf16, #tpu.memory_space<vmem>>, vector<1x28x168xbf16>
    %12 = vector.shape_cast %11 : vector<1x28x168xbf16> to vector<28x168xbf16>
    %cst_14 = arith.constant dense<0.000000e+00> : vector<512x168xf32>
    %13 = tpu.matmul %10, %12, %cst_14 {dimension_numbers = #tpu.dot_dimension_numbers<[1], [0], [0], [1], [0, 0, 1, 1], [], []>} : vector<512x28xbf16>, vector<28x168xbf16>, vector<512x168xf32> -> vector<512x168xf32>
    %14 = arith.addf %8, %13 : vector<512x168xf32>
    %c2 = arith.constant 2 : index
    %c0_15 = arith.constant 0 : index
    %15 = vector.load %arg15[%c2, %c0_15] : memref<520x28xf32, #tpu.memory_space<vmem>>, vector<512x28xf32>
    %16 = arith.truncf %15 : vector<512x28xf32> to vector<512x28xbf16>
    %c2_16 = arith.constant 2 : index
    %c0_17 = arith.constant 0 : index
    %c0_18 = arith.constant 0 : index
    %17 = vector.load %arg2[%c2_16, %c0_17, %c0_18] : memref<5x28x168xbf16, #tpu.memory_space<vmem>>, vector<1x28x168xbf16>
    %18 = vector.shape_cast %17 : vector<1x28x168xbf16> to vector<28x168xbf16>
    %cst_19 = arith.constant dense<0.000000e+00> : vector<512x168xf32>
    %19 = tpu.matmul %16, %18, %cst_19 {dimension_numbers = #tpu.dot_dimension_numbers<[1], [0], [0], [1], [0, 0, 1, 1], [], []>} : vector<512x28xbf16>, vector<28x168xbf16>, vector<512x168xf32> -> vector<512x168xf32>
    %20 = arith.addf %14, %19 : vector<512x168xf32>
    %c3 = arith.constant 3 : index
    %c0_20 = arith.constant 0 : index
    %21 = vector.load %arg15[%c3, %c0_20] : memref<520x28xf32, #tpu.memory_space<vmem>>, vector<512x28xf32>
    %22 = arith.truncf %21 : vector<512x28xf32> to vector<512x28xbf16>
    %c3_21 = arith.constant 3 : index
    %c0_22 = arith.constant 0 : index
    %c0_23 = arith.constant 0 : index
    %23 = vector.load %arg2[%c3_21, %c0_22, %c0_23] : memref<5x28x168xbf16, #tpu.memory_space<vmem>>, vector<1x28x168xbf16>
    %24 = vector.shape_cast %23 : vector<1x28x168xbf16> to vector<28x168xbf16>
    %cst_24 = arith.constant dense<0.000000e+00> : vector<512x168xf32>
    %25 = tpu.matmul %22, %24, %cst_24 {dimension_numbers = #tpu.dot_dimension_numbers<[1], [0], [0], [1], [0, 0, 1, 1], [], []>} : vector<512x28xbf16>, vector<28x168xbf16>, vector<512x168xf32> -> vector<512x168xf32>
    %26 = arith.addf %20, %25 : vector<512x168xf32>
    %c4 = arith.constant 4 : index
    %c0_25 = arith.constant 0 : index
    %27 = vector.load %arg15[%c4, %c0_25] : memref<520x28xf32, #tpu.memory_space<vmem>>, vector<512x28xf32>
    %28 = arith.truncf %27 : vector<512x28xf32> to vector<512x28xbf16>
    %c4_26 = arith.constant 4 : index
    %c0_27 = arith.constant 0 : index
    %c0_28 = arith.constant 0 : index
    %29 = vector.load %arg2[%c4_26, %c0_27, %c0_28] : memref<5x28x168xbf16, #tpu.memory_space<vmem>>, vector<1x28x168xbf16>
    %30 = vector.shape_cast %29 : vector<1x28x168xbf16> to vector<28x168xbf16>
    %cst_29 = arith.constant dense<0.000000e+00> : vector<512x168xf32>
    %31 = tpu.matmul %28, %30, %cst_29 {dimension_numbers = #tpu.dot_dimension_numbers<[1], [0], [0], [1], [0, 0, 1, 1], [], []>} : vector<512x28xbf16>, vector<28x168xbf16>, vector<512x168xf32> -> vector<512x168xf32>
    %32 = arith.addf %26, %31 : vector<512x168xf32>
    %c0_30 = arith.constant 0 : index
    %c0_31 = arith.constant 0 : index
    %33 = vector.load %arg3[%c0_30, %c0_31] : memref<1x168xf32, #tpu.memory_space<vmem>>, vector<1x168xf32>
    %34 = vector.broadcast %33 : vector<1x168xf32> to vector<512x168xf32>
    %35 = arith.addf %32, %34 : vector<512x168xf32>
    %36 = math.tanh %35 : vector<512x168xf32>
    %c0_32 = arith.constant 0 : index
    %c0_33 = arith.constant 0 : index
    %37 = vector.load %arg4[%c0_32, %c0_33] : memref<168x84xf32, #tpu.memory_space<vmem>>, vector<168x84xf32>
    %cst_34 = arith.constant dense<0.000000e+00> : vector<512x84xf32>
    %38 = tpu.matmul %36, %37, %cst_34 {dimension_numbers = #tpu.dot_dimension_numbers<[1], [0], [0], [1], [0, 0, 1, 1], [], []>} : vector<512x168xf32>, vector<168x84xf32>, vector<512x84xf32> -> vector<512x84xf32>
    %c0_35 = arith.constant 0 : index
    %c0_36 = arith.constant 0 : index
    %39 = vector.load %arg16[%c0_35, %c0_36] : memref<520x84xf32, #tpu.memory_space<vmem>>, vector<512x84xf32>
    tpu.vector_store %arg16[%c0_35, %c0_36], %38 {strides = array<i32>} : memref<520x84xf32, #tpu.memory_space<vmem>>, vector<512x84xf32>,
    %cst_37 = arith.constant 0.000000e+00 : f32
    %40 = vector.broadcast %cst_37 : f32 to vector<8x84xf32>
    %c512_38 = arith.constant 512 : index
    %c0_39 = arith.constant 0 : index
    %41 = vector.load %arg16[%c512_38, %c0_39] : memref<520x84xf32, #tpu.memory_space<vmem>>, vector<8x84xf32>
    tpu.vector_store %arg16[%c512_38, %c0_39], %40 {strides = array<i32>} : memref<520x84xf32, #tpu.memory_space<vmem>>, vector<8x84xf32>,
    %c0_40 = arith.constant 0 : index
    %c0_41 = arith.constant 0 : index
    %42 = tpu.strided_load %arg16[%c0_40, %c0_41] {strides = array<i32: 2, 1>} : memref<520x84xf32, #tpu.memory_space<vmem>>, vector<256x84xf32>
    %c1_42 = arith.constant 1 : index
    %c0_43 = arith.constant 0 : index
    %43 = tpu.strided_load %arg16[%c1_42, %c0_43] {strides = array<i32: 2, 1>} : memref<520x84xf32, #tpu.memory_space<vmem>>, vector<256x84xf32>
    %44 = arith.addf %42, %43 : vector<256x84xf32>
    %cst_44 = arith.constant 5.000000e-01 : f32
    %45 = vector.broadcast %cst_44 : f32 to vector<256x84xf32>
    %46 = arith.mulf %45, %44 : vector<256x84xf32>
    %47 = arith.truncf %46 : vector<256x84xf32> to vector<256x84xbf16>
    %c0_45 = arith.constant 0 : index
    %c0_46 = arith.constant 0 : index
    %c0_47 = arith.constant 0 : index
    %48 = vector.load %arg5[%c0_45, %c0_46, %c0_47] : memref<5x84x160xbf16, #tpu.memory_space<vmem>>, vector<1x84x160xbf16>
    %49 = vector.shape_cast %48 : vector<1x84x160xbf16> to vector<84x160xbf16>
    %cst_48 = arith.constant dense<0.000000e+00> : vector<256x160xf32>
    %50 = tpu.matmul %47, %49, %cst_48 {dimension_numbers = #tpu.dot_dimension_numbers<[1], [0], [0], [1], [0, 0, 1, 1], [], []>} : vector<256x84xbf16>, vector<84x160xbf16>, vector<256x160xf32> -> vector<256x160xf32>
    %c2_49 = arith.constant 2 : index
    %c0_50 = arith.constant 0 : index
    %51 = tpu.strided_load %arg16[%c2_49, %c0_50] {strides = array<i32: 2, 1>} : memref<520x84xf32, #tpu.memory_space<vmem>>, vector<256x84xf32>
    %c3_51 = arith.constant 3 : index
    %c0_52 = arith.constant 0 : index
    %52 = tpu.strided_load %arg16[%c3_51, %c0_52] {strides = array<i32: 2, 1>} : memref<520x84xf32, #tpu.memory_space<vmem>>, vector<256x84xf32>
    %53 = arith.addf %51, %52 : vector<256x84xf32>
    %cst_53 = arith.constant 5.000000e-01 : f32
    %54 = vector.broadcast %cst_53 : f32 to vector<256x84xf32>
    %55 = arith.mulf %54, %53 : vector<256x84xf32>
    %56 = arith.truncf %55 : vector<256x84xf32> to vector<256x84xbf16>
    %c1_54 = arith.constant 1 : index
    %c0_55 = arith.constant 0 : index
    %c0_56 = arith.constant 0 : index
    %57 = vector.load %arg5[%c1_54, %c0_55, %c0_56] : memref<5x84x160xbf16, #tpu.memory_space<vmem>>, vector<1x84x160xbf16>
    %58 = vector.shape_cast %57 : vector<1x84x160xbf16> to vector<84x160xbf16>
    %cst_57 = arith.constant dense<0.000000e+00> : vector<256x160xf32>
    %59 = tpu.matmul %56, %58, %cst_57 {dimension_numbers = #tpu.dot_dimension_numbers<[1], [0], [0], [1], [0, 0, 1, 1], [], []>} : vector<256x84xbf16>, vector<84x160xbf16>, vector<256x160xf32> -> vector<256x160xf32>
    %60 = arith.addf %50, %59 : vector<256x160xf32>
    %c4_58 = arith.constant 4 : index
    %c0_59 = arith.constant 0 : index
    %61 = tpu.strided_load %arg16[%c4_58, %c0_59] {strides = array<i32: 2, 1>} : memref<520x84xf32, #tpu.memory_space<vmem>>, vector<256x84xf32>
    %c5 = arith.constant 5 : index
    %c0_60 = arith.constant 0 : index
    %62 = tpu.strided_load %arg16[%c5, %c0_60] {strides = array<i32: 2, 1>} : memref<520x84xf32, #tpu.memory_space<vmem>>, vector<256x84xf32>
    %63 = arith.addf %61, %62 : vector<256x84xf32>
    %cst_61 = arith.constant 5.000000e-01 : f32
    %64 = vector.broadcast %cst_61 : f32 to vector<256x84xf32>
    %65 = arith.mulf %64, %63 : vector<256x84xf32>
    %66 = arith.truncf %65 : vector<256x84xf32> to vector<256x84xbf16>
    %c2_62 = arith.constant 2 : index
    %c0_63 = arith.constant 0 : index
    %c0_64 = arith.constant 0 : index
    %67 = vector.load %arg5[%c2_62, %c0_63, %c0_64] : memref<5x84x160xbf16, #tpu.memory_space<vmem>>, vector<1x84x160xbf16>
    %68 = vector.shape_cast %67 : vector<1x84x160xbf16> to vector<84x160xbf16>
    %cst_65 = arith.constant dense<0.000000e+00> : vector<256x160xf32>
    %69 = tpu.matmul %66, %68, %cst_65 {dimension_numbers = #tpu.dot_dimension_numbers<[1], [0], [0], [1], [0, 0, 1, 1], [], []>} : vector<256x84xbf16>, vector<84x160xbf16>, vector<256x160xf32> -> vector<256x160xf32>
    %70 = arith.addf %60, %69 : vector<256x160xf32>
    %c6 = arith.constant 6 : index
    %c0_66 = arith.constant 0 : index
    %71 = tpu.strided_load %arg16[%c6, %c0_66] {strides = array<i32: 2, 1>} : memref<520x84xf32, #tpu.memory_space<vmem>>, vector<256x84xf32>
    %c7 = arith.constant 7 : index
    %c0_67 = arith.constant 0 : index
    %72 = tpu.strided_load %arg16[%c7, %c0_67] {strides = array<i32: 2, 1>} : memref<520x84xf32, #tpu.memory_space<vmem>>, vector<256x84xf32>
    %73 = arith.addf %71, %72 : vector<256x84xf32>
    %cst_68 = arith.constant 5.000000e-01 : f32
    %74 = vector.broadcast %cst_68 : f32 to vector<256x84xf32>
    %75 = arith.mulf %74, %73 : vector<256x84xf32>
    %76 = arith.truncf %75 : vector<256x84xf32> to vector<256x84xbf16>
    %c3_69 = arith.constant 3 : index
    %c0_70 = arith.constant 0 : index
    %c0_71 = arith.constant 0 : index
    %77 = vector.load %arg5[%c3_69, %c0_70, %c0_71] : memref<5x84x160xbf16, #tpu.memory_space<vmem>>, vector<1x84x160xbf16>
    %78 = vector.shape_cast %77 : vector<1x84x160xbf16> to vector<84x160xbf16>
    %cst_72 = arith.constant dense<0.000000e+00> : vector<256x160xf32>
    %79 = tpu.matmul %76, %78, %cst_72 {dimension_numbers = #tpu.dot_dimension_numbers<[1], [0], [0], [1], [0, 0, 1, 1], [], []>} : vector<256x84xbf16>, vector<84x160xbf16>, vector<256x160xf32> -> vector<256x160xf32>
    %80 = arith.addf %70, %79 : vector<256x160xf32>
    %c8 = arith.constant 8 : index
    %c0_73 = arith.constant 0 : index
    %81 = tpu.strided_load %arg16[%c8, %c0_73] {strides = array<i32: 2, 1>} : memref<520x84xf32, #tpu.memory_space<vmem>>, vector<256x84xf32>
    %c9 = arith.constant 9 : index
    %c0_74 = arith.constant 0 : index
    %82 = tpu.strided_load %arg16[%c9, %c0_74] {strides = array<i32: 2, 1>} : memref<520x84xf32, #tpu.memory_space<vmem>>, vector<256x84xf32>
    %83 = arith.addf %81, %82 : vector<256x84xf32>
    %cst_75 = arith.constant 5.000000e-01 : f32
    %84 = vector.broadcast %cst_75 : f32 to vector<256x84xf32>
    %85 = arith.mulf %84, %83 : vector<256x84xf32>
    %86 = arith.truncf %85 : vector<256x84xf32> to vector<256x84xbf16>
    %c4_76 = arith.constant 4 : index
    %c0_77 = arith.constant 0 : index
    %c0_78 = arith.constant 0 : index
    %87 = vector.load %arg5[%c4_76, %c0_77, %c0_78] : memref<5x84x160xbf16, #tpu.memory_space<vmem>>, vector<1x84x160xbf16>
    %88 = vector.shape_cast %87 : vector<1x84x160xbf16> to vector<84x160xbf16>
    %cst_79 = arith.constant dense<0.000000e+00> : vector<256x160xf32>
    %89 = tpu.matmul %86, %88, %cst_79 {dimension_numbers = #tpu.dot_dimension_numbers<[1], [0], [0], [1], [0, 0, 1, 1], [], []>} : vector<256x84xbf16>, vector<84x160xbf16>, vector<256x160xf32> -> vector<256x160xf32>
    %90 = arith.addf %80, %89 : vector<256x160xf32>
    %c0_80 = arith.constant 0 : index
    %c0_81 = arith.constant 0 : index
    %91 = vector.load %arg6[%c0_80, %c0_81] : memref<1x160xf32, #tpu.memory_space<vmem>>, vector<1x160xf32>
    %92 = vector.broadcast %91 : vector<1x160xf32> to vector<256x160xf32>
    %93 = arith.addf %90, %92 : vector<256x160xf32>
    %94 = math.tanh %93 : vector<256x160xf32>
    %c0_82 = arith.constant 0 : index
    %c0_83 = arith.constant 0 : index
    %95 = vector.load %arg7[%c0_82, %c0_83] : memref<160x80xf32, #tpu.memory_space<vmem>>, vector<160x80xf32>
    %cst_84 = arith.constant dense<0.000000e+00> : vector<256x80xf32>
    %96 = tpu.matmul %94, %95, %cst_84 {dimension_numbers = #tpu.dot_dimension_numbers<[1], [0], [0], [1], [0, 0, 1, 1], [], []>} : vector<256x160xf32>, vector<160x80xf32>, vector<256x80xf32> -> vector<256x80xf32>
    %c0_85 = arith.constant 0 : index
    %c0_86 = arith.constant 0 : index
    %97 = vector.load %arg17[%c0_85, %c0_86] : memref<256x80xf32, #tpu.memory_space<vmem>>, vector<256x80xf32>
    tpu.vector_store %arg17[%c0_85, %c0_86], %96 {strides = array<i32>} : memref<256x80xf32, #tpu.memory_space<vmem>>, vector<256x80xf32>,
    %c0_87 = arith.constant 0 : index
    %c0_88 = arith.constant 0 : index
    %98 = tpu.strided_load %arg17[%c0_87, %c0_88] {strides = array<i32: 16, 1>} : memref<256x80xf32, #tpu.memory_space<vmem>>, vector<16x80xf32>
    %c1_89 = arith.constant 1 : index
    %c0_90 = arith.constant 0 : index
    %99 = tpu.strided_load %arg17[%c1_89, %c0_90] {strides = array<i32: 16, 1>} : memref<256x80xf32, #tpu.memory_space<vmem>>, vector<16x80xf32>
    %100 = arith.addf %98, %99 : vector<16x80xf32>
    %cst_91 = arith.constant 5.000000e-01 : f32
    %101 = vector.broadcast %cst_91 : f32 to vector<16x80xf32>
    %102 = arith.mulf %101, %100 : vector<16x80xf32>
    %103 = arith.truncf %102 : vector<16x80xf32> to vector<16x80xbf16>
    %c0_92 = arith.constant 0 : index
    %c0_93 = arith.constant 0 : index
    %c0_94 = arith.constant 0 : index
    %104 = vector.load %arg8[%c0_92, %c0_93, %c0_94] : memref<5x80x120xbf16, #tpu.memory_space<vmem>>, vector<1x80x120xbf16>
    %105 = vector.shape_cast %104 : vector<1x80x120xbf16> to vector<80x120xbf16>
    %cst_95 = arith.constant dense<0.000000e+00> : vector<16x120xf32>
    %106 = tpu.matmul %103, %105, %cst_95 {dimension_numbers = #tpu.dot_dimension_numbers<[1], [0], [0], [1], [0, 0, 1, 1], [], []>} : vector<16x80xbf16>, vector<80x120xbf16>, vector<16x120xf32> -> vector<16x120xf32>
    %c2_96 = arith.constant 2 : index
    %c0_97 = arith.constant 0 : index
    %107 = tpu.strided_load %arg17[%c2_96, %c0_97] {strides = array<i32: 16, 1>} : memref<256x80xf32, #tpu.memory_space<vmem>>, vector<16x80xf32>
    %c3_98 = arith.constant 3 : index
    %c0_99 = arith.constant 0 : index
    %108 = tpu.strided_load %arg17[%c3_98, %c0_99] {strides = array<i32: 16, 1>} : memref<256x80xf32, #tpu.memory_space<vmem>>, vector<16x80xf32>
    %109 = arith.addf %107, %108 : vector<16x80xf32>
    %cst_100 = arith.constant 5.000000e-01 : f32
    %110 = vector.broadcast %cst_100 : f32 to vector<16x80xf32>
    %111 = arith.mulf %110, %109 : vector<16x80xf32>
    %112 = arith.truncf %111 : vector<16x80xf32> to vector<16x80xbf16>
    %c1_101 = arith.constant 1 : index
    %c0_102 = arith.constant 0 : index
    %c0_103 = arith.constant 0 : index
    %113 = vector.load %arg8[%c1_101, %c0_102, %c0_103] : memref<5x80x120xbf16, #tpu.memory_space<vmem>>, vector<1x80x120xbf16>
    %114 = vector.shape_cast %113 : vector<1x80x120xbf16> to vector<80x120xbf16>
    %cst_104 = arith.constant dense<0.000000e+00> : vector<16x120xf32>
    %115 = tpu.matmul %112, %114, %cst_104 {dimension_numbers = #tpu.dot_dimension_numbers<[1], [0], [0], [1], [0, 0, 1, 1], [], []>} : vector<16x80xbf16>, vector<80x120xbf16>, vector<16x120xf32> -> vector<16x120xf32>
    %116 = arith.addf %106, %115 : vector<16x120xf32>
    %c4_105 = arith.constant 4 : index
    %c0_106 = arith.constant 0 : index
    %117 = tpu.strided_load %arg17[%c4_105, %c0_106] {strides = array<i32: 16, 1>} : memref<256x80xf32, #tpu.memory_space<vmem>>, vector<16x80xf32>
    %c5_107 = arith.constant 5 : index
    %c0_108 = arith.constant 0 : index
    %118 = tpu.strided_load %arg17[%c5_107, %c0_108] {strides = array<i32: 16, 1>} : memref<256x80xf32, #tpu.memory_space<vmem>>, vector<16x80xf32>
    %119 = arith.addf %117, %118 : vector<16x80xf32>
    %cst_109 = arith.constant 5.000000e-01 : f32
    %120 = vector.broadcast %cst_109 : f32 to vector<16x80xf32>
    %121 = arith.mulf %120, %119 : vector<16x80xf32>
    %122 = arith.truncf %121 : vector<16x80xf32> to vector<16x80xbf16>
    %c2_110 = arith.constant 2 : index
    %c0_111 = arith.constant 0 : index
    %c0_112 = arith.constant 0 : index
    %123 = vector.load %arg8[%c2_110, %c0_111, %c0_112] : memref<5x80x120xbf16, #tpu.memory_space<vmem>>, vector<1x80x120xbf16>
    %124 = vector.shape_cast %123 : vector<1x80x120xbf16> to vector<80x120xbf16>
    %cst_113 = arith.constant dense<0.000000e+00> : vector<16x120xf32>
    %125 = tpu.matmul %122, %124, %cst_113 {dimension_numbers = #tpu.dot_dimension_numbers<[1], [0], [0], [1], [0, 0, 1, 1], [], []>} : vector<16x80xbf16>, vector<80x120xbf16>, vector<16x120xf32> -> vector<16x120xf32>
    %126 = arith.addf %116, %125 : vector<16x120xf32>
    %c6_114 = arith.constant 6 : index
    %c0_115 = arith.constant 0 : index
    %127 = tpu.strided_load %arg17[%c6_114, %c0_115] {strides = array<i32: 16, 1>} : memref<256x80xf32, #tpu.memory_space<vmem>>, vector<16x80xf32>
    %c7_116 = arith.constant 7 : index
    %c0_117 = arith.constant 0 : index
    %128 = tpu.strided_load %arg17[%c7_116, %c0_117] {strides = array<i32: 16, 1>} : memref<256x80xf32, #tpu.memory_space<vmem>>, vector<16x80xf32>
    %129 = arith.addf %127, %128 : vector<16x80xf32>
    %cst_118 = arith.constant 5.000000e-01 : f32
    %130 = vector.broadcast %cst_118 : f32 to vector<16x80xf32>
    %131 = arith.mulf %130, %129 : vector<16x80xf32>
    %132 = arith.truncf %131 : vector<16x80xf32> to vector<16x80xbf16>
    %c3_119 = arith.constant 3 : index
    %c0_120 = arith.constant 0 : index
    %c0_121 = arith.constant 0 : index
    %133 = vector.load %arg8[%c3_119, %c0_120, %c0_121] : memref<5x80x120xbf16, #tpu.memory_space<vmem>>, vector<1x80x120xbf16>
    %134 = vector.shape_cast %133 : vector<1x80x120xbf16> to vector<80x120xbf16>
    %cst_122 = arith.constant dense<0.000000e+00> : vector<16x120xf32>
    %135 = tpu.matmul %132, %134, %cst_122 {dimension_numbers = #tpu.dot_dimension_numbers<[1], [0], [0], [1], [0, 0, 1, 1], [], []>} : vector<16x80xbf16>, vector<80x120xbf16>, vector<16x120xf32> -> vector<16x120xf32>
    %136 = arith.addf %126, %135 : vector<16x120xf32>
    %c8_123 = arith.constant 8 : index
    %c0_124 = arith.constant 0 : index
    %137 = tpu.strided_load %arg17[%c8_123, %c0_124] {strides = array<i32: 16, 1>} : memref<256x80xf32, #tpu.memory_space<vmem>>, vector<16x80xf32>
    %c9_125 = arith.constant 9 : index
    %c0_126 = arith.constant 0 : index
    %138 = tpu.strided_load %arg17[%c9_125, %c0_126] {strides = array<i32: 16, 1>} : memref<256x80xf32, #tpu.memory_space<vmem>>, vector<16x80xf32>
    %139 = arith.addf %137, %138 : vector<16x80xf32>
    %cst_127 = arith.constant 5.000000e-01 : f32
    %140 = vector.broadcast %cst_127 : f32 to vector<16x80xf32>
    %141 = arith.mulf %140, %139 : vector<16x80xf32>
    %142 = arith.truncf %141 : vector<16x80xf32> to vector<16x80xbf16>
    %c4_128 = arith.constant 4 : index
    %c0_129 = arith.constant 0 : index
    %c0_130 = arith.constant 0 : index
    %143 = vector.load %arg8[%c4_128, %c0_129, %c0_130] : memref<5x80x120xbf16, #tpu.memory_space<vmem>>, vector<1x80x120xbf16>
    %144 = vector.shape_cast %143 : vector<1x80x120xbf16> to vector<80x120xbf16>
    %cst_131 = arith.constant dense<0.000000e+00> : vector<16x120xf32>
    %145 = tpu.matmul %142, %144, %cst_131 {dimension_numbers = #tpu.dot_dimension_numbers<[1], [0], [0], [1], [0, 0, 1, 1], [], []>} : vector<16x80xbf16>, vector<80x120xbf16>, vector<16x120xf32> -> vector<16x120xf32>
    %146 = arith.addf %136, %145 : vector<16x120xf32>
    %c0_132 = arith.constant 0 : index
    %c0_133 = arith.constant 0 : index
    %147 = vector.load %arg9[%c0_132, %c0_133] : memref<1x120xf32, #tpu.memory_space<vmem>>, vector<1x120xf32>
    %148 = vector.broadcast %147 : vector<1x120xf32> to vector<16x120xf32>
    %149 = arith.addf %146, %148 : vector<16x120xf32>
    %150 = arith.truncf %149 : vector<16x120xf32> to vector<16x120xbf16>
    %c0_134 = arith.constant 0 : index
    %c0_135 = arith.constant 0 : index
    %151 = vector.load %arg10[%c0_134, %c0_135] : memref<120x84xbf16, #tpu.memory_space<vmem>>, vector<120x84xbf16>
    %cst_136 = arith.constant dense<0.000000e+00> : vector<16x84xf32>
    %152 = tpu.matmul %150, %151, %cst_136 {dimension_numbers = #tpu.dot_dimension_numbers<[1], [0], [0], [1], [0, 0, 1, 1], [], []>} : vector<16x120xbf16>, vector<120x84xbf16>, vector<16x84xf32> -> vector<16x84xf32>
    %c0_137 = arith.constant 0 : index
    %c0_138 = arith.constant 0 : index
    %153 = vector.load %arg11[%c0_137, %c0_138] : memref<1x84xf32, #tpu.memory_space<vmem>>, vector<1x84xf32>
    %154 = vector.broadcast %153 : vector<1x84xf32> to vector<16x84xf32>
    %155 = arith.addf %152, %154 : vector<16x84xf32>
    %156 = math.tanh %155 : vector<16x84xf32>
    %157 = arith.truncf %156 : vector<16x84xf32> to vector<16x84xbf16>
    %c0_139 = arith.constant 0 : index
    %c0_140 = arith.constant 0 : index
    %158 = vector.load %arg12[%c0_139, %c0_140] : memref<84x10xbf16, #tpu.memory_space<vmem>>, vector<84x10xbf16>
    %cst_141 = arith.constant dense<0.000000e+00> : vector<16x10xf32>
    %159 = tpu.matmul %157, %158, %cst_141 {dimension_numbers = #tpu.dot_dimension_numbers<[1], [0], [0], [1], [0, 0, 1, 1], [], []>} : vector<16x84xbf16>, vector<84x10xbf16>, vector<16x10xf32> -> vector<16x10xf32>
    %c0_142 = arith.constant 0 : index
    %c0_143 = arith.constant 0 : index
    %160 = vector.load %arg13[%c0_142, %c0_143] : memref<1x10xf32, #tpu.memory_space<vmem>>, vector<1x10xf32>
    %161 = vector.broadcast %160 : vector<1x10xf32> to vector<16x10xf32>
    %162 = arith.addf %159, %161 : vector<16x10xf32>
    %cst_144 = arith.constant dense<0xFF800000> : vector<16xf32>
    %163 = vector.multi_reduction <maximumf>, %162, %cst_144 [1] : vector<16x10xf32> to vector<16xf32>
    %164 = vector.shape_cast %163 : vector<16xf32> to vector<16x1xf32>
    %165 = vector.broadcast %164 : vector<16x1xf32> to vector<16x10xf32>
    %166 = arith.subf %162, %165 : vector<16x10xf32>
    %167 = math.exp %166 : vector<16x10xf32>
    %cst_145 = arith.constant dense<0.000000e+00> : vector<16xf32>
    %168 = vector.multi_reduction <add>, %167, %cst_145 [1] : vector<16x10xf32> to vector<16xf32>
    %169 = vector.shape_cast %168 : vector<16xf32> to vector<16x1xf32>
    %170 = math.log %169 : vector<16x1xf32>
    %171 = arith.addf %164, %170 : vector<16x1xf32>
    %172 = vector.broadcast %171 : vector<16x1xf32> to vector<16x10xf32>
    %173 = arith.subf %162, %172 : vector<16x10xf32>
    %c0_146 = arith.constant 0 : index
    %c0_147 = arith.constant 0 : index
    %174 = vector.load %arg14[%c0_146, %c0_147] : memref<16x10xf32, #tpu.memory_space<vmem>>, vector<16x10xf32>
    tpu.vector_store %arg14[%c0_146, %c0_147], %173 {strides = array<i32>} : memref<16x10xf32, #tpu.memory_space<vmem>>, vector<16x10xf32>,
    return
  }
  func.func @transform_0(%arg0: i32) -> (i32, i32) {
    %c0_i32 = arith.constant 0 : i32
    %c0_i32_0 = arith.constant 0 : i32
    return %arg0, %c0_i32 : i32, i32
  }
  func.func @transform_1(%arg0: i32) -> (i32, i32, i32) {
    %c0_i32 = arith.constant 0 : i32
    %c0_i32_0 = arith.constant 0 : i32
    %c0_i32_1 = arith.constant 0 : i32
    %c0_i32_2 = arith.constant 0 : i32
    return %c0_i32, %c0_i32_0, %c0_i32_1 : i32, i32, i32
  }
  func.func @transform_2(%arg0: i32) -> (i32, i32) {
    %c0_i32 = arith.constant 0 : i32
    %c0_i32_0 = arith.constant 0 : i32
    %c0_i32_1 = arith.constant 0 : i32
    return %c0_i32, %c0_i32_0 : i32, i32
  }
  func.func @transform_3(%arg0: i32) -> (i32, i32) {
    %c0_i32 = arith.constant 0 : i32
    %c0_i32_0 = arith.constant 0 : i32
    %c0_i32_1 = arith.constant 0 : i32
    return %c0_i32, %c0_i32_0 : i32, i32
  }
  func.func @transform_4(%arg0: i32) -> (i32, i32, i32) {
    %c0_i32 = arith.constant 0 : i32
    %c0_i32_0 = arith.constant 0 : i32
    %c0_i32_1 = arith.constant 0 : i32
    %c0_i32_2 = arith.constant 0 : i32
    return %c0_i32, %c0_i32_0, %c0_i32_1 : i32, i32, i32
  }
  func.func @transform_5(%arg0: i32) -> (i32, i32) {
    %c0_i32 = arith.constant 0 : i32
    %c0_i32_0 = arith.constant 0 : i32
    %c0_i32_1 = arith.constant 0 : i32
    return %c0_i32, %c0_i32_0 : i32, i32
  }
  func.func @transform_6(%arg0: i32) -> (i32, i32) {
    %c0_i32 = arith.constant 0 : i32
    %c0_i32_0 = arith.constant 0 : i32
    %c0_i32_1 = arith.constant 0 : i32
    return %c0_i32, %c0_i32_0 : i32, i32
  }
  func.func @transform_7(%arg0: i32) -> (i32, i32, i32) {
    %c0_i32 = arith.constant 0 : i32
    %c0_i32_0 = arith.constant 0 : i32
    %c0_i32_1 = arith.constant 0 : i32
    %c0_i32_2 = arith.constant 0 : i32
    return %c0_i32, %c0_i32_0, %c0_i32_1 : i32, i32, i32
  }
  func.func @transform_8(%arg0: i32) -> (i32, i32) {
    %c0_i32 = arith.constant 0 : i32
    %c0_i32_0 = arith.constant 0 : i32
    %c0_i32_1 = arith.constant 0 : i32
    return %c0_i32, %c0_i32_0 : i32, i32
  }
  func.func @transform_9(%arg0: i32) -> (i32, i32) {
    %c0_i32 = arith.constant 0 : i32
    %c0_i32_0 = arith.constant 0 : i32
    %c0_i32_1 = arith.constant 0 : i32
    return %c0_i32, %c0_i32_0 : i32, i32
  }
  func.func @transform_10(%arg0: i32) -> (i32, i32) {
    %c0_i32 = arith.constant 0 : i32
    %c0_i32_0 = arith.constant 0 : i32
    %c0_i32_1 = arith.constant 0 : i32
    return %c0_i32, %c0_i32_0 : i32, i32
  }
  func.func @transform_11(%arg0: i32) -> (i32, i32) {
    %c0_i32 = arith.constant 0 : i32
    %c0_i32_0 = arith.constant 0 : i32
    %c0_i32_1 = arith.constant 0 : i32
    return %c0_i32, %c0_i32_0 : i32, i32
  }
  func.func @transform_12(%arg0: i32) -> (i32, i32) {
    %c0_i32 = arith.constant 0 : i32
    %c0_i32_0 = arith.constant 0 : i32
    %c0_i32_1 = arith.constant 0 : i32
    return %c0_i32, %c0_i32_0 : i32, i32
  }
  func.func @transform_13(%arg0: i32) -> (i32, i32) {
    %c0_i32 = arith.constant 0 : i32
    %c0_i32_0 = arith.constant 0 : i32
    return %arg0, %c0_i32 : i32, i32
  }
}

</mosaic_0001>

<bundles_post_ra>
// kernel: lenet_forward.1
= control target key start
LH: loop header
LB: loop body
LE: loop exit
PB: predicated region body
PF: predicated region fallthrough
CT: control target
= control target key end

     0   :  { %s10382_s25 = smov 0   ;;  %s13786_s0 = inlined_call_operand.vmem [shape: f32[1024,28], index: 0, kind: input, shape index: {}]   ;;  %s13787_s1 = inlined_call_operand.vmem [shape: bf16[5,28,168], index: 1, kind: input, shape index: {}]   ;;  %s13788_s2 = inlined_call_operand.vmem [shape: f32[1,168], index: 2, kind: input, shape index: {}]   ;;  %s13789_s3 = inlined_call_operand.vmem [shape: f32[168,84], index: 3, kind: input, shape index: {}]   ;;  %s13790_s4 = inlined_call_operand.vmem [shape: bf16[5,84,160], index: 4, kind: input, shape index: {}]   ;;  %s13791_s5 = inlined_call_operand.vmem [shape: f32[1,160], index: 5, kind: input, shape index: {}]   ;;  %s13792_s6 = inlined_call_operand.vmem [shape: f32[160,80], index: 6, kind: input, shape index: {}]   ;;  %s13793_s7 = inlined_call_operand.vmem [shape: bf16[5,80,120], index: 7, kind: input, shape index: {}]   ;;  %s13794_s8 = inlined_call_operand.vmem [shape: f32[1,120], index: 8, kind: input, shape index: {}]   ;;  %s13795_s9 = inlined_call_operand.vmem [shape: bf16[120,84], index: 9, kind: input, shape index: {}]   ;;  %s13796_s10 = inlined_call_operand.vmem [shape: f32[1,84], index: 10, kind: input, shape index: {}]   ;;  %s13797_s11 = inlined_call_operand.vmem [shape: bf16[84,10], index: 11, kind: input, shape index: {}]   ;;  %s13798_s12 = inlined_call_operand.vmem [shape: f32[1,10], index: 12, kind: input, shape index: {}]   ;;  %s13799_s13 = inlined_call_operand.vmem [shape: f32[32,10], index: 13, kind: output, shape index: {}]  }
   0x1 LB: > { %s9004_s26 = sadd.s32 4294967295, %s10307_s25   ;;  %p9008_p0 = scmp.ge.s32.totalorder %s10307_s25, 1  ;;  %s10307_s25 = sphi %s10382_s25, %s23_s25  }
   0x2   : > { %p388_p1 = scmp.lt.s32.totalorder %s10307_s25, 3 }
   0x4   : > { %p389_p2 = pnand %p9008_p0, %p388_p1 }
   0x6   : > { %392 = sbr.rel (%p389_p2) target bundleno = 2873 (0xb39), region = 72 }
   0xb   : > { %v9753_v0 = vld [vmem:[%s13787_s1 + $0x34] ss:$8 sps:$4 sm:$0x3f]   ;;  %vm890_vm0 = vcmask 1045504   ;;  %v9759_v5 = vld [vmem:[%s13787_s1 + $0x24] ss:$8 sps:$4 sm:$0xff]  }
   0xc   : > { %v9755_v1 = vld [vmem:[%s13787_s1 + $0x30] ss:$8 sps:$4 sm:$0x3f]   ;;  %9021 = vmatprep.subr.msk.bf16.mxu0 %vm890_vm0, %v9753_v0  ;;  %v9756_v2 = vld [vmem:[%s13787_s1 + $0x14] ss:$8 sps:$4 sm:$0x3f]  }
   0xd   : > { %v892_v3 = vsel %vm890_vm0, %v9755_v1, 0  ;;  %v9758_v4 = vld [vmem:[%s13787_s1 + $0x10] ss:$8 sps:$4 sm:$0x3f]   ;;  %9058 = vmatprep.subr.msk.bf16.mxu1 %vm890_vm0, %v9756_v2  ;;  %v9761_v6 = vld [vmem:[%s13787_s1 + $0x20] ss:$8 sps:$4 sm:$0xff]  }
   0xe   : > { %910 = vmatpush1.bf16.msra.mxu0 %v892_v3  ;;  %s9009_s22 = sshll.u32 %s9004_s26, 6  ;;  %v1365_v7 = vsel %vm890_vm0, %v9758_v4, 0  ;;  %v9762_v8 = vld [vmem:[%s13787_s1 + $0x4] ss:$8 sps:$4 sm:$0xff]   ;;  %v13802_v9 = vmov 0   ;;  %vm509_vm1 = vcmask 228352  }
   0xf   : > { %911 = vmatprep.subr.bf16.mxu0 %v9759_v5  ;;  %929 = vmatprep.mubr.bf16.mxu0 %v13802_v9  ;;  %v9764_v10 = vld [vmem:[%s13787_s1] ss:$8 sps:$4 sm:$0xff]   ;;  %v9765_v11 = vld [vmem:[%s13787_s1 + $0x54] ss:$8 sps:$4 sm:$0x3f]   ;;  %p433_p3 = scmp.lt.s32.totalorder %s9009_s22, 127 }
  0x10   : > { %1383 = vmatpush1.bf16.msra.mxu1 %v1365_v7  ;;  %1402 = vmatprep.mubr.bf16.mxu1 %v13802_v9  ;;  %v9093_v12 = vld [vmem:[%s13787_s1 + $0x50] sm:$0xff]  ;;  %v9094_v13 = vld [vmem:[%s13787_s1 + $0x58] sm:$0x33]  ;;  %v9767_v5 = vld [vmem:[%s13787_s1 + $0x40] ss:$8 sps:$4 sm:$0xff]   ;;  %vm5303_vm2 = vcmask 1041408  }
  0x11   : > { %1384 = vmatprep.subr.bf16.mxu1 %v9762_v8  ;;  %s14467_s22 = smov (!%p433_p3, %s9009_s22), 127  ;;  %v9097_v29 = vcombine.low %v9093_v12, %v9094_v13  ;;  %v9769_v8 = vld [vmem:[%s13787_s1 + $0x44] ss:$8 sps:$4 sm:$0xff]   ;;  %vm4118_vm3 = vcmask 326656   ;;  %vm4696_vm4 = vcmask 687104   ;;  %vm7723_vm5 = vcmask 261120  }
  0x12   : > { %912 = vmatpush1.bf16.msra.mxu0 %v9761_v6  ;;  %s9010_s14 = sshll.u32 %s14467_s22, 3  ;;  %vm8045_vm6 = vcmask 654336   ;;  %vm10311_vm7 = vmmov 0   ;;  %vm8773_vm8 = vcmask 1043456   ;;  %vm8769_vm9 = vcmask 982016   ;;  %s9011_s22 = sshll.u32 %s9004_s26, 1 }
  0x13   : > { %9099 = vmatprep.subr.msk.bf16.mxu0 %vm890_vm0, %v9765_v11  ;;  %s10429_s17 = scalar_lea.vmem %s13786_s0, %s9010_s14  ;;  %v1939_v44 = vsel %vm890_vm0, %v9097_v29, 0  ;;  %vm8919_vm10 = vcmask 80896   ;;  %p439_p4 = scmp.lt.s32.totalorder %s9011_s22, 3 }
  0x14   : > { %1385 = vmatpush1.bf16.msra.mxu1 %v9764_v10  ;;  %v445_v14 = vld [vmem:[%s10429_s17] sm:$0xff]  ;;  %v446_v15 = vld [vmem:[%s10429_s17 + $0x8] sm:$0xff]  ;;  %v447_v16 = vld [vmem:[%s10429_s17 + $0x10] sm:$0xff] }
  0x15   : > { %510 = vst.msk [vmem:[#allocation2] sm:$0xff] %vm509_vm1, %v445_v14  ;;  %511 = vst.msk [vmem:[#allocation2 + $0x8] sm:$0xff] %vm509_vm1, %v446_v15  ;;  %v448_v17 = vld [vmem:[%s10429_s17 + $0x18] sm:$0xff]  ;;  %v449_v18 = vld [vmem:[%s10429_s17 + $0x20] sm:$0xff]  ;;  %s14469_s22 = smov (!%p439_p4, %s9011_s22), 3 }
  0x16   : > { %512 = vst.msk [vmem:[#allocation2 + $0x10] sm:$0xff] %vm509_vm1, %v447_v16  ;;  %v450_v19 = vld [vmem:[%s10429_s17 + $0x28] sm:$0xff]  ;;  %513 = vst.msk [vmem:[#allocation2 + $0x18] sm:$0xff] %vm509_vm1, %v448_v17  ;;  %v451_v20 = vld [vmem:[%s10429_s17 + $0x30] sm:$0xff]  ;;  %s9012_s23 = sshll.u32 %s14469_s22, 3 }
  0x17   : > { %514 = vst.msk [vmem:[#allocation2 + $0x20] sm:$0xff] %vm509_vm1, %v449_v18  ;;  %515 = vst.msk [vmem:[#allocation2 + $0x28] sm:$0xff] %vm509_vm1, %v450_v19  ;;  %v452_v21 = vld [vmem:[%s10429_s17 + $0x38] sm:$0xff]  ;;  %v453_v22 = vld [vmem:[%s10429_s17 + $0x40] sm:$0xff]  ;;  %s442_s28 = scalar_lea.vmem %s13799_s13, %s9012_s23 }
  0x18   : > { %516 = vst.msk [vmem:[#allocation2 + $0x30] sm:$0xff] %vm509_vm1, %v451_v20  ;;  %517 = vst.msk [vmem:[#allocation2 + $0x38] sm:$0xff] %vm509_vm1, %v452_v21  ;;  %v454_v23 = vld [vmem:[%s10429_s17 + $0x48] sm:$0xff]  ;;  %v455_v24 = vld [vmem:[%s10429_s17 + $0x50] sm:$0xff] }
  0x19   : > { %518 = vst.msk [vmem:[#allocation2 + $0x40] sm:$0xff] %vm509_vm1, %v453_v22  ;;  %v456_v25 = vld [vmem:[%s10429_s17 + $0x58] sm:$0xff]  ;;  %519 = vst.msk [vmem:[#allocation2 + $0x48] sm:$0xff] %vm509_vm1, %v454_v23  ;;  %v457_v26 = vld [vmem:[%s10429_s17 + $0x60] sm:$0xff] }
  0x1a   : > { %520 = vst.msk [vmem:[#allocation2 + $0x50] sm:$0xff] %vm509_vm1, %v455_v24  ;;  %521 = vst.msk [vmem:[#allocation2 + $0x58] sm:$0xff] %vm509_vm1, %v456_v25  ;;  %v458_v27 = vld [vmem:[%s10429_s17 + $0x68] sm:$0xff]  ;;  %v459_v28 = vld [vmem:[%s10429_s17 + $0x70] sm:$0xff] }
  0x1b   : > { %522 = vst.msk [vmem:[#allocation2 + $0x60] sm:$0xff] %vm509_vm1, %v457_v26  ;;  %523 = vst.msk [vmem:[#allocation2 + $0x68] sm:$0xff] %vm509_vm1, %v458_v27  ;;  %v460_v30 = vld [vmem:[%s10429_s17 + $0x78] sm:$0xff]  ;;  %v461_v31 = vld [vmem:[%s10429_s17 + $0x80] sm:$0xff] }
  0x1c   : > { %524 = vst.msk [vmem:[#allocation2 + $0x70] sm:$0xff] %vm509_vm1, %v459_v28  ;;  %v462_v32 = vld [vmem:[%s10429_s17 + $0x88] sm:$0xff]  ;;  %525 = vst.msk [vmem:[#allocation2 + $0x78] sm:$0xff] %vm509_vm1, %v460_v30  ;;  %v463_v33 = vld [vmem:[%s10429_s17 + $0x90] sm:$0xff] }
  0x1d   : > { %526 = vst.msk [vmem:[#allocation2 + $0x80] sm:$0xff] %vm509_vm1, %v461_v31  ;;  %527 = vst.msk [vmem:[#allocation2 + $0x88] sm:$0xff] %vm509_vm1, %v462_v32  ;;  %v464_v34 = vld [vmem:[%s10429_s17 + $0x98] sm:$0xff]  ;;  %v465_v35 = vld [vmem:[%s10429_s17 + $0xa0] sm:$0xff] }
  0x1e   : > { %528 = vst.msk [vmem:[#allocation2 + $0x90] sm:$0xff] %vm509_vm1, %v463_v33  ;;  %529 = vst.msk [vmem:[#allocation2 + $0x98] sm:$0xff] %vm509_vm1, %v464_v34  ;;  %v466_v36 = vld [vmem:[%s10429_s17 + $0xa8] sm:$0xff]  ;;  %v467_v37 = vld [vmem:[%s10429_s17 + $0xb0] sm:$0xff] }
  0x1f   : > { %530 = vst.msk [vmem:[#allocation2 + $0xa0] sm:$0xff] %vm509_vm1, %v465_v35  ;;  %v468_v38 = vld [vmem:[%s10429_s17 + $0xb8] sm:$0xff]  ;;  %v675_v39 = vld [vmem:[#allocation2 + $0x1] sm:$0xff]  ;;  %v676_v40 = vld [vmem:[#allocation2 + $0x9] sm:$0xff] }
  0x20   : > { %v575_v41 = vld [vmem:[#allocation2] sm:$0xff]  ;;  %531 = vst.msk [vmem:[#allocation2 + $0xa8] sm:$0xff] %vm509_vm1, %v466_v36  ;;  %532 = vst.msk [vmem:[#allocation2 + $0xb0] sm:$0xff] %vm509_vm1, %v467_v37  ;;  %v739_v42 = vpack.c.bf16 %v676_v40, %v675_v39  ;;  %v576_v43 = vld [vmem:[#allocation2 + $0x8] sm:$0xff] }
  0x21   : > { %533 = vst.msk [vmem:[#allocation2 + $0xb8] sm:$0xff] %vm509_vm1, %v468_v38  ;;  %v639_v45 = vpack.c.bf16 %v576_v43, %v575_v41  ;;  %v677_v46 = vld [vmem:[#allocation2 + $0x11] sm:$0xff]  ;;  %v678_v47 = vld [vmem:[#allocation2 + $0x19] sm:$0xff]  ;;  %v679_v52 = vld [vmem:[#allocation2 + $0x21] sm:$0xff] }
  0x22   : > { %9022 = vmatmul.mubr.msk.bf16.vlgmr.msra.gmra.mxu0 %vm509_vm1, %v739_v42  ;;  %v577_v48 = vld [vmem:[#allocation2 + $0x10] sm:$0xff]  ;;  %v578_v49 = vld [vmem:[#allocation2 + $0x18] sm:$0xff]  ;;  %v740_v50 = vpack.c.bf16 %v678_v47, %v677_v46  ;;  %v579_v54 = vld [vmem:[#allocation2 + $0x20] sm:$0xff] }
  0x23   : > { %9059 = vmatmul.mubr.msk.bf16.vlgmr.msra.gmra.mxu1 %vm509_vm1, %v639_v45  ;;  %1957 = vmatpush1.bf16.msra.mxu0 %v1939_v44  ;;  %v640_v51 = vpack.c.bf16 %v578_v49, %v577_v48  ;;  %v680_v53 = vld [vmem:[#allocation2 + $0x29] sm:$0xff]  ;;  %v469_v56 = vld [vmem:[%s10429_s17 + $0xc0] sm:$0xff]  ;;  %v472_v61 = vld [vmem:[%s10429_s17 + $0xd8] sm:$0xff] }
  0x24   : > { %939 = vmatprep.mubr.bf16.mxu0 %v13802_v9  ;;  %1412 = vmatprep.mubr.bf16.mxu1 %v13802_v9  ;;  %v580_v55 = vld [vmem:[#allocation2 + $0x28] sm:$0xff]  ;;  %v741_v57 = vpack.c.bf16 %v680_v53, %v679_v52  ;;  %534 = vst.msk [vmem:[#allocation2 + $0xc0] sm:$0xff] %vm509_vm1, %v469_v56  ;;  %v471_v60 = vld [vmem:[%s10429_s17 + $0xd0] sm:$0xff]  ;;  %v473_v62 = vld [vmem:[%s10429_s17 + $0xe0] sm:$0xff] }
  0x25   : > { %v641_v58 = vpack.c.bf16 %v580_v55, %v579_v54  ;;  %v470_v59 = vld [vmem:[%s10429_s17 + $0xc8] sm:$0xff]  ;;  %536 = vst.msk [vmem:[#allocation2 + $0xd0] sm:$0xff] %vm509_vm1, %v471_v60  ;;  %537 = vst.msk [vmem:[#allocation2 + $0xd8] sm:$0xff] %vm509_vm1, %v472_v61  ;;  %v475_v0 = vld [vmem:[%s10429_s17 + $0xf0] sm:$0xff]  ;;  %1958 = vmatprep.subr.bf16.mxu0 %v9769_v8 }
  0x26   : > { %535 = vst.msk [vmem:[#allocation2 + $0xc8] sm:$0xff] %vm509_vm1, %v470_v59  ;;  %v474_v63 = vld [vmem:[%s10429_s17 + $0xe8] sm:$0xff]  ;;  %v681_v1 = vld [vmem:[#allocation2 + $0x31] sm:$0xff]  ;;  %v682_v2 = vld [vmem:[#allocation2 + $0x39] sm:$0xff] }
  0x27   : > { %538 = vst.msk [vmem:[#allocation2 + $0xe0] sm:$0xff] %vm509_vm1, %v473_v62  ;;  %539 = vst.msk [vmem:[#allocation2 + $0xe8] sm:$0xff] %vm509_vm1, %v474_v63  ;;  %v476_v3 = vld [vmem:[%s10429_s17 + $0xf8] sm:$0xff]  ;;  %v477_v4 = vld [vmem:[%s10429_s17 + $0x100] sm:$0xff]  ;;  %1959 = vmatpush1.bf16.msra.mxu0 %v9767_v5  ;;  %v742_v18 = vpack.c.bf16 %v682_v2, %v681_v1 }
  0x28   : > { %540 = vst.msk [vmem:[#allocation2 + $0xf0] sm:$0xff] %vm509_vm1, %v475_v0  ;;  %v581_v6 = vld [vmem:[#allocation2 + $0x30] sm:$0xff]  ;;  %v582_v7 = vld [vmem:[#allocation2 + $0x38] sm:$0xff]  ;;  %541 = vst.msk [vmem:[#allocation2 + $0xf8] sm:$0xff] %vm509_vm1, %v476_v3 }
  0x29   : > { %542 = vst.msk [vmem:[#allocation2 + $0x100] sm:$0xff] %vm509_vm1, %v477_v4  ;;  %v478_v10 = vld [vmem:[%s10429_s17 + $0x108] sm:$0xff]  ;;  %v479_v11 = vld [vmem:[%s10429_s17 + $0x110] sm:$0xff]  ;;  %v480_v12 = vld [vmem:[%s10429_s17 + $0x118] sm:$0xff]  ;;  %v642_v19 = vpack.c.bf16 %v582_v7, %v581_v6 }
  0x2a   : > { %9023 = vmatmul.mubr.msk.bf16.gmra.mxu0 %vm509_vm1, %v740_v50  ;;  %543 = vst.msk [vmem:[#allocation2 + $0x108] sm:$0xff] %vm509_vm1, %v478_v10  ;;  %544 = vst.msk [vmem:[#allocation2 + $0x110] sm:$0xff] %vm509_vm1, %v479_v11  ;;  %v481_v13 = vld [vmem:[%s10429_s17 + $0x120] sm:$0xff]  ;;  %v482_v14 = vld [vmem:[%s10429_s17 + $0x128] sm:$0xff] }
  0x2b   : > { %9060 = vmatmul.mubr.msk.bf16.gmra.mxu1 %vm509_vm1, %v640_v51  ;;  %949 = vmatprep.mubr.bf16.mxu0 %v13802_v9  ;;  %545 = vst.msk [vmem:[#allocation2 + $0x118] sm:$0xff] %vm509_vm1, %v480_v12  ;;  %546 = vst.msk [vmem:[#allocation2 + $0x120] sm:$0xff] %vm509_vm1, %v481_v13  ;;  %v483_v15 = vld [vmem:[%s10429_s17 + $0x130] sm:$0xff]  ;;  %v484_v16 = vld [vmem:[%s10429_s17 + $0x138] sm:$0xff] }
  0x2c   : > { %1422 = vmatprep.mubr.bf16.mxu1 %v13802_v9  ;;  %547 = vst.msk [vmem:[#allocation2 + $0x128] sm:$0xff] %vm509_vm1, %v482_v14  ;;  %v485_v17 = vld [vmem:[%s10429_s17 + $0x140] sm:$0xff]  ;;  %548 = vst.msk [vmem:[#allocation2 + $0x130] sm:$0xff] %vm509_vm1, %v483_v15  ;;  %v684_v21 = vld [vmem:[#allocation2 + $0x49] sm:$0xff] }
  0x2d   : > { %549 = vst.msk [vmem:[#allocation2 + $0x138] sm:$0xff] %vm509_vm1, %v484_v16  ;;  %550 = vst.msk [vmem:[#allocation2 + $0x140] sm:$0xff] %vm509_vm1, %v485_v17  ;;  %v683_v20 = vld [vmem:[#allocation2 + $0x41] sm:$0xff]  ;;  %v685_v26 = vld [vmem:[#allocation2 + $0x51] sm:$0xff] }
  0x2e   : > { %v583_v22 = vld [vmem:[#allocation2 + $0x40] sm:$0xff]  ;;  %v584_v23 = vld [vmem:[#allocation2 + $0x48] sm:$0xff]  ;;  %v743_v24 = vpack.c.bf16 %v684_v21, %v683_v20  ;;  %v487_v29 = vld [vmem:[%s10429_s17 + $0x150] sm:$0xff] }
  0x2f   : > { %v643_v25 = vpack.c.bf16 %v584_v23, %v583_v22  ;;  %v686_v27 = vld [vmem:[#allocation2 + $0x59] sm:$0xff]  ;;  %v486_v28 = vld [vmem:[%s10429_s17 + $0x148] sm:$0xff]  ;;  %v585_v30 = vld [vmem:[#allocation2 + $0x50] sm:$0xff]  ;;  %552 = vst.msk [vmem:[#allocation2 + $0x150] sm:$0xff] %vm509_vm1, %v487_v29 }
  0x30   : > { %v586_v31 = vld [vmem:[#allocation2 + $0x58] sm:$0xff]  ;;  %551 = vst.msk [vmem:[#allocation2 + $0x148] sm:$0xff] %vm509_vm1, %v486_v28  ;;  %v489_v33 = vld [vmem:[%s10429_s17 + $0x160] sm:$0xff]  ;;  %v744_v34 = vpack.c.bf16 %v686_v27, %v685_v26  ;;  %v490_v36 = vld [vmem:[%s10429_s17 + $0x168] sm:$0xff] }
  0x31   : > { %v488_v32 = vld [vmem:[%s10429_s17 + $0x158] sm:$0xff]  ;;  %554 = vst.msk [vmem:[#allocation2 + $0x160] sm:$0xff] %vm509_vm1, %v489_v33  ;;  %v644_v35 = vpack.c.bf16 %v586_v31, %v585_v30  ;;  %v491_v37 = vld [vmem:[%s10429_s17 + $0x170] sm:$0xff]  ;;  %555 = vst.msk [vmem:[#allocation2 + $0x168] sm:$0xff] %vm509_vm1, %v490_v36 }
  0x32   : > { %9024 = vmatmul.mubr.msk.bf16.gmra.mxu0 %vm509_vm1, %v741_v57  ;;  %553 = vst.msk [vmem:[#allocation2 + $0x158] sm:$0xff] %vm509_vm1, %v488_v32  ;;  %556 = vst.msk [vmem:[#allocation2 + $0x170] sm:$0xff] %vm509_vm1, %v491_v37  ;;  %v687_v38 = vld [vmem:[#allocation2 + $0x61] sm:$0xff]  ;;  %v688_v39 = vld [vmem:[#allocation2 + $0x69] sm:$0xff] }
  0x33   : > { %9061 = vmatmul.mubr.msk.bf16.gmra.mxu1 %vm509_vm1, %v641_v58  ;;  %959 = vmatprep.mubr.bf16.mxu0 %v13802_v9  ;;  %v587_v40 = vld [vmem:[#allocation2 + $0x60] sm:$0xff]  ;;  %v588_v41 = vld [vmem:[#allocation2 + $0x68] sm:$0xff]  ;;  %v745_v42 = vpack.c.bf16 %v688_v39, %v687_v38  ;;  %v689_v44 = vld [vmem:[#allocation2 + $0x71] sm:$0xff] }
  0x34   : > { %1432 = vmatprep.mubr.bf16.mxu1 %v13802_v9  ;;  %v645_v43 = vpack.c.bf16 %v588_v41, %v587_v40  ;;  %v690_v45 = vld [vmem:[#allocation2 + $0x79] sm:$0xff]  ;;  %v589_v48 = vld [vmem:[#allocation2 + $0x70] sm:$0xff]  ;;  %v494_v52 = vld [vmem:[%s10429_s17 + $0x188] sm:$0xff] }
  0x35   : > { %v492_v46 = vld [vmem:[%s10429_s17 + $0x178] sm:$0xff]  ;;  %v493_v47 = vld [vmem:[%s10429_s17 + $0x180] sm:$0xff]  ;;  %v746_v50 = vpack.c.bf16 %v690_v45, %v689_v44  ;;  %v495_v53 = vld [vmem:[%s10429_s17 + $0x190] sm:$0xff]  ;;  %559 = vst.msk [vmem:[#allocation2 + $0x188] sm:$0xff] %vm509_vm1, %v494_v52 }
  0x36   : > { %v590_v49 = vld [vmem:[#allocation2 + $0x78] sm:$0xff]  ;;  %557 = vst.msk [vmem:[#allocation2 + $0x178] sm:$0xff] %vm509_vm1, %v492_v46  ;;  %558 = vst.msk [vmem:[#allocation2 + $0x180] sm:$0xff] %vm509_vm1, %v493_v47  ;;  %v691_v54 = vld [vmem:[#allocation2 + $0x81] sm:$0xff] }
  0x37   : > { %v646_v51 = vpack.c.bf16 %v590_v49, %v589_v48  ;;  %v692_v55 = vld [vmem:[#allocation2 + $0x89] sm:$0xff]  ;;  %560 = vst.msk [vmem:[#allocation2 + $0x190] sm:$0xff] %vm509_vm1, %v495_v53  ;;  %v591_v56 = vld [vmem:[#allocation2 + $0x80] sm:$0xff]  ;;  %v693_v60 = vld [vmem:[#allocation2 + $0x91] sm:$0xff]  ;;  %v13800_v49 = vmov 0.0  }
  0x38   : > { %v592_v57 = vld [vmem:[#allocation2 + $0x88] sm:$0xff]  ;;  %v747_v58 = vpack.c.bf16 %v692_v55, %v691_v54  ;;  %v694_v61 = vld [vmem:[#allocation2 + $0x99] sm:$0xff]  ;;  %v593_v0 = vld [vmem:[#allocation2 + $0x90] sm:$0xff]  ;;  %574 = vst.msk [vmem:[#allocation2 + $0x200] sm:$0xff] %vm509_vm1, %v13800_v49 }
  0x39   : > { %v647_v59 = vpack.c.bf16 %v592_v57, %v591_v56  ;;  %v496_v62 = vld [vmem:[%s10429_s17 + $0x198] sm:$0xff]  ;;  %v497_v63 = vld [vmem:[%s10429_s17 + $0x1a0] sm:$0xff]  ;;  %v748_v2 = vpack.c.bf16 %v694_v61, %v693_v60  ;;  %v498_v4 = vld [vmem:[%s10429_s17 + $0x1a8] sm:$0xff] }
  0x3a   : > { %9025 = vmatmul.mubr.msk.bf16.gmra.mxu0 %vm509_vm1, %v742_v18  ;;  %v594_v1 = vld [vmem:[#allocation2 + $0x98] sm:$0xff]  ;;  %561 = vst.msk [vmem:[#allocation2 + $0x198] sm:$0xff] %vm509_vm1, %v496_v62  ;;  %562 = vst.msk [vmem:[#allocation2 + $0x1a0] sm:$0xff] %vm509_vm1, %v497_v63  ;;  %v499_v5 = vld [vmem:[%s10429_s17 + $0x1b0] sm:$0xff] }
  0x3b   : > { %9062 = vmatmul.mubr.msk.bf16.gmra.mxu1 %vm509_vm1, %v642_v19  ;;  %969 = vmatprep.mubr.bf16.mxu0 %v13802_v9  ;;  %v648_v3 = vpack.c.bf16 %v594_v1, %v593_v0  ;;  %v695_v6 = vld [vmem:[#allocation2 + $0xa1] sm:$0xff]  ;;  %v696_v7 = vld [vmem:[#allocation2 + $0xa9] sm:$0xff]  ;;  %563 = vst.msk [vmem:[#allocation2 + $0x1a8] sm:$0xff] %vm509_vm1, %v498_v4  ;;  %564 = vst.msk [vmem:[#allocation2 + $0x1b0] sm:$0xff] %vm509_vm1, %v499_v5 }
  0x3c   : > { %1442 = vmatprep.mubr.bf16.mxu1 %v13802_v9  ;;  %v595_v8 = vld [vmem:[#allocation2 + $0xa0] sm:$0xff]  ;;  %v596_v10 = vld [vmem:[#allocation2 + $0xa8] sm:$0xff]  ;;  %v749_v11 = vpack.c.bf16 %v696_v7, %v695_v6  ;;  %v697_v13 = vld [vmem:[#allocation2 + $0xb1] sm:$0xff] }
  0x3d   : > { %v649_v12 = vpack.c.bf16 %v596_v10, %v595_v8  ;;  %v698_v14 = vld [vmem:[#allocation2 + $0xb9] sm:$0xff]  ;;  %v597_v17 = vld [vmem:[#allocation2 + $0xb0] sm:$0xff]  ;;  %v502_v22 = vld [vmem:[%s10429_s17 + $0x1c8] sm:$0xff] }
  0x3e   : > { %v500_v15 = vld [vmem:[%s10429_s17 + $0x1b8] sm:$0xff]  ;;  %v501_v16 = vld [vmem:[%s10429_s17 + $0x1c0] sm:$0xff]  ;;  %v750_v19 = vpack.c.bf16 %v698_v14, %v697_v13  ;;  %567 = vst.msk [vmem:[#allocation2 + $0x1c8] sm:$0xff] %vm509_vm1, %v502_v22  ;;  %v700_v26 = vld [vmem:[#allocation2 + $0xc9] sm:$0xff] }
  0x3f   : > { %v598_v18 = vld [vmem:[#allocation2 + $0xb8] sm:$0xff]  ;;  %565 = vst.msk [vmem:[#allocation2 + $0x1b8] sm:$0xff] %vm509_vm1, %v500_v15  ;;  %566 = vst.msk [vmem:[#allocation2 + $0x1c0] sm:$0xff] %vm509_vm1, %v501_v16  ;;  %v599_v27 = vld [vmem:[#allocation2 + $0xc0] sm:$0xff] }
  0x40   : > { %v650_v20 = vpack.c.bf16 %v598_v18, %v597_v17  ;;  %v9770_v21 = vld [vmem:[%s13787_s1 + $0x74] ss:$8 sps:$4 sm:$0x3f]   ;;  %v9772_v23 = vld [vmem:[%s13787_s1 + $0x70] ss:$8 sps:$4 sm:$0x3f]  }
  0x41   : > { %9140 = vmatprep.subr.msk.bf16.mxu1 %vm890_vm0, %v9770_v21  ;;  %v600_v28 = vld [vmem:[#allocation2 + $0xc8] sm:$0xff]  ;;  %v2641_v29 = vsel %vm890_vm0, %v9772_v23, 0  ;;  %v504_v32 = vld [vmem:[%s10429_s17 + $0x1d8] sm:$0xff]  ;;  %v505_v33 = vld [vmem:[%s10429_s17 + $0x1e0] sm:$0xff] }
  0x42   : > { %9026 = vmatmul.mubr.msk.bf16.gmra.mxu0 %vm509_vm1, %v743_v24  ;;  %v503_v24 = vld [vmem:[%s10429_s17 + $0x1d0] sm:$0xff]  ;;  %2659 = vmatpush1.bf16.msra.mxu1 %v2641_v29  ;;  %v651_v31 = vpack.c.bf16 %v600_v28, %v599_v27  ;;  %569 = vst.msk [vmem:[#allocation2 + $0x1d8] sm:$0xff] %vm509_vm1, %v504_v32  ;;  %570 = vst.msk [vmem:[#allocation2 + $0x1e0] sm:$0xff] %vm509_vm1, %v505_v33  ;;  %v602_v37 = vld [vmem:[#allocation2 + $0xd8] sm:$0xff] }
  0x43   : > { %9063 = vmatmul.mubr.msk.bf16.gmra.mxu1 %vm509_vm1, %v643_v25  ;;  %979 = vmatprep.mubr.bf16.mxu0 %v13802_v9  ;;  %v699_v25 = vld [vmem:[#allocation2 + $0xc1] sm:$0xff]  ;;  %568 = vst.msk [vmem:[#allocation2 + $0x1d0] sm:$0xff] %vm509_vm1, %v503_v24  ;;  %v601_v36 = vld [vmem:[#allocation2 + $0xd0] sm:$0xff]  ;;  %v508_v48 = vld [vmem:[%s10429_s17 + $0x1f8] sm:$0xff] }
  0x44   : > { %1452 = vmatprep.mubr.bf16.mxu1 %v13802_v9  ;;  %v751_v30 = vpack.c.bf16 %v700_v26, %v699_v25  ;;  %v652_v39 = vpack.c.bf16 %v602_v37, %v601_v36  ;;  %v506_v40 = vld [vmem:[%s10429_s17 + $0x1e8] sm:$0xff]  ;;  %v507_v41 = vld [vmem:[%s10429_s17 + $0x1f0] sm:$0xff]  ;;  %v603_v44 = vld [vmem:[#allocation2 + $0xe0] sm:$0xff]  ;;  %573 = vst.msk [vmem:[#allocation2 + $0x1f8] sm:$0xff] %vm509_vm1, %v508_v48 }
  0x45   : > { %571 = vst.msk [vmem:[#allocation2 + $0x1e8] sm:$0xff] %vm509_vm1, %v506_v40  ;;  %572 = vst.msk [vmem:[#allocation2 + $0x1f0] sm:$0xff] %vm509_vm1, %v507_v41  ;;  %v604_v45 = vld [vmem:[#allocation2 + $0xe8] sm:$0xff]  ;;  %v605_v52 = vld [vmem:[#allocation2 + $0xf0] sm:$0xff] }
  0x46   : > { %v653_v47 = vpack.c.bf16 %v604_v45, %v603_v44  ;;  %v606_v53 = vld [vmem:[#allocation2 + $0xf8] sm:$0xff]  ;;  %v707_v56 = vld [vmem:[#allocation2 + $0x101] sm:$0xff]  ;;  %v708_v57 = vld [vmem:[#allocation2 + $0x109] sm:$0xff] }
  0x47   : > { %v654_v55 = vpack.c.bf16 %v606_v53, %v605_v52  ;;  %v755_v60 = vpack.c.bf16 %v708_v57, %v707_v56  ;;  %v9775_v62 = vld [vmem:[%s13787_s1 + $0x64] ss:$8 sps:$4 sm:$0xff]   ;;  %v9773_v63 = vld [vmem:[%s13787_s1 + $0x60] ss:$8 sps:$4 sm:$0xff]   ;;  %v709_v1 = vld [vmem:[#allocation2 + $0x111] sm:$0xff] }
  0x48   : > { %2660 = vmatprep.subr.bf16.mxu1 %v9775_v62  ;;  %v9776_v0 = vld [vmem:[%s13787_s1 + $0x94] ss:$8 sps:$4 sm:$0x3f]   ;;  %v711_v7 = vld [vmem:[#allocation2 + $0x121] sm:$0xff]  ;;  %v712_v8 = vld [vmem:[#allocation2 + $0x129] sm:$0xff] }
  0x49   : > { %2661 = vmatpush1.bf16.msra.mxu1 %v9773_v63  ;;  %v610_v4 = vld [vmem:[#allocation2 + $0x118] sm:$0xff]  ;;  %9181 = vmatprep.subr.msk.bf16.mxu0 %vm890_vm0, %v9776_v0  ;;  %v611_v10 = vld [vmem:[#allocation2 + $0x120] sm:$0xff]  ;;  %v613_v16 = vld [vmem:[#allocation2 + $0x130] sm:$0xff] }
  0x4a   : > { %9027 = vmatmul.mubr.msk.bf16.gmra.mxu0 %vm509_vm1, %v744_v34  ;;  %v701_v34 = vld [vmem:[#allocation2 + $0xd1] sm:$0xff]  ;;  %4311 = vmatprep.subr.mxu1 %v13800_v49  ;;  %v714_v15 = vld [vmem:[#allocation2 + $0x139] sm:$0xff]  ;;  %v716_v21 = vld [vmem:[#allocation2 + $0x149] sm:$0xff] }
  0x4b   : > { %9064 = vmatmul.mubr.msk.bf16.gmra.mxu1 %vm509_vm1, %v644_v35  ;;  %989 = vmatprep.mubr.bf16.mxu0 %v13802_v9  ;;  %v702_v35 = vld [vmem:[#allocation2 + $0xd9] sm:$0xff]  ;;  %v713_v14 = vld [vmem:[#allocation2 + $0x131] sm:$0xff]  ;;  %v616_v23 = vld [vmem:[#allocation2 + $0x148] sm:$0xff] }
  0x4c   : > { %1462 = vmatprep.mubr.bf16.mxu1 %v13802_v9  ;;  %v752_v38 = vpack.c.bf16 %v702_v35, %v701_v34  ;;  %v614_v17 = vld [vmem:[#allocation2 + $0x138] sm:$0xff]  ;;  %v758_v18 = vpack.c.bf16 %v714_v15, %v713_v14  ;;  %v615_v22 = vld [vmem:[#allocation2 + $0x140] sm:$0xff]  ;;  %v617_v28 = vld [vmem:[#allocation2 + $0x150] sm:$0xff] }
  0x4d   : > { %v659_v25 = vpack.c.bf16 %v616_v23, %v615_v22  ;;  %v717_v26 = vld [vmem:[#allocation2 + $0x151] sm:$0xff]  ;;  %v718_v27 = vld [vmem:[#allocation2 + $0x159] sm:$0xff]  ;;  %v719_v32 = vld [vmem:[#allocation2 + $0x161] sm:$0xff] }
  0x4e   : > { %v618_v29 = vld [vmem:[#allocation2 + $0x158] sm:$0xff]  ;;  %v720_v33 = vld [vmem:[#allocation2 + $0x169] sm:$0xff]  ;;  %v619_v34 = vld [vmem:[#allocation2 + $0x160] sm:$0xff] }
  0x4f   : > { %v620_v35 = vld [vmem:[#allocation2 + $0x168] sm:$0xff]  ;;  %v761_v36 = vpack.c.bf16 %v720_v33, %v719_v32  ;;  %v621_v40 = vld [vmem:[#allocation2 + $0x170] sm:$0xff]  ;;  %v622_v41 = vld [vmem:[#allocation2 + $0x178] sm:$0xff] }
  0x50   : > { %v661_v37 = vpack.c.bf16 %v620_v35, %v619_v34  ;;  %v723_v44 = vld [vmem:[#allocation2 + $0x181] sm:$0xff]  ;;  %v724_v45 = vld [vmem:[#allocation2 + $0x189] sm:$0xff]  ;;  %v725_v53 = vld [vmem:[#allocation2 + $0x191] sm:$0xff] }
  0x51   : > { %v763_v48 = vpack.c.bf16 %v724_v45, %v723_v44  ;;  %v625_v57 = vld [vmem:[#allocation2 + $0x190] sm:$0xff]  ;;  %v731_v44 = vld [vmem:[#allocation2 + $0x1c1] sm:$0xff] }
  0x52   : > { %9028 = vmatmul.mubr.msk.bf16.gmra.mxu0 %vm509_vm1, %v745_v42  ;;  %v703_v42 = vld [vmem:[#allocation2 + $0xe1] sm:$0xff]  ;;  %v732_v45 = vld [vmem:[#allocation2 + $0x1c9] sm:$0xff] }
  0x53   : > { %9065 = vmatmul.mubr.msk.bf16.gmra.mxu1 %vm509_vm1, %v645_v43  ;;  %999 = vmatprep.mubr.bf16.mxu0 %v13802_v9  ;;  %v704_v43 = vld [vmem:[#allocation2 + $0xe9] sm:$0xff] }
  0x54   : > { %1472 = vmatprep.mubr.bf16.mxu1 %v13802_v9  ;;  %v753_v46 = vpack.c.bf16 %v704_v43, %v703_v42  ;;  %v662_v43 = vpack.c.bf16 %v622_v41, %v621_v40 }
  0x5a   : > { %9029 = vmatmul.mubr.msk.bf16.gmra.mxu0 %vm509_vm1, %v746_v50  ;;  %v705_v50 = vld [vmem:[#allocation2 + $0xf1] sm:$0xff] }
  0x5b   : > { %9066 = vmatmul.mubr.msk.bf16.gmra.mxu1 %vm509_vm1, %v646_v51  ;;  %1009 = vmatprep.mubr.bf16.mxu0 %v13802_v9  ;;  %v706_v51 = vld [vmem:[#allocation2 + $0xf9] sm:$0xff] }
  0x5c   : > { %1482 = vmatprep.mubr.bf16.mxu1 %v13802_v9  ;;  %v754_v54 = vpack.c.bf16 %v706_v51, %v705_v50 }
  0x62   : > { %9030 = vmatmul.mubr.msk.bf16.gmra.mxu0 %vm509_vm1, %v747_v58  ;;  %v607_v58 = vld [vmem:[#allocation2 + $0x100] sm:$0xff] }
  0x63   : > { %9067 = vmatmul.mubr.msk.bf16.gmra.mxu1 %vm509_vm1, %v647_v59  ;;  %1019 = vmatprep.mubr.bf16.mxu0 %v13802_v9  ;;  %v608_v59 = vld [vmem:[#allocation2 + $0x108] sm:$0xff] }
  0x64   : > { %1492 = vmatprep.mubr.bf16.mxu1 %v13802_v9  ;;  %v655_v61 = vpack.c.bf16 %v608_v59, %v607_v58  ;;  %v626_v58 = vld [vmem:[#allocation2 + $0x198] sm:$0xff] }
  0x65   : > { %v664_v0 = vpack.c.bf16 %v626_v58, %v625_v57 }
  0x6a   : > { %9031 = vmatmul.mubr.msk.bf16.gmra.mxu0 %vm509_vm1, %v748_v2  ;;  %v710_v2 = vld [vmem:[#allocation2 + $0x119] sm:$0xff] }
  0x6b   : > { %9068 = vmatmul.mubr.msk.bf16.gmra.mxu1 %vm509_vm1, %v648_v3  ;;  %1029 = vmatprep.mubr.bf16.mxu0 %v13802_v9  ;;  %v609_v3 = vld [vmem:[#allocation2 + $0x110] sm:$0xff]  ;;  %v756_v5 = vpack.c.bf16 %v710_v2, %v709_v1 }
  0x6c   : > { %1502 = vmatprep.mubr.bf16.mxu1 %v13802_v9  ;;  %v656_v6 = vpack.c.bf16 %v610_v4, %v609_v3 }
  0x72   : > { %9032 = vmatmul.mubr.msk.bf16.gmra.mxu0 %vm509_vm1, %v749_v11  ;;  %v612_v11 = vld [vmem:[#allocation2 + $0x128] sm:$0xff] }
  0x73   : > { %9069 = vmatmul.mubr.msk.bf16.gmra.mxu1 %vm509_vm1, %v649_v12  ;;  %1039 = vmatprep.mubr.bf16.mxu0 %v13802_v9  ;;  %v757_v12 = vpack.c.bf16 %v712_v8, %v711_v7  ;;  %v657_v13 = vpack.c.bf16 %v612_v11, %v611_v10  ;;  %v727_v7 = vld [vmem:[#allocation2 + $0x1a1] sm:$0xff]  ;;  %v728_v8 = vld [vmem:[#allocation2 + $0x1a9] sm:$0xff] }
  0x74   : > { %1512 = vmatprep.mubr.bf16.mxu1 %v13802_v9 }
  0x7a   : > { %9033 = vmatmul.mubr.msk.bf16.gmra.mxu0 %vm509_vm1, %v750_v19  ;;  %v658_v19 = vpack.c.bf16 %v614_v17, %v613_v16  ;;  %v765_v17 = vpack.c.bf16 %v728_v8, %v727_v7  ;;  %v633_v7 = vld [vmem:[#allocation2 + $0x1d0] sm:$0xff]  ;;  %v634_v8 = vld [vmem:[#allocation2 + $0x1d8] sm:$0xff] }
  0x7b   : > { %9070 = vmatmul.mubr.msk.bf16.gmra.mxu1 %vm509_vm1, %v650_v20  ;;  %1049 = vmatprep.mubr.bf16.mxu0 %v13802_v9  ;;  %v715_v20 = vld [vmem:[#allocation2 + $0x141] sm:$0xff] }
  0x7c   : > { %1522 = vmatprep.mubr.bf16.mxu1 %v13802_v9  ;;  %v759_v24 = vpack.c.bf16 %v716_v21, %v715_v20 }
  0x82   : > { %9034 = vmatmul.mubr.msk.bf16.gmra.mxu0 %vm509_vm1, %v751_v30  ;;  %v760_v30 = vpack.c.bf16 %v718_v27, %v717_v26  ;;  %v729_v26 = vld [vmem:[#allocation2 + $0x1b1] sm:$0xff]  ;;  %v730_v27 = vld [vmem:[#allocation2 + $0x1b9] sm:$0xff] }
  0x83   : > { %9071 = vmatmul.mubr.msk.bf16.gmra.mxu1 %vm509_vm1, %v651_v31  ;;  %1059 = vmatprep.mubr.bf16.mxu0 %v13802_v9  ;;  %v660_v31 = vpack.c.bf16 %v618_v29, %v617_v28  ;;  %v766_v35 = vpack.c.bf16 %v730_v27, %v729_v26  ;;  %v735_v26 = vld [vmem:[#allocation2 + $0x1e1] sm:$0xff]  ;;  %v736_v27 = vld [vmem:[#allocation2 + $0x1e9] sm:$0xff] }
  0x84   : > { %1532 = vmatprep.mubr.bf16.mxu1 %v13802_v9 }
  0x8a   : > { %9035 = vmatmul.mubr.msk.bf16.gmra.mxu0 %vm509_vm1, %v752_v38  ;;  %v721_v38 = vld [vmem:[#allocation2 + $0x171] sm:$0xff] }
  0x8b   : > { %9072 = vmatmul.mubr.msk.bf16.gmra.mxu1 %vm509_vm1, %v652_v39  ;;  %1069 = vmatprep.mubr.bf16.mxu0 %v13802_v9  ;;  %v722_v39 = vld [vmem:[#allocation2 + $0x179] sm:$0xff] }
  0x8c   : > { %1542 = vmatprep.mubr.bf16.mxu1 %v13802_v9  ;;  %v762_v42 = vpack.c.bf16 %v722_v39, %v721_v38 }
  0x92   : > { %9036 = vmatmul.mubr.msk.bf16.gmra.mxu0 %vm509_vm1, %v753_v46  ;;  %v623_v46 = vld [vmem:[#allocation2 + $0x180] sm:$0xff] }
  0x93   : > { %9073 = vmatmul.mubr.msk.bf16.gmra.mxu1 %vm509_vm1, %v653_v47  ;;  %1079 = vmatprep.mubr.bf16.mxu0 %v13802_v9  ;;  %v624_v47 = vld [vmem:[#allocation2 + $0x188] sm:$0xff] }
  0x94   : > { %1552 = vmatprep.mubr.bf16.mxu1 %v13802_v9  ;;  %v663_v50 = vpack.c.bf16 %v624_v47, %v623_v46 }
  0x9a   : > { %9037 = vmatmul.mubr.msk.bf16.gmra.mxu0 %vm509_vm1, %v754_v54  ;;  %v726_v54 = vld [vmem:[#allocation2 + $0x199] sm:$0xff] }
  0x9b   : > { %9074 = vmatmul.mubr.msk.bf16.gmra.mxu1 %vm509_vm1, %v654_v55  ;;  %1089 = vmatprep.mubr.bf16.mxu0 %v13802_v9  ;;  %v764_v62 = vpack.c.bf16 %v726_v54, %v725_v53  ;;  %v767_v54 = vpack.c.bf16 %v732_v45, %v731_v44 }
  0x9c   : > { %1562 = vmatprep.mubr.bf16.mxu1 %v13802_v9 }
  0xa2   : > { %9038 = vmatmul.mubr.msk.bf16.gmra.mxu0 %vm509_vm1, %v755_v60 }
  0xa3   : > { %9075 = vmatmul.mubr.msk.bf16.gmra.mxu1 %vm509_vm1, %v655_v61  ;;  %1099 = vmatprep.mubr.bf16.mxu0 %v13802_v9 }
  0xa4   : > { %1572 = vmatprep.mubr.bf16.mxu1 %v13802_v9 }
  0xaa   : > { %9039 = vmatmul.mubr.msk.bf16.gmra.mxu0 %vm509_vm1, %v756_v5 }
  0xab   : > { %9076 = vmatmul.mubr.msk.bf16.gmra.mxu1 %vm509_vm1, %v656_v6  ;;  %1109 = vmatprep.mubr.bf16.mxu0 %v13802_v9 }
  0xac   : > { %1582 = vmatprep.mubr.bf16.mxu1 %v13802_v9 }
  0xb2   : > { %9040 = vmatmul.mubr.msk.bf16.gmra.mxu0 %vm509_vm1, %v757_v12  ;;  %v627_v12 = vld [vmem:[#allocation2 + $0x1a0] sm:$0xff] }
  0xb3   : > { %9077 = vmatmul.mubr.msk.bf16.gmra.mxu1 %vm509_vm1, %v657_v13  ;;  %1119 = vmatprep.mubr.bf16.mxu0 %v13802_v9  ;;  %v628_v13 = vld [vmem:[#allocation2 + $0x1a8] sm:$0xff] }
  0xb4   : > { %1592 = vmatprep.mubr.bf16.mxu1 %v13802_v9 }
  0xba   : > { %9041 = vmatmul.mubr.msk.bf16.gmra.mxu0 %vm509_vm1, %v758_v18 }
  0xbb   : > { %9078 = vmatmul.mubr.msk.bf16.gmra.mxu1 %vm509_vm1, %v658_v19  ;;  %1129 = vmatprep.mubr.bf16.mxu0 %v13802_v9  ;;  %v665_v19 = vpack.c.bf16 %v628_v13, %v627_v12 }
  0xbc   : > { %1602 = vmatprep.mubr.bf16.mxu1 %v13802_v9 }
  0xc2   : > { %9042 = vmatmul.mubr.msk.bf16.gmra.mxu0 %vm509_vm1, %v759_v24 }
  0xc3   : > { %9079 = vmatmul.mubr.msk.bf16.gmra.mxu1 %vm509_vm1, %v659_v25  ;;  %1139 = vmatprep.mubr.bf16.mxu0 %v13802_v9 }
  0xc4   : > { %1612 = vmatprep.mubr.bf16.mxu1 %v13802_v9 }
  0xca   : > { %9043 = vmatmul.mubr.msk.bf16.gmra.mxu0 %vm509_vm1, %v760_v30  ;;  %v629_v30 = vld [vmem:[#allocation2 + $0x1b0] sm:$0xff] }
  0xcb   : > { %9080 = vmatmul.mubr.msk.bf16.gmra.mxu1 %vm509_vm1, %v660_v31  ;;  %1149 = vmatprep.mubr.bf16.mxu0 %v13802_v9  ;;  %v630_v31 = vld [vmem:[#allocation2 + $0x1b8] sm:$0xff] }
  0xcc   : > { %1622 = vmatprep.mubr.bf16.mxu1 %v13802_v9 }
  0xd2   : > { %9044 = vmatmul.mubr.msk.bf16.gmra.mxu0 %vm509_vm1, %v761_v36 }
  0xd3   : > { %9081 = vmatmul.mubr.msk.bf16.gmra.mxu1 %vm509_vm1, %v661_v37  ;;  %1159 = vmatprep.mubr.bf16.mxu0 %v13802_v9  ;;  %v666_v37 = vpack.c.bf16 %v630_v31, %v629_v30  ;;  %v635_v31 = vld [vmem:[#allocation2 + $0x1e0] sm:$0xff] }
  0xd4   : > { %1632 = vmatprep.mubr.bf16.mxu1 %v13802_v9 }
  0xda   : > { %9045 = vmatmul.mubr.msk.bf16.gmra.mxu0 %vm509_vm1, %v762_v42 }
  0xdb   : > { %9082 = vmatmul.mubr.msk.bf16.gmra.mxu1 %vm509_vm1, %v662_v43  ;;  %1169 = vmatprep.mubr.bf16.mxu0 %v13802_v9 }
  0xdc   : > { %1642 = vmatprep.mubr.bf16.mxu1 %v13802_v9 }
  0xe2   : > { %v931_v51 = vpop.f32.mrf.mxu0  ;;  %9046 = vmatmul.mubr.msk.bf16.gmra.mxu0 %vm509_vm1, %v763_v48  ;;  %v631_v48 = vld [vmem:[#allocation2 + $0x1c0] sm:$0xff] }
  0xe3   : > { %v1404_v52 = vpop.f32.mrf.mxu1  ;;  %9083 = vmatmul.mubr.msk.bf16.gmra.mxu1 %vm509_vm1, %v663_v50  ;;  %1179 = vmatprep.mubr.bf16.mxu0 %v13802_v9  ;;  %v632_v50 = vld [vmem:[#allocation2 + $0x1c8] sm:$0xff] }
  0xe4   : > { %v10692_v55 = vadd.f32 %v1404_v52, %v931_v51  ;;  %v933_v56 = vpop.f32.mrf.mxu0  ;;  %1652 = vmatprep.mubr.bf16.mxu1 %v13802_v9  ;;  %v667_v57 = vpack.c.bf16 %v632_v50, %v631_v48  ;;  %v737_v50 = vld [vmem:[#allocation2 + $0x1f1] sm:$0xff] }
  0xe5   : > { %v1406_v59 = vpop.f32.mrf.mxu1 }
  0xe6   : > { %v10695_v60 = vadd.f32 %v1406_v59, %v933_v56  ;;  %v935_v61 = vpop.f32.mrf.mxu0 }
  0xe7   : > { %v1408_v63 = vpop.f32.mrf.mxu1 }
  0xe8   : > { %v10697_v1 = vadd.f32 %v1408_v63, %v935_v61  ;;  %v937_v2 = vpop.f32.mrf.mxu0 }
  0xe9   : > { %v1410_v3 = vpop.f32.mrf.mxu1 }
  0xea   : > { %v10699_v4 = vadd.f32 %v1410_v3, %v937_v2  ;;  %v941_v5 = vpop.f32.mrf.mxu0  ;;  %9047 = vmatmul.mubr.msk.bf16.gmra.mxu0 %vm509_vm1, %v764_v62  ;;  %v733_v2 = vld [vmem:[#allocation2 + $0x1d1] sm:$0xff]  ;;  %v734_v3 = vld [vmem:[#allocation2 + $0x1d9] sm:$0xff] }
  0xeb   : > { %v1414_v6 = vpop.f32.mrf.mxu1  ;;  %9084 = vmatmul.mubr.msk.bf16.gmra.mxu1 %vm509_vm1, %v664_v0  ;;  %1189 = vmatprep.mubr.bf16.mxu0 %v13802_v9 }
  0xec   : > { %v10704_v10 = vadd.f32 %v1414_v6, %v941_v5  ;;  %v943_v11 = vpop.f32.mrf.mxu0  ;;  %1662 = vmatprep.mubr.bf16.mxu1 %v13802_v9 }
  0xed   : > { %v1416_v14 = vpop.f32.mrf.mxu1 }
  0xee   : > { %v10707_v15 = vadd.f32 %v1416_v14, %v943_v11  ;;  %v945_v16 = vpop.f32.mrf.mxu0  ;;  %v768_v14 = vpack.c.bf16 %v734_v3, %v733_v2 }
  0xef   : > { %v1418_v18 = vpop.f32.mrf.mxu1 }
  0xf0   : > { %v10709_v20 = vadd.f32 %v1418_v18, %v945_v16  ;;  %v947_v21 = vpop.f32.mrf.mxu0 }
  0xf1   : > { %v1420_v22 = vpop.f32.mrf.mxu1 }
  0xf2   : > { %v10711_v23 = vadd.f32 %v1420_v22, %v947_v21  ;;  %v951_v24 = vpop.f32.mrf.mxu0  ;;  %9048 = vmatmul.mubr.msk.bf16.gmra.mxu0 %vm509_vm1, %v765_v17  ;;  %v668_v17 = vpack.c.bf16 %v634_v8, %v633_v7 }
  0xf3   : > { %v1424_v25 = vpop.f32.mrf.mxu1  ;;  %9085 = vmatmul.mubr.msk.bf16.gmra.mxu1 %vm509_vm1, %v665_v19  ;;  %1199 = vmatprep.mubr.bf16.mxu0 %v13802_v9 }
  0xf4   : > { %v10716_v28 = vadd.f32 %v1424_v25, %v951_v24  ;;  %v953_v29 = vpop.f32.mrf.mxu0  ;;  %1672 = vmatprep.mubr.bf16.mxu1 %v13802_v9 }
  0xf5   : > { %v1426_v32 = vpop.f32.mrf.mxu1 }
  0xf6   : > { %v10719_v33 = vadd.f32 %v1426_v32, %v953_v29  ;;  %v955_v34 = vpop.f32.mrf.mxu0  ;;  %v636_v32 = vld [vmem:[#allocation2 + $0x1e8] sm:$0xff] }
  0xf7   : > { %v1428_v36 = vpop.f32.mrf.mxu1 }
  0xf8   : > { %v10721_v38 = vadd.f32 %v1428_v36, %v955_v34  ;;  %v957_v39 = vpop.f32.mrf.mxu0 }
  0xf9   : > { %v1430_v40 = vpop.f32.mrf.mxu1 }
  0xfa   : > { %v10723_v41 = vadd.f32 %v1430_v40, %v957_v39  ;;  %v961_v42 = vpop.f32.mrf.mxu0  ;;  %9049 = vmatmul.mubr.msk.bf16.gmra.mxu0 %vm509_vm1, %v766_v35  ;;  %v669_v40 = vpack.c.bf16 %v636_v32, %v635_v31 }
  0xfb   : > { %v1434_v43 = vpop.f32.mrf.mxu1  ;;  %9086 = vmatmul.mubr.msk.bf16.gmra.mxu1 %vm509_vm1, %v666_v37  ;;  %1209 = vmatprep.mubr.bf16.mxu0 %v13802_v9  ;;  %v769_v37 = vpack.c.bf16 %v736_v27, %v735_v26  ;;  %v2426_v26 = vld [vmem:[#allocation2 + $0xb] sm:$0xff] }
  0xfc   : > { %v10728_v46 = vadd.f32 %v1434_v43, %v961_v42  ;;  %v963_v47 = vpop.f32.mrf.mxu0  ;;  %1682 = vmatprep.mubr.bf16.mxu1 %v13802_v9 }
  0xfd   : > { %v1436_v51 = vpop.f32.mrf.mxu1 }
  0xfe   : > { %v10731_v52 = vadd.f32 %v1436_v51, %v963_v47  ;;  %v965_v53 = vpop.f32.mrf.mxu0  ;;  %v738_v51 = vld [vmem:[#allocation2 + $0x1f9] sm:$0xff] }
  0xff   : > { %v1438_v56 = vpop.f32.mrf.mxu1 }
 0x100   : > { %v10733_v58 = vadd.f32 %v1438_v56, %v965_v53  ;;  %v967_v59 = vpop.f32.mrf.mxu0  ;;  %v637_v56 = vld [vmem:[#allocation2 + $0x1f0] sm:$0xff] }
 0x101   : > { %v1440_v61 = vpop.f32.mrf.mxu1 }
 0x102   : > { %v10735_v62 = vadd.f32 %v1440_v61, %v967_v59  ;;  %v971_v63 = vpop.f32.mrf.mxu0  ;;  %9050 = vmatmul.mubr.msk.bf16.gmra.mxu0 %vm509_vm1, %v767_v54 }
 0x103   : > { %v1444_v0 = vpop.f32.mrf.mxu1  ;;  %9087 = vmatmul.mubr.msk.bf16.gmra.mxu1 %vm509_vm1, %v667_v57  ;;  %1219 = vmatprep.mubr.bf16.mxu0 %v13802_v9  ;;  %v638_v57 = vld [vmem:[#allocation2 + $0x1f8] sm:$0xff] }
 0x104   : > { %v10740_v5 = vadd.f32 %v1444_v0, %v971_v63  ;;  %v973_v6 = vpop.f32.mrf.mxu0  ;;  %1692 = vmatprep.mubr.bf16.mxu1 %v13802_v9  ;;  %v770_v0 = vpack.c.bf16 %v738_v51, %v737_v50  ;;  %v670_v3 = vpack.c.bf16 %v638_v57, %v637_v56  ;;  %v1725_v51 = vld [vmem:[#allocation2 + $0x12] sm:$0xff]  ;;  %v9779_v56 = vld [vmem:[%s13787_s1 + $0x80] ss:$8 sps:$4 sm:$0xff]  }
 0x105   : > { %v1446_v11 = vpop.f32.mrf.mxu1 }
 0x106   : > { %v10743_v12 = vadd.f32 %v1446_v11, %v973_v6  ;;  %v975_v13 = vpop.f32.mrf.mxu0 }
 0x107   : > { %v1448_v16 = vpop.f32.mrf.mxu1 }
 0x108   : > { %v10745_v18 = vadd.f32 %v1448_v16, %v975_v13  ;;  %v977_v19 = vpop.f32.mrf.mxu0  ;;  %v1723_v16 = vld [vmem:[#allocation2 + $0x2] sm:$0xff] }
 0x109   : > { %v1450_v21 = vpop.f32.mrf.mxu1 }
 0x10a   : > { %v10747_v22 = vadd.f32 %v1450_v21, %v977_v19  ;;  %v981_v24 = vpop.f32.mrf.mxu0  ;;  %9051 = vmatmul.mubr.msk.bf16.gmra.mxu0 %vm509_vm1, %v768_v14 }
 0x10b   : > { %v1454_v25 = vpop.f32.mrf.mxu1  ;;  %9088 = vmatmul.mubr.msk.bf16.gmra.mxu1 %vm509_vm1, %v668_v17  ;;  %1229 = vmatprep.mubr.bf16.mxu0 %v13802_v9  ;;  %v1724_v17 = vld [vmem:[#allocation2 + $0xa] sm:$0xff] }
 0x10c   : > { %v10752_v29 = vadd.f32 %v1454_v25, %v981_v24  ;;  %v983_v30 = vpop.f32.mrf.mxu0  ;;  %1702 = vmatprep.mubr.bf16.mxu1 %v13802_v9  ;;  %v9778_v24 = vld [vmem:[%s13787_s1 + $0x90] ss:$8 sps:$4 sm:$0x3f]   ;;  %v2425_v25 = vld [vmem:[#allocation2 + $0x3] sm:$0xff]  ;;  %v1787_v32 = vpack.c.bf16 %v1724_v17, %v1723_v16 }
 0x10d   : > { %v1456_v34 = vpop.f32.mrf.mxu1 }
 0x10e   : > { %v10755_v35 = vadd.f32 %v1456_v34, %v983_v30  ;;  %v985_v36 = vpop.f32.mrf.mxu0 }
 0x10f   : > { %v1458_v39 = vpop.f32.mrf.mxu1 }
 0x110   : > { %v10757_v42 = vadd.f32 %v1458_v39, %v985_v36  ;;  %v987_v43 = vpop.f32.mrf.mxu0  ;;  %v2489_v36 = vpack.c.bf16 %v2426_v26, %v2425_v25 }
 0x111   : > { %v1460_v44 = vpop.f32.mrf.mxu1 }
 0x112   : > { %v10759_v45 = vadd.f32 %v1460_v44, %v987_v43  ;;  %v991_v47 = vpop.f32.mrf.mxu0  ;;  %9052 = vmatmul.mubr.msk.bf16.gmra.mxu0 %vm509_vm1, %v769_v37 }
 0x113   : > { %v1464_v48 = vpop.f32.mrf.mxu1  ;;  %9089 = vmatmul.mubr.msk.bf16.gmra.mxu1 %vm509_vm1, %v669_v40  ;;  %1239 = vmatprep.mubr.bf16.mxu0 %v13802_v9  ;;  %v3343_v40 = vsel %vm890_vm0, %v9778_v24, 0 }
 0x114   : > { %v10764_v53 = vadd.f32 %v1464_v48, %v991_v47  ;;  %v993_v54 = vpop.f32.mrf.mxu0  ;;  %1712 = vmatprep.mubr.bf16.mxu1 %v13802_v9  ;;  %v9781_v48 = vld [vmem:[%s13787_s1 + $0x84] ss:$8 sps:$4 sm:$0xff]  }
 0x115   : > { %v1466_v59 = vpop.f32.mrf.mxu1 }
 0x116   : > { %v10767_v61 = vadd.f32 %v1466_v59, %v993_v54  ;;  %v995_v63 = vpop.f32.mrf.mxu0  ;;  %v1726_v54 = vld [vmem:[#allocation2 + $0x1a] sm:$0xff] }
 0x117   : > { %v1468_v2 = vpop.f32.mrf.mxu1 }
 0x118   : > { %v10769_v6 = vadd.f32 %v1468_v2, %v995_v63  ;;  %v997_v7 = vpop.f32.mrf.mxu0  ;;  %v2427_v63 = vld [vmem:[#allocation2 + $0x13] sm:$0xff] }
 0x119   : > { %v1470_v8 = vpop.f32.mrf.mxu1 }
 0x11a   : > { %v10771_v11 = vadd.f32 %v1470_v8, %v997_v7  ;;  %v1001_v13 = vpop.f32.mrf.mxu0  ;;  %9053 = vmatmul.mubr.msk.bf16.gmra.mxu0 %vm509_vm1, %v770_v0  ;;  %v2428_v0 = vld [vmem:[#allocation2 + $0x1b] sm:$0xff]  ;;  %v1788_v8 = vpack.c.bf16 %v1726_v54, %v1725_v51 }
 0x11b   : > { %v1474_v14 = vpop.f32.mrf.mxu1  ;;  %9090 = vmatmul.mubr.msk.bf16.gmra.mxu1 %vm509_vm1, %v670_v3  ;;  %1976 = vmatprep.mubr.bf16.mxu0 %v13802_v9 }
 0x11c   : > { %v10776_v19 = vadd.f32 %v1474_v14, %v1001_v13  ;;  %v1003_v21 = vpop.f32.mrf.mxu0  ;;  %2678 = vmatprep.mubr.bf16.mxu1 %v13802_v9  ;;  %v2490_v14 = vpack.c.bf16 %v2428_v0, %v2427_v63 }
 0x11d   : > { %v1476_v27 = vpop.f32.mrf.mxu1 }
 0x11e   : > { %v10782_v30 = vadd.f32 %v1476_v27, %v1003_v21  ;;  %v1005_v31 = vpop.f32.mrf.mxu0  ;;  %v1727_v27 = vld [vmem:[#allocation2 + $0x22] sm:$0xff] }
 0x11f   : > { %v1478_v34 = vpop.f32.mrf.mxu1 }
 0x120   : > { %v10784_v37 = vadd.f32 %v1478_v34, %v1005_v31  ;;  %v1007_v39 = vpop.f32.mrf.mxu0  ;;  %v1728_v31 = vld [vmem:[#allocation2 + $0x2a] sm:$0xff] }
 0x121   : > { %v1480_v43 = vpop.f32.mrf.mxu1 }
 0x122   : > { %v10787_v44 = vadd.f32 %v1480_v43, %v1007_v39  ;;  %v1011_v47 = vpop.f32.mrf.mxu0  ;;  %9100 = vmatmul.mubr.msk.bf16.vlgmr.msra.gmra.mxu0 %vm509_vm1, %v1787_v32  ;;  %v2430_v39 = vld [vmem:[#allocation2 + $0x2b] sm:$0xff] }
 0x123   : > { %v1484_v50 = vpop.f32.mrf.mxu1  ;;  %3361 = vmatpush1.bf16.msra.mxu0 %v3343_v40  ;;  %9141 = vmatmul.mubr.msk.bf16.vlgmr.msra.gmra.mxu1 %vm509_vm1, %v2489_v36  ;;  %v2429_v36 = vld [vmem:[#allocation2 + $0x23] sm:$0xff] }
 0x124   : > { %v10797_v57 = vadd.f32 %v1484_v50, %v1011_v47  ;;  %v1013_v59 = vpop.f32.mrf.mxu0  ;;  %1986 = vmatprep.mubr.bf16.mxu0 %v13802_v9  ;;  %2688 = vmatprep.mubr.bf16.mxu1 %v13802_v9  ;;  %v2491_v51 = vpack.c.bf16 %v2430_v39, %v2429_v36 }
 0x125   : > { %v1486_v2 = vpop.f32.mrf.mxu1  ;;  %3362 = vmatprep.subr.bf16.mxu0 %v9781_v48  ;;  %v1789_v48 = vpack.c.bf16 %v1728_v31, %v1727_v27 }
 0x126   : > { %v10801_v3 = vadd.f32 %v1486_v2, %v1013_v59  ;;  %v1015_v7 = vpop.f32.mrf.mxu0 }
 0x127   : > { %v1488_v13 = vpop.f32.mrf.mxu1  ;;  %3363 = vmatpush1.bf16.msra.mxu0 %v9779_v56 }
 0x128   : > { %v10803_v16 = vadd.f32 %v1488_v13, %v1015_v7  ;;  %v1017_v17 = vpop.f32.mrf.mxu0  ;;  %v1729_v7 = vld [vmem:[#allocation2 + $0x32] sm:$0xff] }
 0x129   : > { %v1490_v21 = vpop.f32.mrf.mxu1 }
 0x12a   : > { %v10805_v24 = vadd.f32 %v1490_v21, %v1017_v17  ;;  %v1021_v25 = vpop.f32.mrf.mxu0  ;;  %9101 = vmatmul.mubr.msk.bf16.gmra.mxu0 %vm509_vm1, %v1788_v8  ;;  %v1730_v8 = vld [vmem:[#allocation2 + $0x3a] sm:$0xff] }
 0x12b   : > { %v1494_v26 = vpop.f32.mrf.mxu1  ;;  %9142 = vmatmul.mubr.msk.bf16.gmra.mxu1 %vm509_vm1, %v2490_v14  ;;  %1996 = vmatprep.mubr.bf16.mxu0 %v13802_v9  ;;  %v2431_v17 = vld [vmem:[#allocation2 + $0x33] sm:$0xff]  ;;  %v2432_v21 = vld [vmem:[#allocation2 + $0x3b] sm:$0xff]  ;;  %v1790_v31 = vpack.c.bf16 %v1730_v8, %v1729_v7  ;;  %v2433_v7 = vld [vmem:[#allocation2 + $0x43] sm:$0xff] }
 0x12c   : > { %v10810_v32 = vadd.f32 %v1494_v26, %v1021_v25  ;;  %v1023_v34 = vpop.f32.mrf.mxu0  ;;  %2698 = vmatprep.mubr.bf16.mxu1 %v13802_v9  ;;  %v2492_v36 = vpack.c.bf16 %v2432_v21, %v2431_v17  ;;  %v2434_v8 = vld [vmem:[#allocation2 + $0x4b] sm:$0xff] }
 0x12d   : > { %v1496_v40 = vpop.f32.mrf.mxu1 }
 0x12e   : > { %v10813_v43 = vadd.f32 %v1496_v40, %v1023_v34  ;;  %v1025_v47 = vpop.f32.mrf.mxu0 }
 0x12f   : > { %v1498_v50 = vpop.f32.mrf.mxu1 }
 0x130   : > { %v10815_v54 = vadd.f32 %v1498_v50, %v1025_v47  ;;  %v1027_v56 = vpop.f32.mrf.mxu0 }
 0x131   : > { %v1500_v59 = vpop.f32.mrf.mxu1 }
 0x132   : > { %v10817_v63 = vadd.f32 %v1500_v59, %v1027_v56  ;;  %v1031_v0 = vpop.f32.mrf.mxu0  ;;  %9102 = vmatmul.mubr.msk.bf16.gmra.mxu0 %vm509_vm1, %v1789_v48  ;;  %v1731_v56 = vld [vmem:[#allocation2 + $0x42] sm:$0xff]  ;;  %v1732_v59 = vld [vmem:[#allocation2 + $0x4a] sm:$0xff] }
 0x133   : > { %v1504_v2 = vpop.f32.mrf.mxu1  ;;  %9143 = vmatmul.mubr.msk.bf16.gmra.mxu1 %vm509_vm1, %v2491_v51  ;;  %2006 = vmatprep.mubr.bf16.mxu0 %v13802_v9 }
 0x134   : > { %v10822_v13 = vadd.f32 %v1504_v2, %v1031_v0  ;;  %v1033_v14 = vpop.f32.mrf.mxu0  ;;  %2708 = vmatprep.mubr.bf16.mxu1 %v13802_v9 }
 0x135   : > { %v1506_v25 = vpop.f32.mrf.mxu1 }
 0x136   : > { %v10825_v26 = vadd.f32 %v1506_v25, %v1033_v14  ;;  %v1035_v27 = vpop.f32.mrf.mxu0  ;;  %v1791_v25 = vpack.c.bf16 %v1732_v59, %v1731_v56  ;;  %v2435_v59 = vld [vmem:[#allocation2 + $0x53] sm:$0xff] }
 0x137   : > { %v1508_v34 = vpop.f32.mrf.mxu1 }
 0x138   : > { %v10827_v39 = vadd.f32 %v1508_v34, %v1035_v27  ;;  %v1037_v40 = vpop.f32.mrf.mxu0 }
 0x139   : > { %v1510_v47 = vpop.f32.mrf.mxu1 }
 0x13a   : > { %v10829_v48 = vadd.f32 %v1510_v47, %v1037_v40  ;;  %v1041_v50 = vpop.f32.mrf.mxu0  ;;  %9103 = vmatmul.mubr.msk.bf16.gmra.mxu0 %vm509_vm1, %v1790_v31  ;;  %v2493_v31 = vpack.c.bf16 %v2434_v8, %v2433_v7  ;;  %v2436_v7 = vld [vmem:[#allocation2 + $0x5b] sm:$0xff] }
 0x13b   : > { %v1514_v51 = vpop.f32.mrf.mxu1  ;;  %9144 = vmatmul.mubr.msk.bf16.gmra.mxu1 %vm509_vm1, %v2492_v36  ;;  %2016 = vmatprep.mubr.bf16.mxu0 %v13802_v9 }
 0x13c   : > { %v10834_v0 = vadd.f32 %v1514_v51, %v1041_v50  ;;  %v1043_v2 = vpop.f32.mrf.mxu0  ;;  %2718 = vmatprep.mubr.bf16.mxu1 %v13802_v9 }
 0x13d   : > { %v1516_v14 = vpop.f32.mrf.mxu1 }
 0x13e   : > { %13810 = vst [vmem:[#allocation5_spill] sm:$0xff] %v10834_v0  ;;  %v10837_v17 = vadd.f32 %v1516_v14, %v1043_v2  ;;  %v1045_v21 = vpop.f32.mrf.mxu0  ;;  %v1733_v2 = vld [vmem:[#allocation2 + $0x52] sm:$0xff]  ;;  %v1734_v14 = vld [vmem:[#allocation2 + $0x5a] sm:$0xff] }
 0x13f   : > { %v1518_v27 = vpop.f32.mrf.mxu1 }
 0x140   : > { %13811 = vst [vmem:[#allocation6_spill] sm:$0xff] %v10837_v17  ;;  %v10839_v34 = vadd.f32 %v1518_v27, %v1045_v21  ;;  %v1047_v36 = vpop.f32.mrf.mxu0 }
 0x141   : > { %v1520_v40 = vpop.f32.mrf.mxu1 }
 0x142   : > { %13812 = vst [vmem:[#allocation7_spill] sm:$0xff] %v10839_v34  ;;  %v10841_v47 = vadd.f32 %v1520_v40, %v1047_v36  ;;  %v1051_v50 = vpop.f32.mrf.mxu0  ;;  %9104 = vmatmul.mubr.msk.bf16.gmra.mxu0 %vm509_vm1, %v1791_v25  ;;  %v1792_v36 = vpack.c.bf16 %v1734_v14, %v1733_v2  ;;  %v2494_v40 = vpack.c.bf16 %v2436_v7, %v2435_v59  ;;  %v2437_v14 = vld [vmem:[#allocation2 + $0x63] sm:$0xff]  ;;  %v2438_v59 = vld [vmem:[#allocation2 + $0x6b] sm:$0xff] }
 0x143   : > { %v1524_v51 = vpop.f32.mrf.mxu1  ;;  %9145 = vmatmul.mubr.msk.bf16.gmra.mxu1 %vm509_vm1, %v2493_v31  ;;  %2026 = vmatprep.mubr.bf16.mxu0 %v13802_v9 }
 0x144   : > { %13813 = vst [vmem:[#allocation8_spill] sm:$0xff] %v10841_v47  ;;  %v10846_v49 = vadd.f32 %v1524_v51, %v1051_v50  ;;  %v1053_v56 = vpop.f32.mrf.mxu0  ;;  %2728 = vmatprep.mubr.bf16.mxu1 %v13802_v9 }
 0x145   : > { %v1526_v8 = vpop.f32.mrf.mxu1 }
 0x146   : > { %13814 = vst [vmem:[#allocation9_spill] sm:$0xff] %v10846_v49  ;;  %v10849_v21 = vadd.f32 %v1526_v8, %v1053_v56  ;;  %v1055_v27 = vpop.f32.mrf.mxu0  ;;  %v1735_v56 = vld [vmem:[#allocation2 + $0x62] sm:$0xff]  ;;  %v1736_v8 = vld [vmem:[#allocation2 + $0x6a] sm:$0xff] }
 0x147   : > { %v1528_v25 = vpop.f32.mrf.mxu1 }
 0x148   : > { %13815 = vst [vmem:[#allocation10_spill] sm:$0xff] %v10849_v21  ;;  %v10851_v47 = vadd.f32 %v1528_v25, %v1055_v27  ;;  %v1057_v31 = vpop.f32.mrf.mxu0  ;;  %v1793_v25 = vpack.c.bf16 %v1736_v8, %v1735_v56  ;;  %v2439_v8 = vld [vmem:[#allocation2 + $0x73] sm:$0xff] }
 0x149   : > { %v1530_v34 = vpop.f32.mrf.mxu1 }
 0x14a   : > { %13816 = vst [vmem:[#allocation11_spill] sm:$0xff] %v10851_v47  ;;  %v10853_v17 = vadd.f32 %v1530_v34, %v1057_v31  ;;  %v1061_v50 = vpop.f32.mrf.mxu0  ;;  %9105 = vmatmul.mubr.msk.bf16.gmra.mxu0 %vm509_vm1, %v1792_v36  ;;  %v2495_v31 = vpack.c.bf16 %v2438_v59, %v2437_v14  ;;  %v2440_v14 = vld [vmem:[#allocation2 + $0x7b] sm:$0xff] }
 0x14b   : > { %v1534_v51 = vpop.f32.mrf.mxu1  ;;  %9146 = vmatmul.mubr.msk.bf16.gmra.mxu1 %vm509_vm1, %v2494_v40  ;;  %2036 = vmatprep.mubr.bf16.mxu0 %v13802_v9 }
 0x14c   : > { %13817 = vst [vmem:[#allocation12_spill] sm:$0xff] %v10853_v17  ;;  %v10858_v21 = vadd.f32 %v1534_v51, %v1061_v50  ;;  %v1063_v2 = vpop.f32.mrf.mxu0  ;;  %2738 = vmatprep.mubr.bf16.mxu1 %v13802_v9 }
 0x14d   : > { %v1536_v7 = vpop.f32.mrf.mxu1 }
 0x14e   : > { %13818 = vst [vmem:[#allocation13_spill] sm:$0xff] %v10858_v21  ;;  %v10861_v34 = vadd.f32 %v1536_v7, %v1063_v2  ;;  %v1065_v27 = vpop.f32.mrf.mxu0  ;;  %v1737_v2 = vld [vmem:[#allocation2 + $0x72] sm:$0xff]  ;;  %v1738_v7 = vld [vmem:[#allocation2 + $0x7a] sm:$0xff] }
 0x14f   : > { %v1538_v36 = vpop.f32.mrf.mxu1 }
 0x150   : > { %13819 = vst [vmem:[#allocation14_spill] sm:$0xff] %v10861_v34  ;;  %v10863_v17 = vadd.f32 %v1538_v36, %v1065_v27  ;;  %v1067_v40 = vpop.f32.mrf.mxu0  ;;  %v1794_v36 = vpack.c.bf16 %v1738_v7, %v1737_v2  ;;  %v2441_v7 = vld [vmem:[#allocation2 + $0x83] sm:$0xff] }
 0x151   : > { %v1540_v47 = vpop.f32.mrf.mxu1 }
 0x152   : > { %13820 = vst [vmem:[#allocation15_spill] sm:$0xff] %v10863_v17  ;;  %v10865_v49 = vadd.f32 %v1540_v47, %v1067_v40  ;;  %v1071_v50 = vpop.f32.mrf.mxu0  ;;  %9106 = vmatmul.mubr.msk.bf16.gmra.mxu0 %vm509_vm1, %v1793_v25  ;;  %v2496_v40 = vpack.c.bf16 %v2440_v14, %v2439_v8  ;;  %v2442_v8 = vld [vmem:[#allocation2 + $0x8b] sm:$0xff] }
 0x153   : > { %v1544_v51 = vpop.f32.mrf.mxu1  ;;  %9147 = vmatmul.mubr.msk.bf16.gmra.mxu1 %vm509_vm1, %v2495_v31  ;;  %2046 = vmatprep.mubr.bf16.mxu0 %v13802_v9 }
 0x154   : > { %13821 = vst [vmem:[#allocation16_spill] sm:$0xff] %v10865_v49  ;;  %v10870_v34 = vadd.f32 %v1544_v51, %v1071_v50  ;;  %v1073_v56 = vpop.f32.mrf.mxu0  ;;  %2748 = vmatprep.mubr.bf16.mxu1 %v13802_v9 }
 0x155   : > { %v1546_v59 = vpop.f32.mrf.mxu1 }
 0x156   : > { %13822 = vst [vmem:[#allocation17_spill] sm:$0xff] %v10870_v34  ;;  %v10873_v47 = vadd.f32 %v1546_v59, %v1073_v56  ;;  %v1075_v27 = vpop.f32.mrf.mxu0  ;;  %v1739_v56 = vld [vmem:[#allocation2 + $0x82] sm:$0xff]  ;;  %v1740_v59 = vld [vmem:[#allocation2 + $0x8a] sm:$0xff] }
 0x157   : > { %v1548_v25 = vpop.f32.mrf.mxu1 }
 0x158   : > { %13823 = vst [vmem:[#allocation18_spill] sm:$0xff] %v10873_v47  ;;  %v10875_v49 = vadd.f32 %v1548_v25, %v1075_v27  ;;  %v1077_v31 = vpop.f32.mrf.mxu0  ;;  %v1795_v25 = vpack.c.bf16 %v1740_v59, %v1739_v56  ;;  %v2443_v59 = vld [vmem:[#allocation2 + $0x93] sm:$0xff] }
 0x159   : > { %v1550_v17 = vpop.f32.mrf.mxu1 }
 0x15a   : > { %13824 = vst [vmem:[#allocation19_spill] sm:$0xff] %v10875_v49  ;;  %v10877_v21 = vadd.f32 %v1550_v17, %v1077_v31  ;;  %v1081_v50 = vpop.f32.mrf.mxu0  ;;  %9107 = vmatmul.mubr.msk.bf16.gmra.mxu0 %vm509_vm1, %v1794_v36  ;;  %v2497_v31 = vpack.c.bf16 %v2442_v8, %v2441_v7  ;;  %v2444_v7 = vld [vmem:[#allocation2 + $0x9b] sm:$0xff] }
 0x15b   : > { %v1554_v51 = vpop.f32.mrf.mxu1  ;;  %9148 = vmatmul.mubr.msk.bf16.gmra.mxu1 %vm509_vm1, %v2496_v40  ;;  %2056 = vmatprep.mubr.bf16.mxu0 %v13802_v9 }
 0x15c   : > { %13825 = vst [vmem:[#allocation20_spill] sm:$0xff] %v10877_v21  ;;  %v10882_v47 = vadd.f32 %v1554_v51, %v1081_v50  ;;  %v1083_v2 = vpop.f32.mrf.mxu0  ;;  %2758 = vmatprep.mubr.bf16.mxu1 %v13802_v9 }
 0x15d   : > { %v1556_v14 = vpop.f32.mrf.mxu1 }
 0x15e   : > { %13826 = vst [vmem:[#allocation21_spill] sm:$0xff] %v10882_v47  ;;  %v10885_v17 = vadd.f32 %v1556_v14, %v1083_v2  ;;  %v1085_v27 = vpop.f32.mrf.mxu0  ;;  %v1741_v2 = vld [vmem:[#allocation2 + $0x92] sm:$0xff]  ;;  %v1742_v14 = vld [vmem:[#allocation2 + $0x9a] sm:$0xff] }
 0x15f   : > { %v1558_v36 = vpop.f32.mrf.mxu1 }
 0x160   : > { %13827 = vst [vmem:[#allocation22_spill] sm:$0xff] %v10885_v17  ;;  %v10887_v21 = vadd.f32 %v1558_v36, %v1085_v27  ;;  %v1087_v40 = vpop.f32.mrf.mxu0  ;;  %v1796_v36 = vpack.c.bf16 %v1742_v14, %v1741_v2  ;;  %v2445_v14 = vld [vmem:[#allocation2 + $0xa3] sm:$0xff] }
 0x161   : > { %v1560_v49 = vpop.f32.mrf.mxu1 }
 0x162   : > { %13828 = vst [vmem:[#allocation23_spill] sm:$0xff] %v10887_v21  ;;  %v10889_v34 = vadd.f32 %v1560_v49, %v1087_v40  ;;  %v1091_v50 = vpop.f32.mrf.mxu0  ;;  %9108 = vmatmul.mubr.msk.bf16.gmra.mxu0 %vm509_vm1, %v1795_v25  ;;  %v2498_v40 = vpack.c.bf16 %v2444_v7, %v2443_v59  ;;  %v2446_v59 = vld [vmem:[#allocation2 + $0xab] sm:$0xff] }
 0x163   : > { %v1564_v51 = vpop.f32.mrf.mxu1  ;;  %9149 = vmatmul.mubr.msk.bf16.gmra.mxu1 %vm509_vm1, %v2497_v31  ;;  %2066 = vmatprep.mubr.bf16.mxu0 %v13802_v9 }
 0x164   : > { %13829 = vst [vmem:[#allocation24_spill] sm:$0xff] %v10889_v34  ;;  %v10894_v17 = vadd.f32 %v1564_v51, %v1091_v50  ;;  %v1093_v56 = vpop.f32.mrf.mxu0  ;;  %2768 = vmatprep.mubr.bf16.mxu1 %v13802_v9 }
 0x165   : > { %v1566_v8 = vpop.f32.mrf.mxu1 }
 0x166   : > { %13830 = vst [vmem:[#allocation25_spill] sm:$0xff] %v10894_v17  ;;  %v10897_v49 = vadd.f32 %v1566_v8, %v1093_v56  ;;  %v1095_v27 = vpop.f32.mrf.mxu0  ;;  %v1743_v56 = vld [vmem:[#allocation2 + $0xa2] sm:$0xff]  ;;  %v1744_v8 = vld [vmem:[#allocation2 + $0xaa] sm:$0xff] }
 0x167   : > { %v1568_v25 = vpop.f32.mrf.mxu1 }
 0x168   : > { %13831 = vst [vmem:[#allocation26_spill] sm:$0xff] %v10897_v49  ;;  %v10899_v34 = vadd.f32 %v1568_v25, %v1095_v27  ;;  %v1097_v31 = vpop.f32.mrf.mxu0  ;;  %v1797_v25 = vpack.c.bf16 %v1744_v8, %v1743_v56  ;;  %v2447_v8 = vld [vmem:[#allocation2 + $0xb3] sm:$0xff] }
 0x169   : > { %v1570_v21 = vpop.f32.mrf.mxu1 }
 0x16a   : > { %13832 = vst [vmem:[#allocation27_spill] sm:$0xff] %v10899_v34  ;;  %v10901_v47 = vadd.f32 %v1570_v21, %v1097_v31  ;;  %v1101_v50 = vpop.f32.mrf.mxu0  ;;  %9109 = vmatmul.mubr.msk.bf16.gmra.mxu0 %vm509_vm1, %v1796_v36  ;;  %v2499_v31 = vpack.c.bf16 %v2446_v59, %v2445_v14  ;;  %v2448_v14 = vld [vmem:[#allocation2 + $0xbb] sm:$0xff] }
 0x16b   : > { %v1574_v51 = vpop.f32.mrf.mxu1  ;;  %9150 = vmatmul.mubr.msk.bf16.gmra.mxu1 %vm509_vm1, %v2498_v40  ;;  %2076 = vmatprep.mubr.bf16.mxu0 %v13802_v9 }
 0x16c   : > { %13833 = vst [vmem:[#allocation28_spill] sm:$0xff] %v10901_v47  ;;  %v10906_v49 = vadd.f32 %v1574_v51, %v1101_v50  ;;  %v1103_v2 = vpop.f32.mrf.mxu0  ;;  %2778 = vmatprep.mubr.bf16.mxu1 %v13802_v9 }
 0x16d   : > { %v1576_v7 = vpop.f32.mrf.mxu1 }
 0x16e   : > { %13834 = vst [vmem:[#allocation29_spill] sm:$0xff] %v10906_v49  ;;  %v10909_v21 = vadd.f32 %v1576_v7, %v1103_v2  ;;  %v1105_v27 = vpop.f32.mrf.mxu0  ;;  %v1745_v2 = vld [vmem:[#allocation2 + $0xb2] sm:$0xff]  ;;  %v1746_v7 = vld [vmem:[#allocation2 + $0xba] sm:$0xff] }
 0x16f   : > { %v1578_v36 = vpop.f32.mrf.mxu1 }
 0x170   : > { %13835 = vst [vmem:[#allocation30_spill] sm:$0xff] %v10909_v21  ;;  %v10911_v47 = vadd.f32 %v1578_v36, %v1105_v27  ;;  %v1107_v40 = vpop.f32.mrf.mxu0  ;;  %v1798_v36 = vpack.c.bf16 %v1746_v7, %v1745_v2  ;;  %v13842_v2 = vmov 0   ;;  %v1747_v7 = vld [vmem:[#allocation2 + $0xc2] sm:$0xff] }
 0x171   : > { %v1580_v34 = vpop.f32.mrf.mxu1 }
 0x172   : > { %13836 = vst [vmem:[#allocation31_spill] sm:$0xff] %v10911_v47  ;;  %v10913_v17 = vadd.f32 %v1580_v34, %v1107_v40  ;;  %v1111_v50 = vpop.f32.mrf.mxu0  ;;  %9110 = vmatmul.mubr.msk.bf16.gmra.mxu0 %vm509_vm1, %v1797_v25  ;;  %v2500_v40 = vpack.c.bf16 %v2448_v14, %v2447_v8  ;;  %v1748_v8 = vld [vmem:[#allocation2 + $0xca] sm:$0xff] }
 0x173   : > { %v1584_v51 = vpop.f32.mrf.mxu1  ;;  %9151 = vmatmul.mubr.msk.bf16.gmra.mxu1 %vm509_vm1, %v2499_v31  ;;  %2086 = vmatprep.mubr.bf16.mxu0 %v13802_v9 }
 0x174   : > { %13837 = vst [vmem:[#allocation32_spill] sm:$0xff] %v10913_v17  ;;  %v10918_v21 = vadd.f32 %v1584_v51, %v1111_v50  ;;  %v1113_v56 = vpop.f32.mrf.mxu0  ;;  %2788 = vmatprep.mubr.bf16.mxu1 %v13802_v9  ;;  %v4112_v50 = vld [vmem:[%s13789_s3 + $0x78] sm:$0xff] }
 0x175   : > { %v1586_v59 = vpop.f32.mrf.mxu1  ;;  %4312 = vmatpush1.msra.mxu1 %v4112_v50  ;;  %v1799_v50 = vpack.c.bf16 %v1748_v8, %v1747_v7  ;;  %v2452_v8 = vld [vmem:[#allocation2 + $0xdb] sm:$0xff] }
 0x176   : > { %13838 = vst [vmem:[#allocation33_spill] sm:$0xff] %v10918_v21  ;;  %v10921_v34 = vadd.f32 %v1586_v59, %v1113_v56  ;;  %v1115_v27 = vpop.f32.mrf.mxu0 }
 0x177   : > { %v1588_v25 = vpop.f32.mrf.mxu1 }
 0x178   : > { %13839 = vst [vmem:[#allocation34_spill] sm:$0xff] %v10921_v34  ;;  %v10923_v17 = vadd.f32 %v1588_v25, %v1115_v27  ;;  %v1117_v31 = vpop.f32.mrf.mxu0  ;;  %v2449_v27 = vld [vmem:[#allocation2 + $0xc3] sm:$0xff]  ;;  %v2450_v25 = vld [vmem:[#allocation2 + $0xcb] sm:$0xff] }
 0x179   : > { %v1590_v47 = vpop.f32.mrf.mxu1 }
 0x17a   : > { %13840 = vst [vmem:[#allocation35_spill] sm:$0xff] %v10923_v17  ;;  %v10928_v51 = vadd.f32 %v1590_v47, %v1117_v31  ;;  %v1121_v9 = vpop.f32.mrf.mxu0  ;;  %9111 = vmatmul.mubr.msk.bf16.gmra.mxu0 %vm509_vm1, %v1798_v36  ;;  %v13844_v47 = vmov 0.0  }
 0x17b   : > { %v1594_v56 = vpop.f32.mrf.mxu1  ;;  %9152 = vmatmul.mubr.msk.bf16.gmra.mxu1 %vm509_vm1, %v2500_v40  ;;  %2096 = vmatprep.mubr.bf16.mxu0 %v13842_v2  ;;  %v2501_v40 = vpack.c.bf16 %v2450_v25, %v2449_v27 }
 0x17c   : > { %13841 = vst [vmem:[#allocation36_spill] sm:$0xff] %v10928_v51  ;;  %v10933_v14 = vadd.f32 %v1594_v56, %v1121_v9  ;;  %v1123_v59 = vpop.f32.mrf.mxu0  ;;  %2798 = vmatprep.mubr.bf16.mxu1 %v13842_v2  ;;  %4313 = vmatprep.subr.mxu1 %v13844_v47 }
 0x17d   : > { %v1596_v31 = vpop.f32.mrf.mxu1 }
 0x17e   : > { %13843 = vst [vmem:[#allocation37_spill] sm:$0xff] %v10933_v14  ;;  %v10937_v51 = vadd.f32 %v1596_v31, %v1123_v59  ;;  %v1125_v36 = vpop.f32.mrf.mxu0  ;;  %v1749_v59 = vld [vmem:[#allocation2 + $0xd2] sm:$0xff]  ;;  %v1750_v31 = vld [vmem:[#allocation2 + $0xda] sm:$0xff] }
 0x17f   : > { %v1598_v17 = vpop.f32.mrf.mxu1 }
 0x180   : > { %13845 = vst [vmem:[#allocation38_spill] sm:$0xff] %v10937_v51  ;;  %v10939_v34 = vadd.f32 %v1598_v17, %v1125_v36  ;;  %v1127_v21 = vpop.f32.mrf.mxu0  ;;  %v2451_v17 = vld [vmem:[#allocation2 + $0xd3] sm:$0xff]  ;;  %v1800_v36 = vpack.c.bf16 %v1750_v31, %v1749_v59  ;;  %v1751_v59 = vld [vmem:[#allocation2 + $0xe2] sm:$0xff]  ;;  %v1752_v31 = vld [vmem:[#allocation2 + $0xea] sm:$0xff] }
 0x181   : > { %v1600_v49 = vpop.f32.mrf.mxu1 }
 0x182   : > { %13846 = vst [vmem:[#allocation39_spill] sm:$0xff] %v10939_v34  ;;  %v10941_v9 = vadd.f32 %v1600_v49, %v1127_v21  ;;  %v1131_v56 = vpop.f32.mrf.mxu0  ;;  %9112 = vmatmul.mubr.msk.bf16.gmra.mxu0 %vm509_vm1, %v1799_v50  ;;  %v4111_v49 = vld [vmem:[%s13789_s3 + $0x70] sm:$0xff] }
 0x183   : > { %v1604_v14 = vpop.f32.mrf.mxu1  ;;  %9153 = vmatmul.mubr.msk.bf16.gmra.mxu1 %vm509_vm1, %v2501_v40  ;;  %2106 = vmatprep.mubr.bf16.mxu0 %v13842_v2  ;;  %v2502_v40 = vpack.c.bf16 %v2452_v8, %v2451_v17  ;;  %v2453_v8 = vld [vmem:[#allocation2 + $0xe3] sm:$0xff] }
 0x184   : > { %13847 = vst [vmem:[#allocation40_spill] sm:$0xff] %v10941_v9  ;;  %v10946_v51 = vadd.f32 %v1604_v14, %v1131_v56  ;;  %v1133_v7 = vpop.f32.mrf.mxu0  ;;  %2808 = vmatprep.mubr.bf16.mxu1 %v13842_v2  ;;  %4314 = vmatpush1.msra.mxu1 %v4111_v49 }
 0x185   : > { %v1606_v27 = vpop.f32.mrf.mxu1  ;;  %4315 = vmatprep.subr.mxu1 %v13844_v47 }
 0x186   : > { %13848 = vst [vmem:[#allocation41_spill] sm:$0xff] %v10946_v51  ;;  %v10952_v21 = vadd.f32 %v1606_v27, %v1133_v7  ;;  %v1135_v25 = vpop.f32.mrf.mxu0  ;;  %v2454_v27 = vld [vmem:[#allocation2 + $0xeb] sm:$0xff] }
 0x187   : > { %v1608_v50 = vpop.f32.mrf.mxu1 }
 0x188   : > { %13849 = vst [vmem:[#allocation42_spill] sm:$0xff] %v10952_v21  ;;  %v10955_v14 = vadd.f32 %v1608_v50, %v1135_v25  ;;  %v1137_v56 = vpop.f32.mrf.mxu0  ;;  %v1801_v50 = vpack.c.bf16 %v1752_v31, %v1751_v59  ;;  %v1753_v59 = vld [vmem:[#allocation2 + $0xf2] sm:$0xff]  ;;  %v1754_v31 = vld [vmem:[#allocation2 + $0xfa] sm:$0xff] }
 0x189   : > { %v1610_v51 = vpop.f32.mrf.mxu1 }
 0x18a   : > { %13850 = vst [vmem:[#allocation43_spill] sm:$0xff] %v10955_v14  ;;  %v10957_v9 = vadd.f32 %v1610_v51, %v1137_v56  ;;  %v1141_v34 = vpop.f32.mrf.mxu0  ;;  %9113 = vmatmul.mubr.msk.bf16.gmra.mxu0 %vm509_vm1, %v1800_v36  ;;  %v2503_v56 = vpack.c.bf16 %v2454_v27, %v2453_v8 }
 0x18b   : > { %v1614_v0 = vpop.f32.mrf.mxu1  ;;  %9154 = vmatmul.mubr.msk.bf16.gmra.mxu1 %vm509_vm1, %v2502_v40  ;;  %2116 = vmatprep.mubr.bf16.mxu0 %v13842_v2 }
 0x18c   : > { %13851 = vst [vmem:[#allocation44_spill] sm:$0xff] %v10957_v9  ;;  %v10962_v7 = vadd.f32 %v1614_v0, %v1141_v34  ;;  %v1143_v17 = vpop.f32.mrf.mxu0  ;;  %2818 = vmatprep.mubr.bf16.mxu1 %v13842_v2  ;;  %v4110_v0 = vld [vmem:[%s13789_s3 + $0x68] sm:$0xff] }
 0x18d   : > { %v1616_v49 = vpop.f32.mrf.mxu1  ;;  %4316 = vmatpush1.msra.mxu1 %v4110_v0 }
 0x18e   : > { %13852 = vst [vmem:[#allocation45_spill] sm:$0xff] %v10962_v7  ;;  %v10965_v51 = vadd.f32 %v1616_v49, %v1143_v17  ;;  %v1145_v25 = vpop.f32.mrf.mxu0  ;;  %v2455_v49 = vld [vmem:[#allocation2 + $0xf3] sm:$0xff]  ;;  %4317 = vmatprep.subr.mxu1 %v13844_v47 }
 0x18f   : > { %v1618_v36 = vpop.f32.mrf.mxu1 }
 0x190   : > { %13853 = vst [vmem:[#allocation46_spill] sm:$0xff] %v10965_v51  ;;  %v10967_v9 = vadd.f32 %v1618_v36, %v1145_v25  ;;  %v1147_v40 = vpop.f32.mrf.mxu0  ;;  %v2456_v25 = vld [vmem:[#allocation2 + $0xfb] sm:$0xff] }
 0x191   : > { %v1620_v14 = vpop.f32.mrf.mxu1 }
 0x192   : > { %13854 = vst [vmem:[#allocation47_spill] sm:$0xff] %v10967_v9  ;;  %v10972_v34 = vadd.f32 %v1620_v14, %v1147_v40  ;;  %v1151_v7 = vpop.f32.mrf.mxu0  ;;  %9114 = vmatmul.mubr.msk.bf16.gmra.mxu0 %vm509_vm1, %v1801_v50  ;;  %v1802_v40 = vpack.c.bf16 %v1754_v31, %v1753_v59  ;;  %v2457_v31 = vld [vmem:[#allocation2 + $0x103] sm:$0xff] }
 0x193   : > { %v1624_v17 = vpop.f32.mrf.mxu1  ;;  %9155 = vmatmul.mubr.msk.bf16.gmra.mxu1 %vm509_vm1, %v2503_v56  ;;  %2126 = vmatprep.mubr.bf16.mxu0 %v13842_v2  ;;  %v2504_v56 = vpack.c.bf16 %v2456_v25, %v2455_v49  ;;  %v2458_v49 = vld [vmem:[#allocation2 + $0x10b] sm:$0xff] }
 0x194   : > { %13855 = vst [vmem:[#allocation48_spill] sm:$0xff] %v10972_v34  ;;  %v10977_v8 = vadd.f32 %v1624_v17, %v1151_v7  ;;  %v1153_v27 = vpop.f32.mrf.mxu0  ;;  %2828 = vmatprep.mubr.bf16.mxu1 %v13842_v2 }
 0x195   : > { %v1626_v14 = vpop.f32.mrf.mxu1 }
 0x196   : > { %13856 = vst [vmem:[#allocation49_spill] sm:$0xff] %v10977_v8  ;;  %v10981_v36 = vadd.f32 %v1626_v14, %v1153_v27  ;;  %v1155_v50 = vpop.f32.mrf.mxu0  ;;  %v1755_v27 = vld [vmem:[#allocation2 + $0x102] sm:$0xff]  ;;  %v1756_v14 = vld [vmem:[#allocation2 + $0x10a] sm:$0xff] }
 0x197   : > { %v1628_v0 = vpop.f32.mrf.mxu1 }
 0x198   : > { %13857 = vst [vmem:[#allocation50_spill] sm:$0xff] %v10981_v36  ;;  %v10983_v34 = vadd.f32 %v1628_v0, %v1155_v50  ;;  %v1157_v9 = vpop.f32.mrf.mxu0 }
 0x199   : > { %v1630_v51 = vpop.f32.mrf.mxu1 }
 0x19a   : > { %13858 = vst [vmem:[#allocation51_spill] sm:$0xff] %v10983_v34  ;;  %v10985_v7 = vadd.f32 %v1630_v51, %v1157_v9  ;;  %v1161_v17 = vpop.f32.mrf.mxu0  ;;  %9115 = vmatmul.mubr.msk.bf16.gmra.mxu0 %vm509_vm1, %v1802_v40  ;;  %v4109_v9 = vld [vmem:[%s13789_s3 + $0x60] sm:$0xff]  ;;  %v1803_v40 = vpack.c.bf16 %v1756_v14, %v1755_v27  ;;  %v1757_v27 = vld [vmem:[#allocation2 + $0x112] sm:$0xff] }
 0x19b   : > { %v1634_v8 = vpop.f32.mrf.mxu1  ;;  %9156 = vmatmul.mubr.msk.bf16.gmra.mxu1 %vm509_vm1, %v2504_v56  ;;  %2136 = vmatprep.mubr.bf16.mxu0 %v13842_v2  ;;  %v2505_v56 = vpack.c.bf16 %v2458_v49, %v2457_v31  ;;  %v1758_v14 = vld [vmem:[#allocation2 + $0x11a] sm:$0xff] }
 0x19c   : > { %13859 = vst [vmem:[#allocation52_spill] sm:$0xff] %v10985_v7  ;;  %v10990_v36 = vadd.f32 %v1634_v8, %v1161_v17  ;;  %v1163_v59 = vpop.f32.mrf.mxu0  ;;  %2838 = vmatprep.mubr.bf16.mxu1 %v13842_v2  ;;  %4318 = vmatpush1.msra.mxu1 %v4109_v9  ;;  %v2459_v49 = vld [vmem:[#allocation2 + $0x113] sm:$0xff] }
 0x19d   : > { %v1636_v25 = vpop.f32.mrf.mxu1  ;;  %4319 = vmatprep.subr.mxu1 %v13844_v47 }
 0x19e   : > { %13860 = vst [vmem:[#allocation53_spill] sm:$0xff] %v10990_v36  ;;  %v10996_v51 = vadd.f32 %v1636_v25, %v1163_v59  ;;  %v1165_v50 = vpop.f32.mrf.mxu0  ;;  %v2460_v25 = vld [vmem:[#allocation2 + $0x11b] sm:$0xff] }
 0x19f   : > { %v1638_v0 = vpop.f32.mrf.mxu1 }
 0x1a0   : > { %13861 = vst [vmem:[#allocation54_spill] sm:$0xff] %v10996_v51  ;;  %v10999_v8 = vadd.f32 %v1638_v0, %v1165_v50  ;;  %v1167_v17 = vpop.f32.mrf.mxu0  ;;  %v1804_v0 = vpack.c.bf16 %v1758_v14, %v1757_v27  ;;  %v1759_v27 = vld [vmem:[#allocation2 + $0x122] sm:$0xff]  ;;  %v1760_v14 = vld [vmem:[#allocation2 + $0x12a] sm:$0xff] }
 0x1a1   : > { %v1640_v36 = vpop.f32.mrf.mxu1 }
 0x1a2   : > { %13862 = vst [vmem:[#allocation55_spill] sm:$0xff] %v10999_v8  ;;  %v11001_v7 = vadd.f32 %v1640_v36, %v1167_v17  ;;  %v1171_v34 = vpop.f32.mrf.mxu0  ;;  %9116 = vmatmul.mubr.msk.bf16.gmra.mxu0 %vm509_vm1, %v1803_v40  ;;  %v2506_v17 = vpack.c.bf16 %v2460_v25, %v2459_v49 }
 0x1a3   : > { %v1644_v21 = vpop.f32.mrf.mxu1  ;;  %9157 = vmatmul.mubr.msk.bf16.gmra.mxu1 %vm509_vm1, %v2505_v56  ;;  %2146 = vmatprep.mubr.bf16.mxu0 %v13842_v2 }
 0x1a4   : > { %13863 = vst [vmem:[#allocation56_spill] sm:$0xff] %v11001_v7  ;;  %v11006_v59 = vadd.f32 %v1644_v21, %v1171_v34  ;;  %v1173_v31 = vpop.f32.mrf.mxu0  ;;  %2848 = vmatprep.mubr.bf16.mxu1 %v13842_v2  ;;  %v4108_v21 = vld [vmem:[%s13789_s3 + $0x58] sm:$0xff] }
 0x1a5   : > { %v1646_v9 = vpop.f32.mrf.mxu1  ;;  %4320 = vmatpush1.msra.mxu1 %v4108_v21 }
 0x1a6   : > { %13864 = vst [vmem:[#allocation57_spill] sm:$0xff] %v11006_v59  ;;  %v11009_v36 = vadd.f32 %v1646_v9, %v1173_v31  ;;  %v1175_v50 = vpop.f32.mrf.mxu0  ;;  %v2461_v9 = vld [vmem:[#allocation2 + $0x123] sm:$0xff]  ;;  %4321 = vmatprep.subr.mxu1 %v13844_v47 }
 0x1a7   : > { %v1648_v40 = vpop.f32.mrf.mxu1 }
 0x1a8   : > { %13865 = vst [vmem:[#allocation58_spill] sm:$0xff] %v11009_v36  ;;  %v11011_v7 = vadd.f32 %v1648_v40, %v1175_v50  ;;  %v1177_v56 = vpop.f32.mrf.mxu0  ;;  %v2462_v50 = vld [vmem:[#allocation2 + $0x12b] sm:$0xff] }
 0x1a9   : > { %v1650_v8 = vpop.f32.mrf.mxu1 }
 0x1aa   : > { %13866 = vst [vmem:[#allocation59_spill] sm:$0xff] %v11011_v7  ;;  %v11016_v34 = vadd.f32 %v1650_v8, %v1177_v56  ;;  %v1181_v59 = vpop.f32.mrf.mxu0  ;;  %9117 = vmatmul.mubr.msk.bf16.gmra.mxu0 %vm509_vm1, %v1804_v0  ;;  %v1805_v56 = vpack.c.bf16 %v1760_v14, %v1759_v27  ;;  %v2463_v14 = vld [vmem:[#allocation2 + $0x133] sm:$0xff] }
 0x1ab   : > { %v1654_v31 = vpop.f32.mrf.mxu1  ;;  %9158 = vmatmul.mubr.msk.bf16.gmra.mxu1 %vm509_vm1, %v2506_v17  ;;  %2156 = vmatprep.mubr.bf16.mxu0 %v13842_v2  ;;  %v2507_v17 = vpack.c.bf16 %v2462_v50, %v2461_v9  ;;  %v2464_v9 = vld [vmem:[#allocation2 + $0x13b] sm:$0xff] }
 0x1ac   : > { %13867 = vst [vmem:[#allocation60_spill] sm:$0xff] %v11016_v34  ;;  %v11021_v49 = vadd.f32 %v1654_v31, %v1181_v59  ;;  %v1183_v25 = vpop.f32.mrf.mxu0  ;;  %2858 = vmatprep.mubr.bf16.mxu1 %v13842_v2 }
 0x1ad   : > { %v1656_v8 = vpop.f32.mrf.mxu1 }
 0x1ae   : > { %13868 = vst [vmem:[#allocation61_spill] sm:$0xff] %v11021_v49  ;;  %v11025_v40 = vadd.f32 %v1656_v8, %v1183_v25  ;;  %v1185_v0 = vpop.f32.mrf.mxu0  ;;  %v1761_v25 = vld [vmem:[#allocation2 + $0x132] sm:$0xff]  ;;  %v1762_v8 = vld [vmem:[#allocation2 + $0x13a] sm:$0xff] }
 0x1af   : > { %v1658_v21 = vpop.f32.mrf.mxu1 }
 0x1b0   : > { %13869 = vst [vmem:[#allocation62_spill] sm:$0xff] %v11025_v40  ;;  %v11027_v34 = vadd.f32 %v1658_v21, %v1185_v0  ;;  %v1187_v7 = vpop.f32.mrf.mxu0 }
 0x1b1   : > { %v1660_v36 = vpop.f32.mrf.mxu1 }
 0x1b2   : > { %13870 = vst [vmem:[#allocation63_spill] sm:$0xff] %v11027_v34  ;;  %v11029_v59 = vadd.f32 %v1660_v36, %v1187_v7  ;;  %v1191_v31 = vpop.f32.mrf.mxu0  ;;  %9118 = vmatmul.mubr.msk.bf16.gmra.mxu0 %vm509_vm1, %v1805_v56  ;;  %v4107_v7 = vld [vmem:[%s13789_s3 + $0x50] sm:$0xff]  ;;  %v1806_v56 = vpack.c.bf16 %v1762_v8, %v1761_v25  ;;  %v1763_v25 = vld [vmem:[#allocation2 + $0x142] sm:$0xff] }
 0x1b3   : > { %v1664_v49 = vpop.f32.mrf.mxu1  ;;  %9159 = vmatmul.mubr.msk.bf16.gmra.mxu1 %vm509_vm1, %v2507_v17  ;;  %2166 = vmatprep.mubr.bf16.mxu0 %v13842_v2  ;;  %v2508_v17 = vpack.c.bf16 %v2464_v9, %v2463_v14  ;;  %v1764_v8 = vld [vmem:[#allocation2 + $0x14a] sm:$0xff] }
 0x1b4   : > { %13871 = vst [vmem:[#allocation64_spill] sm:$0xff] %v11029_v59  ;;  %v11034_v40 = vadd.f32 %v1664_v49, %v1191_v31  ;;  %v1193_v27 = vpop.f32.mrf.mxu0  ;;  %2868 = vmatprep.mubr.bf16.mxu1 %v13842_v2  ;;  %4322 = vmatpush1.msra.mxu1 %v4107_v7  ;;  %v2465_v9 = vld [vmem:[#allocation2 + $0x143] sm:$0xff] }
 0x1b5   : > { %v1666_v50 = vpop.f32.mrf.mxu1  ;;  %4323 = vmatprep.subr.mxu1 %v13844_v47 }
 0x1b6   : > { %13872 = vst [vmem:[#allocation65_spill] sm:$0xff] %v11034_v40  ;;  %v11040_v36 = vadd.f32 %v1666_v50, %v1193_v27  ;;  %v1195_v0 = vpop.f32.mrf.mxu0  ;;  %v2466_v50 = vld [vmem:[#allocation2 + $0x14b] sm:$0xff] }
 0x1b7   : > { %v1668_v21 = vpop.f32.mrf.mxu1 }
 0x1b8   : > { %13873 = vst [vmem:[#allocation66_spill] sm:$0xff] %v11040_v36  ;;  %v11043_v49 = vadd.f32 %v1668_v21, %v1195_v0  ;;  %v1197_v31 = vpop.f32.mrf.mxu0  ;;  %v1807_v21 = vpack.c.bf16 %v1764_v8, %v1763_v25  ;;  %v4106_v25 = vld [vmem:[%s13789_s3 + $0x48] sm:$0xff] }
 0x1b9   : > { %v1670_v40 = vpop.f32.mrf.mxu1  ;;  %4324 = vmatpush1.msra.mxu1 %v4106_v25  ;;  %v1767_v25 = vld [vmem:[#allocation2 + $0x162] sm:$0xff] }
 0x1ba   : > { %13874 = vst [vmem:[#allocation67_spill] sm:$0xff] %v11043_v49  ;;  %v11045_v59 = vadd.f32 %v1670_v40, %v1197_v31  ;;  %v1201_v34 = vpop.f32.mrf.mxu0  ;;  %9119 = vmatmul.mubr.msk.bf16.gmra.mxu0 %vm509_vm1, %v1806_v56  ;;  %v2509_v31 = vpack.c.bf16 %v2466_v50, %v2465_v9  ;;  %v2468_v50 = vld [vmem:[#allocation2 + $0x15b] sm:$0xff]  ;;  %4325 = vmatprep.subr.mxu1 %v13844_v47 }
 0x1bb   : > { %v1674_v51 = vpop.f32.mrf.mxu1  ;;  %9160 = vmatmul.mubr.msk.bf16.gmra.mxu1 %vm509_vm1, %v2508_v17  ;;  %2176 = vmatprep.mubr.bf16.mxu0 %v13842_v2 }
 0x1bc   : > { %13875 = vst [vmem:[#allocation68_spill] sm:$0xff] %v11045_v59  ;;  %v11050_v27 = vadd.f32 %v1674_v51, %v1201_v34  ;;  %v1203_v14 = vpop.f32.mrf.mxu0  ;;  %2878 = vmatprep.mubr.bf16.mxu1 %v13842_v2 }
 0x1bd   : > { %v1676_v7 = vpop.f32.mrf.mxu1 }
 0x1be   : > { %13876 = vst [vmem:[#allocation69_spill] sm:$0xff] %v11050_v27  ;;  %v11053_v40 = vadd.f32 %v1676_v7, %v1203_v14  ;;  %v1205_v0 = vpop.f32.mrf.mxu0  ;;  %v1765_v14 = vld [vmem:[#allocation2 + $0x152] sm:$0xff]  ;;  %v1766_v7 = vld [vmem:[#allocation2 + $0x15a] sm:$0xff] }
 0x1bf   : > { %v1678_v56 = vpop.f32.mrf.mxu1 }
 0x1c0   : > { %13877 = vst [vmem:[#allocation70_spill] sm:$0xff] %v11053_v40  ;;  %v11055_v59 = vadd.f32 %v1678_v56, %v1205_v0  ;;  %v1207_v17 = vpop.f32.mrf.mxu0 }
 0x1c1   : > { %v1680_v49 = vpop.f32.mrf.mxu1 }
 0x1c2   : > { %13878 = vst [vmem:[#allocation71_spill] sm:$0xff] %v11055_v59  ;;  %v11057_v36 = vadd.f32 %v1680_v49, %v1207_v17  ;;  %v1211_v51 = vpop.f32.mrf.mxu0  ;;  %9120 = vmatmul.mubr.msk.bf16.gmra.mxu0 %vm509_vm1, %v1807_v21  ;;  %v2467_v49 = vld [vmem:[#allocation2 + $0x153] sm:$0xff] }
 0x1c3   : > { %v1684_v34 = vpop.f32.mrf.mxu1  ;;  %9161 = vmatmul.mubr.msk.bf16.gmra.mxu1 %vm509_vm1, %v2509_v31  ;;  %2186 = vmatprep.mubr.bf16.mxu0 %v13842_v2  ;;  %v1808_v31 = vpack.c.bf16 %v1766_v7, %v1765_v14  ;;  %v2469_v7 = vld [vmem:[#allocation2 + $0x163] sm:$0xff] }
 0x1c4   : > { %13879 = vst [vmem:[#allocation72_spill] sm:$0xff] %v11057_v36  ;;  %v11065_v8 = vadd.f32 %v1684_v34, %v1211_v51  ;;  %v1213_v9 = vpop.f32.mrf.mxu0  ;;  %2888 = vmatprep.mubr.bf16.mxu1 %v13842_v2  ;;  %v2510_v36 = vpack.c.bf16 %v2468_v50, %v2467_v49  ;;  %v2470_v49 = vld [vmem:[#allocation2 + $0x16b] sm:$0xff] }
 0x1c5   : > { %v1686_v0 = vpop.f32.mrf.mxu1 }
 0x1c6   : > { %13880 = vst [vmem:[#allocation73_spill] sm:$0xff] %v11065_v8  ;;  %v11069_v21 = vadd.f32 %v1686_v0, %v1213_v9  ;;  %v1215_v56 = vpop.f32.mrf.mxu0  ;;  %v1768_v9 = vld [vmem:[#allocation2 + $0x16a] sm:$0xff] }
 0x1c7   : > { %v1688_v17 = vpop.f32.mrf.mxu1 }
 0x1c8   : > { %13881 = vst [vmem:[#allocation74_spill] sm:$0xff] %v11069_v21  ;;  %v11071_v59 = vadd.f32 %v1688_v17, %v1215_v56  ;;  %v1217_v40 = vpop.f32.mrf.mxu0  ;;  %v1809_v17 = vpack.c.bf16 %v1768_v9, %v1767_v25  ;;  %v1769_v25 = vld [vmem:[#allocation2 + $0x172] sm:$0xff]  ;;  %v1770_v9 = vld [vmem:[#allocation2 + $0x17a] sm:$0xff] }
 0x1c9   : > { %v1690_v51 = vpop.f32.mrf.mxu1 }
 0x1ca   : > { %13882 = vst [vmem:[#allocation75_spill] sm:$0xff] %v11071_v59  ;;  %v11073_v34 = vadd.f32 %v1690_v51, %v1217_v40  ;;  %v1221_v8 = vpop.f32.mrf.mxu0  ;;  %9121 = vmatmul.mubr.msk.bf16.gmra.mxu0 %vm509_vm1, %v1808_v31  ;;  %v2511_v51 = vpack.c.bf16 %v2470_v49, %v2469_v7 }
 0x1cb   : > { %v1694_v27 = vpop.f32.mrf.mxu1  ;;  %9162 = vmatmul.mubr.msk.bf16.gmra.mxu1 %vm509_vm1, %v2510_v36  ;;  %2196 = vmatprep.mubr.bf16.mxu0 %v13842_v2  ;;  %v4105_v36 = vld [vmem:[%s13789_s3 + $0x40] sm:$0xff] }
 0x1cc   : > { %13883 = vst [vmem:[#allocation76_spill] sm:$0xff] %v11073_v34  ;;  %v11078_v0 = vadd.f32 %v1694_v27, %v1221_v8  ;;  %v1223_v14 = vpop.f32.mrf.mxu0  ;;  %2898 = vmatprep.mubr.bf16.mxu1 %v13842_v2  ;;  %4326 = vmatpush1.msra.mxu1 %v4105_v36 }
 0x1cd   : > { %v1696_v50 = vpop.f32.mrf.mxu1  ;;  %4327 = vmatprep.subr.mxu1 %v13844_v47 }
 0x1ce   : > { %13884 = vst [vmem:[#allocation77_spill] sm:$0xff] %v11078_v0  ;;  %v11081_v40 = vadd.f32 %v1696_v50, %v1223_v14  ;;  %v1225_v56 = vpop.f32.mrf.mxu0  ;;  %v2471_v50 = vld [vmem:[#allocation2 + $0x173] sm:$0xff] }
 0x1cf   : > { %v1698_v31 = vpop.f32.mrf.mxu1 }
 0x1d0   : > { %13885 = vst [vmem:[#allocation78_spill] sm:$0xff] %v11081_v40  ;;  %v11086_v34 = vadd.f32 %v1698_v31, %v1225_v56  ;;  %v1227_v27 = vpop.f32.mrf.mxu0  ;;  %v2472_v56 = vld [vmem:[#allocation2 + $0x17b] sm:$0xff] }
 0x1d1   : > { %v1700_v8 = vpop.f32.mrf.mxu1 }
 0x1d2   : > { %13886 = vst [vmem:[#allocation79_spill] sm:$0xff] %v11086_v34  ;;  %v11089_v0 = vadd.f32 %v1700_v8, %v1227_v27  ;;  %v1231_v59 = vpop.f32.mrf.mxu0  ;;  %9122 = vmatmul.mubr.msk.bf16.gmra.mxu0 %vm509_vm1, %v1809_v17  ;;  %v1810_v8 = vpack.c.bf16 %v1770_v9, %v1769_v25  ;;  %v4104_v25 = vld [vmem:[%s13789_s3 + $0x38] sm:$0xff] }
 0x1d3   : > { %v1704_v14 = vpop.f32.mrf.mxu1  ;;  %9163 = vmatmul.mubr.msk.bf16.gmra.mxu1 %vm509_vm1, %v2511_v51  ;;  %2206 = vmatprep.mubr.bf16.mxu0 %v13842_v2 }
 0x1d4   : > { %13887 = vst [vmem:[#allocation80_spill] sm:$0xff] %v11089_v0  ;;  %v11094_v7 = vadd.f32 %v1704_v14, %v1231_v59  ;;  %v1233_v49 = vpop.f32.mrf.mxu0  ;;  %2908 = vmatprep.mubr.bf16.mxu1 %v13842_v2  ;;  %v2512_v0 = vpack.c.bf16 %v2472_v56, %v2471_v50  ;;  %v2474_v56 = vld [vmem:[#allocation2 + $0x18b] sm:$0xff]  ;;  %4328 = vmatpush1.msra.mxu1 %v4104_v25 }
 0x1d5   : > { %v1706_v31 = vpop.f32.mrf.mxu1  ;;  %4329 = vmatprep.subr.mxu1 %v13844_v47 }
 0x1d6   : > { %13888 = vst [vmem:[#allocation81_spill] sm:$0xff] %v11094_v7  ;;  %v11097_v36 = vadd.f32 %v1706_v31, %v1233_v49  ;;  %v1235_v27 = vpop.f32.mrf.mxu0  ;;  %v1771_v49 = vld [vmem:[#allocation2 + $0x182] sm:$0xff]  ;;  %v1772_v31 = vld [vmem:[#allocation2 + $0x18a] sm:$0xff] }
 0x1d7   : > { %v1708_v17 = vpop.f32.mrf.mxu1 }
 0x1d8   : > { %13889 = vst [vmem:[#allocation82_spill] sm:$0xff] %v11097_v36  ;;  %v11099_v34 = vadd.f32 %v1708_v17, %v1235_v27  ;;  %v1237_v51 = vpop.f32.mrf.mxu0  ;;  %v1811_v17 = vpack.c.bf16 %v1772_v31, %v1771_v49  ;;  %v1774_v49 = vld [vmem:[#allocation2 + $0x19a] sm:$0xff] }
 0x1d9   : > { %v1710_v40 = vpop.f32.mrf.mxu1 }
 0x1da   : > { %13890 = vst [vmem:[#allocation83_spill] sm:$0xff] %v11099_v34  ;;  %v11101_v21 = vadd.f32 %v1710_v40, %v1237_v51  ;;  %v1241_v59 = vpop.f32.mrf.mxu0  ;;  %9123 = vmatmul.mubr.msk.bf16.gmra.mxu0 %vm509_vm1, %v1810_v8  ;;  %v2473_v40 = vld [vmem:[#allocation2 + $0x183] sm:$0xff] }
 0x1db   : > { %v1714_v14 = vpop.f32.mrf.mxu1  ;;  %9164 = vmatmul.mubr.msk.bf16.gmra.mxu1 %vm509_vm1, %v2512_v0  ;;  %2216 = vmatprep.mubr.bf16.mxu0 %v13842_v2 }
 0x1dc   : > { %13891 = vst [vmem:[#allocation84_spill] sm:$0xff] %v11101_v21  ;;  %v11109_v9 = vadd.f32 %v1714_v14, %v1241_v59  ;;  %v1243_v50 = vpop.f32.mrf.mxu0  ;;  %2918 = vmatprep.mubr.bf16.mxu1 %v13842_v2  ;;  %v2513_v21 = vpack.c.bf16 %v2474_v56, %v2473_v40  ;;  %v2475_v40 = vld [vmem:[#allocation2 + $0x193] sm:$0xff]  ;;  %v2476_v56 = vld [vmem:[#allocation2 + $0x19b] sm:$0xff] }
 0x1dd   : > { %v1716_v27 = vpop.f32.mrf.mxu1 }
 0x1de   : > { %13892 = vst [vmem:[#allocation85_spill] sm:$0xff] %v11109_v9  ;;  %v11113_v0 = vadd.f32 %v1716_v27, %v1243_v50  ;;  %v1245_v8 = vpop.f32.mrf.mxu0  ;;  %v1773_v50 = vld [vmem:[#allocation2 + $0x192] sm:$0xff] }
 0x1df   : > { %v1718_v51 = vpop.f32.mrf.mxu1 }
 0x1e0   : > { %13893 = vst [vmem:[#allocation86_spill] sm:$0xff] %v11113_v0  ;;  %v11115_v34 = vadd.f32 %v1718_v51, %v1245_v8  ;;  %v1247_v36 = vpop.f32.mrf.mxu0  ;;  %v1812_v51 = vpack.c.bf16 %v1774_v49, %v1773_v50 }
 0x1e1   : > { %v1720_v59 = vpop.f32.mrf.mxu1 }
 0x1e2   : > { %13894 = vst [vmem:[#allocation87_spill] sm:$0xff] %v11115_v34  ;;  %v11117_v14 = vadd.f32 %v1720_v59, %v1247_v36  ;;  %v1978_v9 = vpop.f32.mrf.mxu0  ;;  %9124 = vmatmul.mubr.msk.bf16.gmra.mxu0 %vm509_vm1, %v1811_v17  ;;  %v2514_v59 = vpack.c.bf16 %v2476_v56, %v2475_v40  ;;  %v2478_v40 = vld [vmem:[#allocation2 + $0x1ab] sm:$0xff] }
 0x1e3   : > { %v2297_v25 = vadd.f32 %v1978_v9, %v10692_v55  ;;  %v2680_v7 = vpop.f32.mrf.mxu1  ;;  %9165 = vmatmul.mubr.msk.bf16.gmra.mxu1 %vm509_vm1, %v2513_v21  ;;  %2226 = vmatprep.mubr.bf16.mxu0 %v13842_v2 }
 0x1e4   : > { %13895 = vst [vmem:[#allocation88_spill] sm:$0xff] %v11117_v14  ;;  %v1980_v31 = vpop.f32.mrf.mxu0  ;;  %2928 = vmatprep.mubr.bf16.mxu1 %v13842_v2  ;;  %v4103_v14 = vld [vmem:[%s13789_s3 + $0x30] sm:$0xff] }
 0x1e5   : > { %v2298_v36 = vadd.f32 %v1980_v31, %v10695_v60  ;;  %v11125_v27 = vadd.f32 %v2680_v7, %v2297_v25  ;;  %v2682_v8 = vpop.f32.mrf.mxu1  ;;  %4330 = vmatpush1.msra.mxu1 %v4103_v14  ;;  %v1775_v14 = vld [vmem:[#allocation2 + $0x1a2] sm:$0xff]  ;;  %v1776_v31 = vld [vmem:[#allocation2 + $0x1aa] sm:$0xff] }
 0x1e6   : > { %v1982_v17 = vpop.f32.mrf.mxu0  ;;  %4331 = vmatprep.subr.mxu1 %v13844_v47 }
 0x1e7   : > { %v2299_v55 = vadd.f32 %v1982_v17, %v10697_v1  ;;  %v11128_v9 = vadd.f32 %v2682_v8, %v2298_v36  ;;  %v2684_v21 = vpop.f32.mrf.mxu1 }
 0x1e8   : > { %v1984_v34 = vpop.f32.mrf.mxu0 }
 0x1e9   : > { %v2300_v0 = vadd.f32 %v1984_v34, %v10699_v4  ;;  %v11134_v60 = vadd.f32 %v2684_v21, %v2299_v55  ;;  %v2686_v7 = vpop.f32.mrf.mxu1  ;;  %v2477_v34 = vld [vmem:[#allocation2 + $0x1a3] sm:$0xff] }
 0x1ea   : > { %v1988_v25 = vpop.f32.mrf.mxu0  ;;  %9125 = vmatmul.mubr.msk.bf16.gmra.mxu0 %vm509_vm1, %v1812_v51  ;;  %v2515_v21 = vpack.c.bf16 %v2478_v40, %v2477_v34  ;;  %v2480_v34 = vld [vmem:[#allocation2 + $0x1bb] sm:$0xff] }
 0x1eb   : > { %13896 = vst [vmem:[#allocation89_spill] sm:$0xff] %v11134_v60  ;;  %v2301_v1 = vadd.f32 %v1988_v25, %v10704_v10  ;;  %v11139_v50 = vadd.f32 %v2686_v7, %v2300_v0  ;;  %v2690_v49 = vpop.f32.mrf.mxu1  ;;  %9166 = vmatmul.mubr.msk.bf16.gmra.mxu1 %vm509_vm1, %v2514_v59  ;;  %2236 = vmatprep.mubr.bf16.mxu0 %v13842_v2 }
 0x1ec   : > { %v1990_v4 = vpop.f32.mrf.mxu0  ;;  %2938 = vmatprep.mubr.bf16.mxu1 %v13842_v2  ;;  %v1813_v0 = vpack.c.bf16 %v1776_v31, %v1775_v14  ;;  %v1778_v14 = vld [vmem:[#allocation2 + $0x1ba] sm:$0xff] }
 0x1ed   : > { %13897 = vst [vmem:[#allocation90_spill] sm:$0xff] %v11139_v50  ;;  %v2302_v56 = vadd.f32 %v1990_v4, %v10707_v15  ;;  %v11145_v36 = vadd.f32 %v2690_v49, %v2301_v1  ;;  %v2692_v8 = vpop.f32.mrf.mxu1  ;;  %v2479_v4 = vld [vmem:[#allocation2 + $0x1b3] sm:$0xff] }
 0x1ee   : > { %v1992_v10 = vpop.f32.mrf.mxu0 }
 0x1ef   : > { %v2303_v17 = vadd.f32 %v1992_v10, %v10709_v20  ;;  %v11148_v51 = vadd.f32 %v2692_v8, %v2302_v56  ;;  %v2694_v55 = vpop.f32.mrf.mxu1  ;;  %v1777_v20 = vld [vmem:[#allocation2 + $0x1b2] sm:$0xff] }
 0x1f0   : > { %v1994_v59 = vpop.f32.mrf.mxu0  ;;  %v1814_v56 = vpack.c.bf16 %v1778_v14, %v1777_v20  ;;  %v1780_v14 = vld [vmem:[#allocation2 + $0x1ca] sm:$0xff] }
 0x1f1   : > { %v2304_v7 = vadd.f32 %v1994_v59, %v10711_v23  ;;  %v11151_v25 = vadd.f32 %v2694_v55, %v2303_v17  ;;  %v2696_v50 = vpop.f32.mrf.mxu1  ;;  %v4102_v23 = vld [vmem:[%s13789_s3 + $0x28] sm:$0xff]  ;;  %v2516_v17 = vpack.c.bf16 %v2480_v34, %v2479_v4 }
 0x1f2   : > { %v1998_v60 = vpop.f32.mrf.mxu0  ;;  %9126 = vmatmul.mubr.msk.bf16.gmra.mxu0 %vm509_vm1, %v1813_v0  ;;  %4332 = vmatpush1.msra.mxu1 %v4102_v23 }
 0x1f3   : > { %v2305_v15 = vadd.f32 %v1998_v60, %v10716_v28  ;;  %v11155_v1 = vadd.f32 %v2696_v50, %v2304_v7  ;;  %v2700_v49 = vpop.f32.mrf.mxu1  ;;  %9167 = vmatmul.mubr.msk.bf16.gmra.mxu1 %vm509_vm1, %v2515_v21  ;;  %2246 = vmatprep.mubr.bf16.mxu0 %v13842_v2 }
 0x1f4   : > { %v2000_v31 = vpop.f32.mrf.mxu0  ;;  %2948 = vmatprep.mubr.bf16.mxu1 %v13842_v2  ;;  %4333 = vmatprep.subr.mxu1 %v13844_v47 }
 0x1f5   : > { %v2306_v28 = vadd.f32 %v2000_v31, %v10719_v33  ;;  %v11164_v60 = vadd.f32 %v2700_v49, %v2305_v15  ;;  %v2702_v50 = vpop.f32.mrf.mxu1  ;;  %v2482_v31 = vld [vmem:[#allocation2 + $0x1cb] sm:$0xff] }
 0x1f6   : > { %v2002_v40 = vpop.f32.mrf.mxu0 }
 0x1f7   : > { %v2307_v8 = vadd.f32 %v2002_v40, %v10721_v38  ;;  %v11168_v10 = vadd.f32 %v2702_v50, %v2306_v28  ;;  %v2704_v0 = vpop.f32.mrf.mxu1  ;;  %v1779_v38 = vld [vmem:[#allocation2 + $0x1c2] sm:$0xff] }
 0x1f8   : > { %v2004_v55 = vpop.f32.mrf.mxu0  ;;  %v1815_v50 = vpack.c.bf16 %v1780_v14, %v1779_v38  ;;  %v1782_v38 = vld [vmem:[#allocation2 + $0x1da] sm:$0xff] }
 0x1f9   : > { %v2308_v21 = vadd.f32 %v2004_v55, %v10723_v41  ;;  %v11171_v59 = vadd.f32 %v2704_v0, %v2307_v8  ;;  %v2706_v7 = vpop.f32.mrf.mxu1  ;;  %v2481_v41 = vld [vmem:[#allocation2 + $0x1c3] sm:$0xff] }
 0x1fa   : > { %v2008_v33 = vpop.f32.mrf.mxu0  ;;  %9127 = vmatmul.mubr.msk.bf16.gmra.mxu0 %vm509_vm1, %v1814_v56  ;;  %v2517_v0 = vpack.c.bf16 %v2482_v31, %v2481_v41  ;;  %v2484_v41 = vld [vmem:[#allocation2 + $0x1db] sm:$0xff] }
 0x1fb   : > { %v2309_v15 = vadd.f32 %v2008_v33, %v10728_v46  ;;  %v11175_v49 = vadd.f32 %v2706_v7, %v2308_v21  ;;  %v2710_v20 = vpop.f32.mrf.mxu1  ;;  %9168 = vmatmul.mubr.msk.bf16.gmra.mxu1 %vm509_vm1, %v2516_v17  ;;  %2256 = vmatprep.mubr.bf16.mxu0 %v13842_v2  ;;  %v4101_v17 = vld [vmem:[%s13789_s3 + $0x20] sm:$0xff] }
 0x1fc   : > { %v2010_v23 = vpop.f32.mrf.mxu0  ;;  %2958 = vmatprep.mubr.bf16.mxu1 %v13842_v2  ;;  %4334 = vmatpush1.msra.mxu1 %v4101_v17 }
 0x1fd   : > { %v2310_v4 = vadd.f32 %v2010_v23, %v10731_v52  ;;  %v11181_v34 = vadd.f32 %v2710_v20, %v2309_v15  ;;  %v2712_v28 = vpop.f32.mrf.mxu1  ;;  %4335 = vmatprep.subr.mxu1 %v13844_v47  ;;  %v2483_v23 = vld [vmem:[#allocation2 + $0x1d3] sm:$0xff] }
 0x1fe   : > { %v2012_v46 = vpop.f32.mrf.mxu0 }
 0x1ff   : > { %v2311_v40 = vadd.f32 %v2012_v46, %v10733_v58  ;;  %v11184_v56 = vadd.f32 %v2712_v28, %v2310_v4  ;;  %v2714_v8 = vpop.f32.mrf.mxu1 }
 0x200   : > { %v2014_v55 = vpop.f32.mrf.mxu0 }
 0x201   : > { %v2312_v21 = vadd.f32 %v2014_v55, %v10735_v62  ;;  %v11190_v52 = vadd.f32 %v2714_v8, %v2311_v40  ;;  %v2716_v7 = vpop.f32.mrf.mxu1  ;;  %v1781_v62 = vld [vmem:[#allocation2 + $0x1d2] sm:$0xff]  ;;  %v2518_v40 = vpack.c.bf16 %v2484_v41, %v2483_v23 }
 0x202   : > { %v2018_v33 = vpop.f32.mrf.mxu0  ;;  %9128 = vmatmul.mubr.msk.bf16.gmra.mxu0 %vm509_vm1, %v1815_v50  ;;  %v1816_v28 = vpack.c.bf16 %v1782_v38, %v1781_v62  ;;  %v2485_v62 = vld [vmem:[#allocation2 + $0x1e3] sm:$0xff]  ;;  %v2486_v38 = vld [vmem:[#allocation2 + $0x1eb] sm:$0xff] }
 0x203   : > { %v11195_v58 = vadd.f32 %v2018_v33, %v10740_v5  ;;  %v11197_v15 = vadd.f32 %v2716_v7, %v2312_v21  ;;  %v11199_v20 = vpop.f32.mrf.mxu1  ;;  %9169 = vmatmul.mubr.msk.bf16.gmra.mxu1 %vm509_vm1, %v2517_v0  ;;  %2266 = vmatprep.mubr.bf16.mxu0 %v13842_v2  ;;  %v1784_v7 = vld [vmem:[#allocation2 + $0x1ea] sm:$0xff] }
 0x204   : > { %v2020_v14 = vpop.f32.mrf.mxu0  ;;  %2968 = vmatprep.mubr.bf16.mxu1 %v13842_v2 }
 0x205   : > { %v11205_v31 = vadd.f32 %v2020_v14, %v10743_v12  ;;  %v11207_v5 = vpop.f32.mrf.mxu1 }
 0x206   : > { %v2022_v4 = vpop.f32.mrf.mxu0 }
 0x207   : > { %v11210_v46 = vadd.f32 %v2022_v4, %v10745_v18  ;;  %v11212_v50 = vpop.f32.mrf.mxu1  ;;  %v1783_v18 = vld [vmem:[#allocation2 + $0x1e2] sm:$0xff] }
 0x208   : > { %v2024_v8 = vpop.f32.mrf.mxu0  ;;  %v1817_v41 = vpack.c.bf16 %v1784_v7, %v1783_v18  ;;  %v1785_v18 = vld [vmem:[#allocation2 + $0x1f2] sm:$0xff] }
 0x209   : > { %v11215_v0 = vadd.f32 %v2024_v8, %v10747_v22  ;;  %v11217_v17 = vpop.f32.mrf.mxu1  ;;  %v4100_v22 = vld [vmem:[%s13789_s3 + $0x18] sm:$0xff] }
 0x20a   : > { %v2028_v55 = vpop.f32.mrf.mxu0  ;;  %9129 = vmatmul.mubr.msk.bf16.gmra.mxu0 %vm509_vm1, %v1816_v28  ;;  %4336 = vmatpush1.msra.mxu1 %v4100_v22  ;;  %v2519_v28 = vpack.c.bf16 %v2486_v38, %v2485_v62 }
 0x20b   : > { %v11221_v12 = vadd.f32 %v2028_v55, %v10752_v29  ;;  %v11223_v21 = vpop.f32.mrf.mxu1  ;;  %9170 = vmatmul.mubr.msk.bf16.gmra.mxu1 %vm509_vm1, %v2518_v40  ;;  %2276 = vmatprep.mubr.bf16.mxu0 %v13842_v2 }
 0x20c   : > { %v2030_v33 = vpop.f32.mrf.mxu0  ;;  %2978 = vmatprep.mubr.bf16.mxu1 %v13842_v2  ;;  %4337 = vmatprep.subr.mxu1 %v13844_v47 }
 0x20d   : > { %v11232_v29 = vadd.f32 %v2030_v33, %v10755_v35  ;;  %v11235_v23 = vpop.f32.mrf.mxu1  ;;  %v2487_v33 = vld [vmem:[#allocation2 + $0x1f3] sm:$0xff] }
 0x20e   : > { %v2032_v14 = vpop.f32.mrf.mxu0 }
 0x20f   : > { %v11238_v4 = vadd.f32 %v2032_v14, %v10757_v42  ;;  %v11243_v55 = vpop.f32.mrf.mxu1  ;;  %v1786_v42 = vld [vmem:[#allocation2 + $0x1fa] sm:$0xff] }
 0x210   : > { %v2034_v40 = vpop.f32.mrf.mxu0 }
 0x211   : > { %v11241_v8 = vadd.f32 %v2034_v40, %v10759_v45  ;;  %v2488_v45 = vld [vmem:[#allocation2 + $0x1fb] sm:$0xff]  ;;  %v11255_v38 = vpop.f32.mrf.mxu1  ;;  %v4099_v40 = vld [vmem:[%s13789_s3 + $0x10] sm:$0xff] }
 0x212   : > { %v2038_v22 = vpop.f32.mrf.mxu0  ;;  %9130 = vmatmul.mubr.msk.bf16.gmra.mxu0 %vm509_vm1, %v1817_v41  ;;  %v1818_v41 = vpack.c.bf16 %v1786_v42, %v1785_v18  ;;  %4338 = vmatpush1.msra.mxu1 %v4099_v40  ;;  %v3127_v18 = vld [vmem:[#allocation2 + $0x4] sm:$0xff]  ;;  %v3128_v42 = vld [vmem:[#allocation2 + $0xc] sm:$0xff] }
 0x213   : > { %v11247_v35 = vadd.f32 %v2038_v22, %v10764_v53  ;;  %9171 = vmatmul.mubr.msk.bf16.gmra.mxu1 %vm509_vm1, %v2519_v28  ;;  %2286 = vmatprep.mubr.bf16.mxu0 %v13842_v2  ;;  %v2520_v28 = vpack.c.bf16 %v2488_v45, %v2487_v33  ;;  %v3191_v40 = vpack.c.bf16 %v3128_v42, %v3127_v18 }
 0x214   : > { %v2040_v7 = vpop.f32.mrf.mxu0  ;;  %2988 = vmatprep.mubr.bf16.mxu1 %v13842_v2  ;;  %4339 = vmatprep.subr.mxu1 %v13844_v47 }
 0x215   : > { %13898 = vst [vmem:[#allocation91_spill] sm:$0xff] %v11247_v35  ;;  %v11253_v62 = vadd.f32 %v2040_v7, %v10767_v61  ;;  %v11267_v61 = vpop.f32.mrf.mxu1 }
 0x216   : > { %v2042_v14 = vpop.f32.mrf.mxu0 }
 0x217   : > { %v11258_v53 = vadd.f32 %v2042_v14, %v10769_v6  ;;  %v11278_v45 = vpop.f32.mrf.mxu1 }
 0x218   : > { %v2044_v22 = vpop.f32.mrf.mxu0 }
 0x219   : > { %v11264_v35 = vadd.f32 %v2044_v22, %v10771_v11 }
 0x21a   : > { %v2048_v7 = vpop.f32.mrf.mxu0  ;;  %9131 = vmatmul.mubr.msk.bf16.gmra.mxu0 %vm509_vm1, %v1818_v41 }
 0x21b   : > { %v11271_v6 = vadd.f32 %v2048_v7, %v10776_v19  ;;  %9172 = vmatmul.mubr.msk.bf16.gmra.mxu1 %vm509_vm1, %v2520_v28  ;;  %3380 = vmatprep.mubr.bf16.mxu0 %v13842_v2  ;;  %v11286_v28 = vpop.f32.mrf.mxu1 }
 0x21c   : > { %v2050_v33 = vpop.f32.mrf.mxu0 }
 0x21d   : > { %13899 = vst [vmem:[#allocation92_spill] sm:$0xff] %v11271_v6  ;;  %v11276_v11 = vadd.f32 %v2050_v33, %v10782_v30  ;;  %v3129_v30 = vld [vmem:[#allocation2 + $0x14] sm:$0xff]  ;;  %v3130_v33 = vld [vmem:[#allocation2 + $0x1c] sm:$0xff]  ;;  %v11300_v42 = vpop.f32.mrf.mxu1 }
 0x21e   : > { %v2052_v14 = vpop.f32.mrf.mxu0 }
 0x21f   : > { %v11281_v22 = vadd.f32 %v2052_v14, %v10784_v37  ;;  %v4098_v37 = vld [vmem:[%s13789_s3 + $0x8] sm:$0xff] }
 0x220   : > { %v2054_v41 = vpop.f32.mrf.mxu0  ;;  %4340 = vmatpush1.msra.mxu1 %v4098_v37  ;;  %v3131_v37 = vld [vmem:[#allocation2 + $0x24] sm:$0xff] }
 0x221   : > { %v11284_v19 = vadd.f32 %v2054_v41, %v10787_v44  ;;  %4341 = vmatprep.subr.mxu1 %v13844_v47 }
 0x222   : > { %v2058_v7 = vpop.f32.mrf.mxu0  ;;  %9182 = vmatmul.mubr.msk.bf16.vlgmr.msra.gmra.mxu0 %vm509_vm1, %v3191_v40 }
 0x223   : > { %13900 = vst [vmem:[#allocation93_spill] sm:$0xff] %v11284_v19  ;;  %v11290_v6 = vadd.f32 %v2058_v7, %v10797_v57  ;;  %3390 = vmatprep.mubr.bf16.mxu0 %v13842_v2  ;;  %v3192_v57 = vpack.c.bf16 %v3130_v33, %v3129_v30 }
 0x224   : > { %v2060_v18 = vpop.f32.mrf.mxu0 }
 0x225   : > { %13901 = vst [vmem:[#allocation94_spill] sm:$0xff] %v11290_v6  ;;  %v11297_v44 = vadd.f32 %v2060_v18, %v10801_v3  ;;  %v11308_v6 = vpop.f32.mrf.mxu1  ;;  %v3132_v18 = vld [vmem:[#allocation2 + $0x2c] sm:$0xff] }
 0x226   : > { %v2062_v14 = vpop.f32.mrf.mxu0 }
 0x227   : > { %v11303_v40 = vadd.f32 %v2062_v14, %v10803_v16  ;;  %v11318_v33 = vpop.f32.mrf.mxu1  ;;  %v3193_v14 = vpack.c.bf16 %v3132_v18, %v3131_v37  ;;  %v3134_v18 = vld [vmem:[#allocation2 + $0x3c] sm:$0xff] }
 0x228   : > { %v2064_v41 = vpop.f32.mrf.mxu0 }
 0x229   : > { %13902 = vst [vmem:[#allocation95_spill] sm:$0xff] %v11303_v40  ;;  %v11306_v7 = vadd.f32 %v2064_v41, %v10805_v24 }
 0x22a   : > { %v2068_v19 = vpop.f32.mrf.mxu0  ;;  %9183 = vmatmul.mubr.msk.bf16.gmra.mxu0 %vm509_vm1, %v3192_v57 }
 0x22b   : > { %13903 = vst [vmem:[#allocation96_spill] sm:$0xff] %v11306_v7  ;;  %v11312_v3 = vadd.f32 %v2068_v19, %v10810_v32  ;;  %3400 = vmatprep.mubr.bf16.mxu0 %v13842_v2  ;;  %v4097_v32 = vld [vmem:[%s13789_s3] sm:$0xff] }
 0x22c   : > { %v2070_v30 = vpop.f32.mrf.mxu0  ;;  %4342 = vmatpush1.msra.mxu1 %v4097_v32 }
 0x22d   : > { %13904 = vst [vmem:[#allocation97_spill] sm:$0xff] %v11312_v3  ;;  %v11316_v16 = vadd.f32 %v2070_v30, %v10813_v43  ;;  %4365 = vmatprep.subr.mxu1 %v13844_v47  ;;  %v11330_v43 = vpop.f32.mrf.mxu1 }
 0x22e   : > { %v2072_v24 = vpop.f32.mrf.mxu0 }
 0x22f   : > { %13905 = vst [vmem:[#allocation98_spill] sm:$0xff] %v11316_v16  ;;  %v11321_v41 = vadd.f32 %v2072_v24, %v10815_v54  ;;  %v3133_v54 = vld [vmem:[#allocation2 + $0x34] sm:$0xff] }
 0x230   : > { %v2074_v19 = vpop.f32.mrf.mxu0 }
 0x231   : > { %13906 = vst [vmem:[#allocation99_spill] sm:$0xff] %v11321_v41  ;;  %v11327_v57 = vadd.f32 %v2074_v19, %v10817_v63  ;;  %v11340_v63 = vpop.f32.mrf.mxu1 }
 0x232   : > { %v2078_v30 = vpop.f32.mrf.mxu0  ;;  %9184 = vmatmul.mubr.msk.bf16.gmra.mxu0 %vm509_vm1, %v3193_v14 }
 0x233   : > { %13907 = vst [vmem:[#allocation100_spill] sm:$0xff] %v11327_v57  ;;  %v11334_v37 = vadd.f32 %v2078_v30, %v10822_v13  ;;  %3410 = vmatprep.mubr.bf16.mxu0 %v13842_v2  ;;  %v3194_v57 = vpack.c.bf16 %v3134_v18, %v3133_v54  ;;  %v11348_v13 = vpop.f32.mrf.mxu1  ;;  %v13914_v18 = vld [vmem:[#allocation6_spill] sm:$0xff] }
 0x234   : > { %v2080_v24 = vpop.f32.mrf.mxu0 }
 0x235   : > { %13908 = vst [vmem:[#allocation101_spill] sm:$0xff] %v11334_v37  ;;  %v11338_v32 = vadd.f32 %v2080_v24, %v10825_v26  ;;  %v13912_v37 = vld [vmem:[#allocation5_spill] sm:$0xff]  ;;  %v3135_v26 = vld [vmem:[#allocation2 + $0x44] sm:$0xff] }
 0x236   : > { %v2082_v19 = vpop.f32.mrf.mxu0  ;;  %v3136_v24 = vld [vmem:[#allocation2 + $0x4c] sm:$0xff] }
 0x237   : > { %13909 = vst [vmem:[#allocation102_spill] sm:$0xff] %v11338_v32  ;;  %v11343_v41 = vadd.f32 %v2082_v19, %v10827_v39 }
 0x238   : > { %v2084_v16 = vpop.f32.mrf.mxu0 }
 0x239   : > { %13910 = vst [vmem:[#allocation103_spill] sm:$0xff] %v11343_v41  ;;  %v11346_v14 = vadd.f32 %v2084_v16, %v10829_v48  ;;  %v4117_v48 = vld [vmem:[%s13789_s3 + $0xa0] sm:$0xff]  ;;  %v11361_v16 = vpop.f32.mrf.mxu1 }
 0x23a   : > { %v2088_v30 = vpop.f32.mrf.mxu0  ;;  %9185 = vmatmul.mubr.msk.bf16.gmra.mxu0 %vm509_vm1, %v3194_v57  ;;  %13916 = vst [vmem:[#allocation105_spill] sm:$0xff] %v11361_v16  ;;  %4366 = vmatpush2.msra.mxu1 %v4117_v48  ;;  %v13917_v57 = vld [vmem:[#allocation7_spill] sm:$0xff] }
 0x23b   : > { %13911 = vst [vmem:[#allocation104_spill] sm:$0xff] %v11346_v14  ;;  %v11352_v3 = vadd.f32 %v2088_v30, %v13912_v37  ;;  %3420 = vmatprep.mubr.bf16.mxu0 %v13842_v2  ;;  %v3195_v14 = vpack.c.bf16 %v3136_v24, %v3135_v26  ;;  %4367 = vmatprep.subr.mxu1 %v13844_v47  ;;  %v3137_v26 = vld [vmem:[#allocation2 + $0x54] sm:$0xff]  ;;  %v3138_v24 = vld [vmem:[#allocation2 + $0x5c] sm:$0xff] }
 0x23c   : > { %v2090_v54 = vpop.f32.mrf.mxu0 }
 0x23d   : > { %13913 = vst [vmem:[#allocation5_spill] sm:$0xff] %v11352_v3  ;;  %v11356_v39 = vadd.f32 %v2090_v54, %v13914_v18  ;;  %v13919_v3 = vld [vmem:[#allocation8_spill] sm:$0xff]  ;;  %v11370_v54 = vpop.f32.mrf.mxu1 }
 0x23e   : > { %v2092_v19 = vpop.f32.mrf.mxu0  ;;  %13921 = vst [vmem:[#allocation106_spill] sm:$0xff] %v11370_v54 }
 0x23f   : > { %13915 = vst [vmem:[#allocation6_spill] sm:$0xff] %v11356_v39  ;;  %v11364_v37 = vadd.f32 %v2092_v19, %v13917_v57  ;;  %v13922_v39 = vld [vmem:[#allocation9_spill] sm:$0xff]  ;;  %v13924_v19 = vld [vmem:[#allocation10_spill] sm:$0xff] }
 0x240   : > { %v2094_v30 = vpop.f32.mrf.mxu0 }
 0x241   : > { %13918 = vst [vmem:[#allocation7_spill] sm:$0xff] %v11364_v37  ;;  %v11368_v41 = vadd.f32 %v2094_v30, %v13919_v3  ;;  %v11380_v37 = vpop.f32.mrf.mxu1  ;;  %v3196_v30 = vpack.c.bf16 %v3138_v24, %v3137_v26  ;;  %v3140_v26 = vld [vmem:[#allocation2 + $0x6c] sm:$0xff]  ;;  %v13934_v24 = vld [vmem:[#allocation14_spill] sm:$0xff] }
 0x242   : > { %v2098_v18 = vpop.f32.mrf.mxu0  ;;  %9186 = vmatmul.mubr.msk.bf16.gmra.mxu0 %vm509_vm1, %v3195_v14  ;;  %13926 = vst [vmem:[#allocation107_spill] sm:$0xff] %v11380_v37  ;;  %v13929_v14 = vld [vmem:[#allocation12_spill] sm:$0xff]  ;;  %v13942_v37 = vld [vmem:[#allocation17_spill] sm:$0xff] }
 0x243   : > { %13920 = vst [vmem:[#allocation8_spill] sm:$0xff] %v11368_v41  ;;  %v11374_v32 = vadd.f32 %v2098_v18, %v13922_v39  ;;  %3430 = vmatprep.mubr.bf16.mxu0 %v13842_v2  ;;  %v13927_v41 = vld [vmem:[#allocation11_spill] sm:$0xff]  ;;  %v4116_v39 = vld [vmem:[%s13789_s3 + $0x98] sm:$0xff]  ;;  %v11391_v18 = vpop.f32.mrf.mxu1 }
 0x244   : > { %v2100_v48 = vpop.f32.mrf.mxu0  ;;  %13931 = vst [vmem:[#allocation108_spill] sm:$0xff] %v11391_v18  ;;  %4368 = vmatpush2.msra.mxu1 %v4116_v39 }
 0x245   : > { %13923 = vst [vmem:[#allocation9_spill] sm:$0xff] %v11374_v32  ;;  %v11378_v57 = vadd.f32 %v2100_v48, %v13924_v19  ;;  %v13932_v48 = vld [vmem:[#allocation13_spill] sm:$0xff]  ;;  %4369 = vmatprep.subr.mxu1 %v13844_v47 }
 0x246   : > { %v2102_v3 = vpop.f32.mrf.mxu0 }
 0x247   : > { %13925 = vst [vmem:[#allocation10_spill] sm:$0xff] %v11378_v57  ;;  %v11383_v7 = vadd.f32 %v2102_v3, %v13927_v41  ;;  %v3139_v41 = vld [vmem:[#allocation2 + $0x64] sm:$0xff] }
 0x248   : > { %v2104_v54 = vpop.f32.mrf.mxu0  ;;  %v13937_v57 = vld [vmem:[#allocation15_spill] sm:$0xff] }
 0x249   : > { %13928 = vst [vmem:[#allocation11_spill] sm:$0xff] %v11383_v7  ;;  %v11386_v40 = vadd.f32 %v2104_v54, %v13929_v14  ;;  %v11402_v14 = vpop.f32.mrf.mxu1  ;;  %v3197_v7 = vpack.c.bf16 %v3140_v26, %v3139_v41  ;;  %v13944_v26 = vld [vmem:[#allocation18_spill] sm:$0xff] }
 0x24a   : > { %v2108_v32 = vpop.f32.mrf.mxu0  ;;  %9187 = vmatmul.mubr.msk.bf16.gmra.mxu0 %vm509_vm1, %v3196_v30  ;;  %13936 = vst [vmem:[#allocation109_spill] sm:$0xff] %v11402_v14 }
 0x24b   : > { %13930 = vst [vmem:[#allocation12_spill] sm:$0xff] %v11386_v40  ;;  %v11395_v19 = vadd.f32 %v2108_v32, %v13932_v48  ;;  %3440 = vmatprep.mubr.bf16.mxu0 %v13842_v2  ;;  %v13939_v32 = vld [vmem:[#allocation16_spill] sm:$0xff] }
 0x24c   : > { %v2110_v54 = vpop.f32.mrf.mxu0 }
 0x24d   : > { %13933 = vst [vmem:[#allocation13_spill] sm:$0xff] %v11395_v19  ;;  %v11400_v3 = vadd.f32 %v2110_v54, %v13934_v24  ;;  %v11410_v19 = vpop.f32.mrf.mxu1  ;;  %v3141_v54 = vld [vmem:[#allocation2 + $0x74] sm:$0xff]  ;;  %v3142_v24 = vld [vmem:[#allocation2 + $0x7c] sm:$0xff] }
 0x24e   : > { %v2112_v40 = vpop.f32.mrf.mxu0  ;;  %13941 = vst [vmem:[#allocation110_spill] sm:$0xff] %v11410_v19 }
 0x24f   : > { %13935 = vst [vmem:[#allocation14_spill] sm:$0xff] %v11400_v3  ;;  %v11405_v30 = vadd.f32 %v2112_v40, %v13937_v57  ;;  %v4115_v57 = vld [vmem:[%s13789_s3 + $0x90] sm:$0xff] }
 0x250   : > { %v2114_v39 = vpop.f32.mrf.mxu0  ;;  %4370 = vmatpush2.msra.mxu1 %v4115_v57 }
 0x251   : > { %13938 = vst [vmem:[#allocation15_spill] sm:$0xff] %v11405_v30  ;;  %v11408_v48 = vadd.f32 %v2114_v39, %v13939_v32  ;;  %v11423_v39 = vpop.f32.mrf.mxu1  ;;  %4371 = vmatprep.subr.mxu1 %v13844_v47 }
 0x252   : > { %v2118_v18 = vpop.f32.mrf.mxu0  ;;  %9188 = vmatmul.mubr.msk.bf16.gmra.mxu0 %vm509_vm1, %v3197_v7  ;;  %13946 = vst [vmem:[#allocation111_spill] sm:$0xff] %v11423_v39  ;;  %v13947_v7 = vld [vmem:[#allocation19_spill] sm:$0xff] }
 0x253   : > { %13940 = vst [vmem:[#allocation16_spill] sm:$0xff] %v11408_v48  ;;  %v11414_v16 = vadd.f32 %v2118_v18, %v13942_v37  ;;  %3450 = vmatprep.mubr.bf16.mxu0 %v13842_v2  ;;  %v3198_v48 = vpack.c.bf16 %v3142_v24, %v3141_v54  ;;  %v3143_v54 = vld [vmem:[#allocation2 + $0x84] sm:$0xff]  ;;  %v3144_v24 = vld [vmem:[#allocation2 + $0x8c] sm:$0xff] }
 0x254   : > { %v2120_v41 = vpop.f32.mrf.mxu0 }
 0x255   : > { %13943 = vst [vmem:[#allocation17_spill] sm:$0xff] %v11414_v16  ;;  %v11418_v40 = vadd.f32 %v2120_v41, %v13944_v26  ;;  %v13949_v16 = vld [vmem:[#allocation20_spill] sm:$0xff]  ;;  %v11432_v41 = vpop.f32.mrf.mxu1 }
 0x256   : > { %v2122_v32 = vpop.f32.mrf.mxu0  ;;  %13951 = vst [vmem:[#allocation112_spill] sm:$0xff] %v11432_v41 }
 0x257   : > { %13945 = vst [vmem:[#allocation18_spill] sm:$0xff] %v11418_v40  ;;  %v11426_v37 = vadd.f32 %v2122_v32, %v13947_v7  ;;  %v13952_v40 = vld [vmem:[#allocation21_spill] sm:$0xff]  ;;  %v13954_v32 = vld [vmem:[#allocation22_spill] sm:$0xff] }
 0x258   : > { %v2124_v18 = vpop.f32.mrf.mxu0 }
 0x259   : > { %13948 = vst [vmem:[#allocation19_spill] sm:$0xff] %v11426_v37  ;;  %v11430_v30 = vadd.f32 %v2124_v18, %v13949_v16  ;;  %v11442_v37 = vpop.f32.mrf.mxu1  ;;  %v3199_v18 = vpack.c.bf16 %v3144_v24, %v3143_v54  ;;  %v3146_v54 = vld [vmem:[#allocation2 + $0x9c] sm:$0xff] }
 0x25a   : > { %v2128_v26 = vpop.f32.mrf.mxu0  ;;  %9189 = vmatmul.mubr.msk.bf16.gmra.mxu0 %vm509_vm1, %v3198_v48  ;;  %13956 = vst [vmem:[#allocation113_spill] sm:$0xff] %v11442_v37  ;;  %v13959_v48 = vld [vmem:[#allocation24_spill] sm:$0xff]  ;;  %v13964_v24 = vld [vmem:[#allocation26_spill] sm:$0xff] }
 0x25b   : > { %13950 = vst [vmem:[#allocation20_spill] sm:$0xff] %v11430_v30  ;;  %v11436_v3 = vadd.f32 %v2128_v26, %v13952_v40  ;;  %3460 = vmatprep.mubr.bf16.mxu0 %v13842_v2  ;;  %v13957_v30 = vld [vmem:[#allocation23_spill] sm:$0xff]  ;;  %v4114_v40 = vld [vmem:[%s13789_s3 + $0x88] sm:$0xff]  ;;  %v11453_v26 = vpop.f32.mrf.mxu1 }
 0x25c   : > { %v2130_v57 = vpop.f32.mrf.mxu0  ;;  %13961 = vst [vmem:[#allocation114_spill] sm:$0xff] %v11453_v26  ;;  %4372 = vmatpush2.msra.mxu1 %v4114_v40 }
 0x25d   : > { %13953 = vst [vmem:[#allocation21_spill] sm:$0xff] %v11436_v3  ;;  %v11440_v7 = vadd.f32 %v2130_v57, %v13954_v32  ;;  %v13962_v57 = vld [vmem:[#allocation25_spill] sm:$0xff]  ;;  %4373 = vmatprep.subr.mxu1 %v13844_v47 }
 0x25e   : > { %v2132_v16 = vpop.f32.mrf.mxu0  ;;  %v13972_v47 = vld [vmem:[#allocation29_spill] sm:$0xff] }
 0x25f   : > { %13955 = vst [vmem:[#allocation22_spill] sm:$0xff] %v11440_v7  ;;  %v11445_v41 = vadd.f32 %v2132_v16, %v13957_v30  ;;  %v3145_v30 = vld [vmem:[#allocation2 + $0x94] sm:$0xff]  ;;  %v13967_v7 = vld [vmem:[#allocation27_spill] sm:$0xff] }
 0x260   : > { %v2134_v39 = vpop.f32.mrf.mxu0 }
 0x261   : > { %13958 = vst [vmem:[#allocation23_spill] sm:$0xff] %v11445_v41  ;;  %v11448_v19 = vadd.f32 %v2134_v39, %v13959_v48  ;;  %v11464_v48 = vpop.f32.mrf.mxu1  ;;  %v3200_v41 = vpack.c.bf16 %v3146_v54, %v3145_v30  ;;  %v13974_v54 = vld [vmem:[#allocation30_spill] sm:$0xff] }
 0x262   : > { %v2138_v3 = vpop.f32.mrf.mxu0  ;;  %9190 = vmatmul.mubr.msk.bf16.gmra.mxu0 %vm509_vm1, %v3199_v18  ;;  %13966 = vst [vmem:[#allocation115_spill] sm:$0xff] %v11464_v48 }
 0x263   : > { %13960 = vst [vmem:[#allocation24_spill] sm:$0xff] %v11448_v19  ;;  %v11457_v32 = vadd.f32 %v2138_v3, %v13962_v57  ;;  %3470 = vmatprep.mubr.bf16.mxu0 %v13842_v2  ;;  %v13969_v3 = vld [vmem:[#allocation28_spill] sm:$0xff] }
 0x264   : > { %v2140_v39 = vpop.f32.mrf.mxu0 }
 0x265   : > { %13963 = vst [vmem:[#allocation25_spill] sm:$0xff] %v11457_v32  ;;  %v11462_v16 = vadd.f32 %v2140_v39, %v13964_v24  ;;  %v11472_v32 = vpop.f32.mrf.mxu1  ;;  %v3147_v39 = vld [vmem:[#allocation2 + $0xa4] sm:$0xff]  ;;  %v3148_v24 = vld [vmem:[#allocation2 + $0xac] sm:$0xff] }
 0x266   : > { %v2142_v19 = vpop.f32.mrf.mxu0  ;;  %13971 = vst [vmem:[#allocation116_spill] sm:$0xff] %v11472_v32 }
 0x267   : > { %13965 = vst [vmem:[#allocation26_spill] sm:$0xff] %v11462_v16  ;;  %v11467_v18 = vadd.f32 %v2142_v19, %v13967_v7  ;;  %v11482_v7 = vpop.f32.mrf.mxu1 }
 0x268   : > { %v2144_v40 = vpop.f32.mrf.mxu0  ;;  %13976 = vst [vmem:[#allocation117_spill] sm:$0xff] %v11482_v7 }
 0x269   : > { %13968 = vst [vmem:[#allocation27_spill] sm:$0xff] %v11467_v18  ;;  %v11470_v57 = vadd.f32 %v2144_v40, %v13969_v3  ;;  %v3201_v3 = vpack.c.bf16 %v3148_v24, %v3147_v39  ;;  %v3150_v39 = vld [vmem:[#allocation2 + $0xbc] sm:$0xff] }
 0x26a   : > { %v2148_v26 = vpop.f32.mrf.mxu0  ;;  %9191 = vmatmul.mubr.msk.bf16.gmra.mxu0 %vm509_vm1, %v3200_v41  ;;  %v13979_v41 = vld [vmem:[#allocation32_spill] sm:$0xff] }
 0x26b   : > { %13970 = vst [vmem:[#allocation28_spill] sm:$0xff] %v11470_v57  ;;  %v11476_v37 = vadd.f32 %v2148_v26, %v13972_v47  ;;  %3480 = vmatprep.mubr.bf16.mxu0 %v13842_v2  ;;  %v13977_v57 = vld [vmem:[#allocation31_spill] sm:$0xff]  ;;  %v11493_v26 = vpop.f32.mrf.mxu1 }
 0x26c   : > { %v2150_v30 = vpop.f32.mrf.mxu0  ;;  %v4113_v47 = vld [vmem:[%s13789_s3 + $0x80] sm:$0xff]  ;;  %13981 = vst [vmem:[#allocation118_spill] sm:$0xff] %v11493_v26 }
 0x26d   : > { %13973 = vst [vmem:[#allocation29_spill] sm:$0xff] %v11476_v37  ;;  %v11480_v19 = vadd.f32 %v2150_v30, %v13974_v54  ;;  %4374 = vmatpush2.msra.mxu1 %v4113_v47  ;;  %v13982_v30 = vld [vmem:[#allocation33_spill] sm:$0xff]  ;;  %v13989_v47 = vld [vmem:[#allocation36_spill] sm:$0xff] }
 0x26e   : > { %v2152_v40 = vpop.f32.mrf.mxu0 }
 0x26f   : > { %13975 = vst [vmem:[#allocation30_spill] sm:$0xff] %v11480_v19  ;;  %v11485_v18 = vadd.f32 %v2152_v40, %v13977_v57  ;;  %v3149_v57 = vld [vmem:[#allocation2 + $0xb4] sm:$0xff]  ;;  %v13987_v19 = vld [vmem:[#allocation35_spill] sm:$0xff] }
 0x270   : > { %v2154_v16 = vpop.f32.mrf.mxu0 }
 0x271   : > { %13978 = vst [vmem:[#allocation31_spill] sm:$0xff] %v11485_v18  ;;  %v11488_v32 = vadd.f32 %v2154_v16, %v13979_v41  ;;  %v13984_v16 = vld [vmem:[#allocation34_spill] sm:$0xff]  ;;  %v11503_v41 = vpop.f32.mrf.mxu1  ;;  %v3202_v18 = vpack.c.bf16 %v3150_v39, %v3149_v57 }
 0x272   : > { %v2158_v37 = vpop.f32.mrf.mxu0  ;;  %9192 = vmatmul.mubr.msk.bf16.gmra.mxu0 %vm509_vm1, %v3201_v3  ;;  %13986 = vst [vmem:[#allocation119_spill] sm:$0xff] %v11503_v41  ;;  %v13994_v39 = vld [vmem:[#allocation38_spill] sm:$0xff] }
 0x273   : > { %13980 = vst [vmem:[#allocation32_spill] sm:$0xff] %v11488_v32  ;;  %v11497_v54 = vadd.f32 %v2158_v37, %v13982_v30  ;;  %3490 = vmatprep.mubr.bf16.mxu0 %v13842_v2  ;;  %v11511_v37 = vpop.f32.mrf.mxu1 }
 0x274   : > { %v2160_v24 = vpop.f32.mrf.mxu0  ;;  %13991 = vst [vmem:[#allocation120_spill] sm:$0xff] %v11511_v37 }
 0x275   : > { %13983 = vst [vmem:[#allocation33_spill] sm:$0xff] %v11497_v54  ;;  %v11501_v40 = vadd.f32 %v2160_v24, %v13984_v16  ;;  %v13992_v54 = vld [vmem:[#allocation37_spill] sm:$0xff]  ;;  %v3151_v24 = vld [vmem:[#allocation2 + $0xc4] sm:$0xff] }
 0x276   : > { %v2162_v32 = vpop.f32.mrf.mxu0  ;;  %v3152_v16 = vld [vmem:[#allocation2 + $0xcc] sm:$0xff] }
 0x277   : > { %13985 = vst [vmem:[#allocation34_spill] sm:$0xff] %v11501_v40  ;;  %v11506_v26 = vadd.f32 %v2162_v32, %v13987_v19  ;;  %v11521_v19 = vpop.f32.mrf.mxu1 }
 0x278   : > { %v2164_v3 = vpop.f32.mrf.mxu0  ;;  %13996 = vst [vmem:[#allocation121_spill] sm:$0xff] %v11521_v19 }
 0x279   : > { %13988 = vst [vmem:[#allocation35_spill] sm:$0xff] %v11506_v26  ;;  %v11509_v7 = vadd.f32 %v2164_v3, %v13989_v47  ;;  %v3203_v47 = vpack.c.bf16 %v3152_v16, %v3151_v24  ;;  %v14004_v16 = vld [vmem:[#allocation42_spill] sm:$0xff] }
 0x27a   : > { %v2168_v30 = vpop.f32.mrf.mxu0  ;;  %9193 = vmatmul.mubr.msk.bf16.gmra.mxu0 %vm509_vm1, %v3202_v18  ;;  %v13999_v18 = vld [vmem:[#allocation40_spill] sm:$0xff] }
 0x27b   : > { %13990 = vst [vmem:[#allocation36_spill] sm:$0xff] %v11509_v7  ;;  %v11515_v48 = vadd.f32 %v2168_v30, %v13992_v54  ;;  %3500 = vmatprep.mubr.bf16.mxu0 %v13842_v2  ;;  %v13997_v7 = vld [vmem:[#allocation39_spill] sm:$0xff]  ;;  %v11529_v54 = vpop.f32.mrf.mxu1 }
 0x27c   : > { %v2170_v57 = vpop.f32.mrf.mxu0  ;;  %14001 = vst [vmem:[#allocation122_spill] sm:$0xff] %v11529_v54 }
 0x27d   : > { %13993 = vst [vmem:[#allocation37_spill] sm:$0xff] %v11515_v48  ;;  %v11519_v32 = vadd.f32 %v2170_v57, %v13994_v39  ;;  %v14002_v48 = vld [vmem:[#allocation41_spill] sm:$0xff]  ;;  %v3154_v39 = vld [vmem:[#allocation2 + $0xdc] sm:$0xff] }
 0x27e   : > { %v2172_v3 = vpop.f32.mrf.mxu0  ;;  %v3153_v57 = vld [vmem:[#allocation2 + $0xd4] sm:$0xff] }
 0x27f   : > { %13995 = vst [vmem:[#allocation38_spill] sm:$0xff] %v11519_v32  ;;  %v11524_v26 = vadd.f32 %v2172_v3, %v13997_v7  ;;  %v11539_v3 = vpop.f32.mrf.mxu1 }
 0x280   : > { %v2174_v40 = vpop.f32.mrf.mxu0  ;;  %14006 = vst [vmem:[#allocation123_spill] sm:$0xff] %v11539_v3 }
 0x281   : > { %13998 = vst [vmem:[#allocation39_spill] sm:$0xff] %v11524_v26  ;;  %v11527_v37 = vadd.f32 %v2174_v40, %v13999_v18  ;;  %v3204_v18 = vpack.c.bf16 %v3154_v39, %v3153_v57  ;;  %v14014_v39 = vld [vmem:[#allocation46_spill] sm:$0xff] }
 0x282   : > { %v2178_v30 = vpop.f32.mrf.mxu0  ;;  %9194 = vmatmul.mubr.msk.bf16.gmra.mxu0 %vm509_vm1, %v3203_v47  ;;  %v14009_v47 = vld [vmem:[#allocation44_spill] sm:$0xff] }
 0x283   : > { %14000 = vst [vmem:[#allocation40_spill] sm:$0xff] %v11527_v37  ;;  %v11533_v41 = vadd.f32 %v2178_v30, %v14002_v48  ;;  %3510 = vmatprep.mubr.bf16.mxu0 %v13842_v2  ;;  %v14007_v37 = vld [vmem:[#allocation43_spill] sm:$0xff]  ;;  %v11547_v48 = vpop.f32.mrf.mxu1 }
 0x284   : > { %v2180_v24 = vpop.f32.mrf.mxu0  ;;  %14011 = vst [vmem:[#allocation124_spill] sm:$0xff] %v11547_v48 }
 0x285   : > { %14003 = vst [vmem:[#allocation41_spill] sm:$0xff] %v11533_v41  ;;  %v11537_v7 = vadd.f32 %v2180_v24, %v14004_v16  ;;  %v14012_v41 = vld [vmem:[#allocation45_spill] sm:$0xff]  ;;  %v3155_v24 = vld [vmem:[#allocation2 + $0xe4] sm:$0xff] }
 0x286   : > { %v2182_v40 = vpop.f32.mrf.mxu0  ;;  %v3156_v16 = vld [vmem:[#allocation2 + $0xec] sm:$0xff] }
 0x287   : > { %14005 = vst [vmem:[#allocation42_spill] sm:$0xff] %v11537_v7  ;;  %v11542_v26 = vadd.f32 %v2182_v40, %v14007_v37  ;;  %v11557_v40 = vpop.f32.mrf.mxu1 }
 0x288   : > { %v2184_v32 = vpop.f32.mrf.mxu0  ;;  %14016 = vst [vmem:[#allocation125_spill] sm:$0xff] %v11557_v40 }
 0x289   : > { %14008 = vst [vmem:[#allocation43_spill] sm:$0xff] %v11542_v26  ;;  %v11545_v54 = vadd.f32 %v2184_v32, %v14009_v47  ;;  %v3205_v47 = vpack.c.bf16 %v3156_v16, %v3155_v24  ;;  %v14024_v16 = vld [vmem:[#allocation50_spill] sm:$0xff] }
 0x28a   : > { %v2188_v30 = vpop.f32.mrf.mxu0  ;;  %9195 = vmatmul.mubr.msk.bf16.gmra.mxu0 %vm509_vm1, %v3204_v18  ;;  %v14019_v18 = vld [vmem:[#allocation48_spill] sm:$0xff] }
 0x28b   : > { %14010 = vst [vmem:[#allocation44_spill] sm:$0xff] %v11545_v54  ;;  %v11551_v19 = vadd.f32 %v2188_v30, %v14012_v41  ;;  %3520 = vmatprep.mubr.bf16.mxu0 %v13842_v2  ;;  %v14017_v54 = vld [vmem:[#allocation47_spill] sm:$0xff]  ;;  %v11565_v41 = vpop.f32.mrf.mxu1 }
 0x28c   : > { %v2190_v57 = vpop.f32.mrf.mxu0  ;;  %14021 = vst [vmem:[#allocation126_spill] sm:$0xff] %v11565_v41 }
 0x28d   : > { %14013 = vst [vmem:[#allocation45_spill] sm:$0xff] %v11551_v19  ;;  %v11555_v37 = vadd.f32 %v2190_v57, %v14014_v39  ;;  %v14022_v19 = vld [vmem:[#allocation49_spill] sm:$0xff]  ;;  %v3158_v39 = vld [vmem:[#allocation2 + $0xfc] sm:$0xff] }
 0x28e   : > { %v2192_v32 = vpop.f32.mrf.mxu0  ;;  %v3157_v57 = vld [vmem:[#allocation2 + $0xf4] sm:$0xff] }
 0x28f   : > { %14015 = vst [vmem:[#allocation46_spill] sm:$0xff] %v11555_v37  ;;  %v11560_v26 = vadd.f32 %v2192_v32, %v14017_v54  ;;  %v11575_v32 = vpop.f32.mrf.mxu1 }
 0x290   : > { %v2194_v7 = vpop.f32.mrf.mxu0  ;;  %14026 = vst [vmem:[#allocation127_spill] sm:$0xff] %v11575_v32 }
 0x291   : > { %14018 = vst [vmem:[#allocation47_spill] sm:$0xff] %v11560_v26  ;;  %v11563_v48 = vadd.f32 %v2194_v7, %v14019_v18  ;;  %v3206_v18 = vpack.c.bf16 %v3158_v39, %v3157_v57  ;;  %v14034_v39 = vld [vmem:[#allocation54_spill] sm:$0xff] }
 0x292   : > { %v2198_v30 = vpop.f32.mrf.mxu0  ;;  %9196 = vmatmul.mubr.msk.bf16.gmra.mxu0 %vm509_vm1, %v3205_v47  ;;  %v14029_v47 = vld [vmem:[#allocation52_spill] sm:$0xff] }
 0x293   : > { %14020 = vst [vmem:[#allocation48_spill] sm:$0xff] %v11563_v48  ;;  %v11569_v3 = vadd.f32 %v2198_v30, %v14022_v19  ;;  %3530 = vmatprep.mubr.bf16.mxu0 %v13842_v2  ;;  %v14027_v48 = vld [vmem:[#allocation51_spill] sm:$0xff]  ;;  %v11583_v19 = vpop.f32.mrf.mxu1 }
 0x294   : > { %v2200_v24 = vpop.f32.mrf.mxu0  ;;  %14031 = vst [vmem:[#allocation128_spill] sm:$0xff] %v11583_v19 }
 0x295   : > { %14023 = vst [vmem:[#allocation49_spill] sm:$0xff] %v11569_v3  ;;  %v11573_v54 = vadd.f32 %v2200_v24, %v14024_v16  ;;  %v14032_v3 = vld [vmem:[#allocation53_spill] sm:$0xff]  ;;  %v3159_v24 = vld [vmem:[#allocation2 + $0x104] sm:$0xff] }
 0x296   : > { %v2202_v7 = vpop.f32.mrf.mxu0  ;;  %v3160_v16 = vld [vmem:[#allocation2 + $0x10c] sm:$0xff] }
 0x297   : > { %14025 = vst [vmem:[#allocation50_spill] sm:$0xff] %v11573_v54  ;;  %v11578_v26 = vadd.f32 %v2202_v7, %v14027_v48  ;;  %v11593_v7 = vpop.f32.mrf.mxu1 }
 0x298   : > { %v2204_v37 = vpop.f32.mrf.mxu0  ;;  %14036 = vst [vmem:[#allocation129_spill] sm:$0xff] %v11593_v7 }
 0x299   : > { %14028 = vst [vmem:[#allocation51_spill] sm:$0xff] %v11578_v26  ;;  %v11581_v41 = vadd.f32 %v2204_v37, %v14029_v47  ;;  %v3207_v47 = vpack.c.bf16 %v3160_v16, %v3159_v24  ;;  %v14044_v16 = vld [vmem:[#allocation58_spill] sm:$0xff] }
 0x29a   : > { %v2208_v30 = vpop.f32.mrf.mxu0  ;;  %9197 = vmatmul.mubr.msk.bf16.gmra.mxu0 %vm509_vm1, %v3206_v18  ;;  %v14039_v18 = vld [vmem:[#allocation56_spill] sm:$0xff] }
 0x29b   : > { %14030 = vst [vmem:[#allocation52_spill] sm:$0xff] %v11581_v41  ;;  %v11587_v40 = vadd.f32 %v2208_v30, %v14032_v3  ;;  %3540 = vmatprep.mubr.bf16.mxu0 %v13842_v2  ;;  %v14037_v41 = vld [vmem:[#allocation55_spill] sm:$0xff]  ;;  %v11601_v3 = vpop.f32.mrf.mxu1 }
 0x29c   : > { %v2210_v57 = vpop.f32.mrf.mxu0  ;;  %14041 = vst [vmem:[#allocation130_spill] sm:$0xff] %v11601_v3 }
 0x29d   : > { %14033 = vst [vmem:[#allocation53_spill] sm:$0xff] %v11587_v40  ;;  %v11591_v48 = vadd.f32 %v2210_v57, %v14034_v39  ;;  %v14042_v40 = vld [vmem:[#allocation57_spill] sm:$0xff]  ;;  %v3162_v39 = vld [vmem:[#allocation2 + $0x11c] sm:$0xff] }
 0x29e   : > { %v2212_v37 = vpop.f32.mrf.mxu0  ;;  %v3161_v57 = vld [vmem:[#allocation2 + $0x114] sm:$0xff] }
 0x29f   : > { %14035 = vst [vmem:[#allocation54_spill] sm:$0xff] %v11591_v48  ;;  %v11596_v26 = vadd.f32 %v2212_v37, %v14037_v41  ;;  %v11611_v37 = vpop.f32.mrf.mxu1 }
 0x2a0   : > { %v2214_v54 = vpop.f32.mrf.mxu0  ;;  %14046 = vst [vmem:[#allocation131_spill] sm:$0xff] %v11611_v37 }
 0x2a1   : > { %14038 = vst [vmem:[#allocation55_spill] sm:$0xff] %v11596_v26  ;;  %v11599_v19 = vadd.f32 %v2214_v54, %v14039_v18  ;;  %v3208_v18 = vpack.c.bf16 %v3162_v39, %v3161_v57  ;;  %v14054_v39 = vld [vmem:[#allocation62_spill] sm:$0xff] }
 0x2a2   : > { %v2218_v30 = vpop.f32.mrf.mxu0  ;;  %9198 = vmatmul.mubr.msk.bf16.gmra.mxu0 %vm509_vm1, %v3207_v47  ;;  %v14049_v47 = vld [vmem:[#allocation60_spill] sm:$0xff] }
 0x2a3   : > { %14040 = vst [vmem:[#allocation56_spill] sm:$0xff] %v11599_v19  ;;  %v11605_v32 = vadd.f32 %v2218_v30, %v14042_v40  ;;  %3550 = vmatprep.mubr.bf16.mxu0 %v13842_v2  ;;  %v14047_v19 = vld [vmem:[#allocation59_spill] sm:$0xff]  ;;  %v11619_v40 = vpop.f32.mrf.mxu1 }
 0x2a4   : > { %v2220_v24 = vpop.f32.mrf.mxu0  ;;  %14051 = vst [vmem:[#allocation132_spill] sm:$0xff] %v11619_v40 }
 0x2a5   : > { %14043 = vst [vmem:[#allocation57_spill] sm:$0xff] %v11605_v32  ;;  %v11609_v41 = vadd.f32 %v2220_v24, %v14044_v16  ;;  %v14052_v32 = vld [vmem:[#allocation61_spill] sm:$0xff]  ;;  %v3163_v24 = vld [vmem:[#allocation2 + $0x124] sm:$0xff] }
 0x2a6   : > { %v2222_v54 = vpop.f32.mrf.mxu0  ;;  %v3164_v16 = vld [vmem:[#allocation2 + $0x12c] sm:$0xff] }
 0x2a7   : > { %14045 = vst [vmem:[#allocation58_spill] sm:$0xff] %v11609_v41  ;;  %v11614_v26 = vadd.f32 %v2222_v54, %v14047_v19  ;;  %v11629_v54 = vpop.f32.mrf.mxu1 }
 0x2a8   : > { %v2224_v48 = vpop.f32.mrf.mxu0  ;;  %14056 = vst [vmem:[#allocation133_spill] sm:$0xff] %v11629_v54 }
 0x2a9   : > { %14048 = vst [vmem:[#allocation59_spill] sm:$0xff] %v11614_v26  ;;  %v11617_v3 = vadd.f32 %v2224_v48, %v14049_v47  ;;  %v3209_v47 = vpack.c.bf16 %v3164_v16, %v3163_v24  ;;  %v14064_v16 = vld [vmem:[#allocation66_spill] sm:$0xff] }
 0x2aa   : > { %v2228_v30 = vpop.f32.mrf.mxu0  ;;  %9199 = vmatmul.mubr.msk.bf16.gmra.mxu0 %vm509_vm1, %v3208_v18  ;;  %v14059_v18 = vld [vmem:[#allocation64_spill] sm:$0xff] }
 0x2ab   : > { %14050 = vst [vmem:[#allocation60_spill] sm:$0xff] %v11617_v3  ;;  %v11623_v7 = vadd.f32 %v2228_v30, %v14052_v32  ;;  %3560 = vmatprep.mubr.bf16.mxu0 %v13842_v2  ;;  %v14057_v3 = vld [vmem:[#allocation63_spill] sm:$0xff]  ;;  %v11637_v32 = vpop.f32.mrf.mxu1 }
 0x2ac   : > { %v2230_v57 = vpop.f32.mrf.mxu0  ;;  %14061 = vst [vmem:[#allocation134_spill] sm:$0xff] %v11637_v32 }
 0x2ad   : > { %14053 = vst [vmem:[#allocation61_spill] sm:$0xff] %v11623_v7  ;;  %v11627_v19 = vadd.f32 %v2230_v57, %v14054_v39  ;;  %v14062_v7 = vld [vmem:[#allocation65_spill] sm:$0xff]  ;;  %v3166_v39 = vld [vmem:[#allocation2 + $0x13c] sm:$0xff] }
 0x2ae   : > { %v2232_v48 = vpop.f32.mrf.mxu0  ;;  %v3165_v57 = vld [vmem:[#allocation2 + $0x134] sm:$0xff] }
 0x2af   : > { %14055 = vst [vmem:[#allocation62_spill] sm:$0xff] %v11627_v19  ;;  %v11632_v26 = vadd.f32 %v2232_v48, %v14057_v3  ;;  %v11647_v48 = vpop.f32.mrf.mxu1 }
 0x2b0   : > { %v2234_v41 = vpop.f32.mrf.mxu0  ;;  %14066 = vst [vmem:[#allocation135_spill] sm:$0xff] %v11647_v48 }
 0x2b1   : > { %14058 = vst [vmem:[#allocation63_spill] sm:$0xff] %v11632_v26  ;;  %v11635_v40 = vadd.f32 %v2234_v41, %v14059_v18  ;;  %v3210_v18 = vpack.c.bf16 %v3166_v39, %v3165_v57  ;;  %v14074_v39 = vld [vmem:[#allocation70_spill] sm:$0xff] }
 0x2b2   : > { %v2238_v30 = vpop.f32.mrf.mxu0  ;;  %9200 = vmatmul.mubr.msk.bf16.gmra.mxu0 %vm509_vm1, %v3209_v47  ;;  %v14069_v47 = vld [vmem:[#allocation68_spill] sm:$0xff] }
 0x2b3   : > { %14060 = vst [vmem:[#allocation64_spill] sm:$0xff] %v11635_v40  ;;  %v11641_v37 = vadd.f32 %v2238_v30, %v14062_v7  ;;  %3570 = vmatprep.mubr.bf16.mxu0 %v13842_v2  ;;  %v14067_v40 = vld [vmem:[#allocation67_spill] sm:$0xff]  ;;  %v11655_v7 = vpop.f32.mrf.mxu1 }
 0x2b4   : > { %v2240_v24 = vpop.f32.mrf.mxu0  ;;  %14071 = vst [vmem:[#allocation136_spill] sm:$0xff] %v11655_v7 }
 0x2b5   : > { %14063 = vst [vmem:[#allocation65_spill] sm:$0xff] %v11641_v37  ;;  %v11645_v3 = vadd.f32 %v2240_v24, %v14064_v16  ;;  %v14072_v37 = vld [vmem:[#allocation69_spill] sm:$0xff]  ;;  %v3167_v24 = vld [vmem:[#allocation2 + $0x144] sm:$0xff] }
 0x2b6   : > { %v2242_v41 = vpop.f32.mrf.mxu0  ;;  %v3168_v16 = vld [vmem:[#allocation2 + $0x14c] sm:$0xff] }
 0x2b7   : > { %14065 = vst [vmem:[#allocation66_spill] sm:$0xff] %v11645_v3  ;;  %v11650_v26 = vadd.f32 %v2242_v41, %v14067_v40  ;;  %v11665_v41 = vpop.f32.mrf.mxu1 }
 0x2b8   : > { %v2244_v19 = vpop.f32.mrf.mxu0  ;;  %14076 = vst [vmem:[#allocation137_spill] sm:$0xff] %v11665_v41 }
 0x2b9   : > { %14068 = vst [vmem:[#allocation67_spill] sm:$0xff] %v11650_v26  ;;  %v11653_v32 = vadd.f32 %v2244_v19, %v14069_v47  ;;  %v3211_v47 = vpack.c.bf16 %v3168_v16, %v3167_v24  ;;  %v14084_v16 = vld [vmem:[#allocation74_spill] sm:$0xff] }
 0x2ba   : > { %v2248_v30 = vpop.f32.mrf.mxu0  ;;  %9201 = vmatmul.mubr.msk.bf16.gmra.mxu0 %vm509_vm1, %v3210_v18  ;;  %v14079_v18 = vld [vmem:[#allocation72_spill] sm:$0xff] }
 0x2bb   : > { %14070 = vst [vmem:[#allocation68_spill] sm:$0xff] %v11653_v32  ;;  %v11659_v54 = vadd.f32 %v2248_v30, %v14072_v37  ;;  %3580 = vmatprep.mubr.bf16.mxu0 %v13842_v2  ;;  %v14077_v32 = vld [vmem:[#allocation71_spill] sm:$0xff]  ;;  %v11673_v37 = vpop.f32.mrf.mxu1 }
 0x2bc   : > { %v2250_v57 = vpop.f32.mrf.mxu0  ;;  %14081 = vst [vmem:[#allocation138_spill] sm:$0xff] %v11673_v37 }
 0x2bd   : > { %14073 = vst [vmem:[#allocation69_spill] sm:$0xff] %v11659_v54  ;;  %v11663_v40 = vadd.f32 %v2250_v57, %v14074_v39  ;;  %v14082_v54 = vld [vmem:[#allocation73_spill] sm:$0xff]  ;;  %v3170_v39 = vld [vmem:[#allocation2 + $0x15c] sm:$0xff] }
 0x2be   : > { %v2252_v19 = vpop.f32.mrf.mxu0  ;;  %v3169_v57 = vld [vmem:[#allocation2 + $0x154] sm:$0xff] }
 0x2bf   : > { %14075 = vst [vmem:[#allocation70_spill] sm:$0xff] %v11663_v40  ;;  %v11668_v26 = vadd.f32 %v2252_v19, %v14077_v32  ;;  %v11683_v19 = vpop.f32.mrf.mxu1 }
 0x2c0   : > { %v2254_v3 = vpop.f32.mrf.mxu0  ;;  %14086 = vst [vmem:[#allocation139_spill] sm:$0xff] %v11683_v19 }
 0x2c1   : > { %14078 = vst [vmem:[#allocation71_spill] sm:$0xff] %v11668_v26  ;;  %v11671_v7 = vadd.f32 %v2254_v3, %v14079_v18  ;;  %v3212_v18 = vpack.c.bf16 %v3170_v39, %v3169_v57  ;;  %v14094_v39 = vld [vmem:[#allocation78_spill] sm:$0xff] }
 0x2c2   : > { %v2258_v30 = vpop.f32.mrf.mxu0  ;;  %9202 = vmatmul.mubr.msk.bf16.gmra.mxu0 %vm509_vm1, %v3211_v47  ;;  %v14089_v47 = vld [vmem:[#allocation76_spill] sm:$0xff] }
 0x2c3   : > { %14080 = vst [vmem:[#allocation72_spill] sm:$0xff] %v11671_v7  ;;  %v11677_v48 = vadd.f32 %v2258_v30, %v14082_v54  ;;  %3590 = vmatprep.mubr.bf16.mxu0 %v13842_v2  ;;  %v14087_v7 = vld [vmem:[#allocation75_spill] sm:$0xff]  ;;  %v11691_v54 = vpop.f32.mrf.mxu1 }
 0x2c4   : > { %v2260_v24 = vpop.f32.mrf.mxu0  ;;  %14091 = vst [vmem:[#allocation140_spill] sm:$0xff] %v11691_v54 }
 0x2c5   : > { %14083 = vst [vmem:[#allocation73_spill] sm:$0xff] %v11677_v48  ;;  %v11681_v32 = vadd.f32 %v2260_v24, %v14084_v16  ;;  %v14092_v48 = vld [vmem:[#allocation77_spill] sm:$0xff]  ;;  %v3171_v24 = vld [vmem:[#allocation2 + $0x164] sm:$0xff] }
 0x2c6   : > { %v2262_v3 = vpop.f32.mrf.mxu0  ;;  %v3172_v16 = vld [vmem:[#allocation2 + $0x16c] sm:$0xff] }
 0x2c7   : > { %14085 = vst [vmem:[#allocation74_spill] sm:$0xff] %v11681_v32  ;;  %v11686_v26 = vadd.f32 %v2262_v3, %v14087_v7  ;;  %v11701_v3 = vpop.f32.mrf.mxu1  ;;  %v14099_v32 = vld [vmem:[#allocation80_spill] sm:$0xff] }
 0x2c8   : > { %v2264_v40 = vpop.f32.mrf.mxu0  ;;  %14096 = vst [vmem:[#allocation141_spill] sm:$0xff] %v11701_v3 }
 0x2c9   : > { %14088 = vst [vmem:[#allocation75_spill] sm:$0xff] %v11686_v26  ;;  %v11689_v37 = vadd.f32 %v2264_v40, %v14089_v47  ;;  %v3213_v47 = vpack.c.bf16 %v3172_v16, %v3171_v24  ;;  %v14102_v24 = vld [vmem:[#allocation81_spill] sm:$0xff] }
 0x2ca   : > { %v2268_v30 = vpop.f32.mrf.mxu0  ;;  %9203 = vmatmul.mubr.msk.bf16.gmra.mxu0 %vm509_vm1, %v3212_v18 }
 0x2cb   : > { %14090 = vst [vmem:[#allocation76_spill] sm:$0xff] %v11689_v37  ;;  %v11695_v41 = vadd.f32 %v2268_v30, %v14092_v48  ;;  %3600 = vmatprep.mubr.bf16.mxu0 %v13842_v2  ;;  %v14097_v37 = vld [vmem:[#allocation79_spill] sm:$0xff]  ;;  %v9288_v48 = vld [vmem:[%s13790_s4 + $0xa8] sm:$0x33] }
 0x2cc   : > { %v2270_v57 = vpop.f32.mrf.mxu0  ;;  %v9300_v30 = vcombine.high %v9288_v48, %v9288_v48 }
 0x2cd   : > { %14093 = vst [vmem:[#allocation77_spill] sm:$0xff] %v11695_v41  ;;  %v11699_v7 = vadd.f32 %v2270_v57, %v14094_v39  ;;  %v9299_v41 = vcombine.low %v9288_v48, %v9288_v48  ;;  %v11712_v57 = vpop.f32.mrf.mxu1 }
 0x2ce   : > { %v2272_v40 = vpop.f32.mrf.mxu0  ;;  %14101 = vst [vmem:[#allocation142_spill] sm:$0xff] %v11712_v57  ;;  %9301 = vmatprep.subr.msk.bf16.mxu0 %vm5303_vm2, %v9300_v30  ;;  %v3831_v57 = vlaneseq  ;;  %v14107_v30 = vld [vmem:[#allocation83_spill] sm:$0xff] }
 0x2cf   : > { %14095 = vst [vmem:[#allocation78_spill] sm:$0xff] %v11699_v7  ;;  %v11704_v26 = vadd.f32 %v2272_v40, %v14097_v37  ;;  %v5305_v37 = vsel %vm5303_vm2, %v9299_v41, 0  ;;  %v3173_v40 = vld [vmem:[#allocation2 + $0x174] sm:$0xff] }
 0x2d0   : > { %v2274_v18 = vpop.f32.mrf.mxu0  ;;  %5315 = vmatpush1.bf16.msra.mxu0 %v5305_v37  ;;  %v11735_v37 = vshrl.u32 %v3831_v57, 7 }
 0x2d1   : > { %14098 = vst [vmem:[#allocation79_spill] sm:$0xff] %v11704_v26  ;;  %v11710_v54 = vadd.f32 %v2274_v18, %v14099_v32  ;;  %v3174_v26 = vld [vmem:[#allocation2 + $0x17c] sm:$0xff] }
 0x2d2   : > { %v2278_v39 = vpop.f32.mrf.mxu0  ;;  %9204 = vmatmul.mubr.msk.bf16.gmra.mxu0 %vm509_vm1, %v3213_v47  ;;  %v14104_v32 = vld [vmem:[#allocation82_spill] sm:$0xff]  ;;  %v3214_v47 = vpack.c.bf16 %v3174_v26, %v3173_v40  ;;  %14112 = vst [vmem:[#allocation145_spill] sm:$0xff] %v11735_v37  ;;  %v3175_v26 = vld [vmem:[#allocation2 + $0x184] sm:$0xff]  ;;  %v3176_v40 = vld [vmem:[#allocation2 + $0x18c] sm:$0xff] }
 0x2d3   : > { %14100 = vst [vmem:[#allocation80_spill] sm:$0xff] %v11710_v54  ;;  %v11718_v16 = vadd.f32 %v2278_v39, %v14102_v24  ;;  %3610 = vmatprep.mubr.bf16.mxu0 %v13842_v2  ;;  %v11724_v54 = vpop.f32.mrf.mxu1  ;;  %v14109_v39 = vld [vmem:[#allocation84_spill] sm:$0xff] }
 0x2d4   : > { %v2280_v48 = vpop.f32.mrf.mxu0  ;;  %14106 = vst [vmem:[#allocation143_spill] sm:$0xff] %v11724_v54 }
 0x2d5   : > { %14103 = vst [vmem:[#allocation81_spill] sm:$0xff] %v11718_v16  ;;  %v11722_v18 = vadd.f32 %v2280_v48, %v14104_v32  ;;  %v11732_v16 = vpop.f32.mrf.mxu1  ;;  %v14113_v48 = vld [vmem:[#allocation85_spill] sm:$0xff] }
 0x2d6   : > { %v2282_v7 = vpop.f32.mrf.mxu0  ;;  %14111 = vst [vmem:[#allocation144_spill] sm:$0xff] %v11732_v16  ;;  %v14120_v16 = vld [vmem:[#allocation88_spill] sm:$0xff] }
 0x2d7   : > { %14105 = vst [vmem:[#allocation82_spill] sm:$0xff] %v11722_v18  ;;  %v11727_v3 = vadd.f32 %v2282_v7, %v14107_v30  ;;  %v14115_v30 = vld [vmem:[#allocation86_spill] sm:$0xff]  ;;  %v3215_v18 = vpack.c.bf16 %v3176_v40, %v3175_v26 }
 0x2d8   : > { %v2284_v41 = vpop.f32.mrf.mxu0 }
 0x2d9   : > { %14108 = vst [vmem:[#allocation83_spill] sm:$0xff] %v11727_v3  ;;  %v11730_v24 = vadd.f32 %v2284_v41, %v14109_v39  ;;  %v11744_v41 = vpop.f32.mrf.mxu1 }
 0x2da   : > { %v2288_v19 = vpop.f32.mrf.mxu0  ;;  %9205 = vmatmul.mubr.msk.bf16.gmra.mxu0 %vm509_vm1, %v3214_v47  ;;  %14117 = vst [vmem:[#allocation146_spill] sm:$0xff] %v11744_v41  ;;  %v14118_v47 = vld [vmem:[#allocation87_spill] sm:$0xff] }
 0x2db   : > { %14110 = vst [vmem:[#allocation84_spill] sm:$0xff] %v11730_v24  ;;  %v11738_v32 = vadd.f32 %v2288_v19, %v14113_v48  ;;  %3620 = vmatprep.mubr.bf16.mxu0 %v13842_v2  ;;  %v13805_v24 = vsub.s32 0, %v11735_v37  ;;  %v3829_v19 = vld [vmem:[%s13788_s2] sm:$0x3]  ;;  %v13808_v48 = vsub.s32 1, %v11735_v37 }
 0x2dc   : > { %v2290_v7 = vpop.f32.mrf.mxu0 }
 0x2dd   : > { %14114 = vst [vmem:[#allocation85_spill] sm:$0xff] %v11738_v32  ;;  %v11742_v3 = vadd.f32 %v2290_v7, %v14115_v30  ;;  %v11757_v7 = vpop.f32.mrf.mxu1  ;;  %v11767_v40 = vrot.slane %v3829_v19, %v13808_v48 }
 0x2de   : > { %v2292_v39 = vpop.f32.mrf.mxu0  ;;  %14122 = vst [vmem:[#allocation147_spill] sm:$0xff] %v11757_v7 }
 0x2df   : > { %14116 = vst [vmem:[#allocation86_spill] sm:$0xff] %v11742_v3  ;;  %v11748_v57 = vadd.f32 %v2292_v39, %v14118_v47  ;;  %v11761_v3 = vrot.slane %v3829_v19, %v13805_v24  ;;  %v3177_v39 = vld [vmem:[#allocation2 + $0x194] sm:$0xff] }
 0x2e0   : > { %v2294_v32 = vpop.f32.mrf.mxu0  ;;  %v14124_v19 = vld [vmem:[#allocation90_spill] sm:$0xff] }
 0x2e1   : > { %14119 = vst [vmem:[#allocation87_spill] sm:$0xff] %v11748_v57  ;;  %v11755_v54 = vadd.f32 %v2294_v32, %v14120_v16  ;;  %v3178_v16 = vld [vmem:[#allocation2 + $0x19c] sm:$0xff] }
 0x2e2   : > { %v3382_v30 = vpop.f32.mrf.mxu0  ;;  %9206 = vmatmul.mubr.msk.bf16.gmra.mxu0 %vm509_vm1, %v3215_v18  ;;  %v3216_v7 = vpack.c.bf16 %v3178_v16, %v3177_v39  ;;  %v3179_v16 = vld [vmem:[#allocation2 + $0x1a4] sm:$0xff] }
 0x2e3   : > { %14121 = vst [vmem:[#allocation88_spill] sm:$0xff] %v11755_v54  ;;  %v3701_v26 = vadd.f32 %v3382_v30, %v11125_v27  ;;  %3630 = vmatprep.mubr.bf16.mxu0 %v13842_v2  ;;  %v11771_v54 = vpop.f32.mrf.mxu1  ;;  %v14123_v27 = vld [vmem:[#allocation89_spill] sm:$0xff] }
 0x2e4   : > { %v3384_v32 = vpop.f32.mrf.mxu0 }
 0x2e5   : > { %v3702_v47 = vadd.f32 %v3384_v32, %v11128_v9  ;;  %v3841_v24 = vadd.f32 %v11761_v3, %v3701_v26  ;;  %v11777_v41 = vpop.f32.mrf.mxu1 }
 0x2e6   : > { %v3386_v57 = vpop.f32.mrf.mxu0 }
 0x2e7   : > { %v3842_v18 = vadd.f32 %v11767_v40, %v3702_v47  ;;  %v3703_v30 = vadd.f32 %v3386_v57, %v14123_v27  ;;  %v3180_v57 = vld [vmem:[#allocation2 + $0x1ac] sm:$0xff]  ;;  %v11785_v47 = vpop.f32.mrf.mxu1 }
 0x2e8   : > { %v3388_v37 = vpop.f32.mrf.mxu0  ;;  %v3217_v27 = vpack.c.bf16 %v3180_v57, %v3179_v16 }
 0x2e9   : > { %9905 = vtanh.f32 %v3842_v18  ;;  %v3704_v48 = vadd.f32 %v3388_v37, %v14124_v19  ;;  %v3843_v14 = vadd.f32 %v11761_v3, %v3703_v30  ;;  %v11791_v19 = vpop.f32.mrf.mxu1 }
 0x2ea   : > { %9907 = vtanh.f32 %v3841_v24  ;;  %v3392_v9 = vpop.f32.mrf.mxu0  ;;  %9207 = vmatmul.mubr.msk.bf16.gmra.mxu0 %vm509_vm1, %v3216_v7 }
 0x2eb   : > { %v3844_v26 = vadd.f32 %v11767_v40, %v3704_v48  ;;  %v3705_v39 = vadd.f32 %v3392_v9, %v11145_v36  ;;  %3640 = vmatprep.mubr.bf16.mxu0 %v13842_v2 }
 0x2ec   : > { %v3394_v32 = vpop.f32.mrf.mxu0 }
 0x2ed   : > { %9909 = vtanh.f32 %v3844_v26  ;;  %v3706_v37 = vadd.f32 %v3394_v32, %v11148_v51  ;;  %v3845_v24 = vadd.f32 %v11761_v3, %v3705_v39  ;;  %v3181_v39 = vld [vmem:[#allocation2 + $0x1b4] sm:$0xff]  ;;  %v11799_v32 = vpop.f32.mrf.mxu1 }
 0x2ee   : > { %9911 = vtanh.f32 %v3843_v14  ;;  %v3396_v18 = vpop.f32.mrf.mxu0 }
 0x2ef   : > { %v3846_v7 = vadd.f32 %v11767_v40, %v3706_v37  ;;  %v3707_v48 = vadd.f32 %v3396_v18, %v11151_v25  ;;  %v3182_v25 = vld [vmem:[#allocation2 + $0x1bc] sm:$0xff] }
 0x2f0   : > { %v3398_v36 = vpop.f32.mrf.mxu0  ;;  %v3218_v18 = vpack.c.bf16 %v3182_v25, %v3181_v39  ;;  %v3183_v25 = vld [vmem:[#allocation2 + $0x1c4] sm:$0xff] }
 0x2f1   : > { %9913 = vtanh.f32 %v3846_v7  ;;  %v3708_v30 = vadd.f32 %v3398_v36, %v11155_v1  ;;  %v3847_v51 = vadd.f32 %v11761_v3, %v3707_v48  ;;  %v9784_v36 = vld [vmem:[%s13790_s4 + $0x98] ss:$8 sps:$4 sm:$0xff]  }
 0x2f2   : > { %9915 = vtanh.f32 %v3845_v24  ;;  %v3402_v9 = vpop.f32.mrf.mxu0  ;;  %9208 = vmatmul.mubr.msk.bf16.gmra.mxu0 %vm509_vm1, %v3217_v27 }
 0x2f3   : > { %v3848_v14 = vadd.f32 %v11767_v40, %v3708_v30  ;;  %v3709_v26 = vadd.f32 %v3402_v9, %v11164_v60  ;;  %3650 = vmatprep.mubr.bf16.mxu0 %v13842_v2  ;;  %v9786_v30 = vld [vmem:[%s13790_s4 + $0x9c] ss:$8 sps:$4 sm:$0xff]   ;;  %v11812_v9 = vpop.f32.mrf.mxu1 }
 0x2f4   : > { %v3404_v16 = vpop.f32.mrf.mxu0  ;;  %5316 = vmatprep.subr.bf16.mxu0 %v9786_v30 }
 0x2f5   : > { %9917 = vtanh.f32 %v3848_v14  ;;  %v3710_v1 = vadd.f32 %v3404_v16, %v11168_v10  ;;  %v3849_v37 = vadd.f32 %v11761_v3, %v3709_v26  ;;  %v3184_v16 = vld [vmem:[#allocation2 + $0x1cc] sm:$0xff]  ;;  %5317 = vmatpush1.bf16.msra.mxu0 %v9784_v36 }
 0x2f6   : > { %v9906_v57 = vpop.eup %9905  ;;  %9919 = vtanh.f32 %v3847_v51  ;;  %v3406_v24 = vpop.f32.mrf.mxu0 }
 0x2f7   : > { %v9908_v27 = vpop.eup %9907  ;;  %v3850_v60 = vadd.f32 %v11767_v40, %v3710_v1  ;;  %v3711_v7 = vadd.f32 %v3406_v24, %v11171_v59  ;;  %9214 = vmatprep.mubr.msk.f32.mxu1 %vm4118_vm3, %v9906_v57  ;;  %v11821_v24 = vpop.f32.mrf.mxu1 }
 0x2f8   : > { %v3408_v48 = vpop.f32.mrf.mxu0  ;;  %4376 = vmatmul.mubr.f32.vlgmr.msra.gmra.mxu1 %v9908_v27  ;;  %v3219_v27 = vpack.c.bf16 %v3184_v16, %v3183_v25  ;;  %v3017_v25 = vadd.f32 %v11212_v50, %v11210_v46  ;;  %v3019_v50 = vadd.f32 %v11223_v21, %v11221_v12  ;;  %v3187_v12 = vld [vmem:[#allocation2 + $0x1e4] sm:$0xff]  ;;  %v3188_v21 = vld [vmem:[#allocation2 + $0x1ec] sm:$0xff] }
 0x2f9   : > { %9921 = vtanh.f32 %v3850_v60  ;;  %v3712_v10 = vadd.f32 %v3408_v48, %v11175_v49  ;;  %v3851_v59 = vadd.f32 %v11761_v3, %v3711_v7 }
 0x2fa   : > { %v9910_v51 = vpop.eup %9909  ;;  %9923 = vtanh.f32 %v3849_v37  ;;  %v3412_v14 = vpop.f32.mrf.mxu0  ;;  %9209 = vmatmul.mubr.msk.bf16.gmra.mxu0 %vm509_vm1, %v3218_v18 }
 0x2fb   : > { %v9912_v26 = vpop.eup %9911  ;;  %v3852_v49 = vadd.f32 %v11767_v40, %v3712_v10  ;;  %v3713_v39 = vadd.f32 %v3412_v14, %v11181_v34  ;;  %9215 = vmatprep.mubr.msk.f32.mxu1 %vm4118_vm3, %v9910_v51  ;;  %3660 = vmatprep.mubr.bf16.mxu0 %v13842_v2  ;;  %v11830_v51 = vpop.f32.mrf.mxu1 }
 0x2fc   : > { %v3414_v1 = vpop.f32.mrf.mxu0  ;;  %4381 = vmatmul.mubr.f32.gmra.mxu1 %v9912_v26  ;;  %v3016_v26 = vadd.f32 %v11207_v5, %v11205_v31 }
 0x2fd   : > { %9925 = vtanh.f32 %v3852_v49  ;;  %v3714_v57 = vadd.f32 %v3414_v1, %v11184_v56  ;;  %v3853_v18 = vadd.f32 %v11761_v3, %v3713_v39  ;;  %v3015_v56 = vadd.f32 %v11199_v20, %v11195_v58  ;;  %v3185_v58 = vld [vmem:[#allocation2 + $0x1d4] sm:$0xff] }
 0x2fe   : > { %v9914_v37 = vpop.eup %9913  ;;  %9927 = vtanh.f32 %v3851_v59  ;;  %v3416_v34 = vpop.f32.mrf.mxu0 }
 0x2ff   : > { %v9916_v60 = vpop.eup %9915  ;;  %v3854_v7 = vadd.f32 %v11767_v40, %v3714_v57  ;;  %v3715_v48 = vadd.f32 %v3416_v34, %v11190_v52  ;;  %9216 = vmatprep.mubr.msk.f32.mxu1 %vm4118_vm3, %v9914_v37  ;;  %v11841_v57 = vpop.f32.mrf.mxu1  ;;  %v3018_v34 = vadd.f32 %v11217_v17, %v11215_v0  ;;  %v3020_v17 = vadd.f32 %v11235_v23, %v11232_v29 }
 0x300   : > { %v3418_v10 = vpop.f32.mrf.mxu0  ;;  %4386 = vmatmul.mubr.f32.gmra.mxu1 %v9916_v60 }
 0x301   : > { %9929 = vtanh.f32 %v3854_v7  ;;  %v3716_v36 = vadd.f32 %v3418_v10, %v11197_v15  ;;  %v3855_v59 = vadd.f32 %v11761_v3, %v3715_v48  ;;  %v3186_v15 = vld [vmem:[#allocation2 + $0x1dc] sm:$0xff]  ;;  %v11850_v10 = vpop.f32.mrf.mxu1 }
 0x302   : > { %v9918_v30 = vpop.eup %9917  ;;  %9931 = vtanh.f32 %v3853_v18  ;;  %v3422_v14 = vpop.f32.mrf.mxu0  ;;  %9210 = vmatmul.mubr.msk.bf16.gmra.mxu0 %vm509_vm1, %v3219_v27  ;;  %v3220_v37 = vpack.c.bf16 %v3186_v15, %v3185_v58  ;;  %v3221_v58 = vpack.c.bf16 %v3188_v21, %v3187_v12 }
 0x303   : > { %v9920_v52 = vpop.eup %9919  ;;  %v3856_v49 = vadd.f32 %v11767_v40, %v3716_v36  ;;  %v3717_v39 = vadd.f32 %v3422_v14, %v3015_v56  ;;  %9217 = vmatprep.mubr.msk.f32.mxu1 %vm4118_vm3, %v9918_v30  ;;  %3670 = vmatprep.mubr.bf16.mxu0 %v13842_v2 }
 0x304   : > { %v3424_v20 = vpop.f32.mrf.mxu0  ;;  %4391 = vmatmul.mubr.f32.gmra.mxu1 %v9920_v52  ;;  %v3021_v52 = vadd.f32 %v11243_v55, %v11238_v4  ;;  %v14125_v55 = vld [vmem:[#allocation91_spill] sm:$0xff] }
 0x305   : > { %9933 = vtanh.f32 %v3856_v49  ;;  %v3718_v16 = vadd.f32 %v3424_v20, %v3016_v26  ;;  %v3857_v31 = vadd.f32 %v11761_v3, %v3717_v39  ;;  %v11861_v39 = vpop.f32.mrf.mxu1  ;;  %v3022_v20 = vadd.f32 %v11255_v38, %v11241_v8 }
 0x306   : > { %v9922_v1 = vpop.eup %9921  ;;  %9935 = vtanh.f32 %v3855_v59  ;;  %v3426_v5 = vpop.f32.mrf.mxu0  ;;  %v3024_v38 = vadd.f32 %v11278_v45, %v11253_v62 }
 0x307   : > { %v9924_v18 = vpop.eup %9923  ;;  %v3858_v27 = vadd.f32 %v11767_v40, %v3718_v16  ;;  %v3719_v60 = vadd.f32 %v3426_v5, %v3017_v25  ;;  %9218 = vmatprep.mubr.msk.f32.mxu1 %vm4118_vm3, %v9922_v1  ;;  %v3023_v1 = vadd.f32 %v11267_v61, %v14125_v55  ;;  %v3189_v61 = vld [vmem:[#allocation2 + $0x1f4] sm:$0xff] }
 0x308   : > { %v3428_v46 = vpop.f32.mrf.mxu0  ;;  %4396 = vmatmul.mubr.f32.gmra.mxu1 %v9924_v18  ;;  %v14127_v55 = vld [vmem:[#allocation93_spill] sm:$0xff] }
 0x309   : > { %9937 = vtanh.f32 %v3858_v27  ;;  %v3720_v7 = vadd.f32 %v3428_v46, %v3018_v34  ;;  %v3859_v56 = vadd.f32 %v11761_v3, %v3719_v60  ;;  %v3190_v46 = vld [vmem:[#allocation2 + $0x1fc] sm:$0xff] }
 0x30a   : > { %v9926_v48 = vpop.eup %9925  ;;  %9939 = vtanh.f32 %v3857_v31  ;;  %v3432_v36 = vpop.f32.mrf.mxu0  ;;  %9211 = vmatmul.mubr.msk.bf16.gmra.mxu0 %vm509_vm1, %v3220_v37 }
 0x30b   : > { %v9928_v0 = vpop.eup %9927  ;;  %v3860_v30 = vadd.f32 %v11767_v40, %v3720_v7  ;;  %v3721_v59 = vadd.f32 %v3432_v36, %v3019_v50  ;;  %9219 = vmatprep.mubr.msk.f32.mxu1 %vm4118_vm3, %v9926_v48  ;;  %3680 = vmatprep.mubr.bf16.mxu0 %v13842_v2  ;;  %v11870_v37 = vpop.f32.mrf.mxu1  ;;  %v3025_v7 = vadd.f32 %v11286_v28, %v11258_v53  ;;  %v14126_v28 = vld [vmem:[#allocation92_spill] sm:$0xff] }
 0x30c   : > { %v3434_v14 = vpop.f32.mrf.mxu0  ;;  %4401 = vmatmul.mubr.f32.gmra.mxu1 %v9928_v0  ;;  %v3222_v0 = vpack.c.bf16 %v3190_v46, %v3189_v61  ;;  %v3027_v21 = vadd.f32 %v11308_v6, %v14126_v28  ;;  %v14129_v61 = vld [vmem:[#allocation105_spill] sm:$0xff]  ;;  %v14132_v28 = vld [vmem:[#allocation96_spill] sm:$0xff] }
 0x30d   : > { %9941 = vtanh.f32 %v3860_v30  ;;  %v3722_v26 = vadd.f32 %v3434_v14, %v3020_v17  ;;  %v3861_v29 = vadd.f32 %v11761_v3, %v3721_v59  ;;  %v11881_v36 = vpop.f32.mrf.mxu1  ;;  %v3026_v30 = vadd.f32 %v11300_v42, %v11264_v35 }
 0x30e   : > { %v9930_v49 = vpop.eup %9929  ;;  %9943 = vtanh.f32 %v3859_v56  ;;  %v3436_v23 = vpop.f32.mrf.mxu0  ;;  %v3028_v42 = vadd.f32 %v11318_v33, %v11276_v11  ;;  %v3032_v46 = vadd.f32 %v14129_v61, %v11297_v44  ;;  %v9789_v44 = vld [vmem:[%s13790_s4 + $0x8c] ss:$8 sps:$4 sm:$0xff]  }
 0x30f   : > { %v9932_v15 = vpop.eup %9931  ;;  %v3862_v25 = vadd.f32 %v11767_v40, %v3722_v26  ;;  %v3723_v16 = vadd.f32 %v3436_v23, %v3021_v52  ;;  %9220 = vmatprep.mubr.msk.f32.mxu1 %vm4118_vm3, %v9930_v49  ;;  %v11890_v26 = vpop.f32.mrf.mxu1  ;;  %5318 = vmatprep.subr.bf16.mxu0 %v9789_v44 }
 0x310   : > { %v3438_v4 = vpop.f32.mrf.mxu0  ;;  %4406 = vmatmul.mubr.f32.gmra.mxu1 %v9932_v15  ;;  %v3029_v15 = vadd.f32 %v11330_v43, %v11281_v22  ;;  %v14128_v22 = vld [vmem:[#allocation94_spill] sm:$0xff] }
 0x311   : > { %9945 = vtanh.f32 %v3862_v25  ;;  %v3724_v31 = vadd.f32 %v3438_v4, %v3022_v20  ;;  %v3863_v18 = vadd.f32 %v11761_v3, %v3723_v16  ;;  %v11901_v16 = vpop.f32.mrf.mxu1  ;;  %v3031_v43 = vadd.f32 %v11348_v13, %v14128_v22  ;;  %v14130_v13 = vld [vmem:[#allocation95_spill] sm:$0xff]  ;;  %v14139_v22 = vld [vmem:[#allocation110_spill] sm:$0xff] }
 0x312   : > { %v9934_v5 = vpop.eup %9933  ;;  %9947 = vtanh.f32 %v3861_v29  ;;  %v3442_v34 = vpop.f32.mrf.mxu0  ;;  %9212 = vmatmul.mubr.msk.bf16.gmra.mxu0 %vm509_vm1, %v3221_v58 }
 0x313   : > { %v9936_v8 = vpop.eup %9935  ;;  %v3864_v27 = vadd.f32 %v11767_v40, %v3724_v31  ;;  %v3725_v60 = vadd.f32 %v3442_v34, %v3023_v1  ;;  %9221 = vmatprep.mubr.msk.f32.mxu1 %vm4118_vm3, %v9934_v5  ;;  %3690 = vmatprep.mubr.bf16.mxu0 %v13842_v2  ;;  %v3030_v1 = vadd.f32 %v11340_v63, %v14127_v55 }
 0x314   : > { %v3444_v50 = vpop.f32.mrf.mxu0  ;;  %4411 = vmatmul.mubr.f32.gmra.mxu1 %v9936_v8 }
 0x315   : > { %9949 = vtanh.f32 %v3864_v27  ;;  %v3726_v48 = vadd.f32 %v3444_v50, %v3024_v38  ;;  %v3865_v62 = vadd.f32 %v11761_v3, %v3725_v60  ;;  %v11910_v38 = vpop.f32.mrf.mxu1 }
 0x316   : > { %v9938_v56 = vpop.eup %9937  ;;  %9951 = vtanh.f32 %v3863_v18  ;;  %v3446_v45 = vpop.f32.mrf.mxu0 }
 0x317   : > { %v9940_v17 = vpop.eup %9939  ;;  %v3866_v59 = vadd.f32 %v11767_v40, %v3726_v48  ;;  %v3727_v12 = vadd.f32 %v3446_v45, %v3025_v7  ;;  %9222 = vmatprep.mubr.msk.f32.mxu1 %vm4118_vm3, %v9938_v56  ;;  %v14131_v56 = vld [vmem:[#allocation106_spill] sm:$0xff] }
 0x318   : > { %v3448_v53 = vpop.f32.mrf.mxu0  ;;  %4416 = vmatmul.mubr.f32.gmra.mxu1 %v9940_v17 }
 0x319   : > { %9953 = vtanh.f32 %v3866_v59  ;;  %v3728_v14 = vadd.f32 %v3448_v53, %v3026_v30  ;;  %v3867_v49 = vadd.f32 %v11761_v3, %v3727_v12  ;;  %v11925_v30 = vpop.f32.mrf.mxu1 }
 0x31a   : > { %v9942_v52 = vpop.eup %9941  ;;  %9955 = vtanh.f32 %v3865_v62  ;;  %v3452_v29 = vpop.f32.mrf.mxu0  ;;  %9213 = vmatmul.mubr.msk.bf16.gmra.mxu0 %vm509_vm1, %v3222_v0  ;;  %v3033_v62 = vadd.f32 %v14131_v56, %v14130_v13  ;;  %v9787_v0 = vld [vmem:[%s13790_s4 + $0x88] ss:$8 sps:$4 sm:$0xff]  }
 0x31b   : > { %v9944_v35 = vpop.eup %9943  ;;  %v3868_v23 = vadd.f32 %v11767_v40, %v3728_v14  ;;  %v3729_v58 = vadd.f32 %v3452_v29, %v3027_v21  ;;  %9223 = vmatprep.mubr.msk.f32.mxu1 %vm4118_vm3, %v9942_v52  ;;  %5342 = vmatprep.mubr.bf16.mxu0 %v13842_v2  ;;  %v14133_v21 = vld [vmem:[#allocation107_spill] sm:$0xff] }
 0x31c   : > { %v3454_v6 = vpop.f32.mrf.mxu0  ;;  %4421 = vmatmul.mubr.f32.gmra.mxu1 %v9944_v35  ;;  %v3034_v14 = vadd.f32 %v14133_v21, %v14132_v28  ;;  %5319 = vmatpush1.bf16.msra.mxu0 %v9787_v0  ;;  %v14134_v35 = vld [vmem:[#allocation97_spill] sm:$0xff]  ;;  %v14144_v21 = vld [vmem:[#allocation102_spill] sm:$0xff] }
 0x31d   : > { %9957 = vtanh.f32 %v3868_v23  ;;  %v3730_v20 = vadd.f32 %v3454_v6, %v3028_v42  ;;  %v3869_v11 = vadd.f32 %v11761_v3, %v3729_v58  ;;  %v14135_v42 = vld [vmem:[#allocation108_spill] sm:$0xff] }
 0x31e   : > { %v9946_v25 = vpop.eup %9945  ;;  %9959 = vtanh.f32 %v3867_v49  ;;  %v3456_v33 = vpop.f32.mrf.mxu0  ;;  %v3035_v23 = vadd.f32 %v14135_v42, %v14134_v35  ;;  %v14146_v42 = vld [vmem:[#allocation103_spill] sm:$0xff] }
 0x31f   : > { %v9948_v4 = vpop.eup %9947  ;;  %v3870_v31 = vadd.f32 %v11767_v40, %v3730_v20  ;;  %v3731_v5 = vadd.f32 %v3456_v33, %v3029_v15  ;;  %9224 = vmatprep.mubr.msk.f32.mxu1 %vm4118_vm3, %v9946_v25  ;;  %v11934_v15 = vpop.f32.mrf.mxu1  ;;  %v14136_v33 = vld [vmem:[#allocation98_spill] sm:$0xff] }
 0x320   : > { %v3458_v18 = vpop.f32.mrf.mxu0  ;;  %4426 = vmatmul.mubr.f32.gmra.mxu1 %v9948_v4  ;;  %v14137_v4 = vld [vmem:[#allocation109_spill] sm:$0xff] }
 0x321   : > { %9961 = vtanh.f32 %v3870_v31  ;;  %v3732_v34 = vadd.f32 %v3458_v18, %v3030_v1  ;;  %v3871_v27 = vadd.f32 %v11761_v3, %v3731_v5  ;;  %v3036_v55 = vadd.f32 %v14137_v4, %v14136_v33  ;;  %v14138_v18 = vld [vmem:[#allocation99_spill] sm:$0xff] }
 0x322   : > { %v9950_v8 = vpop.eup %9949  ;;  %9963 = vtanh.f32 %v3869_v11  ;;  %v3462_v60 = vpop.f32.mrf.mxu0 }
 0x323   : > { %v9952_v63 = vpop.eup %9951  ;;  %v3872_v50 = vadd.f32 %v11767_v40, %v3732_v34  ;;  %v3733_v7 = vadd.f32 %v3462_v60, %v3031_v43  ;;  %9225 = vmatprep.mubr.msk.f32.mxu1 %vm4118_vm3, %v9950_v8  ;;  %v3037_v43 = vadd.f32 %v14139_v22, %v14138_v18 }
 0x324   : > { %v3464_v48 = vpop.f32.mrf.mxu0  ;;  %4431 = vmatmul.mubr.f32.gmra.mxu1 %v9952_v63 }
 0x325   : > { %9965 = vtanh.f32 %v3872_v50  ;;  %v3734_v45 = vadd.f32 %v3464_v48, %v3032_v46  ;;  %v3873_v59 = vadd.f32 %v11761_v3, %v3733_v7  ;;  %v14140_v46 = vld [vmem:[#allocation100_spill] sm:$0xff]  ;;  %v14141_v50 = vld [vmem:[#allocation111_spill] sm:$0xff] }
 0x326   : > { %v9954_v17 = vpop.eup %9953  ;;  %9967 = vtanh.f32 %v3871_v27  ;;  %v3466_v12 = vpop.f32.mrf.mxu0  ;;  %v3038_v7 = vadd.f32 %v14141_v50, %v14140_v46 }
 0x327   : > { %v9956_v53 = vpop.eup %9955  ;;  %v3874_v52 = vadd.f32 %v11767_v40, %v3734_v45  ;;  %v3735_v49 = vadd.f32 %v3466_v12, %v3033_v62  ;;  %9226 = vmatprep.mubr.msk.f32.mxu1 %vm4118_vm3, %v9954_v17  ;;  %v11943_v27 = vpop.f32.mrf.mxu1  ;;  %v14142_v62 = vld [vmem:[#allocation101_spill] sm:$0xff]  ;;  %v14143_v45 = vld [vmem:[#allocation112_spill] sm:$0xff] }
 0x328   : > { %v3468_v29 = vpop.f32.mrf.mxu0  ;;  %4436 = vmatmul.mubr.f32.gmra.mxu1 %v9956_v53  ;;  %v3039_v0 = vadd.f32 %v14143_v45, %v14142_v62 }
 0x329   : > { %9969 = vtanh.f32 %v3874_v52  ;;  %v3736_v58 = vadd.f32 %v3468_v29, %v3034_v14  ;;  %v3875_v20 = vadd.f32 %v11761_v3, %v3735_v49  ;;  %v14145_v14 = vld [vmem:[#allocation113_spill] sm:$0xff] }
 0x32a   : > { %v9958_v6 = vpop.eup %9957  ;;  %9971 = vtanh.f32 %v3873_v59  ;;  %v3472_v25 = vpop.f32.mrf.mxu0  ;;  %v3040_v52 = vadd.f32 %v14145_v14, %v14144_v21 }
 0x32b   : > { %v9960_v11 = vpop.eup %9959  ;;  %v3876_v1 = vadd.f32 %v11767_v40, %v3736_v58  ;;  %v3737_v31 = vadd.f32 %v3472_v25, %v3035_v23  ;;  %9227 = vmatprep.mubr.msk.f32.mxu1 %vm4118_vm3, %v9958_v6  ;;  %v11952_v59 = vpop.f32.mrf.mxu1  ;;  %v14147_v23 = vld [vmem:[#allocation114_spill] sm:$0xff] }
 0x32c   : > { %v3474_v5 = vpop.f32.mrf.mxu0  ;;  %4441 = vmatmul.mubr.f32.gmra.mxu1 %v9960_v11  ;;  %v3041_v58 = vadd.f32 %v14147_v23, %v14146_v42  ;;  %v14158_v42 = vld [vmem:[#allocation119_spill] sm:$0xff] }
 0x32d   : > { %9973 = vtanh.f32 %v3876_v1  ;;  %v3738_v34 = vadd.f32 %v3474_v5, %v3036_v55  ;;  %v3877_v60 = vadd.f32 %v11761_v3, %v3737_v31  ;;  %v11961_v25 = vpop.f32.mrf.mxu1  ;;  %v14148_v55 = vld [vmem:[#allocation104_spill] sm:$0xff]  ;;  %v14149_v1 = vld [vmem:[#allocation115_spill] sm:$0xff] }
 0x32e   : > { %v9962_v8 = vpop.eup %9961  ;;  %9975 = vtanh.f32 %v3875_v20  ;;  %v3476_v63 = vpop.f32.mrf.mxu0  ;;  %v3042_v31 = vadd.f32 %v14149_v1, %v14148_v55 }
 0x32f   : > { %v9964_v61 = vpop.eup %9963  ;;  %v3878_v48 = vadd.f32 %v11767_v40, %v3738_v34  ;;  %v3739_v13 = vadd.f32 %v3476_v63, %v3037_v43  ;;  %9228 = vmatprep.mubr.msk.f32.mxu1 %vm4118_vm3, %v9962_v8  ;;  %v14150_v43 = vld [vmem:[#allocation5_spill] sm:$0xff]  ;;  %v14151_v34 = vld [vmem:[#allocation116_spill] sm:$0xff] }
 0x330   : > { %v3478_v56 = vpop.f32.mrf.mxu0  ;;  %4446 = vmatmul.mubr.f32.gmra.mxu1 %v9964_v61  ;;  %v3043_v8 = vadd.f32 %v14151_v34, %v14150_v43  ;;  %v11970_v61 = vpop.f32.mrf.mxu1  ;;  %v14161_v43 = vld [vmem:[#allocation10_spill] sm:$0xff]  ;;  %v14162_v34 = vld [vmem:[#allocation121_spill] sm:$0xff] }
 0x331   : > { %9977 = vtanh.f32 %v3878_v48  ;;  %v3740_v44 = vadd.f32 %v3478_v56, %v3038_v7  ;;  %v3879_v12 = vadd.f32 %v11761_v3, %v3739_v13  ;;  %v14152_v7 = vmov 0.0   ;;  %v14153_v13 = vld [vmem:[#allocation6_spill] sm:$0xff]  ;;  %v14154_v56 = vld [vmem:[#allocation117_spill] sm:$0xff] }
 0x332   : > { %v9966_v17 = vpop.eup %9965  ;;  %9979 = vtanh.f32 %v3877_v60  ;;  %v3482_v53 = vpop.f32.mrf.mxu0  ;;  %4761 = vst.msk [vmem:[#allocation3 + $0x200] sm:$0xff] %vm4696_vm4, %v14152_v7  ;;  %v3044_v62 = vadd.f32 %v14154_v56, %v14153_v13 }
 0x333   : > { %v9968_v28 = vpop.eup %9967  ;;  %v3880_v49 = vadd.f32 %v11767_v40, %v3740_v44  ;;  %v3741_v29 = vadd.f32 %v3482_v53, %v3039_v0  ;;  %9229 = vmatprep.mubr.msk.f32.mxu1 %vm4118_vm3, %v9966_v17  ;;  %v14155_v17 = vld [vmem:[#allocation7_spill] sm:$0xff]  ;;  %v11981_v14 = vpop.f32.mrf.mxu1 }
 0x334   : > { %v3484_v35 = vpop.f32.mrf.mxu0  ;;  %4451 = vmatmul.mubr.f32.gmra.mxu1 %v9968_v28 }
 0x335   : > { %9981 = vtanh.f32 %v3880_v49  ;;  %v3742_v6 = vadd.f32 %v3484_v35, %v3040_v52  ;;  %v3881_v11 = vadd.f32 %v11761_v3, %v3741_v29  ;;  %v14157_v35 = vld [vmem:[#allocation8_spill] sm:$0xff] }
 0x336   : > { %v9970_v20 = vpop.eup %9969  ;;  %9983 = vtanh.f32 %v3879_v12  ;;  %v3486_v33 = vpop.f32.mrf.mxu0  ;;  %v14156_v12 = vld [vmem:[#allocation118_spill] sm:$0xff]  ;;  %v3046_v23 = vadd.f32 %v14158_v42, %v14157_v35  ;;  %v14168_v35 = vld [vmem:[#allocation124_spill] sm:$0xff] }
 0x337   : > { %v9972_v4 = vpop.eup %9971  ;;  %v3882_v5 = vadd.f32 %v11767_v40, %v3742_v6  ;;  %v3743_v18 = vadd.f32 %v3486_v33, %v3041_v58  ;;  %9230 = vmatprep.mubr.msk.f32.mxu1 %vm4118_vm3, %v9970_v20  ;;  %v3045_v53 = vadd.f32 %v14156_v12, %v14155_v17  ;;  %v14160_v33 = vld [vmem:[#allocation120_spill] sm:$0xff] }
 0x338   : > { %v3488_v22 = vpop.f32.mrf.mxu0  ;;  %4456 = vmatmul.mubr.f32.gmra.mxu1 %v9972_v4  ;;  %v14165_v12 = vld [vmem:[#allocation12_spill] sm:$0xff] }
 0x339   : > { %9985 = vtanh.f32 %v3882_v5  ;;  %v3744_v60 = vadd.f32 %v3488_v22, %v3042_v31  ;;  %v3883_v46 = vadd.f32 %v11761_v3, %v3743_v18  ;;  %v11990_v31 = vpop.f32.mrf.mxu1 }
 0x33a   : > { %v9974_v63 = vpop.eup %9973  ;;  %9987 = vtanh.f32 %v3881_v11  ;;  %v3492_v50 = vpop.f32.mrf.mxu0  ;;  %v14159_v11 = vld [vmem:[#allocation9_spill] sm:$0xff] }
 0x33b   : > { %v9976_v48 = vpop.eup %9975  ;;  %v3884_v45 = vadd.f32 %v11767_v40, %v3744_v60  ;;  %v3745_v0 = vadd.f32 %v3492_v50, %v3043_v8  ;;  %9231 = vmatprep.mubr.msk.f32.mxu1 %vm4118_vm3, %v9974_v63  ;;  %v3047_v4 = vadd.f32 %v14160_v33, %v14159_v11  ;;  %v3048_v8 = vadd.f32 %v14162_v34, %v14161_v43  ;;  %v14163_v50 = vld [vmem:[#allocation11_spill] sm:$0xff] }
 0x33c   : > { %v3494_v44 = vpop.f32.mrf.mxu0  ;;  %4461 = vmatmul.mubr.f32.gmra.mxu1 %v9976_v48  ;;  %v14164_v48 = vld [vmem:[#allocation122_spill] sm:$0xff] }
 0x33d   : > { %9989 = vtanh.f32 %v3884_v45  ;;  %v3746_v28 = vadd.f32 %v3494_v44, %v3044_v62  ;;  %v3885_v52 = vadd.f32 %v11761_v3, %v3745_v0  ;;  %v3049_v13 = vadd.f32 %v14164_v48, %v14163_v50  ;;  %v11999_v45 = vpop.f32.mrf.mxu1  ;;  %v9794_v33 = vld [vmem:[%s13790_s4 + $0x7c] ss:$8 sps:$4 sm:$0xff]   ;;  %v9792_v43 = vld [vmem:[%s13790_s4 + $0x78] ss:$8 sps:$4 sm:$0xff]   ;;  %v4979_v50 = vld [vmem:[%s13790_s4 + $0x50] sm:$0x33] }
 0x33e   : > { %v9978_v21 = vpop.eup %9977  ;;  %9991 = vtanh.f32 %v3883_v46  ;;  %v3496_v49 = vpop.f32.mrf.mxu0  ;;  %5320 = vmatprep.subr.bf16.mxu0 %v9794_v33 }
 0x33f   : > { %v9980_v29 = vpop.eup %9979  ;;  %v3886_v58 = vadd.f32 %v11767_v40, %v3746_v28  ;;  %v3747_v6 = vadd.f32 %v3496_v49, %v3045_v53  ;;  %9232 = vmatprep.mubr.msk.f32.mxu1 %vm4118_vm3, %v9978_v21  ;;  %v14166_v53 = vld [vmem:[#allocation123_spill] sm:$0xff]  ;;  %5321 = vmatpush1.bf16.msra.mxu0 %v9792_v43  ;;  %v14178_v43 = vld [vmem:[#allocation129_spill] sm:$0xff] }
 0x340   : > { %v3498_v20 = vpop.f32.mrf.mxu0  ;;  %4466 = vmatmul.mubr.f32.gmra.mxu1 %v9980_v29  ;;  %v3050_v28 = vadd.f32 %v14166_v53, %v14165_v12  ;;  %v14167_v29 = vld [vmem:[#allocation13_spill] sm:$0xff]  ;;  %v14173_v53 = vld [vmem:[#allocation16_spill] sm:$0xff] }
 0x341   : > { %9993 = vtanh.f32 %v3886_v58  ;;  %v3748_v55 = vadd.f32 %v3498_v20, %v3046_v23  ;;  %v3887_v5 = vadd.f32 %v11761_v3, %v3747_v6  ;;  %v3051_v42 = vadd.f32 %v14168_v35, %v14167_v29  ;;  %v12008_v6 = vpop.f32.mrf.mxu1  ;;  %v9795_v29 = vld [vmem:[%s13790_s4 + $0x68] ss:$8 sps:$4 sm:$0xff]  }
 0x342   : > { %v9982_v1 = vpop.eup %9981  ;;  %9995 = vtanh.f32 %v3885_v52  ;;  %v3502_v18 = vpop.f32.mrf.mxu0 }
 0x343   : > { %v9984_v22 = vpop.eup %9983  ;;  %v3888_v60 = vadd.f32 %v11767_v40, %v3748_v55  ;;  %v3749_v63 = vadd.f32 %v3502_v18, %v3047_v4  ;;  %9233 = vmatprep.mubr.msk.f32.mxu1 %vm4118_vm3, %v9982_v1  ;;  %v14169_v55 = vld [vmem:[#allocation14_spill] sm:$0xff]  ;;  %v14170_v1 = vld [vmem:[#allocation125_spill] sm:$0xff] }
 0x344   : > { %v3504_v46 = vpop.f32.mrf.mxu0  ;;  %4471 = vmatmul.mubr.f32.gmra.mxu1 %v9984_v22 }
 0x345   : > { %9997 = vtanh.f32 %v3888_v60  ;;  %v3750_v56 = vadd.f32 %v3504_v46, %v3048_v8  ;;  %v3889_v0 = vadd.f32 %v11761_v3, %v3749_v63  ;;  %v14171_v8 = vld [vmem:[#allocation15_spill] sm:$0xff]  ;;  %v14172_v60 = vld [vmem:[#allocation126_spill] sm:$0xff] }
 0x346   : > { %v9986_v62 = vpop.eup %9985  ;;  %9999 = vtanh.f32 %v3887_v5  ;;  %v3506_v44 = vpop.f32.mrf.mxu0  ;;  %v3052_v5 = vadd.f32 %v14170_v1, %v14169_v55  ;;  %v3053_v63 = vadd.f32 %v14172_v60, %v14171_v8 }
 0x347   : > { %v9988_v17 = vpop.eup %9987  ;;  %v3890_v21 = vadd.f32 %v11767_v40, %v3750_v56  ;;  %v3751_v52 = vadd.f32 %v3506_v44, %v3049_v13  ;;  %9234 = vmatprep.mubr.msk.f32.mxu1 %vm4118_vm3, %v9986_v62  ;;  %v12026_v13 = vpop.f32.mrf.mxu1  ;;  %v9328_v44 = vcombine.low %v4979_v50, %v4979_v50 }
 0x348   : > { %v3508_v49 = vpop.f32.mrf.mxu0  ;;  %4476 = vmatmul.mubr.f32.gmra.mxu1 %v9988_v17  ;;  %v9797_v17 = vld [vmem:[%s13790_s4 + $0x6c] ss:$8 sps:$4 sm:$0xff]  }
 0x349   : > { %10001 = vtanh.f32 %v3890_v21  ;;  %v3752_v23 = vadd.f32 %v3508_v49, %v3050_v28  ;;  %v3891_v20 = vadd.f32 %v11761_v3, %v3751_v52  ;;  %v14174_v28 = vld [vmem:[#allocation127_spill] sm:$0xff]  ;;  %5322 = vmatprep.subr.bf16.mxu0 %v9797_v17 }
 0x34a   : > { %v9990_v58 = vpop.eup %9989  ;;  %10003 = vtanh.f32 %v3889_v0  ;;  %v3512_v11 = vpop.f32.mrf.mxu0  ;;  %v9329_v0 = vcombine.high %v4979_v50, %v4979_v50  ;;  %v3054_v21 = vadd.f32 %v14174_v28, %v14173_v53  ;;  %5323 = vmatpush1.bf16.msra.mxu0 %v9795_v29  ;;  %v14179_v50 = vld [vmem:[#allocation19_spill] sm:$0xff]  ;;  %v14181_v28 = vld [vmem:[#allocation20_spill] sm:$0xff] }
 0x34b   : > { %v9992_v4 = vpop.eup %9991  ;;  %v3892_v18 = vadd.f32 %v11767_v40, %v3752_v23  ;;  %v3753_v22 = vadd.f32 %v3512_v11, %v3051_v42  ;;  %9235 = vmatprep.mubr.msk.f32.mxu1 %vm4118_vm3, %v9990_v58  ;;  %v5607_v42 = vsel %vm5303_vm2, %v9328_v44, 0  ;;  %v14175_v23 = vld [vmem:[#allocation17_spill] sm:$0xff]  ;;  %v14176_v58 = vld [vmem:[#allocation128_spill] sm:$0xff] }
 0x34c   : > { %v3514_v34 = vpop.f32.mrf.mxu0  ;;  %4481 = vmatmul.mubr.f32.gmra.mxu1 %v9992_v4  ;;  %9330 = vmatprep.subr.msk.bf16.mxu1 %vm5303_vm2, %v9329_v0  ;;  %v12043_v4 = vpop.f32.mrf.mxu1 }
 0x34d   : > { %10005 = vtanh.f32 %v3892_v18  ;;  %v3754_v46 = vadd.f32 %v3514_v34, %v3052_v5  ;;  %v3893_v56 = vadd.f32 %v11761_v3, %v3753_v22  ;;  %5617 = vmatpush1.bf16.msra.mxu1 %v5607_v42  ;;  %v9800_v5 = vld [vmem:[%s13790_s4 + $0x5c] ss:$8 sps:$4 sm:$0xff]   ;;  %v14183_v42 = vld [vmem:[#allocation21_spill] sm:$0xff] }
 0x34e   : > { %v9994_v48 = vpop.eup %9993  ;;  %10007 = vtanh.f32 %v3891_v20  ;;  %v3516_v62 = vpop.f32.mrf.mxu0  ;;  %v3055_v20 = vadd.f32 %v14176_v58, %v14175_v23  ;;  %v14177_v22 = vld [vmem:[#allocation18_spill] sm:$0xff]  ;;  %5324 = vmatprep.subr.bf16.mxu0 %v9800_v5  ;;  %v14184_v23 = vld [vmem:[#allocation132_spill] sm:$0xff] }
 0x34f   : > { %v9996_v12 = vpop.eup %9995  ;;  %v3894_v52 = vadd.f32 %v11767_v40, %v3754_v46  ;;  %v3755_v49 = vadd.f32 %v3516_v62, %v3053_v63  ;;  %9236 = vmatprep.mubr.msk.f32.mxu1 %vm4118_vm3, %v9994_v48  ;;  %v3056_v34 = vadd.f32 %v14178_v43, %v14177_v22  ;;  %v9798_v63 = vld [vmem:[%s13790_s4 + $0x58] ss:$8 sps:$4 sm:$0xff]   ;;  %v12058_v44 = vpop.f32.mrf.mxu1  ;;  %v3059_v58 = vadd.f32 %v14184_v23, %v14183_v42  ;;  %v14186_v22 = vld [vmem:[#allocation133_spill] sm:$0xff]  ;;  %v14192_v42 = vld [vmem:[#allocation136_spill] sm:$0xff] }
 0x350   : > { %v3518_v35 = vpop.f32.mrf.mxu0  ;;  %4486 = vmatmul.mubr.f32.gmra.mxu1 %v9996_v12  ;;  %v14180_v48 = vld [vmem:[#allocation130_spill] sm:$0xff]  ;;  %5325 = vmatpush1.bf16.msra.mxu0 %v9798_v63  ;;  %v14187_v63 = vld [vmem:[#allocation23_spill] sm:$0xff] }
 0x351   : > { %10009 = vtanh.f32 %v3894_v52  ;;  %v3756_v11 = vadd.f32 %v3518_v35, %v3054_v21  ;;  %v3895_v55 = vadd.f32 %v11761_v3, %v3755_v49  ;;  %v14182_v21 = vld [vmem:[#allocation131_spill] sm:$0xff] }
 0x352   : > { %v9998_v33 = vpop.eup %9997  ;;  %10011 = vtanh.f32 %v3893_v56  ;;  %v3522_v1 = vpop.f32.mrf.mxu0  ;;  %v3057_v56 = vadd.f32 %v14180_v48, %v14179_v50  ;;  %v3058_v52 = vadd.f32 %v14182_v21, %v14181_v28  ;;  %v14190_v28 = vld [vmem:[#allocation135_spill] sm:$0xff] }
 0x353   : > { %v10000_v18 = vpop.eup %9999  ;;  %v3896_v8 = vadd.f32 %v11767_v40, %v3756_v11  ;;  %v3757_v60 = vadd.f32 %v3522_v1, %v3055_v20  ;;  %9237 = vmatprep.mubr.msk.f32.mxu1 %vm4118_vm3, %v9998_v33  ;;  %v12067_v33 = vpop.f32.mrf.mxu1 }
 0x354   : > { %v3524_v46 = vpop.f32.mrf.mxu0  ;;  %4491 = vmatmul.mubr.f32.gmra.mxu1 %v10000_v18  ;;  %v14185_v18 = vld [vmem:[#allocation22_spill] sm:$0xff] }
 0x355   : > { %10013 = vtanh.f32 %v3896_v8  ;;  %v3758_v62 = vadd.f32 %v3524_v46, %v3056_v34  ;;  %v3897_v17 = vadd.f32 %v11761_v3, %v3757_v60  ;;  %v3060_v43 = vadd.f32 %v14186_v22, %v14185_v18  ;;  %v14188_v46 = vld [vmem:[#allocation134_spill] sm:$0xff]  ;;  %v14194_v22 = vld [vmem:[#allocation137_spill] sm:$0xff] }
 0x356   : > { %v10002_v0 = vpop.eup %10001  ;;  %10015 = vtanh.f32 %v3895_v55  ;;  %v3526_v12 = vpop.f32.mrf.mxu0  ;;  %v3061_v50 = vadd.f32 %v14188_v46, %v14187_v63  ;;  %v14193_v18 = vld [vmem:[#allocation26_spill] sm:$0xff]  ;;  %v9801_v46 = vld [vmem:[%s13790_s4 + $0x40] ss:$8 sps:$4 sm:$0xff]  }
 0x357   : > { %v10004_v53 = vpop.eup %10003  ;;  %v3898_v49 = vadd.f32 %v11767_v40, %v3758_v62  ;;  %v3759_v29 = vadd.f32 %v3526_v12, %v3057_v56  ;;  %9238 = vmatprep.mubr.msk.f32.mxu1 %vm4118_vm3, %v10002_v0  ;;  %v12076_v62 = vpop.f32.mrf.mxu1 }
 0x358   : > { %v3528_v35 = vpop.f32.mrf.mxu0  ;;  %4496 = vmatmul.mubr.f32.gmra.mxu1 %v10004_v53  ;;  %v14189_v53 = vld [vmem:[#allocation24_spill] sm:$0xff] }
 0x359   : > { %10017 = vtanh.f32 %v3898_v49  ;;  %v3760_v20 = vadd.f32 %v3528_v35, %v3058_v52  ;;  %v3899_v55 = vadd.f32 %v11761_v3, %v3759_v29  ;;  %v3062_v21 = vadd.f32 %v14190_v28, %v14189_v53  ;;  %v14191_v35 = vld [vmem:[#allocation25_spill] sm:$0xff] }
 0x35a   : > { %v10006_v11 = vpop.eup %10005  ;;  %10019 = vtanh.f32 %v3897_v17  ;;  %v3532_v1 = vpop.f32.mrf.mxu0  ;;  %v3063_v23 = vadd.f32 %v14192_v42, %v14191_v35 }
 0x35b   : > { %v10008_v5 = vpop.eup %10007  ;;  %v3900_v34 = vadd.f32 %v11767_v40, %v3760_v20  ;;  %v3761_v8 = vadd.f32 %v3532_v1, %v3059_v58  ;;  %9239 = vmatprep.mubr.msk.f32.mxu1 %vm4118_vm3, %v10006_v11  ;;  %v12085_v11 = vpop.f32.mrf.mxu1 }
 0x35c   : > { %v3534_v60 = vpop.f32.mrf.mxu0  ;;  %4501 = vmatmul.mubr.f32.gmra.mxu1 %v10008_v5 }
 0x35d   : > { %10021 = vtanh.f32 %v3900_v34  ;;  %v3762_v48 = vadd.f32 %v3534_v60, %v3060_v43  ;;  %v3901_v0 = vadd.f32 %v11761_v3, %v3761_v8  ;;  %v3064_v43 = vadd.f32 %v14194_v22, %v14193_v18  ;;  %v9803_v60 = vld [vmem:[%s13790_s4 + $0x44] ss:$8 sps:$4 sm:$0xff]  }
 0x35e   : > { %v10010_v56 = vpop.eup %10009  ;;  %10023 = vtanh.f32 %v3899_v55  ;;  %v3536_v17 = vpop.f32.mrf.mxu0  ;;  %5618 = vmatprep.subr.bf16.mxu1 %v9803_v60 }
 0x35f   : > { %v10012_v12 = vpop.eup %10011  ;;  %v3902_v52 = vadd.f32 %v11767_v40, %v3762_v48  ;;  %v3763_v49 = vadd.f32 %v3536_v17, %v3061_v50  ;;  %9240 = vmatprep.mubr.msk.f32.mxu1 %vm4118_vm3, %v10010_v56  ;;  %v14195_v50 = vld [vmem:[#allocation27_spill] sm:$0xff]  ;;  %v14196_v48 = vld [vmem:[#allocation138_spill] sm:$0xff]  ;;  %5619 = vmatpush1.bf16.msra.mxu1 %v9801_v46  ;;  %v14202_v46 = vld [vmem:[#allocation141_spill] sm:$0xff] }
 0x360   : > { %v3538_v29 = vpop.f32.mrf.mxu0  ;;  %4506 = vmatmul.mubr.f32.gmra.mxu1 %v10012_v12  ;;  %v3065_v56 = vadd.f32 %v14196_v48, %v14195_v50  ;;  %v12100_v12 = vpop.f32.mrf.mxu1 }
 0x361   : > { %10025 = vtanh.f32 %v3902_v52  ;;  %v3764_v58 = vadd.f32 %v3538_v29, %v3062_v21  ;;  %v3903_v55 = vadd.f32 %v11761_v3, %v3763_v49  ;;  %v14197_v52 = vld [vmem:[#allocation28_spill] sm:$0xff]  ;;  %v14198_v49 = vld [vmem:[#allocation139_spill] sm:$0xff] }
 0x362   : > { %v10014_v20 = vpop.eup %10013  ;;  %10027 = vtanh.f32 %v3901_v0  ;;  %v3542_v1 = vpop.f32.mrf.mxu0  ;;  %v3066_v29 = vadd.f32 %v14198_v49, %v14197_v52 }
 0x363   : > { %v10016_v5 = vpop.eup %10015  ;;  %v3904_v34 = vadd.f32 %v11767_v40, %v3764_v58  ;;  %v3765_v8 = vadd.f32 %v3542_v1, %v3063_v23  ;;  %9241 = vmatprep.mubr.msk.f32.mxu1 %vm4118_vm3, %v10014_v20  ;;  %v9806_v23 = vld [vmem:[%s13790_s4 + $0x34] ss:$8 sps:$4 sm:$0xff]   ;;  %v9804_v20 = vld [vmem:[%s13790_s4 + $0x30] ss:$8 sps:$4 sm:$0xff]   ;;  %v14200_v1 = vld [vmem:[#allocation140_spill] sm:$0xff] }
 0x364   : > { %v3544_v63 = vpop.f32.mrf.mxu0  ;;  %4511 = vmatmul.mubr.f32.gmra.mxu1 %v10016_v5  ;;  %5620 = vmatprep.subr.bf16.mxu1 %v9806_v23 }
 0x365   : > { %10029 = vtanh.f32 %v3904_v34  ;;  %v3766_v0 = vadd.f32 %v3544_v63, %v3064_v43  ;;  %v3905_v53 = vadd.f32 %v11761_v3, %v3765_v8  ;;  %v12115_v43 = vpop.f32.mrf.mxu1  ;;  %5621 = vmatpush1.bf16.msra.mxu1 %v9804_v20  ;;  %v14201_v63 = vld [vmem:[#allocation30_spill] sm:$0xff]  ;;  %v14205_v20 = vld [vmem:[#allocation32_spill] sm:$0xff] }
 0x366   : > { %v10018_v17 = vpop.eup %10017  ;;  %10031 = vtanh.f32 %v3903_v55  ;;  %v3546_v28 = vpop.f32.mrf.mxu0  ;;  %v14199_v55 = vld [vmem:[#allocation29_spill] sm:$0xff]  ;;  %v3068_v50 = vadd.f32 %v14202_v46, %v14201_v63  ;;  %v14208_v63 = vld [vmem:[#allocation144_spill] sm:$0xff] }
 0x367   : > { %v10020_v21 = vpop.eup %10019  ;;  %v3906_v35 = vadd.f32 %v11767_v40, %v3766_v0  ;;  %v3767_v42 = vadd.f32 %v3546_v28, %v3065_v56  ;;  %9242 = vmatprep.mubr.msk.f32.mxu1 %vm4118_vm3, %v10018_v17  ;;  %v3067_v5 = vadd.f32 %v14200_v1, %v14199_v55  ;;  %v9809_v0 = vld [vmem:[%s13790_s4 + $0x24] ss:$8 sps:$4 sm:$0xff]  }
 0x368   : > { %v3548_v58 = vpop.f32.mrf.mxu0  ;;  %4516 = vmatmul.mubr.f32.gmra.mxu1 %v10020_v21  ;;  %v14203_v28 = vld [vmem:[#allocation31_spill] sm:$0xff]  ;;  %v14204_v21 = vld [vmem:[#allocation142_spill] sm:$0xff]  ;;  %5622 = vmatprep.subr.bf16.mxu1 %v9809_v0 }
 0x369   : > { %10033 = vtanh.f32 %v3906_v35  ;;  %v3768_v18 = vadd.f32 %v3548_v58, %v3066_v29  ;;  %v3907_v34 = vadd.f32 %v11761_v3, %v3767_v42  ;;  %v3069_v52 = vadd.f32 %v14204_v21, %v14203_v28  ;;  %v12130_v35 = vpop.f32.mrf.mxu1  ;;  %v14206_v55 = vld [vmem:[#allocation143_spill] sm:$0xff]  ;;  %v14209_v28 = vld [vmem:[#allocation34_spill] sm:$0xff] }
 0x36a   : > { %v10022_v22 = vpop.eup %10021  ;;  %10035 = vtanh.f32 %v3905_v53  ;;  %v3552_v8 = vpop.f32.mrf.mxu0  ;;  %v9807_v53 = vld [vmem:[%s13790_s4 + $0x20] ss:$8 sps:$4 sm:$0xff]   ;;  %v3070_v1 = vadd.f32 %v14206_v55, %v14205_v20  ;;  %v14210_v21 = vld [vmem:[#allocation146_spill] sm:$0xff] }
 0x36b   : > { %v10024_v60 = vpop.eup %10023  ;;  %v3908_v48 = vadd.f32 %v11767_v40, %v3768_v18  ;;  %v3769_v56 = vadd.f32 %v3552_v8, %v3067_v5  ;;  %9243 = vmatprep.mubr.msk.f32.mxu1 %vm4118_vm3, %v10022_v22  ;;  %5623 = vmatpush1.bf16.msra.mxu1 %v9807_v53  ;;  %v9812_v22 = vld [vmem:[%s13790_s4 + $0x14] ss:$8 sps:$4 sm:$0xff]   ;;  %v14211_v20 = vld [vmem:[#allocation35_spill] sm:$0xff] }
 0x36c   : > { %v3554_v17 = vpop.f32.mrf.mxu0  ;;  %4521 = vmatmul.mubr.f32.gmra.mxu1 %v10024_v60  ;;  %v14207_v60 = vld [vmem:[#allocation33_spill] sm:$0xff]  ;;  %5624 = vmatprep.subr.bf16.mxu1 %v9812_v22  ;;  %v14212_v55 = vld [vmem:[#allocation147_spill] sm:$0xff] }
 0x36d   : > { %10037 = vtanh.f32 %v3908_v48  ;;  %v3770_v49 = vadd.f32 %v3554_v17, %v3068_v50  ;;  %v3909_v42 = vadd.f32 %v11761_v3, %v3769_v56  ;;  %v3071_v46 = vadd.f32 %v14208_v63, %v14207_v60  ;;  %v12145_v56 = vpop.f32.mrf.mxu1  ;;  %v14213_v63 = vld [vmem:[#allocation36_spill] sm:$0xff] }
 0x36e   : > { %v10026_v29 = vpop.eup %10025  ;;  %10039 = vtanh.f32 %v3907_v34  ;;  %v3556_v23 = vpop.f32.mrf.mxu0  ;;  %v9810_v34 = vld [vmem:[%s13790_s4 + $0x10] ss:$8 sps:$4 sm:$0xff]  }
 0x36f   : > { %v10028_v58 = vpop.eup %10027  ;;  %v3910_v5 = vadd.f32 %v11767_v40, %v3770_v49  ;;  %v3771_v18 = vadd.f32 %v3556_v23, %v3069_v52  ;;  %9244 = vmatprep.mubr.msk.f32.mxu1 %vm4118_vm3, %v10026_v29  ;;  %5625 = vmatpush1.bf16.msra.mxu1 %v9810_v34  ;;  %v3072_v52 = vadd.f32 %v14210_v21, %v14209_v28  ;;  %v9815_v23 = vld [vmem:[%s13790_s4 + $0x4] ss:$8 sps:$4 sm:$0xff]   ;;  %v12160_v22 = vpop.f32.mrf.mxu1 }
 0x370   : > { %v3558_v8 = vpop.f32.mrf.mxu0  ;;  %4526 = vmatmul.mubr.f32.gmra.mxu1 %v10028_v58  ;;  %5626 = vmatprep.subr.bf16.mxu1 %v9815_v23  ;;  %v14215_v23 = vld [vmem:[#allocation38_spill] sm:$0xff] }
 0x371   : > { %10041 = vtanh.f32 %v3910_v5  ;;  %v3772_v50 = vadd.f32 %v3558_v8, %v3070_v1  ;;  %v3911_v0 = vadd.f32 %v11761_v3, %v3771_v18  ;;  %v3073_v1 = vadd.f32 %v14212_v55, %v14211_v20 }
 0x372   : > { %v10030_v48 = vpop.eup %10029  ;;  %10043 = vtanh.f32 %v3909_v42  ;;  %v3562_v17 = vpop.f32.mrf.mxu0  ;;  %v9813_v42 = vld [vmem:[%s13790_s4] ss:$8 sps:$4 sm:$0xff]  }
 0x373   : > { %v10032_v53 = vpop.eup %10031  ;;  %v3912_v49 = vadd.f32 %v11767_v40, %v3772_v50  ;;  %v3773_v29 = vadd.f32 %v3562_v17, %v3071_v46  ;;  %9245 = vmatprep.mubr.msk.f32.mxu1 %vm4118_vm3, %v10030_v48  ;;  %5627 = vmatpush1.bf16.msra.mxu1 %v9813_v42  ;;  %v3074_v46 = vadd.f32 %v11771_v54, %v14213_v63  ;;  %v14217_v63 = vld [vmem:[#allocation40_spill] sm:$0xff] }
 0x374   : > { %v3564_v58 = vpop.f32.mrf.mxu0  ;;  %4531 = vmatmul.mubr.f32.gmra.mxu1 %v10032_v53  ;;  %v14214_v53 = vld [vmem:[#allocation37_spill] sm:$0xff] }
 0x375   : > { %10045 = vtanh.f32 %v3912_v49  ;;  %v3774_v5 = vadd.f32 %v3564_v58, %v3072_v52  ;;  %v3913_v8 = vadd.f32 %v11761_v3, %v3773_v29  ;;  %v3075_v28 = vadd.f32 %v11777_v41, %v14214_v53  ;;  %v12169_v52 = vpop.f32.mrf.mxu1  ;;  %v14216_v41 = vld [vmem:[#allocation39_spill] sm:$0xff] }
 0x376   : > { %v10034_v18 = vpop.eup %10033  ;;  %10047 = vtanh.f32 %v3911_v0  ;;  %v3566_v34 = vpop.f32.mrf.mxu0  ;;  %v3076_v58 = vadd.f32 %v11785_v47, %v14215_v23 }
 0x377   : > { %v10036_v60 = vpop.eup %10035  ;;  %v3914_v50 = vadd.f32 %v11767_v40, %v3774_v5  ;;  %v3775_v48 = vadd.f32 %v3566_v34, %v3073_v1  ;;  %9246 = vmatprep.mubr.msk.f32.mxu1 %vm4118_vm3, %v10034_v18  ;;  %v3077_v1 = vadd.f32 %v11791_v19, %v14216_v41  ;;  %v14218_v19 = vld [vmem:[#allocation41_spill] sm:$0xff] }
 0x378   : > { %v3568_v17 = vpop.f32.mrf.mxu0  ;;  %4536 = vmatmul.mubr.f32.gmra.mxu1 %v10036_v60  ;;  %v3079_v53 = vadd.f32 %v11812_v9, %v14218_v19  ;;  %v14220_v9 = vld [vmem:[#allocation43_spill] sm:$0xff] }
 0x379   : > { %10049 = vtanh.f32 %v3914_v50  ;;  %v3776_v0 = vadd.f32 %v3568_v17, %v3074_v46  ;;  %v3915_v49 = vadd.f32 %v11761_v3, %v3775_v48  ;;  %v3078_v46 = vadd.f32 %v11799_v32, %v14217_v63 }
 0x37a   : > { %v10038_v21 = vpop.eup %10037  ;;  %10051 = vtanh.f32 %v3913_v8  ;;  %v3572_v29 = vpop.f32.mrf.mxu0 }
 0x37b   : > { %v10040_v54 = vpop.eup %10039  ;;  %v3916_v42 = vadd.f32 %v11767_v40, %v3776_v0  ;;  %v3777_v20 = vadd.f32 %v3572_v29, %v3075_v28  ;;  %9247 = vmatprep.mubr.msk.f32.mxu1 %vm4118_vm3, %v10038_v21  ;;  %v12178_v8 = vpop.f32.mrf.mxu1 }
 0x37c   : > { %v3574_v55 = vpop.f32.mrf.mxu0  ;;  %4541 = vmatmul.mubr.f32.gmra.mxu1 %v10040_v54  ;;  %v14219_v54 = vld [vmem:[#allocation42_spill] sm:$0xff] }
 0x37d   : > { %10053 = vtanh.f32 %v3916_v42  ;;  %v3778_v5 = vadd.f32 %v3574_v55, %v3076_v58  ;;  %v3917_v34 = vadd.f32 %v11761_v3, %v3777_v20  ;;  %v12187_v21 = vpop.f32.mrf.mxu1  ;;  %v3080_v23 = vadd.f32 %v11821_v24, %v14219_v54 }
 0x37e   : > { %v10042_v18 = vpop.eup %10041  ;;  %10055 = vtanh.f32 %v3915_v49  ;;  %v3576_v60 = vpop.f32.mrf.mxu0  ;;  %v3081_v55 = vadd.f32 %v11830_v51, %v14220_v9  ;;  %v14222_v51 = vld [vmem:[#allocation45_spill] sm:$0xff] }
 0x37f   : > { %v10044_v47 = vpop.eup %10043  ;;  %v3918_v50 = vadd.f32 %v11767_v40, %v3778_v5  ;;  %v3779_v48 = vadd.f32 %v3576_v60, %v3077_v1  ;;  %9248 = vmatprep.mubr.msk.f32.mxu1 %vm4118_vm3, %v10042_v18  ;;  %v12196_v5 = vpop.f32.mrf.mxu1  ;;  %v14221_v60 = vld [vmem:[#allocation44_spill] sm:$0xff] }
 0x380   : > { %v3578_v17 = vpop.f32.mrf.mxu0  ;;  %4546 = vmatmul.mubr.f32.gmra.mxu1 %v10044_v47  ;;  %v3082_v47 = vadd.f32 %v11841_v57, %v14221_v60 }
 0x381   : > { %10057 = vtanh.f32 %v3918_v50  ;;  %v3780_v28 = vadd.f32 %v3578_v17, %v3078_v46  ;;  %v3919_v49 = vadd.f32 %v11761_v3, %v3779_v48  ;;  %v3083_v48 = vadd.f32 %v11850_v10, %v14222_v51  ;;  %v14224_v10 = vld [vmem:[#allocation47_spill] sm:$0xff] }
 0x382   : > { %v10046_v0 = vpop.eup %10045  ;;  %10059 = vtanh.f32 %v3917_v34  ;;  %v3582_v29 = vpop.f32.mrf.mxu0 }
 0x383   : > { %v10048_v32 = vpop.eup %10047  ;;  %v3920_v58 = vadd.f32 %v11767_v40, %v3780_v28  ;;  %v3781_v42 = vadd.f32 %v3582_v29, %v3079_v53  ;;  %9249 = vmatprep.mubr.msk.f32.mxu1 %vm4118_vm3, %v10046_v0  ;;  %v12205_v53 = vpop.f32.mrf.mxu1 }
 0x384   : > { %v3584_v20 = vpop.f32.mrf.mxu0  ;;  %4551 = vmatmul.mubr.f32.gmra.mxu1 %v10048_v32 }
 0x385   : > { %10061 = vtanh.f32 %v3920_v58  ;;  %v3782_v41 = vadd.f32 %v3584_v20, %v3080_v23  ;;  %v3921_v18 = vadd.f32 %v11761_v3, %v3781_v42  ;;  %v3085_v58 = vadd.f32 %v11870_v37, %v14224_v10  ;;  %v12214_v9 = vpop.f32.mrf.mxu1  ;;  %v14226_v37 = vld [vmem:[#allocation49_spill] sm:$0xff] }
 0x386   : > { %v10050_v1 = vpop.eup %10049  ;;  %10063 = vtanh.f32 %v3919_v49  ;;  %v3586_v34 = vpop.f32.mrf.mxu0  ;;  %v14223_v49 = vld [vmem:[#allocation46_spill] sm:$0xff] }
 0x387   : > { %v10052_v24 = vpop.eup %10051  ;;  %v3922_v63 = vadd.f32 %v11767_v40, %v3782_v41  ;;  %v3783_v46 = vadd.f32 %v3586_v34, %v3081_v55  ;;  %9250 = vmatprep.mubr.msk.f32.mxu1 %vm4118_vm3, %v10050_v1  ;;  %v3084_v29 = vadd.f32 %v11861_v39, %v14223_v49  ;;  %v14225_v1 = vld [vmem:[#allocation48_spill] sm:$0xff] }
 0x388   : > { %v3588_v50 = vpop.f32.mrf.mxu0  ;;  %4556 = vmatmul.mubr.f32.gmra.mxu1 %v10052_v24 }
 0x389   : > { %10065 = vtanh.f32 %v3922_v63  ;;  %v3784_v17 = vadd.f32 %v3588_v50, %v3082_v47  ;;  %v3923_v28 = vadd.f32 %v11761_v3, %v3783_v46  ;;  %v3087_v47 = vadd.f32 %v11890_v26, %v14226_v37  ;;  %v12223_v50 = vpop.f32.mrf.mxu1  ;;  %v14228_v26 = vld [vmem:[#allocation51_spill] sm:$0xff]  ;;  %v14231_v37 = vld [vmem:[#allocation54_spill] sm:$0xff] }
 0x38a   : > { %v10054_v19 = vpop.eup %10053  ;;  %10067 = vtanh.f32 %v3921_v18  ;;  %v3592_v0 = vpop.f32.mrf.mxu0  ;;  %v3086_v18 = vadd.f32 %v11881_v36, %v14225_v1  ;;  %v3089_v49 = vadd.f32 %v11910_v38, %v14228_v26  ;;  %v14230_v38 = vld [vmem:[#allocation53_spill] sm:$0xff] }
 0x38b   : > { %v10056_v57 = vpop.eup %10055  ;;  %v3924_v32 = vadd.f32 %v11767_v40, %v3784_v17  ;;  %v3785_v54 = vadd.f32 %v3592_v0, %v3083_v48  ;;  %9251 = vmatprep.mubr.msk.f32.mxu1 %vm4118_vm3, %v10054_v19  ;;  %v14227_v17 = vld [vmem:[#allocation50_spill] sm:$0xff] }
 0x38c   : > { %v3594_v23 = vpop.f32.mrf.mxu0  ;;  %4561 = vmatmul.mubr.f32.gmra.mxu1 %v10056_v57  ;;  %v3088_v19 = vadd.f32 %v11901_v16, %v14227_v17 }
 0x38d   : > { %10069 = vtanh.f32 %v3924_v32  ;;  %v3786_v42 = vadd.f32 %v3594_v23, %v3084_v29  ;;  %v3925_v55 = vadd.f32 %v11761_v3, %v3785_v54  ;;  %v12232_v54 = vpop.f32.mrf.mxu1 }
 0x38e   : > { %v10058_v20 = vpop.eup %10057  ;;  %10071 = vtanh.f32 %v3923_v28  ;;  %v3596_v41 = vpop.f32.mrf.mxu0 }
 0x38f   : > { %v10060_v39 = vpop.eup %10059  ;;  %v3926_v34 = vadd.f32 %v11767_v40, %v3786_v42  ;;  %v3787_v24 = vadd.f32 %v3596_v41, %v3085_v58  ;;  %9252 = vmatprep.mubr.msk.f32.mxu1 %vm4118_vm3, %v10058_v20  ;;  %v14229_v58 = vld [vmem:[#allocation52_spill] sm:$0xff] }
 0x390   : > { %v3598_v60 = vpop.f32.mrf.mxu0  ;;  %4566 = vmatmul.mubr.f32.gmra.mxu1 %v10060_v39  ;;  %v3090_v42 = vadd.f32 %v11925_v30, %v14229_v58  ;;  %v3091_v39 = vadd.f32 %v11934_v15, %v14230_v38  ;;  %v14232_v15 = vld [vmem:[#allocation55_spill] sm:$0xff] }
 0x391   : > { %10073 = vtanh.f32 %v3926_v34  ;;  %v3788_v63 = vadd.f32 %v3598_v60, %v3086_v18  ;;  %v3927_v51 = vadd.f32 %v11761_v3, %v3787_v24  ;;  %v12241_v34 = vpop.f32.mrf.mxu1 }
 0x392   : > { %v10062_v46 = vpop.eup %10061  ;;  %10075 = vtanh.f32 %v3925_v55  ;;  %v3602_v48 = vpop.f32.mrf.mxu0 }
 0x393   : > { %v10064_v36 = vpop.eup %10063  ;;  %v3928_v28 = vadd.f32 %v11767_v40, %v3788_v63  ;;  %v3789_v0 = vadd.f32 %v3602_v48, %v3087_v47  ;;  %9253 = vmatprep.mubr.msk.f32.mxu1 %vm4118_vm3, %v10062_v46  ;;  %v3092_v47 = vadd.f32 %v11943_v27, %v14231_v37  ;;  %v3093_v48 = vadd.f32 %v11952_v59, %v14232_v15  ;;  %v14234_v59 = vld [vmem:[#allocation57_spill] sm:$0xff] }
 0x394   : > { %v3604_v57 = vpop.f32.mrf.mxu0  ;;  %4571 = vmatmul.mubr.f32.gmra.mxu1 %v10064_v36 }
 0x395   : > { %10077 = vtanh.f32 %v3928_v28  ;;  %v3790_v29 = vadd.f32 %v3604_v57, %v3088_v19  ;;  %v3929_v23 = vadd.f32 %v11761_v3, %v3789_v0  ;;  %v12250_v19 = vpop.f32.mrf.mxu1  ;;  %v14233_v57 = vld [vmem:[#allocation56_spill] sm:$0xff] }
 0x396   : > { %v10066_v32 = vpop.eup %10065  ;;  %10079 = vtanh.f32 %v3927_v51  ;;  %v3606_v10 = vpop.f32.mrf.mxu0  ;;  %v3094_v26 = vadd.f32 %v11961_v25, %v14233_v57 }
 0x397   : > { %v10068_v16 = vpop.eup %10067  ;;  %v3930_v20 = vadd.f32 %v11767_v40, %v3790_v29  ;;  %v3791_v55 = vadd.f32 %v3606_v10, %v3089_v49  ;;  %9254 = vmatprep.mubr.msk.f32.mxu1 %vm4118_vm3, %v10066_v32  ;;  %v12259_v58 = vpop.f32.mrf.mxu1 }
 0x398   : > { %v3608_v41 = vpop.f32.mrf.mxu0  ;;  %4576 = vmatmul.mubr.f32.gmra.mxu1 %v10068_v16 }
 0x399   : > { %10081 = vtanh.f32 %v3930_v20  ;;  %v3792_v1 = vadd.f32 %v3608_v41, %v3090_v42  ;;  %v3931_v24 = vadd.f32 %v11761_v3, %v3791_v55  ;;  %v14235_v55 = vld [vmem:[#allocation58_spill] sm:$0xff] }
 0x39a   : > { %v10070_v18 = vpop.eup %10069  ;;  %10083 = vtanh.f32 %v3929_v23  ;;  %v3612_v60 = vpop.f32.mrf.mxu0  ;;  %v3095_v23 = vadd.f32 %v11970_v61, %v14234_v59  ;;  %v3096_v41 = vadd.f32 %v11981_v14, %v14235_v55  ;;  %v14236_v61 = vld [vmem:[#allocation59_spill] sm:$0xff]  ;;  %v14241_v55 = vld [vmem:[#allocation64_spill] sm:$0xff] }
 0x39b   : > { %v10072_v30 = vpop.eup %10071  ;;  %v3932_v63 = vadd.f32 %v11767_v40, %v3792_v1  ;;  %v3793_v46 = vadd.f32 %v3612_v60, %v3091_v39  ;;  %9255 = vmatprep.mubr.msk.f32.mxu1 %vm4118_vm3, %v10070_v18  ;;  %v3097_v18 = vadd.f32 %v11990_v31, %v14236_v61  ;;  %v14238_v31 = vld [vmem:[#allocation61_spill] sm:$0xff] }
 0x39c   : > { %v3614_v51 = vpop.f32.mrf.mxu0  ;;  %4581 = vmatmul.mubr.f32.gmra.mxu1 %v10072_v30  ;;  %v12268_v30 = vpop.f32.mrf.mxu1 }
 0x39d   : > { %10085 = vtanh.f32 %v3932_v63  ;;  %v3794_v36 = vadd.f32 %v3614_v51, %v3092_v47  ;;  %v3933_v28 = vadd.f32 %v11761_v3, %v3793_v46  ;;  %v14237_v63 = vld [vmem:[#allocation60_spill] sm:$0xff] }
 0x39e   : > { %v10074_v17 = vpop.eup %10073  ;;  %10087 = vtanh.f32 %v3931_v24  ;;  %v3616_v0 = vpop.f32.mrf.mxu0  ;;  %v3098_v46 = vadd.f32 %v11999_v45, %v14237_v63 }
 0x39f   : > { %v10076_v27 = vpop.eup %10075  ;;  %v3934_v49 = vadd.f32 %v11767_v40, %v3794_v36  ;;  %v3795_v29 = vadd.f32 %v3616_v0, %v3093_v48  ;;  %9256 = vmatprep.mubr.msk.f32.mxu1 %vm4118_vm3, %v10074_v17  ;;  %v3099_v36 = vadd.f32 %v12008_v6, %v14238_v31  ;;  %v12277_v0 = vpop.f32.mrf.mxu1  ;;  %v14240_v6 = vld [vmem:[#allocation63_spill] sm:$0xff] }
 0x3a0   : > { %v3618_v32 = vpop.f32.mrf.mxu0  ;;  %4586 = vmatmul.mubr.f32.gmra.mxu1 %v10076_v27 }
 0x3a1   : > { %10089 = vtanh.f32 %v3934_v49  ;;  %v3796_v10 = vadd.f32 %v3618_v32, %v3094_v26  ;;  %v3935_v42 = vadd.f32 %v11761_v3, %v3795_v29  ;;  %v14239_v26 = vld [vmem:[#allocation62_spill] sm:$0xff] }
 0x3a2   : > { %v10078_v16 = vpop.eup %10077  ;;  %10091 = vtanh.f32 %v3933_v28  ;;  %v3622_v20 = vpop.f32.mrf.mxu0  ;;  %v3100_v49 = vadd.f32 %v12026_v13, %v14239_v26 }
 0x3a3   : > { %v10080_v25 = vpop.eup %10079  ;;  %v3936_v38 = vadd.f32 %v11767_v40, %v3796_v10  ;;  %v3797_v39 = vadd.f32 %v3622_v20, %v3095_v23  ;;  %9257 = vmatprep.mubr.msk.f32.mxu1 %vm4118_vm3, %v10078_v16  ;;  %v3101_v23 = vadd.f32 %v12043_v4, %v14240_v6  ;;  %v14242_v4 = vld [vmem:[#allocation65_spill] sm:$0xff] }
 0x3a4   : > { %v3624_v1 = vpop.f32.mrf.mxu0  ;;  %4591 = vmatmul.mubr.f32.gmra.mxu1 %v10080_v25  ;;  %v3103_v61 = vadd.f32 %v12067_v33, %v14242_v4  ;;  %v14244_v33 = vld [vmem:[#allocation67_spill] sm:$0xff] }
 0x3a5   : > { %10093 = vtanh.f32 %v3936_v38  ;;  %v3798_v24 = vadd.f32 %v3624_v1, %v3096_v41  ;;  %v3937_v37 = vadd.f32 %v11761_v3, %v3797_v39  ;;  %v3102_v41 = vadd.f32 %v12058_v44, %v14241_v55 }
 0x3a6   : > { %v10082_v60 = vpop.eup %10081  ;;  %10095 = vtanh.f32 %v3935_v42  ;;  %v3626_v47 = vpop.f32.mrf.mxu0 }
 0x3a7   : > { %v10084_v14 = vpop.eup %10083  ;;  %v3938_v51 = vadd.f32 %v11767_v40, %v3798_v24  ;;  %v3799_v15 = vadd.f32 %v3626_v47, %v3097_v18  ;;  %9258 = vmatprep.mubr.msk.f32.mxu1 %vm4118_vm3, %v10082_v60  ;;  %v12286_v42 = vpop.f32.mrf.mxu1 }
 0x3a8   : > { %v3628_v48 = vpop.f32.mrf.mxu0  ;;  %4596 = vmatmul.mubr.f32.gmra.mxu1 %v10084_v14  ;;  %v14243_v14 = vld [vmem:[#allocation66_spill] sm:$0xff] }
 0x3a9   : > { %10097 = vtanh.f32 %v3938_v51  ;;  %v3800_v17 = vadd.f32 %v3628_v48, %v3098_v46  ;;  %v3939_v27 = vadd.f32 %v11761_v3, %v3799_v15  ;;  %v12295_v60 = vpop.f32.mrf.mxu1  ;;  %v3104_v63 = vadd.f32 %v12076_v62, %v14243_v14 }
 0x3aa   : > { %v10086_v28 = vpop.eup %10085  ;;  %10099 = vtanh.f32 %v3937_v37  ;;  %v3632_v57 = vpop.f32.mrf.mxu0  ;;  %v3105_v48 = vadd.f32 %v12085_v11, %v14244_v33 }
 0x3ab   : > { %v10088_v45 = vpop.eup %10087  ;;  %v3940_v29 = vadd.f32 %v11767_v40, %v3800_v17  ;;  %v3801_v32 = vadd.f32 %v3632_v57, %v3099_v36  ;;  %9259 = vmatprep.mubr.msk.f32.mxu1 %vm4118_vm3, %v10086_v28  ;;  %v12304_v17 = vpop.f32.mrf.mxu1  ;;  %v14245_v57 = vld [vmem:[#allocation68_spill] sm:$0xff] }
 0x3ac   : > { %v3634_v59 = vpop.f32.mrf.mxu0  ;;  %4601 = vmatmul.mubr.f32.gmra.mxu1 %v10088_v45  ;;  %v3106_v45 = vadd.f32 %v12100_v12, %v14245_v57 }
 0x3ad   : > { %10101 = vtanh.f32 %v3940_v29  ;;  %v3802_v10 = vadd.f32 %v3634_v59, %v3100_v49  ;;  %v3941_v20 = vadd.f32 %v11761_v3, %v3801_v32  ;;  %v14246_v32 = vld [vmem:[#allocation69_spill] sm:$0xff] }
 0x3ae   : > { %v10090_v16 = vpop.eup %10089  ;;  %10103 = vtanh.f32 %v3939_v27  ;;  %v3636_v25 = vpop.f32.mrf.mxu0  ;;  %v3107_v59 = vadd.f32 %v12115_v43, %v14246_v32 }
 0x3af   : > { %v10092_v13 = vpop.eup %10091  ;;  %v3942_v38 = vadd.f32 %v11767_v40, %v3802_v10  ;;  %v3803_v39 = vadd.f32 %v3636_v25, %v3101_v23  ;;  %9260 = vmatprep.mubr.msk.f32.mxu1 %vm4118_vm3, %v10090_v16  ;;  %v14247_v25 = vld [vmem:[#allocation70_spill] sm:$0xff] }
 0x3b0   : > { %v3638_v1 = vpop.f32.mrf.mxu0  ;;  %4606 = vmatmul.mubr.f32.gmra.mxu1 %v10092_v13  ;;  %v3108_v13 = vadd.f32 %v12130_v35, %v14247_v25 }
 0x3b1   : > { %10105 = vtanh.f32 %v3942_v38  ;;  %v3804_v18 = vadd.f32 %v3638_v1, %v3102_v41  ;;  %v3943_v37 = vadd.f32 %v11761_v3, %v3803_v39  ;;  %v14248_v39 = vld [vmem:[#allocation71_spill] sm:$0xff] }
 0x3b2   : > { %v10094_v24 = vpop.eup %10093  ;;  %10107 = vtanh.f32 %v3941_v20  ;;  %v3642_v47 = vpop.f32.mrf.mxu0  ;;  %v3109_v1 = vadd.f32 %v12145_v56, %v14248_v39 }
 0x3b3   : > { %v10096_v44 = vpop.eup %10095  ;;  %v3944_v46 = vadd.f32 %v11767_v40, %v3804_v18  ;;  %v3805_v51 = vadd.f32 %v3642_v47, %v3103_v61  ;;  %9261 = vmatprep.mubr.msk.f32.mxu1 %vm4118_vm3, %v10094_v24  ;;  %v14249_v47 = vld [vmem:[#allocation72_spill] sm:$0xff] }
 0x3b4   : > { %v3644_v15 = vpop.f32.mrf.mxu0  ;;  %4611 = vmatmul.mubr.f32.gmra.mxu1 %v10096_v44  ;;  %v3110_v44 = vadd.f32 %v12160_v22, %v14249_v47 }
 0x3b5   : > { %10109 = vtanh.f32 %v3944_v46  ;;  %v3806_v31 = vadd.f32 %v3644_v15, %v3104_v63  ;;  %v3945_v28 = vadd.f32 %v11761_v3, %v3805_v51  ;;  %v14250_v51 = vld [vmem:[#allocation73_spill] sm:$0xff] }
 0x3b6   : > { %v10098_v36 = vpop.eup %10097  ;;  %10111 = vtanh.f32 %v3943_v37  ;;  %v3646_v27 = vpop.f32.mrf.mxu0  ;;  %v3111_v15 = vadd.f32 %v12169_v52, %v14250_v51 }
 0x3b7   : > { %v10100_v62 = vpop.eup %10099  ;;  %v3946_v26 = vadd.f32 %v11767_v40, %v3806_v31  ;;  %v3807_v49 = vadd.f32 %v3646_v27, %v3105_v48  ;;  %9262 = vmatprep.mubr.msk.f32.mxu1 %vm4118_vm3, %v10098_v36  ;;  %v14251_v27 = vld [vmem:[#allocation74_spill] sm:$0xff] }
 0x3b8   : > { %v3648_v29 = vpop.f32.mrf.mxu0  ;;  %v4377_v11 = vpop.f32.mrf.mxu1  ;;  %4616 = vmatmul.mubr.f32.gmra.mxu1 %v10100_v62  ;;  %v3112_v62 = vadd.f32 %v12178_v8, %v14251_v27 }
 0x3b9   : > { %10113 = vtanh.f32 %v3946_v26  ;;  %v3808_v6 = vadd.f32 %v3648_v29, %v3106_v45  ;;  %4697 = vst.msk [vmem:[#allocation3] sm:$0xff] %vm4696_vm4, %v4377_v11  ;;  %v3947_v10 = vadd.f32 %v11761_v3, %v3807_v49  ;;  %v14252_v49 = vld [vmem:[#allocation75_spill] sm:$0xff] }
 0x3ba   : > { %v10102_v23 = vpop.eup %10101  ;;  %10115 = vtanh.f32 %v3945_v28  ;;  %v3652_v12 = vpop.f32.mrf.mxu0  ;;  %v3113_v29 = vadd.f32 %v12187_v21, %v14252_v49 }
 0x3bb   : > { %v4379_v16 = vpop.f32.mrf.mxu1  ;;  %v10104_v20 = vpop.eup %10103  ;;  %v3948_v55 = vadd.f32 %v11767_v40, %v3808_v6  ;;  %v3809_v41 = vadd.f32 %v3652_v12, %v3107_v59  ;;  %9263 = vmatprep.mubr.msk.f32.mxu1 %vm4118_vm3, %v10102_v23 }
 0x3bc   : > { %v3654_v43 = vpop.f32.mrf.mxu0  ;;  %4621 = vmatmul.mubr.f32.gmra.mxu1 %v10104_v20 }
 0x3bd   : > { %v4382_v38 = vpop.f32.mrf.mxu1  ;;  %10117 = vtanh.f32 %v3948_v55  ;;  %v3810_v4 = vadd.f32 %v3654_v43, %v3108_v13  ;;  %v3949_v18 = vadd.f32 %v11761_v3, %v3809_v41  ;;  %v14254_v13 = vld [vmem:[#allocation77_spill] sm:$0xff] }
 0x3be   : > { %4698 = vst.msk [vmem:[#allocation3 + $0x8] sm:$0xff] %vm4696_vm4, %v4382_v38  ;;  %v10106_v61 = vpop.eup %10105  ;;  %10119 = vtanh.f32 %v3947_v10  ;;  %v3656_v35 = vpop.f32.mrf.mxu0  ;;  %v14253_v10 = vld [vmem:[#allocation76_spill] sm:$0xff]  ;;  %v3115_v55 = vadd.f32 %v12205_v53, %v14254_v13 }
 0x3bf   : > { %v4384_v24 = vpop.f32.mrf.mxu1  ;;  %v10108_v37 = vpop.eup %10107  ;;  %v3950_v14 = vadd.f32 %v11767_v40, %v3810_v4  ;;  %v3811_v63 = vadd.f32 %v3656_v35, %v3109_v1  ;;  %9264 = vmatprep.mubr.msk.f32.mxu1 %vm4118_vm3, %v10106_v61  ;;  %v3114_v12 = vadd.f32 %v12196_v5, %v14253_v10  ;;  %v12350_v1 = vld [vmem:[%s13790_s4 + $0x100] sm:$0x33]  ;;  %v14255_v61 = vld [vmem:[#allocation78_spill] sm:$0xff] }
 0x3c0   : > { %v3658_v56 = vpop.f32.mrf.mxu0  ;;  %4626 = vmatmul.mubr.f32.gmra.mxu1 %v10108_v37 }
 0x3c1   : > { %v4387_v46 = vpop.f32.mrf.mxu1  ;;  %10121 = vtanh.f32 %v3950_v14  ;;  %v3812_v33 = vadd.f32 %v3658_v56, %v3110_v44  ;;  %v3951_v31 = vadd.f32 %v11761_v3, %v3811_v63  ;;  %v9369_v14 = vcombine.high %v12350_v1, %v12350_v1  ;;  %v14256_v63 = vld [vmem:[#allocation79_spill] sm:$0xff] }
 0x3c2   : > { %4699 = vst.msk [vmem:[#allocation3 + $0x10] sm:$0xff] %vm4696_vm4, %v4387_v46  ;;  %v10110_v48 = vpop.eup %10109  ;;  %10123 = vtanh.f32 %v3949_v18  ;;  %v3662_v22 = vpop.f32.mrf.mxu0  ;;  %v3116_v18 = vadd.f32 %v12214_v9, %v14255_v61  ;;  %v3117_v56 = vadd.f32 %v12223_v50, %v14256_v63  ;;  %v14261_v61 = vld [vmem:[#allocation84_spill] sm:$0xff] }
 0x3c3   : > { %v4389_v36 = vpop.f32.mrf.mxu1  ;;  %v10112_v28 = vpop.eup %10111  ;;  %v3952_v57 = vadd.f32 %v11767_v40, %v3812_v33  ;;  %v3813_v45 = vadd.f32 %v3662_v22, %v3111_v15  ;;  %9265 = vmatprep.mubr.msk.f32.mxu1 %vm4118_vm3, %v10110_v48  ;;  %9370 = vmatprep.subr.msk.bf16.mxu0 %vm5303_vm2, %v9369_v14 }
 0x3c4   : > { %v3664_v52 = vpop.f32.mrf.mxu0  ;;  %4631 = vmatmul.mubr.f32.gmra.mxu1 %v10112_v28 }
 0x3c5   : > { %v4392_v26 = vpop.f32.mrf.mxu1  ;;  %10125 = vtanh.f32 %v3952_v57  ;;  %v3814_v11 = vadd.f32 %v3664_v52, %v3112_v62  ;;  %v3953_v59 = vadd.f32 %v11761_v3, %v3813_v45  ;;  %v14258_v52 = vld [vmem:[#allocation81_spill] sm:$0xff] }
 0x3c6   : > { %4700 = vst.msk [vmem:[#allocation3 + $0x18] sm:$0xff] %vm4696_vm4, %v4392_v26  ;;  %v10114_v32 = vpop.eup %10113  ;;  %10127 = vtanh.f32 %v3951_v31  ;;  %v3666_v8 = vpop.f32.mrf.mxu0  ;;  %v14257_v31 = vld [vmem:[#allocation80_spill] sm:$0xff]  ;;  %v3119_v26 = vadd.f32 %v12241_v34, %v14258_v52 }
 0x3c7   : > { %v4394_v6 = vpop.f32.mrf.mxu1  ;;  %v10116_v23 = vpop.eup %10115  ;;  %v3954_v16 = vadd.f32 %v11767_v40, %v3814_v11  ;;  %v3815_v20 = vadd.f32 %v3666_v8, %v3113_v29  ;;  %9266 = vmatprep.mubr.msk.f32.mxu1 %vm4118_vm3, %v10114_v32  ;;  %v3118_v22 = vadd.f32 %v12232_v54, %v14257_v31  ;;  %v14259_v11 = vld [vmem:[#allocation82_spill] sm:$0xff]  ;;  %v14265_v52 = vld [vmem:[#allocation88_spill] sm:$0xff] }
 0x3c8   : > { %v3668_v21 = vpop.f32.mrf.mxu0  ;;  %4636 = vmatmul.mubr.f32.gmra.mxu1 %v10116_v23  ;;  %v3120_v32 = vadd.f32 %v12250_v19, %v14259_v11  ;;  %v9368_v23 = vcombine.low %v12350_v1, %v12350_v1  ;;  %v14260_v19 = vld [vmem:[#allocation83_spill] sm:$0xff] }
 0x3c9   : > { %v4397_v25 = vpop.f32.mrf.mxu1  ;;  %10129 = vtanh.f32 %v3954_v16  ;;  %v3816_v41 = vadd.f32 %v3668_v21, %v3114_v12  ;;  %v3955_v38 = vadd.f32 %v11761_v3, %v3815_v20  ;;  %v4981_v47 = vld [vmem:[#allocation3 + $0x2] ss:$2 sm:$0xff]  ;;  %v5045_v44 = vld [vmem:[#allocation3 + $0x3] ss:$2 sm:$0xff]  ;;  %v3121_v13 = vadd.f32 %v12259_v58, %v14260_v19 }
 0x3ca   : > { %4701 = vst.msk [vmem:[#allocation3 + $0x20] sm:$0xff] %vm4696_vm4, %v4397_v25  ;;  %v10118_v43 = vpop.eup %10117  ;;  %10131 = vtanh.f32 %v3953_v59  ;;  %v3672_v5 = vpop.f32.mrf.mxu0  ;;  %v5108_v50 = vadd.f32 %v5045_v44, %v4981_v47  ;;  %v6129_v1 = vsel %vm5303_vm2, %v9368_v23, 0  ;;  %v9820_v23 = vld [vmem:[%s13790_s4 + $0xf4] ss:$8 sps:$4 sm:$0xff]  }
 0x3cb   : > { %v4399_v39 = vpop.f32.mrf.mxu1  ;;  %v10120_v4 = vpop.eup %10119  ;;  %v3956_v53 = vadd.f32 %v11767_v40, %v3816_v41  ;;  %v3817_v35 = vadd.f32 %v3672_v5, %v3115_v55  ;;  %9267 = vmatprep.mubr.msk.f32.mxu1 %vm4118_vm3, %v10118_v43 }
 0x3cc   : > { %v3674_v24 = vpop.f32.mrf.mxu0  ;;  %4641 = vmatmul.mubr.f32.gmra.mxu1 %v10120_v4  ;;  %v5140_v16 = vmul.f32 0.5, %v5108_v50 }
 0x3cd   : > { %v4402_v37 = vpop.f32.mrf.mxu1  ;;  %10133 = vtanh.f32 %v3956_v53  ;;  %v3818_v46 = vadd.f32 %v3674_v24, %v3116_v18  ;;  %v3957_v51 = vadd.f32 %v11761_v3, %v3817_v35  ;;  %v3122_v18 = vadd.f32 %v12268_v30, %v14261_v61 }
 0x3ce   : > { %4702 = vst.msk [vmem:[#allocation3 + $0x28] sm:$0xff] %vm4696_vm4, %v4402_v37  ;;  %v10122_v9 = vpop.eup %10121  ;;  %10135 = vtanh.f32 %v3955_v38  ;;  %v3676_v15 = vpop.f32.mrf.mxu0  ;;  %v14262_v37 = vld [vmem:[#allocation85_spill] sm:$0xff] }
 0x3cf   : > { %v4404_v33 = vpop.f32.mrf.mxu1  ;;  %v10124_v48 = vpop.eup %10123  ;;  %v3958_v36 = vadd.f32 %v11767_v40, %v3818_v46  ;;  %v3819_v28 = vadd.f32 %v3676_v15, %v3117_v56  ;;  %9268 = vmatprep.mubr.msk.f32.mxu1 %vm4118_vm3, %v10122_v9  ;;  %v3123_v47 = vadd.f32 %v12277_v0, %v14262_v37  ;;  %v14263_v9 = vld [vmem:[#allocation86_spill] sm:$0xff] }
 0x3d0   : > { %v3678_v27 = vpop.f32.mrf.mxu0  ;;  %4646 = vmatmul.mubr.f32.gmra.mxu1 %v10124_v48 }
 0x3d1   : > { %v4407_v62 = vpop.f32.mrf.mxu1  ;;  %v4983_v57 = vld [vmem:[#allocation3 + $0x12] ss:$2 sm:$0xff]  ;;  %v5047_v45 = vld [vmem:[#allocation3 + $0x13] ss:$2 sm:$0xff]  ;;  %10137 = vtanh.f32 %v3958_v36  ;;  %v3820_v49 = vadd.f32 %v3678_v27, %v3118_v22  ;;  %v3959_v59 = vadd.f32 %v11761_v3, %v3819_v28 }
 0x3d2   : > { %4703 = vst.msk [vmem:[#allocation3 + $0x30] sm:$0xff] %vm4696_vm4, %v4407_v62  ;;  %v5109_v29 = vadd.f32 %v5047_v45, %v4983_v57  ;;  %v10126_v54 = vpop.eup %10125  ;;  %10139 = vtanh.f32 %v3957_v51  ;;  %v3682_v8 = vpop.f32.mrf.mxu0  ;;  %v3124_v51 = vadd.f32 %v12286_v42, %v14263_v9  ;;  %v14264_v36 = vld [vmem:[#allocation87_spill] sm:$0xff] }
 0x3d3   : > { %v4409_v6 = vpop.f32.mrf.mxu1  ;;  %v10128_v10 = vpop.eup %10127  ;;  %v3960_v34 = vadd.f32 %v11767_v40, %v3820_v49  ;;  %v3821_v12 = vadd.f32 %v3682_v8, %v3119_v26  ;;  %9269 = vmatprep.mubr.msk.f32.mxu1 %vm4118_vm3, %v10126_v54  ;;  %v3125_v28 = vadd.f32 %v12295_v60, %v14264_v36  ;;  %v3126_v26 = vadd.f32 %v12304_v17, %v14265_v52  ;;  %v9818_v17 = vld [vmem:[%s13790_s4 + $0xf0] ss:$8 sps:$4 sm:$0xff]  }
 0x3d4   : > { %v5141_v20 = vmul.f32 0.5, %v5109_v29  ;;  %v3684_v21 = vpop.f32.mrf.mxu0  ;;  %4651 = vmatmul.mubr.f32.gmra.mxu1 %v10128_v10 }
 0x3d5   : > { %v4412_v25 = vpop.f32.mrf.mxu1  ;;  %10141 = vtanh.f32 %v3960_v34  ;;  %v3822_v55 = vadd.f32 %v3684_v21, %v3120_v32  ;;  %v3961_v38 = vadd.f32 %v11761_v3, %v3821_v12 }
 0x3d6   : > { %4704 = vst.msk [vmem:[#allocation3 + $0x38] sm:$0xff] %vm4696_vm4, %v4412_v25  ;;  %v5172_v41 = vpack.c.bf16 %v5141_v20, %v5140_v16  ;;  %v10130_v43 = vpop.eup %10129  ;;  %10143 = vtanh.f32 %v3959_v59  ;;  %v3686_v5 = vpop.f32.mrf.mxu0 }
 0x3d7   : > { %v4414_v39 = vpop.f32.mrf.mxu1  ;;  %v10132_v4 = vpop.eup %10131  ;;  %v3962_v53 = vadd.f32 %v11767_v40, %v3822_v55  ;;  %v3823_v58 = vadd.f32 %v3686_v5, %v3121_v13  ;;  %9270 = vmatprep.mubr.msk.f32.mxu1 %vm4118_vm3, %v10130_v43 }
 0x3d8   : > { %9302 = vmatmul.mubr.msk.bf16.vlgmr.msra.gmra.mxu0 %vm4696_vm4, %v5172_v41  ;;  %v3688_v35 = vpop.f32.mrf.mxu0  ;;  %4656 = vmatmul.mubr.f32.gmra.mxu1 %v10132_v4  ;;  %v4764_v39 = vld [vmem:[#allocation3 + $0x10] ss:$2 sm:$0xff] }
 0x3d9   : > { %v4417_v24 = vpop.f32.mrf.mxu1  ;;  %5352 = vmatprep.mubr.bf16.mxu0 %v13842_v2  ;;  %10145 = vtanh.f32 %v3962_v53  ;;  %v3824_v44 = vadd.f32 %v3688_v35, %v3122_v18  ;;  %6139 = vmatpush1.bf16.msra.mxu0 %v6129_v1  ;;  %v3963_v14 = vadd.f32 %v11761_v3, %v3823_v58  ;;  %v4985_v31 = vld [vmem:[#allocation3 + $0x22] ss:$2 sm:$0xff]  ;;  %v5049_v22 = vld [vmem:[#allocation3 + $0x23] ss:$2 sm:$0xff] }
 0x3da   : > { %4705 = vst.msk [vmem:[#allocation3 + $0x40] sm:$0xff] %vm4696_vm4, %v4417_v24  ;;  %v10134_v30 = vpop.eup %10133  ;;  %10147 = vtanh.f32 %v3961_v38  ;;  %v3692_v63 = vpop.f32.mrf.mxu0  ;;  %v5110_v60 = vadd.f32 %v5049_v22, %v4985_v31  ;;  %6140 = vmatprep.subr.bf16.mxu0 %v9820_v23  ;;  %v4828_v1 = vld [vmem:[#allocation3 + $0x11] ss:$2 sm:$0xff]  ;;  %v4762_v53 = vld [vmem:[#allocation3] ss:$2 sm:$0xff] }
 0x3db   : > { %v4419_v56 = vpop.f32.mrf.mxu1  ;;  %v10136_v46 = vpop.eup %10135  ;;  %v3964_v15 = vadd.f32 %v11767_v40, %v3824_v44  ;;  %v3825_v33 = vadd.f32 %v3692_v63, %v3123_v47  ;;  %9271 = vmatprep.mubr.msk.f32.mxu1 %vm4118_vm3, %v10134_v30  ;;  %v4826_v58 = vld [vmem:[#allocation3 + $0x1] ss:$2 sm:$0xff]  ;;  %v4890_v37 = vadd.f32 %v4828_v1, %v4764_v39 }
 0x3dc   : > { %v3694_v0 = vpop.f32.mrf.mxu0  ;;  %4661 = vmatmul.mubr.f32.gmra.mxu1 %v10136_v46  ;;  %v5142_v21 = vmul.f32 0.5, %v5110_v60  ;;  %v4889_v56 = vadd.f32 %v4826_v58, %v4762_v53 }
 0x3dd   : > { %v4422_v48 = vpop.f32.mrf.mxu1  ;;  %10149 = vtanh.f32 %v3964_v15  ;;  %v3826_v50 = vadd.f32 %v3694_v0, %v3124_v51  ;;  %v3965_v42 = vadd.f32 %v11761_v3, %v3825_v33  ;;  %6141 = vmatpush1.bf16.msra.mxu0 %v9818_v17  ;;  %v4922_v15 = vmul.f32 0.5, %v4890_v37  ;;  %v4768_v31 = vld [vmem:[#allocation3 + $0x30] ss:$2 sm:$0xff]  ;;  %v4832_v22 = vld [vmem:[#allocation3 + $0x31] ss:$2 sm:$0xff] }
 0x3de   : > { %4706 = vst.msk [vmem:[#allocation3 + $0x48] sm:$0xff] %vm4696_vm4, %v4422_v48  ;;  %v10138_v27 = vpop.eup %10137  ;;  %10151 = vtanh.f32 %v3963_v14  ;;  %v3696_v62 = vpop.f32.mrf.mxu0 }
 0x3df   : > { %v4424_v57 = vpop.f32.mrf.mxu1  ;;  %v10140_v45 = vpop.eup %10139  ;;  %v3966_v49 = vadd.f32 %v11767_v40, %v3826_v50  ;;  %v3827_v29 = vadd.f32 %v3696_v62, %v3125_v28  ;;  %9272 = vmatprep.mubr.msk.f32.mxu1 %vm4118_vm3, %v10138_v27  ;;  %v4921_v28 = vmul.f32 0.5, %v4889_v56  ;;  %v4766_v50 = vld [vmem:[#allocation3 + $0x20] ss:$2 sm:$0xff] }
 0x3e0   : > { %v3698_v54 = vpop.f32.mrf.mxu0  ;;  %4666 = vmatmul.mubr.f32.gmra.mxu1 %v10140_v45  ;;  %v9821_v62 = vld [vmem:[%s13790_s4 + $0xe0] ss:$8 sps:$4 sm:$0xff]   ;;  %v9823_v57 = vld [vmem:[%s13790_s4 + $0xe4] ss:$8 sps:$4 sm:$0xff]  }
 0x3e1   : > { %v4427_v11 = vpop.f32.mrf.mxu1  ;;  %v4987_v32 = vld [vmem:[#allocation3 + $0x32] ss:$2 sm:$0xff]  ;;  %v5051_v59 = vld [vmem:[#allocation3 + $0x33] ss:$2 sm:$0xff]  ;;  %10153 = vtanh.f32 %v3966_v49  ;;  %v3828_v8 = vadd.f32 %v3698_v54, %v3126_v26  ;;  %v3967_v34 = vadd.f32 %v11761_v3, %v3827_v29  ;;  %v4953_v52 = vpack.c.bf16 %v4922_v15, %v4921_v28  ;;  %6142 = vmatprep.subr.bf16.mxu0 %v9823_v57 }
 0x3e2   : > { %4707 = vst.msk [vmem:[#allocation3 + $0x50] sm:$0xff] %vm4696_vm4, %v4427_v11  ;;  %v5111_v6 = vadd.f32 %v5051_v59, %v4987_v32  ;;  %v10142_v10 = vpop.eup %10141  ;;  %10155 = vtanh.f32 %v3965_v42  ;;  %v4830_v42 = vld [vmem:[#allocation3 + $0x21] ss:$2 sm:$0xff]  ;;  %v4892_v26 = vadd.f32 %v4832_v22, %v4768_v31  ;;  %6143 = vmatpush1.bf16.msra.mxu0 %v9821_v62 }
 0x3e3   : > { %v4429_v12 = vpop.f32.mrf.mxu1  ;;  %v10144_v16 = vpop.eup %10143  ;;  %v3968_v20 = vadd.f32 %v11767_v40, %v3828_v8  ;;  %9273 = vmatprep.mubr.msk.f32.mxu1 %vm4118_vm3, %v10142_v10  ;;  %v4891_v29 = vadd.f32 %v4830_v42, %v4766_v50 }
 0x3e4   : > { %v5143_v25 = vmul.f32 0.5, %v5111_v6  ;;  %4671 = vmatmul.mubr.f32.gmra.mxu1 %v10144_v16  ;;  %v4924_v54 = vmul.f32 0.5, %v4892_v26 }
 0x3e5   : > { %v4432_v19 = vpop.f32.mrf.mxu1  ;;  %10157 = vtanh.f32 %v3968_v20  ;;  %v4923_v8 = vmul.f32 0.5, %v4891_v29  ;;  %v4770_v23 = vld [vmem:[#allocation3 + $0x40] ss:$2 sm:$0xff]  ;;  %v4834_v10 = vld [vmem:[#allocation3 + $0x41] ss:$2 sm:$0xff] }
 0x3e6   : > { %4708 = vst.msk [vmem:[#allocation3 + $0x58] sm:$0xff] %vm4696_vm4, %v4432_v19  ;;  %v5173_v13 = vpack.c.bf16 %v5143_v25, %v5142_v21  ;;  %v10146_v55 = vpop.eup %10145  ;;  %10159 = vtanh.f32 %v3967_v34 }
 0x3e7   : > { %v4434_v41 = vpop.f32.mrf.mxu1  ;;  %v10148_v3 = vpop.eup %10147  ;;  %9274 = vmatprep.mubr.msk.f32.mxu1 %vm4118_vm3, %v10146_v55  ;;  %v4954_v12 = vpack.c.bf16 %v4924_v54, %v4923_v8 }
 0x3e8   : > { %9303 = vmatmul.mubr.msk.bf16.gmra.mxu0 %vm4696_vm4, %v5173_v13  ;;  %4676 = vmatmul.mubr.f32.gmra.mxu1 %v10148_v3  ;;  %v4893_v13 = vadd.f32 %v4834_v10, %v4770_v23 }
 0x3e9   : > { %v4437_v40 = vpop.f32.mrf.mxu1  ;;  %5362 = vmatprep.mubr.bf16.mxu0 %v13842_v2  ;;  %v4989_v61 = vld [vmem:[#allocation3 + $0x42] ss:$2 sm:$0xff]  ;;  %v5053_v18 = vld [vmem:[#allocation3 + $0x43] ss:$2 sm:$0xff] }
 0x3ea   : > { %4709 = vst.msk [vmem:[#allocation3 + $0x60] sm:$0xff] %vm4696_vm4, %v4437_v40  ;;  %v10150_v43 = vpop.eup %10149  ;;  %v5112_v44 = vadd.f32 %v5053_v18, %v4989_v61  ;;  %v4925_v1 = vmul.f32 0.5, %v4893_v13 }
 0x3eb   : > { %v4439_v38 = vpop.f32.mrf.mxu1  ;;  %v10152_v5 = vpop.eup %10151  ;;  %9275 = vmatprep.mubr.msk.f32.mxu1 %vm4118_vm3, %v10150_v43 }
 0x3ec   : > { %4681 = vmatmul.mubr.f32.gmra.mxu1 %v10152_v5  ;;  %v5144_v0 = vmul.f32 0.5, %v5112_v44 }
 0x3ed   : > { %v4442_v4 = vpop.f32.mrf.mxu1  ;;  %v4772_v11 = vld [vmem:[#allocation3 + $0x50] ss:$2 sm:$0xff]  ;;  %v4836_v32 = vld [vmem:[#allocation3 + $0x51] ss:$2 sm:$0xff] }
 0x3ee   : > { %4710 = vst.msk [vmem:[#allocation3 + $0x68] sm:$0xff] %vm4696_vm4, %v4442_v4  ;;  %v10154_v35 = vpop.eup %10153  ;;  %v4894_v16 = vadd.f32 %v4836_v32, %v4772_v11 }
 0x3ef   : > { %v4444_v24 = vpop.f32.mrf.mxu1  ;;  %v10156_v47 = vpop.eup %10155  ;;  %9276 = vmatprep.mubr.msk.f32.mxu1 %vm4118_vm3, %v10154_v35 }
 0x3f0   : > { %4686 = vmatmul.mubr.f32.gmra.mxu1 %v10156_v47  ;;  %v4926_v3 = vmul.f32 0.5, %v4894_v16 }
 0x3f1   : > { %v4447_v30 = vpop.f32.mrf.mxu1  ;;  %v4991_v14 = vld [vmem:[#allocation3 + $0x52] ss:$2 sm:$0xff]  ;;  %v5055_v63 = vld [vmem:[#allocation3 + $0x53] ss:$2 sm:$0xff] }
 0x3f2   : > { %4711 = vst.msk [vmem:[#allocation3 + $0x70] sm:$0xff] %vm4696_vm4, %v4447_v30  ;;  %v5113_v46 = vadd.f32 %v5055_v63, %v4991_v14  ;;  %v10158_v9 = vpop.eup %10157  ;;  %v4955_v58 = vpack.c.bf16 %v4926_v3, %v4925_v1  ;;  %v9824_v30 = vld [vmem:[%s13790_s4 + $0xd0] ss:$8 sps:$4 sm:$0xff]   ;;  %v9826_v14 = vld [vmem:[%s13790_s4 + $0xd4] ss:$8 sps:$4 sm:$0xff]  }
 0x3f3   : > { %v4449_v51 = vpop.f32.mrf.mxu1  ;;  %v10160_v33 = vpop.eup %10159  ;;  %9277 = vmatprep.mubr.msk.f32.mxu1 %vm4118_vm3, %v10158_v9  ;;  %6144 = vmatprep.subr.bf16.mxu0 %v9826_v14 }
 0x3f4   : > { %v5145_v48 = vmul.f32 0.5, %v5113_v46  ;;  %4691 = vmatmul.mubr.f32.gmra.mxu1 %v10160_v33  ;;  %6145 = vmatpush1.bf16.msra.mxu0 %v9824_v30 }
 0x3f5   : > { %v4452_v36 = vpop.f32.mrf.mxu1  ;;  %5644 = vmatprep.mubr.bf16.mxu1 %v13842_v2  ;;  %v4774_v4 = vld [vmem:[#allocation3 + $0x60] ss:$2 sm:$0xff]  ;;  %v4838_v61 = vld [vmem:[#allocation3 + $0x61] ss:$2 sm:$0xff] }
 0x3f6   : > { %4712 = vst.msk [vmem:[#allocation3 + $0x78] sm:$0xff] %vm4696_vm4, %v4452_v36  ;;  %v5174_v27 = vpack.c.bf16 %v5145_v48, %v5144_v0  ;;  %v4895_v24 = vadd.f32 %v4838_v61, %v4774_v4 }
 0x3f7   : > { %v4454_v45 = vpop.f32.mrf.mxu1 }
 0x3f8   : > { %9304 = vmatmul.mubr.msk.bf16.gmra.mxu0 %vm4696_vm4, %v5174_v27  ;;  %9331 = vmatmul.mubr.msk.bf16.vlgmr.msra.gmra.mxu1 %vm4696_vm4, %v4953_v52  ;;  %v4927_v63 = vmul.f32 0.5, %v4895_v24 }
 0x3f9   : > { %v4457_v49 = vpop.f32.mrf.mxu1  ;;  %5372 = vmatprep.mubr.bf16.mxu0 %v13842_v2  ;;  %5654 = vmatprep.mubr.bf16.mxu1 %v13842_v2  ;;  %v4993_v6 = vld [vmem:[#allocation3 + $0x62] ss:$2 sm:$0xff]  ;;  %v5057_v17 = vld [vmem:[#allocation3 + $0x63] ss:$2 sm:$0xff] }
 0x3fa   : > { %4713 = vst.msk [vmem:[#allocation3 + $0x80] sm:$0xff] %vm4696_vm4, %v4457_v49  ;;  %v5114_v20 = vadd.f32 %v5057_v17, %v4993_v6 }
 0x3fb   : > { %v4459_v60 = vpop.f32.mrf.mxu1 }
 0x3fc   : > { %v5146_v40 = vmul.f32 0.5, %v5114_v20 }
 0x3fd   : > { %v4462_v59 = vpop.f32.mrf.mxu1  ;;  %v4776_v38 = vld [vmem:[#allocation3 + $0x70] ss:$2 sm:$0xff]  ;;  %v4840_v5 = vld [vmem:[#allocation3 + $0x71] ss:$2 sm:$0xff] }
 0x3fe   : > { %4714 = vst.msk [vmem:[#allocation3 + $0x88] sm:$0xff] %vm4696_vm4, %v4462_v59  ;;  %v4896_v35 = vadd.f32 %v4840_v5, %v4776_v38  ;;  %v9827_v38 = vld [vmem:[%s13790_s4 + $0xc0] ss:$8 sps:$4 sm:$0xff]   ;;  %v9829_v5 = vld [vmem:[%s13790_s4 + $0xc4] ss:$8 sps:$4 sm:$0xff]  }
 0x3ff   : > { %v4464_v34 = vpop.f32.mrf.mxu1  ;;  %6146 = vmatprep.subr.bf16.mxu0 %v9829_v5 }
 0x400   : > { %9332 = vmatmul.mubr.msk.bf16.gmra.mxu1 %vm4696_vm4, %v4954_v12  ;;  %v4928_v44 = vmul.f32 0.5, %v4896_v35  ;;  %6147 = vmatpush1.bf16.msra.mxu0 %v9827_v38 }
 0x401   : > { %v4467_v21 = vpop.f32.mrf.mxu1  ;;  %v4995_v25 = vld [vmem:[#allocation3 + $0x72] ss:$2 sm:$0xff]  ;;  %v5059_v19 = vld [vmem:[#allocation3 + $0x73] ss:$2 sm:$0xff]  ;;  %5664 = vmatprep.mubr.bf16.mxu1 %v13842_v2 }
 0x402   : > { %4715 = vst.msk [vmem:[#allocation3 + $0x90] sm:$0xff] %vm4696_vm4, %v4467_v21  ;;  %v5115_v55 = vadd.f32 %v5059_v19, %v4995_v25  ;;  %v4956_v31 = vpack.c.bf16 %v4928_v44, %v4927_v63 }
 0x403   : > { %v4469_v41 = vpop.f32.mrf.mxu1 }
 0x404   : > { %v5147_v43 = vmul.f32 0.5, %v5115_v55 }
 0x405   : > { %v4472_v39 = vpop.f32.mrf.mxu1  ;;  %v4778_v33 = vld [vmem:[#allocation3 + $0x80] ss:$2 sm:$0xff]  ;;  %v4842_v0 = vld [vmem:[#allocation3 + $0x81] ss:$2 sm:$0xff] }
 0x406   : > { %4716 = vst.msk [vmem:[#allocation3 + $0x98] sm:$0xff] %vm4696_vm4, %v4472_v39  ;;  %v5175_v18 = vpack.c.bf16 %v5147_v43, %v5146_v40  ;;  %v4897_v42 = vadd.f32 %v4842_v0, %v4778_v33 }
 0x407   : > { %v4474_v53 = vpop.f32.mrf.mxu1 }
 0x408   : > { %9305 = vmatmul.mubr.msk.bf16.gmra.mxu0 %vm4696_vm4, %v5175_v18  ;;  %9333 = vmatmul.mubr.msk.bf16.gmra.mxu1 %vm4696_vm4, %v4955_v58  ;;  %v4929_v29 = vmul.f32 0.5, %v4897_v42 }
 0x409   : > { %v4477_v37 = vpop.f32.mrf.mxu1  ;;  %5382 = vmatprep.mubr.bf16.mxu0 %v13842_v2  ;;  %5674 = vmatprep.mubr.bf16.mxu1 %v13842_v2  ;;  %v4997_v56 = vld [vmem:[#allocation3 + $0x82] ss:$2 sm:$0xff]  ;;  %v5061_v9 = vld [vmem:[#allocation3 + $0x83] ss:$2 sm:$0xff] }
 0x40a   : > { %4717 = vst.msk [vmem:[#allocation3 + $0xa0] sm:$0xff] %vm4696_vm4, %v4477_v37  ;;  %v5116_v36 = vadd.f32 %v5061_v9, %v4997_v56 }
 0x40b   : > { %v4479_v47 = vpop.f32.mrf.mxu1 }
 0x40c   : > { %v5148_v52 = vmul.f32 0.5, %v5116_v36 }
 0x40d   : > { %v4482_v46 = vpop.f32.mrf.mxu1  ;;  %v4780_v51 = vld [vmem:[#allocation3 + $0x90] ss:$2 sm:$0xff]  ;;  %v4844_v15 = vld [vmem:[#allocation3 + $0x91] ss:$2 sm:$0xff] }
 0x40e   : > { %4718 = vst.msk [vmem:[#allocation3 + $0xa8] sm:$0xff] %vm4696_vm4, %v4482_v46  ;;  %v4898_v22 = vadd.f32 %v4844_v15, %v4780_v51 }
 0x40f   : > { %v4484_v48 = vpop.f32.mrf.mxu1 }
 0x410   : > { %9334 = vmatmul.mubr.msk.bf16.gmra.mxu1 %vm4696_vm4, %v4956_v31  ;;  %v4930_v45 = vmul.f32 0.5, %v4898_v22 }
 0x411   : > { %v4487_v28 = vpop.f32.mrf.mxu1  ;;  %v4999_v50 = vld [vmem:[#allocation3 + $0x92] ss:$2 sm:$0xff]  ;;  %v5063_v27 = vld [vmem:[#allocation3 + $0x93] ss:$2 sm:$0xff]  ;;  %5684 = vmatprep.mubr.bf16.mxu1 %v13842_v2 }
 0x412   : > { %4719 = vst.msk [vmem:[#allocation3 + $0xb0] sm:$0xff] %vm4696_vm4, %v4487_v28  ;;  %v5117_v62 = vadd.f32 %v5063_v27, %v4999_v50  ;;  %v4957_v11 = vpack.c.bf16 %v4930_v45, %v4929_v29  ;;  %v9397_v28 = vld [vmem:[%s13790_s4 + $0x158] sm:$0x33] }
 0x413   : > { %v4489_v57 = vpop.f32.mrf.mxu1  ;;  %v9409_v27 = vcombine.high %v9397_v28, %v9397_v28  ;;  %v9408_v42 = vcombine.low %v9397_v28, %v9397_v28  ;;  %v9833_v29 = vld [vmem:[%s13790_s4 + $0xb4] ss:$8 sps:$4 sm:$0xff]  }
 0x414   : > { %v5149_v26 = vmul.f32 0.5, %v5117_v62  ;;  %6148 = vmatprep.subr.bf16.mxu0 %v9833_v29 }
 0x415   : > { %v4492_v49 = vpop.f32.mrf.mxu1  ;;  %v4782_v59 = vld [vmem:[#allocation3 + $0xa0] ss:$2 sm:$0xff]  ;;  %v4846_v8 = vld [vmem:[#allocation3 + $0xa1] ss:$2 sm:$0xff]  ;;  %9410 = vmatprep.subr.msk.bf16.mxu1 %vm5303_vm2, %v9409_v27 }
 0x416   : > { %4720 = vst.msk [vmem:[#allocation3 + $0xb8] sm:$0xff] %vm4696_vm4, %v4492_v49  ;;  %v5176_v60 = vpack.c.bf16 %v5149_v26, %v5148_v52  ;;  %v4899_v17 = vadd.f32 %v4846_v8, %v4782_v59  ;;  %v6715_v52 = vsel %vm5303_vm2, %v9408_v42, 0  ;;  %v9831_v49 = vld [vmem:[%s13790_s4 + $0xb0] ss:$8 sps:$4 sm:$0xff]  }
 0x417   : > { %v4494_v54 = vpop.f32.mrf.mxu1  ;;  %6725 = vmatpush1.bf16.msra.mxu1 %v6715_v52  ;;  %6149 = vmatpush1.bf16.msra.mxu0 %v9831_v49 }
 0x418   : > { %9306 = vmatmul.mubr.msk.bf16.gmra.mxu0 %vm4696_vm4, %v5176_v60  ;;  %9335 = vmatmul.mubr.msk.bf16.gmra.mxu1 %vm4696_vm4, %v4957_v11  ;;  %v4931_v25 = vmul.f32 0.5, %v4899_v17  ;;  %v9836_v54 = vld [vmem:[%s13790_s4 + $0x14c] ss:$8 sps:$4 sm:$0xff]   ;;  %v9834_v11 = vld [vmem:[%s13790_s4 + $0x148] ss:$8 sps:$4 sm:$0xff]  }
 0x419   : > { %v4497_v32 = vpop.f32.mrf.mxu1  ;;  %5392 = vmatprep.mubr.bf16.mxu0 %v13842_v2  ;;  %5694 = vmatprep.mubr.bf16.mxu1 %v13842_v2  ;;  %v5001_v23 = vld [vmem:[#allocation3 + $0xa2] ss:$2 sm:$0xff]  ;;  %v5065_v16 = vld [vmem:[#allocation3 + $0xa3] ss:$2 sm:$0xff]  ;;  %v9839_v17 = vld [vmem:[%s13790_s4 + $0x13c] ss:$8 sps:$4 sm:$0xff]  }
 0x41a   : > { %4721 = vst.msk [vmem:[#allocation3 + $0xc0] sm:$0xff] %vm4696_vm4, %v4497_v32  ;;  %v5118_v13 = vadd.f32 %v5065_v16, %v5001_v23  ;;  %6726 = vmatprep.subr.bf16.mxu1 %v9836_v54 }
 0x41b   : > { %v4499_v6 = vpop.f32.mrf.mxu1  ;;  %6727 = vmatpush1.bf16.msra.mxu1 %v9834_v11 }
 0x41c   : > { %v5150_v1 = vmul.f32 0.5, %v5118_v13  ;;  %6728 = vmatprep.subr.bf16.mxu1 %v9839_v17  ;;  %v9842_v13 = vld [vmem:[%s13790_s4 + $0x12c] ss:$8 sps:$4 sm:$0xff]  }
 0x41d   : > { %v4502_v10 = vpop.f32.mrf.mxu1  ;;  %v4784_v34 = vld [vmem:[#allocation3 + $0xb0] ss:$2 sm:$0xff]  ;;  %v4848_v12 = vld [vmem:[#allocation3 + $0xb1] ss:$2 sm:$0xff] }
 0x41e   : > { %4722 = vst.msk [vmem:[#allocation3 + $0xc8] sm:$0xff] %vm4696_vm4, %v4502_v10  ;;  %v4900_v20 = vadd.f32 %v4848_v12, %v4784_v34  ;;  %v9837_v34 = vld [vmem:[%s13790_s4 + $0x138] ss:$8 sps:$4 sm:$0xff]  }
 0x41f   : > { %v4504_v21 = vpop.f32.mrf.mxu1  ;;  %6729 = vmatpush1.bf16.msra.mxu1 %v9837_v34 }
 0x420   : > { %v4932_v19 = vmul.f32 0.5, %v4900_v20  ;;  %6730 = vmatprep.subr.bf16.mxu1 %v9842_v13 }
 0x421   : > { %v4507_v55 = vpop.f32.mrf.mxu1  ;;  %v5003_v41 = vld [vmem:[#allocation3 + $0xb2] ss:$2 sm:$0xff]  ;;  %v5067_v3 = vld [vmem:[#allocation3 + $0xb3] ss:$2 sm:$0xff] }
 0x422   : > { %4723 = vst.msk [vmem:[#allocation3 + $0xd0] sm:$0xff] %vm4696_vm4, %v4507_v55  ;;  %v4958_v40 = vpack.c.bf16 %v4932_v19, %v4931_v25  ;;  %v5119_v43 = vadd.f32 %v5067_v3, %v5003_v41 }
 0x423   : > { %v4509_v39 = vpop.f32.mrf.mxu1 }
 0x424   : > { %9336 = vmatmul.mubr.msk.bf16.gmra.mxu1 %vm4696_vm4, %v4958_v40  ;;  %v5151_v4 = vmul.f32 0.5, %v5119_v43  ;;  %v9840_v40 = vld [vmem:[%s13790_s4 + $0x128] ss:$8 sps:$4 sm:$0xff]  }
 0x425   : > { %v4512_v61 = vpop.f32.mrf.mxu1  ;;  %5704 = vmatprep.mubr.bf16.mxu1 %v13842_v2  ;;  %v4786_v35 = vld [vmem:[#allocation3 + $0xc0] ss:$2 sm:$0xff]  ;;  %v4850_v24 = vld [vmem:[#allocation3 + $0xc1] ss:$2 sm:$0xff]  ;;  %6731 = vmatpush1.bf16.msra.mxu1 %v9840_v40 }
 0x426   : > { %4724 = vst.msk [vmem:[#allocation3 + $0xd8] sm:$0xff] %vm4696_vm4, %v4512_v61  ;;  %v5177_v18 = vpack.c.bf16 %v5151_v4, %v5150_v1  ;;  %v4901_v47 = vadd.f32 %v4850_v24, %v4786_v35  ;;  %v9845_v61 = vld [vmem:[%s13790_s4 + $0x11c] ss:$8 sps:$4 sm:$0xff]  }
 0x427   : > { %v4514_v53 = vpop.f32.mrf.mxu1  ;;  %6732 = vmatprep.subr.bf16.mxu1 %v9845_v61 }
 0x428   : > { %9307 = vmatmul.mubr.msk.bf16.gmra.mxu0 %vm4696_vm4, %v5177_v18  ;;  %v4933_v51 = vmul.f32 0.5, %v4901_v47  ;;  %v9848_v47 = vld [vmem:[%s13790_s4 + $0x10c] ss:$8 sps:$4 sm:$0xff]  }
 0x429   : > { %v4517_v58 = vpop.f32.mrf.mxu1  ;;  %5402 = vmatprep.mubr.bf16.mxu0 %v13842_v2  ;;  %v5005_v44 = vld [vmem:[#allocation3 + $0xc2] ss:$2 sm:$0xff]  ;;  %v5069_v56 = vld [vmem:[#allocation3 + $0xc3] ss:$2 sm:$0xff] }
 0x42a   : > { %4725 = vst.msk [vmem:[#allocation3 + $0xe0] sm:$0xff] %vm4696_vm4, %v4517_v58  ;;  %v5120_v33 = vadd.f32 %v5069_v56, %v5005_v44  ;;  %v9843_v58 = vld [vmem:[%s13790_s4 + $0x118] ss:$8 sps:$4 sm:$0xff]   ;;  %v9846_v44 = vld [vmem:[%s13790_s4 + $0x108] ss:$8 sps:$4 sm:$0xff]  }
 0x42b   : > { %v4519_v37 = vpop.f32.mrf.mxu1  ;;  %6733 = vmatpush1.bf16.msra.mxu1 %v9843_v58 }
 0x42c   : > { %v5152_v62 = vmul.f32 0.5, %v5120_v33  ;;  %6734 = vmatprep.subr.bf16.mxu1 %v9848_v47 }
 0x42d   : > { %v4522_v30 = vpop.f32.mrf.mxu1  ;;  %v4788_v14 = vld [vmem:[#allocation3 + $0xd0] ss:$2 sm:$0xff]  ;;  %v4852_v63 = vld [vmem:[#allocation3 + $0xd1] ss:$2 sm:$0xff] }
 0x42e   : > { %4726 = vst.msk [vmem:[#allocation3 + $0xe8] sm:$0xff] %vm4696_vm4, %v4522_v30  ;;  %v4902_v46 = vadd.f32 %v4852_v63, %v4788_v14 }
 0x42f   : > { %v4524_v9 = vpop.f32.mrf.mxu1  ;;  %6735 = vmatpush1.bf16.msra.mxu1 %v9846_v44 }
 0x430   : > { %v4934_v15 = vmul.f32 0.5, %v4902_v46  ;;  %7820 = vmatprep.subr.mxu1 %v14152_v7 }
 0x431   : > { %v4527_v0 = vpop.f32.mrf.mxu1  ;;  %v5007_v48 = vld [vmem:[#allocation3 + $0xd2] ss:$2 sm:$0xff]  ;;  %v5071_v31 = vld [vmem:[#allocation3 + $0xd3] ss:$2 sm:$0xff] }
 0x432   : > { %4727 = vst.msk [vmem:[#allocation3 + $0xf0] sm:$0xff] %vm4696_vm4, %v4527_v0  ;;  %v4959_v22 = vpack.c.bf16 %v4934_v15, %v4933_v51  ;;  %v5121_v36 = vadd.f32 %v5071_v31, %v5007_v48  ;;  %v12537_v51 = vld [vmem:[%s13790_s4 + $0x1b0] sm:$0x33] }
 0x433   : > { %v4529_v50 = vpop.f32.mrf.mxu1  ;;  %v9449_v31 = vcombine.high %v12537_v51, %v12537_v51 }
 0x434   : > { %9337 = vmatmul.mubr.msk.bf16.gmra.mxu1 %vm4696_vm4, %v4959_v22  ;;  %v5153_v57 = vmul.f32 0.5, %v5121_v36 }
 0x435   : > { %v4532_v45 = vpop.f32.mrf.mxu1  ;;  %5714 = vmatprep.mubr.bf16.mxu1 %v13842_v2  ;;  %v4790_v59 = vld [vmem:[#allocation3 + $0xe0] ss:$2 sm:$0xff]  ;;  %v4854_v8 = vld [vmem:[#allocation3 + $0xe1] ss:$2 sm:$0xff]  ;;  %9450 = vmatprep.subr.msk.bf16.mxu0 %vm5303_vm2, %v9449_v31 }
 0x436   : > { %4728 = vst.msk [vmem:[#allocation3 + $0xf8] sm:$0xff] %vm4696_vm4, %v4532_v45  ;;  %v5178_v26 = vpack.c.bf16 %v5153_v57, %v5152_v62  ;;  %v4903_v23 = vadd.f32 %v4854_v8, %v4790_v59 }
 0x437   : > { %v4534_v60 = vpop.f32.mrf.mxu1 }
 0x438   : > { %9308 = vmatmul.mubr.msk.bf16.gmra.mxu0 %vm4696_vm4, %v5178_v26  ;;  %v4935_v55 = vmul.f32 0.5, %v4903_v23 }
 0x439   : > { %v4537_v32 = vpop.f32.mrf.mxu1  ;;  %5412 = vmatprep.mubr.bf16.mxu0 %v13842_v2  ;;  %v5009_v10 = vld [vmem:[#allocation3 + $0xe2] ss:$2 sm:$0xff]  ;;  %v5073_v21 = vld [vmem:[#allocation3 + $0xe3] ss:$2 sm:$0xff] }
 0x43a   : > { %4729 = vst.msk [vmem:[#allocation3 + $0x100] sm:$0xff] %vm4696_vm4, %v4537_v32  ;;  %v5122_v3 = vadd.f32 %v5073_v21, %v5009_v10 }
 0x43b   : > { %v4539_v6 = vpop.f32.mrf.mxu1 }
 0x43c   : > { %v5154_v18 = vmul.f32 0.5, %v5122_v3 }
 0x43d   : > { %v4542_v12 = vpop.f32.mrf.mxu1  ;;  %v4792_v16 = vld [vmem:[#allocation3 + $0xf0] ss:$2 sm:$0xff]  ;;  %v4856_v20 = vld [vmem:[#allocation3 + $0xf1] ss:$2 sm:$0xff] }
 0x43e   : > { %4730 = vst.msk [vmem:[#allocation3 + $0x108] sm:$0xff] %vm4696_vm4, %v4542_v12  ;;  %v4904_v25 = vadd.f32 %v4856_v20, %v4792_v16 }
 0x43f   : > { %v4544_v19 = vpop.f32.mrf.mxu1 }
 0x440   : > { %v4936_v41 = vmul.f32 0.5, %v4904_v25 }
 0x441   : > { %v4547_v43 = vpop.f32.mrf.mxu1  ;;  %v5011_v38 = vld [vmem:[#allocation3 + $0xf2] ss:$2 sm:$0xff]  ;;  %v5075_v5 = vld [vmem:[#allocation3 + $0xf3] ss:$2 sm:$0xff] }
 0x442   : > { %4731 = vst.msk [vmem:[#allocation3 + $0x110] sm:$0xff] %vm4696_vm4, %v4547_v43  ;;  %v4960_v39 = vpack.c.bf16 %v4936_v41, %v4935_v55  ;;  %v5123_v1 = vadd.f32 %v5075_v5, %v5011_v38 }
 0x443   : > { %v4549_v4 = vpop.f32.mrf.mxu1 }
 0x444   : > { %9338 = vmatmul.mubr.msk.bf16.gmra.mxu1 %vm4696_vm4, %v4960_v39  ;;  %v5155_v53 = vmul.f32 0.5, %v5123_v1 }
 0x445   : > { %v4552_v35 = vpop.f32.mrf.mxu1  ;;  %5724 = vmatprep.mubr.bf16.mxu1 %v13842_v2  ;;  %v4794_v14 = vld [vmem:[#allocation3 + $0x100] ss:$2 sm:$0xff]  ;;  %v4858_v63 = vld [vmem:[#allocation3 + $0x101] ss:$2 sm:$0xff] }
 0x446   : > { %4732 = vst.msk [vmem:[#allocation3 + $0x118] sm:$0xff] %vm4696_vm4, %v4552_v35  ;;  %v5179_v24 = vpack.c.bf16 %v5155_v53, %v5154_v18  ;;  %v4905_v46 = vadd.f32 %v4858_v63, %v4794_v14 }
 0x447   : > { %v4554_v37 = vpop.f32.mrf.mxu1 }
 0x448   : > { %9309 = vmatmul.mubr.msk.bf16.gmra.mxu0 %vm4696_vm4, %v5179_v24  ;;  %v4937_v28 = vmul.f32 0.5, %v4905_v46 }
 0x449   : > { %v4557_v30 = vpop.f32.mrf.mxu1  ;;  %5422 = vmatprep.mubr.bf16.mxu0 %v13842_v2  ;;  %v5013_v9 = vld [vmem:[#allocation3 + $0x102] ss:$2 sm:$0xff]  ;;  %v5077_v48 = vld [vmem:[#allocation3 + $0x103] ss:$2 sm:$0xff] }
 0x44a   : > { %4733 = vst.msk [vmem:[#allocation3 + $0x120] sm:$0xff] %vm4696_vm4, %v4557_v30  ;;  %v5124_v27 = vadd.f32 %v5077_v48, %v5013_v9 }
 0x44b   : > { %v4559_v56 = vpop.f32.mrf.mxu1 }
 0x44c   : > { %v5156_v49 = vmul.f32 0.5, %v5124_v27 }
 0x44d   : > { %v4562_v15 = vpop.f32.mrf.mxu1  ;;  %v4796_v33 = vld [vmem:[#allocation3 + $0x110] ss:$2 sm:$0xff]  ;;  %v4860_v0 = vld [vmem:[#allocation3 + $0x111] ss:$2 sm:$0xff] }
 0x44e   : > { %4734 = vst.msk [vmem:[#allocation3 + $0x128] sm:$0xff] %vm4696_vm4, %v4562_v15  ;;  %v4906_v22 = vadd.f32 %v4860_v0, %v4796_v33 }
 0x44f   : > { %v4564_v36 = vpop.f32.mrf.mxu1 }
 0x450   : > { %v4938_v50 = vmul.f32 0.5, %v4906_v22 }
 0x451   : > { %v4567_v42 = vpop.f32.mrf.mxu1  ;;  %v5015_v62 = vld [vmem:[#allocation3 + $0x112] ss:$2 sm:$0xff]  ;;  %v5079_v57 = vld [vmem:[#allocation3 + $0x113] ss:$2 sm:$0xff] }
 0x452   : > { %4735 = vst.msk [vmem:[#allocation3 + $0x130] sm:$0xff] %vm4696_vm4, %v4567_v42  ;;  %v4961_v45 = vpack.c.bf16 %v4938_v50, %v4937_v28  ;;  %v5125_v52 = vadd.f32 %v5079_v57, %v5015_v62 }
 0x453   : > { %v4569_v26 = vpop.f32.mrf.mxu1 }
 0x454   : > { %9339 = vmatmul.mubr.msk.bf16.gmra.mxu1 %vm4696_vm4, %v4961_v45  ;;  %v5157_v29 = vmul.f32 0.5, %v5125_v52 }
 0x455   : > { %v4572_v60 = vpop.f32.mrf.mxu1  ;;  %5734 = vmatprep.mubr.bf16.mxu1 %v13842_v2  ;;  %v4798_v59 = vld [vmem:[#allocation3 + $0x120] ss:$2 sm:$0xff]  ;;  %v4862_v8 = vld [vmem:[#allocation3 + $0x121] ss:$2 sm:$0xff] }
 0x456   : > { %4736 = vst.msk [vmem:[#allocation3 + $0x138] sm:$0xff] %vm4696_vm4, %v4572_v60  ;;  %v5180_v54 = vpack.c.bf16 %v5157_v29, %v5156_v49  ;;  %v4907_v17 = vadd.f32 %v4862_v8, %v4798_v59 }
 0x457   : > { %v4574_v11 = vpop.f32.mrf.mxu1 }
 0x458   : > { %9310 = vmatmul.mubr.msk.bf16.gmra.mxu0 %vm4696_vm4, %v5180_v54  ;;  %v4939_v25 = vmul.f32 0.5, %v4907_v17 }
 0x459   : > { %v4577_v32 = vpop.f32.mrf.mxu1  ;;  %5432 = vmatprep.mubr.bf16.mxu0 %v13842_v2  ;;  %v5017_v23 = vld [vmem:[#allocation3 + $0x122] ss:$2 sm:$0xff]  ;;  %v5081_v16 = vld [vmem:[#allocation3 + $0x123] ss:$2 sm:$0xff] }
 0x45a   : > { %4737 = vst.msk [vmem:[#allocation3 + $0x140] sm:$0xff] %vm4696_vm4, %v4577_v32  ;;  %v5126_v13 = vadd.f32 %v5081_v16, %v5017_v23 }
 0x45b   : > { %v4579_v6 = vpop.f32.mrf.mxu1 }
 0x45c   : > { %v5158_v5 = vmul.f32 0.5, %v5126_v13 }
 0x45d   : > { %v4582_v10 = vpop.f32.mrf.mxu1  ;;  %v4800_v34 = vld [vmem:[#allocation3 + $0x130] ss:$2 sm:$0xff]  ;;  %v4864_v12 = vld [vmem:[#allocation3 + $0x131] ss:$2 sm:$0xff] }
 0x45e   : > { %4738 = vst.msk [vmem:[#allocation3 + $0x148] sm:$0xff] %vm4696_vm4, %v4582_v10  ;;  %v4908_v20 = vadd.f32 %v4864_v12, %v4800_v34 }
 0x45f   : > { %v4584_v21 = vpop.f32.mrf.mxu1 }
 0x460   : > { %v4940_v19 = vmul.f32 0.5, %v4908_v20 }
 0x461   : > { %v4587_v55 = vpop.f32.mrf.mxu1  ;;  %v5019_v41 = vld [vmem:[#allocation3 + $0x132] ss:$2 sm:$0xff]  ;;  %v5083_v3 = vld [vmem:[#allocation3 + $0x133] ss:$2 sm:$0xff] }
 0x462   : > { %4739 = vst.msk [vmem:[#allocation3 + $0x150] sm:$0xff] %vm4696_vm4, %v4587_v55  ;;  %v4962_v40 = vpack.c.bf16 %v4940_v19, %v4939_v25  ;;  %v5127_v43 = vadd.f32 %v5083_v3, %v5019_v41 }
 0x463   : > { %v4589_v38 = vpop.f32.mrf.mxu1 }
 0x464   : > { %9340 = vmatmul.mubr.msk.bf16.gmra.mxu1 %vm4696_vm4, %v4962_v40  ;;  %v5159_v39 = vmul.f32 0.5, %v5127_v43 }
 0x465   : > { %v4592_v1 = vpop.f32.mrf.mxu1  ;;  %5744 = vmatprep.mubr.bf16.mxu1 %v13842_v2  ;;  %v4802_v53 = vld [vmem:[#allocation3 + $0x140] ss:$2 sm:$0xff]  ;;  %v4866_v58 = vld [vmem:[#allocation3 + $0x141] ss:$2 sm:$0xff] }
 0x466   : > { %4740 = vst.msk [vmem:[#allocation3 + $0x158] sm:$0xff] %vm4696_vm4, %v4592_v1  ;;  %v5181_v4 = vpack.c.bf16 %v5159_v39, %v5158_v5  ;;  %v4909_v24 = vadd.f32 %v4866_v58, %v4802_v53 }
 0x467   : > { %v4594_v61 = vpop.f32.mrf.mxu1 }
 0x468   : > { %9311 = vmatmul.mubr.msk.bf16.gmra.mxu0 %vm4696_vm4, %v5181_v4  ;;  %v4941_v46 = vmul.f32 0.5, %v4909_v24 }
 0x469   : > { %v4597_v18 = vpop.f32.mrf.mxu1  ;;  %5442 = vmatprep.mubr.bf16.mxu0 %v13842_v2  ;;  %v5021_v37 = vld [vmem:[#allocation3 + $0x142] ss:$2 sm:$0xff]  ;;  %v5085_v14 = vld [vmem:[#allocation3 + $0x143] ss:$2 sm:$0xff] }
 0x46a   : > { %4741 = vst.msk [vmem:[#allocation3 + $0x160] sm:$0xff] %vm4696_vm4, %v4597_v18  ;;  %v5128_v15 = vadd.f32 %v5085_v14, %v5021_v37 }
 0x46b   : > { %v4599_v35 = vpop.f32.mrf.mxu1 }
 0x46c   : > { %v5160_v28 = vmul.f32 0.5, %v5128_v15 }
 0x46d   : > { %v4602_v47 = vpop.f32.mrf.mxu1  ;;  %v4804_v44 = vld [vmem:[#allocation3 + $0x150] ss:$2 sm:$0xff]  ;;  %v4868_v30 = vld [vmem:[#allocation3 + $0x151] ss:$2 sm:$0xff] }
 0x46e   : > { %4742 = vst.msk [vmem:[#allocation3 + $0x168] sm:$0xff] %vm4696_vm4, %v4602_v47  ;;  %v4910_v63 = vadd.f32 %v4868_v30, %v4804_v44 }
 0x46f   : > { %v4604_v56 = vpop.f32.mrf.mxu1 }
 0x470   : > { %v4942_v9 = vmul.f32 0.5, %v4910_v63 }
 0x471   : > { %v4607_v33 = vpop.f32.mrf.mxu1  ;;  %v5023_v0 = vld [vmem:[#allocation3 + $0x152] ss:$2 sm:$0xff]  ;;  %v5087_v48 = vld [vmem:[#allocation3 + $0x153] ss:$2 sm:$0xff] }
 0x472   : > { %4743 = vst.msk [vmem:[#allocation3 + $0x170] sm:$0xff] %vm4696_vm4, %v4607_v33  ;;  %v4963_v31 = vpack.c.bf16 %v4942_v9, %v4941_v46  ;;  %v5129_v22 = vadd.f32 %v5087_v48, %v5023_v0 }
 0x473   : > { %v4609_v36 = vpop.f32.mrf.mxu1 }
 0x474   : > { %9341 = vmatmul.mubr.msk.bf16.gmra.mxu1 %vm4696_vm4, %v4963_v31  ;;  %v5161_v50 = vmul.f32 0.5, %v5129_v22 }
 0x475   : > { %v4612_v27 = vpop.f32.mrf.mxu1  ;;  %5754 = vmatprep.mubr.bf16.mxu1 %v13842_v2  ;;  %v4806_v45 = vld [vmem:[#allocation3 + $0x160] ss:$2 sm:$0xff]  ;;  %v4870_v52 = vld [vmem:[#allocation3 + $0x161] ss:$2 sm:$0xff] }
 0x476   : > { %4744 = vst.msk [vmem:[#allocation3 + $0x178] sm:$0xff] %vm4696_vm4, %v4612_v27  ;;  %v5182_v42 = vpack.c.bf16 %v5161_v50, %v5160_v28  ;;  %v4911_v49 = vadd.f32 %v4870_v52, %v4806_v45 }
 0x477   : > { %v4614_v62 = vpop.f32.mrf.mxu1 }
 0x478   : > { %9312 = vmatmul.mubr.msk.bf16.gmra.mxu0 %vm4696_vm4, %v5182_v42  ;;  %v4943_v6 = vmul.f32 0.5, %v4911_v49 }
 0x479   : > { %v4617_v57 = vpop.f32.mrf.mxu1  ;;  %5452 = vmatprep.mubr.bf16.mxu0 %v13842_v2  ;;  %v5025_v29 = vld [vmem:[#allocation3 + $0x162] ss:$2 sm:$0xff]  ;;  %v5089_v32 = vld [vmem:[#allocation3 + $0x163] ss:$2 sm:$0xff] }
 0x47a   : > { %4745 = vst.msk [vmem:[#allocation3 + $0x180] sm:$0xff] %vm4696_vm4, %v4617_v57  ;;  %v5130_v23 = vadd.f32 %v5089_v32, %v5025_v29 }
 0x47b   : > { %v4619_v26 = vpop.f32.mrf.mxu1 }
 0x47c   : > { %v5162_v25 = vmul.f32 0.5, %v5130_v23 }
 0x47d   : > { %v4622_v60 = vpop.f32.mrf.mxu1  ;;  %v4808_v54 = vld [vmem:[#allocation3 + $0x170] ss:$2 sm:$0xff]  ;;  %v4872_v11 = vld [vmem:[#allocation3 + $0x171] ss:$2 sm:$0xff] }
 0x47e   : > { %4746 = vst.msk [vmem:[#allocation3 + $0x188] sm:$0xff] %vm4696_vm4, %v4622_v60  ;;  %v4912_v59 = vadd.f32 %v4872_v11, %v4808_v54 }
 0x47f   : > { %v4624_v8 = vpop.f32.mrf.mxu1 }
 0x480   : > { %v4944_v17 = vmul.f32 0.5, %v4912_v59 }
 0x481   : > { %v4627_v10 = vpop.f32.mrf.mxu1  ;;  %v5027_v34 = vld [vmem:[#allocation3 + $0x172] ss:$2 sm:$0xff]  ;;  %v5091_v12 = vld [vmem:[#allocation3 + $0x173] ss:$2 sm:$0xff] }
 0x482   : > { %4747 = vst.msk [vmem:[#allocation3 + $0x190] sm:$0xff] %vm4696_vm4, %v4627_v10  ;;  %v4964_v16 = vpack.c.bf16 %v4944_v17, %v4943_v6  ;;  %v5131_v20 = vadd.f32 %v5091_v12, %v5027_v34 }
 0x483   : > { %v4629_v21 = vpop.f32.mrf.mxu1 }
 0x484   : > { %9342 = vmatmul.mubr.msk.bf16.gmra.mxu1 %vm4696_vm4, %v4964_v16  ;;  %v5163_v19 = vmul.f32 0.5, %v5131_v20 }
 0x485   : > { %v4632_v13 = vpop.f32.mrf.mxu1  ;;  %5764 = vmatprep.mubr.bf16.mxu1 %v13842_v2  ;;  %v4810_v40 = vld [vmem:[#allocation3 + $0x180] ss:$2 sm:$0xff]  ;;  %v4874_v43 = vld [vmem:[#allocation3 + $0x181] ss:$2 sm:$0xff] }
 0x486   : > { %4748 = vst.msk [vmem:[#allocation3 + $0x198] sm:$0xff] %vm4696_vm4, %v4632_v13  ;;  %v5183_v55 = vpack.c.bf16 %v5163_v19, %v5162_v25  ;;  %v4913_v5 = vadd.f32 %v4874_v43, %v4810_v40 }
 0x487   : > { %v4634_v41 = vpop.f32.mrf.mxu1 }
 0x488   : > { %9313 = vmatmul.mubr.msk.bf16.gmra.mxu0 %vm4696_vm4, %v5183_v55  ;;  %v4945_v35 = vmul.f32 0.5, %v4913_v5 }
 0x489   : > { %v4637_v3 = vpop.f32.mrf.mxu1  ;;  %5462 = vmatprep.mubr.bf16.mxu0 %v13842_v2  ;;  %v5029_v39 = vld [vmem:[#allocation3 + $0x182] ss:$2 sm:$0xff]  ;;  %v5093_v18 = vld [vmem:[#allocation3 + $0x183] ss:$2 sm:$0xff] }
 0x48a   : > { %4749 = vst.msk [vmem:[#allocation3 + $0x1a0] sm:$0xff] %vm4696_vm4, %v4637_v3  ;;  %v5132_v37 = vadd.f32 %v5093_v18, %v5029_v39 }
 0x48b   : > { %v4639_v38 = vpop.f32.mrf.mxu1 }
 0x48c   : > { %v5164_v46 = vmul.f32 0.5, %v5132_v37 }
 0x48d   : > { %v4642_v1 = vpop.f32.mrf.mxu1  ;;  %v4812_v4 = vld [vmem:[#allocation3 + $0x190] ss:$2 sm:$0xff]  ;;  %v4876_v61 = vld [vmem:[#allocation3 + $0x191] ss:$2 sm:$0xff] }
 0x48e   : > { %4750 = vst.msk [vmem:[#allocation3 + $0x1a8] sm:$0xff] %vm4696_vm4, %v4642_v1  ;;  %v4914_v53 = vadd.f32 %v4876_v61, %v4812_v4 }
 0x48f   : > { %v4644_v58 = vpop.f32.mrf.mxu1 }
 0x490   : > { %v4946_v24 = vmul.f32 0.5, %v4914_v53 }
 0x491   : > { %v4647_v47 = vpop.f32.mrf.mxu1  ;;  %v5031_v44 = vld [vmem:[#allocation3 + $0x192] ss:$2 sm:$0xff]  ;;  %v5095_v30 = vld [vmem:[#allocation3 + $0x193] ss:$2 sm:$0xff] }
 0x492   : > { %4751 = vst.msk [vmem:[#allocation3 + $0x1b0] sm:$0xff] %vm4696_vm4, %v4647_v47  ;;  %v4965_v14 = vpack.c.bf16 %v4946_v24, %v4945_v35  ;;  %v5133_v63 = vadd.f32 %v5095_v30, %v5031_v44 }
 0x493   : > { %v4649_v56 = vpop.f32.mrf.mxu1 }
 0x494   : > { %9343 = vmatmul.mubr.msk.bf16.gmra.mxu1 %vm4696_vm4, %v4965_v14  ;;  %v5165_v9 = vmul.f32 0.5, %v5133_v63 }
 0x495   : > { %v4652_v15 = vpop.f32.mrf.mxu1  ;;  %5774 = vmatprep.mubr.bf16.mxu1 %v13842_v2  ;;  %v4814_v31 = vld [vmem:[#allocation3 + $0x1a0] ss:$2 sm:$0xff]  ;;  %v4878_v22 = vld [vmem:[#allocation3 + $0x1a1] ss:$2 sm:$0xff] }
 0x496   : > { %4752 = vst.msk [vmem:[#allocation3 + $0x1b8] sm:$0xff] %vm4696_vm4, %v4652_v15  ;;  %v5184_v33 = vpack.c.bf16 %v5165_v9, %v5164_v46  ;;  %v4915_v28 = vadd.f32 %v4878_v22, %v4814_v31 }
 0x497   : > { %v4654_v0 = vpop.f32.mrf.mxu1 }
 0x498   : > { %9314 = vmatmul.mubr.msk.bf16.gmra.mxu0 %vm4696_vm4, %v5184_v33  ;;  %v12584_v26 = vpop.f32.mrf.mxu0  ;;  %v4947_v49 = vmul.f32 0.5, %v4915_v28 }
 0x499   : > { %v4657_v48 = vpop.f32.mrf.mxu1  ;;  %5472 = vmatprep.mubr.bf16.mxu0 %v13842_v2  ;;  %v5033_v50 = vld [vmem:[#allocation3 + $0x1a2] ss:$2 sm:$0xff]  ;;  %v5097_v57 = vld [vmem:[#allocation3 + $0x1a3] ss:$2 sm:$0xff] }
 0x49a   : > { %4753 = vst.msk [vmem:[#allocation3 + $0x1c0] sm:$0xff] %vm4696_vm4, %v4657_v48  ;;  %v5134_v60 = vadd.f32 %v5097_v57, %v5033_v50  ;;  %v5346_v17 = vpop.f32.mrf.mxu0 }
 0x49b   : > { %v4659_v36 = vpop.f32.mrf.mxu1 }
 0x49c   : > { %v5166_v23 = vmul.f32 0.5, %v5134_v60  ;;  %v5348_v20 = vpop.f32.mrf.mxu0  ;;  %v5806_v60 = vld [vmem:[#allocation3 + $0x4] ss:$2 sm:$0xff] }
 0x49d   : > { %v4662_v27 = vpop.f32.mrf.mxu1  ;;  %v4816_v42 = vld [vmem:[#allocation3 + $0x1b0] ss:$2 sm:$0xff]  ;;  %v4880_v62 = vld [vmem:[#allocation3 + $0x1b1] ss:$2 sm:$0xff] }
 0x49e   : > { %4754 = vst.msk [vmem:[#allocation3 + $0x1c8] sm:$0xff] %vm4696_vm4, %v4662_v27  ;;  %v4916_v45 = vadd.f32 %v4880_v62, %v4816_v42  ;;  %v12593_v55 = vpop.f32.mrf.mxu0 }
 0x49f   : > { %v4664_v52 = vpop.f32.mrf.mxu1  ;;  %14266 = vst [vmem:[#allocation89_spill] sm:$0xff] %v12593_v55 }
 0x4a0   : > { %v4948_v29 = vmul.f32 0.5, %v4916_v45 }
 0x4a1   : > { %v4667_v54 = vpop.f32.mrf.mxu1  ;;  %v5035_v11 = vld [vmem:[#allocation3 + $0x1b2] ss:$2 sm:$0xff]  ;;  %v5099_v32 = vld [vmem:[#allocation3 + $0x1b3] ss:$2 sm:$0xff] }
 0x4a2   : > { %4755 = vst.msk [vmem:[#allocation3 + $0x1d0] sm:$0xff] %vm4696_vm4, %v4667_v54  ;;  %v4966_v59 = vpack.c.bf16 %v4948_v29, %v4947_v49  ;;  %v5135_v8 = vadd.f32 %v5099_v32, %v5035_v11 }
 0x4a3   : > { %v4669_v6 = vpop.f32.mrf.mxu1 }
 0x4a4   : > { %9344 = vmatmul.mubr.msk.bf16.gmra.mxu1 %vm4696_vm4, %v4966_v59  ;;  %v5167_v10 = vmul.f32 0.5, %v5135_v8  ;;  %v5808_v59 = vld [vmem:[#allocation3 + $0x14] ss:$2 sm:$0xff] }
 0x4a5   : > { %v4672_v34 = vpop.f32.mrf.mxu1  ;;  %5784 = vmatprep.mubr.bf16.mxu1 %v13842_v2  ;;  %v4818_v25 = vld [vmem:[#allocation3 + $0x1c0] ss:$2 sm:$0xff]  ;;  %v4882_v19 = vld [vmem:[#allocation3 + $0x1c1] ss:$2 sm:$0xff] }
 0x4a6   : > { %4756 = vst.msk [vmem:[#allocation3 + $0x1d8] sm:$0xff] %vm4696_vm4, %v4672_v34  ;;  %v5185_v12 = vpack.c.bf16 %v5167_v10, %v5166_v23  ;;  %v4917_v41 = vadd.f32 %v4882_v19, %v4818_v25  ;;  %v5870_v23 = vld [vmem:[#allocation3 + $0x5] ss:$2 sm:$0xff]  ;;  %v6394_v10 = vld [vmem:[#allocation3 + $0x16] ss:$2 sm:$0xff] }
 0x4a7   : > { %v4674_v16 = vpop.f32.mrf.mxu1 }
 0x4a8   : > { %9315 = vmatmul.mubr.msk.bf16.gmra.mxu0 %vm4696_vm4, %v5185_v12  ;;  %v5354_v39 = vpop.f32.mrf.mxu0  ;;  %v4949_v61 = vmul.f32 0.5, %v4917_v41 }
 0x4a9   : > { %v4677_v21 = vpop.f32.mrf.mxu1  ;;  %5482 = vmatprep.mubr.bf16.mxu0 %v13842_v2  ;;  %v5037_v3 = vld [vmem:[#allocation3 + $0x1c2] ss:$2 sm:$0xff]  ;;  %v5101_v5 = vld [vmem:[#allocation3 + $0x1c3] ss:$2 sm:$0xff] }
 0x4aa   : > { %4757 = vst.msk [vmem:[#allocation3 + $0x1e0] sm:$0xff] %vm4696_vm4, %v4677_v21  ;;  %v5136_v53 = vadd.f32 %v5101_v5, %v5037_v3  ;;  %v5356_v37 = vpop.f32.mrf.mxu0  ;;  %v5933_v3 = vadd.f32 %v5870_v23, %v5806_v60 }
 0x4ab   : > { %v4679_v13 = vpop.f32.mrf.mxu1 }
 0x4ac   : > { %v5168_v14 = vmul.f32 0.5, %v5136_v53  ;;  %v5358_v46 = vpop.f32.mrf.mxu0 }
 0x4ad   : > { %v4682_v40 = vpop.f32.mrf.mxu1  ;;  %v4820_v43 = vld [vmem:[#allocation3 + $0x1d0] ss:$2 sm:$0xff]  ;;  %v4884_v38 = vld [vmem:[#allocation3 + $0x1d1] ss:$2 sm:$0xff] }
 0x4ae   : > { %4758 = vst.msk [vmem:[#allocation3 + $0x1e8] sm:$0xff] %vm4696_vm4, %v4682_v40  ;;  %v4918_v1 = vadd.f32 %v4884_v38, %v4820_v43  ;;  %v12602_v31 = vpop.f32.mrf.mxu0  ;;  %v6392_v40 = vld [vmem:[#allocation3 + $0x6] ss:$2 sm:$0xff]  ;;  %v6456_v43 = vld [vmem:[#allocation3 + $0x7] ss:$2 sm:$0xff] }
 0x4af   : > { %v4684_v4 = vpop.f32.mrf.mxu1  ;;  %14267 = vst [vmem:[#allocation90_spill] sm:$0xff] %v12602_v31 }
 0x4b0   : > { %v4950_v18 = vmul.f32 0.5, %v4918_v1 }
 0x4b1   : > { %v4687_v58 = vpop.f32.mrf.mxu1  ;;  %v5039_v35 = vld [vmem:[#allocation3 + $0x1d2] ss:$2 sm:$0xff]  ;;  %v5103_v24 = vld [vmem:[#allocation3 + $0x1d3] ss:$2 sm:$0xff] }
 0x4b2   : > { %4759 = vst.msk [vmem:[#allocation3 + $0x1f0] sm:$0xff] %vm4696_vm4, %v4687_v58  ;;  %v4967_v47 = vpack.c.bf16 %v4950_v18, %v4949_v61  ;;  %v5137_v44 = vadd.f32 %v5103_v24, %v5039_v35  ;;  %v5965_v35 = vmul.f32 0.5, %v5933_v3  ;;  %v5878_v3 = vld [vmem:[#allocation3 + $0x45] ss:$2 sm:$0xff] }
 0x4b3   : > { %v4689_v30 = vpop.f32.mrf.mxu1 }
 0x4b4   : > { %9345 = vmatmul.mubr.msk.bf16.gmra.mxu1 %vm4696_vm4, %v4967_v47  ;;  %v5169_v63 = vmul.f32 0.5, %v5137_v44  ;;  %v9448_v47 = vcombine.low %v12537_v51, %v12537_v51  ;;  %v5876_v30 = vld [vmem:[#allocation3 + $0x35] ss:$2 sm:$0xff]  ;;  %v6396_v51 = vld [vmem:[#allocation3 + $0x26] ss:$2 sm:$0xff] }
 0x4b5   : > { %v4692_v56 = vpop.f32.mrf.mxu1  ;;  %5794 = vmatprep.mubr.bf16.mxu1 %v13842_v2  ;;  %v4822_v36 = vld [vmem:[#allocation3 + $0x1e0] ss:$2 sm:$0xff]  ;;  %v4886_v28 = vld [vmem:[#allocation3 + $0x1e1] ss:$2 sm:$0xff] }
 0x4b6   : > { %4760 = vst.msk [vmem:[#allocation3 + $0x1f8] sm:$0xff] %vm4696_vm4, %v4692_v56  ;;  %v5186_v9 = vpack.c.bf16 %v5169_v63, %v5168_v14  ;;  %v4919_v29 = vadd.f32 %v4886_v28, %v4822_v36  ;;  %v6398_v14 = vld [vmem:[#allocation3 + $0x36] ss:$2 sm:$0xff]  ;;  %v6462_v63 = vld [vmem:[#allocation3 + $0x37] ss:$2 sm:$0xff]  ;;  %v7301_v28 = vsel %vm5303_vm2, %v9448_v47, 0 }
 0x4b7   : > { %v4694_v15 = vpop.f32.mrf.mxu1 }
 0x4b8   : > { %9316 = vmatmul.mubr.msk.bf16.gmra.mxu0 %vm4696_vm4, %v5186_v9  ;;  %v5364_v27 = vpop.f32.mrf.mxu0  ;;  %v4951_v25 = vmul.f32 0.5, %v4919_v29 }
 0x4b9   : > { %v5646_v33 = vpop.f32.mrf.mxu1  ;;  %5492 = vmatprep.mubr.bf16.mxu0 %v13842_v2  ;;  %v5041_v0 = vld [vmem:[#allocation3 + $0x1e2] ss:$2 sm:$0xff]  ;;  %v5105_v48 = vld [vmem:[#allocation3 + $0x1e3] ss:$2 sm:$0xff] }
 0x4ba   : > { %v12605_v22 = vadd.f32 %v5646_v33, %v12584_v26  ;;  %v5138_v62 = vadd.f32 %v5105_v48, %v5041_v0  ;;  %v5872_v26 = vld [vmem:[#allocation3 + $0x15] ss:$2 sm:$0xff]  ;;  %v5366_v34 = vpop.f32.mrf.mxu0  ;;  %v5874_v0 = vld [vmem:[#allocation3 + $0x25] ss:$2 sm:$0xff] }
 0x4bb   : > { %v5648_v50 = vpop.f32.mrf.mxu1  ;;  %v5934_v13 = vadd.f32 %v5872_v26, %v5808_v59 }
 0x4bc   : > { %v12607_v42 = vadd.f32 %v5648_v50, %v5346_v17  ;;  %v6458_v17 = vld [vmem:[#allocation3 + $0x17] ss:$2 sm:$0xff]  ;;  %v5170_v12 = vmul.f32 0.5, %v5138_v62  ;;  %v5368_v4 = vpop.f32.mrf.mxu0  ;;  %v6460_v62 = vld [vmem:[#allocation3 + $0x27] ss:$2 sm:$0xff] }
 0x4bd   : > { %v5650_v57 = vpop.f32.mrf.mxu1  ;;  %v5043_v45 = vld [vmem:[#allocation3 + $0x1f2] ss:$2 sm:$0xff]  ;;  %v5107_v52 = vld [vmem:[#allocation3 + $0x1f3] ss:$2 sm:$0xff]  ;;  %v6520_v38 = vadd.f32 %v6458_v17, %v6394_v10  ;;  %v5966_v53 = vmul.f32 0.5, %v5934_v13 }
 0x4be   : > { %v4824_v49 = vld [vmem:[#allocation3 + $0x1f0] ss:$2 sm:$0xff]  ;;  %v12609_v54 = vadd.f32 %v5650_v57, %v5348_v20  ;;  %v5139_v11 = vadd.f32 %v5107_v52, %v5043_v45  ;;  %v4888_v32 = vld [vmem:[#allocation3 + $0x1f1] ss:$2 sm:$0xff]  ;;  %v12627_v56 = vpop.f32.mrf.mxu0  ;;  %v6522_v57 = vadd.f32 %v6462_v63, %v6398_v14 }
 0x4bf   : > { %v12611_v8 = vpop.f32.mrf.mxu1  ;;  %v4920_v6 = vadd.f32 %v4888_v32, %v4824_v49  ;;  %v6552_v24 = vmul.f32 0.5, %v6520_v38  ;;  %14270 = vst [vmem:[#allocation93_spill] sm:$0xff] %v12627_v56  ;;  %v5997_v15 = vpack.c.bf16 %v5966_v53, %v5965_v35  ;;  %v9853_v49 = vld [vmem:[%s13790_s4 + $0x1a4] ss:$8 sps:$4 sm:$0xff]   ;;  %v9851_v32 = vld [vmem:[%s13790_s4 + $0x1a0] ss:$8 sps:$4 sm:$0xff]  }
 0x4c0   : > { %14268 = vst [vmem:[#allocation91_spill] sm:$0xff] %v12611_v8  ;;  %v5171_v16 = vmul.f32 0.5, %v5139_v11  ;;  %v6521_v11 = vadd.f32 %v6460_v62, %v6396_v51  ;;  %v6554_v23 = vmul.f32 0.5, %v6522_v57  ;;  %v5816_v10 = vld [vmem:[#allocation3 + $0x54] ss:$2 sm:$0xff] }
 0x4c1   : > { %v5656_v21 = vpop.f32.mrf.mxu1  ;;  %v4952_v19 = vmul.f32 0.5, %v4920_v6  ;;  %v9856_v17 = vld [vmem:[%s13790_s4 + $0x194] ss:$8 sps:$4 sm:$0xff]   ;;  %v9854_v53 = vld [vmem:[%s13790_s4 + $0x190] ss:$8 sps:$4 sm:$0xff]  }
 0x4c2   : > { %v12613_v41 = vadd.f32 %v5656_v21, %v5354_v39  ;;  %v5187_v20 = vpack.c.bf16 %v5171_v16, %v5170_v12  ;;  %v6519_v39 = vadd.f32 %v6456_v43, %v6392_v40  ;;  %v5880_v12 = vld [vmem:[#allocation3 + $0x55] ss:$2 sm:$0xff]  ;;  %v6402_v16 = vld [vmem:[#allocation3 + $0x56] ss:$2 sm:$0xff]  ;;  %v6553_v13 = vmul.f32 0.5, %v6521_v11 }
 0x4c3   : > { %v5658_v5 = vpop.f32.mrf.mxu1  ;;  %v4968_v1 = vpack.c.bf16 %v4952_v19, %v4951_v25  ;;  %v6466_v21 = vld [vmem:[#allocation3 + $0x57] ss:$2 sm:$0xff]  ;;  %v6406_v57 = vld [vmem:[#allocation3 + $0x76] ss:$2 sm:$0xff] }
 0x4c4   : > { %v12615_v61 = vadd.f32 %v5658_v5, %v5356_v37  ;;  %9317 = vmatmul.mubr.msk.bf16.gmra.mxu0 %vm4696_vm4, %v5187_v20  ;;  %v5812_v37 = vld [vmem:[#allocation3 + $0x34] ss:$2 sm:$0xff]  ;;  %v6551_v33 = vmul.f32 0.5, %v6519_v39  ;;  %v5814_v20 = vld [vmem:[#allocation3 + $0x44] ss:$2 sm:$0xff]  ;;  %v5938_v5 = vadd.f32 %v5880_v12, %v5816_v10  ;;  %v6584_v35 = vpack.c.bf16 %v6554_v23, %v6553_v13 }
 0x4c5   : > { %9346 = vmatmul.mubr.msk.bf16.gmra.mxu1 %vm4696_vm4, %v4968_v1  ;;  %v5660_v18 = vpop.f32.mrf.mxu1  ;;  %6166 = vmatprep.mubr.bf16.mxu0 %v13842_v2  ;;  %v5936_v50 = vadd.f32 %v5876_v30, %v5812_v37  ;;  %v6400_v1 = vld [vmem:[#allocation3 + $0x46] ss:$2 sm:$0xff]  ;;  %v5937_v37 = vadd.f32 %v5878_v3, %v5814_v20  ;;  %v6468_v10 = vld [vmem:[#allocation3 + $0x67] ss:$2 sm:$0xff] }
 0x4c6   : > { %v12620_v58 = vadd.f32 %v5660_v18, %v5358_v46  ;;  %6752 = vmatprep.mubr.bf16.mxu1 %v13842_v2  ;;  %v5810_v46 = vld [vmem:[#allocation3 + $0x24] ss:$2 sm:$0xff]  ;;  %v6583_v52 = vpack.c.bf16 %v6552_v24, %v6551_v33  ;;  %v6524_v18 = vadd.f32 %v6466_v21, %v6402_v16 }
 0x4c7   : > { %v12625_v44 = vpop.f32.mrf.mxu1  ;;  %v5935_v60 = vadd.f32 %v5874_v0, %v5810_v46  ;;  %v5968_v6 = vmul.f32 0.5, %v5936_v50  ;;  %v9859_v24 = vld [vmem:[%s13790_s4 + $0x184] ss:$8 sps:$4 sm:$0xff]   ;;  %v9857_v46 = vld [vmem:[%s13790_s4 + $0x180] ss:$8 sps:$4 sm:$0xff]   ;;  %v5969_v62 = vmul.f32 0.5, %v5937_v37 }
 0x4c8   : > { %14269 = vst [vmem:[#allocation92_spill] sm:$0xff] %v12625_v44  ;;  %v5374_v48 = vpop.f32.mrf.mxu0  ;;  %v6556_v33 = vmul.f32 0.5, %v6524_v18  ;;  %v9862_v50 = vld [vmem:[%s13790_s4 + $0x174] ss:$8 sps:$4 sm:$0xff]  }
 0x4c9   : > { %v5666_v9 = vpop.f32.mrf.mxu1  ;;  %v5967_v25 = vmul.f32 0.5, %v5935_v60  ;;  %v5818_v60 = vld [vmem:[#allocation3 + $0x64] ss:$2 sm:$0xff]  ;;  %v5888_v18 = vld [vmem:[#allocation3 + $0x95] ss:$2 sm:$0xff] }
 0x4ca   : > { %v12629_v36 = vadd.f32 %v5666_v9, %v5364_v27  ;;  %v5376_v59 = vpop.f32.mrf.mxu0  ;;  %v6404_v23 = vld [vmem:[#allocation3 + $0x66] ss:$2 sm:$0xff] }
 0x4cb   : > { %v5668_v45 = vpop.f32.mrf.mxu1  ;;  %v5998_v38 = vpack.c.bf16 %v5968_v6, %v5967_v25  ;;  %v9865_v25 = vld [vmem:[%s13790_s4 + $0x164] ss:$8 sps:$4 sm:$0xff]   ;;  %v6525_v3 = vadd.f32 %v6468_v10, %v6404_v23 }
 0x4cc   : > { %v12635_v29 = vadd.f32 %v5668_v45, %v5366_v34  ;;  %9371 = vmatmul.mubr.msk.bf16.vlgmr.msra.gmra.mxu0 %vm4696_vm4, %v5997_v15  ;;  %v5378_v40 = vpop.f32.mrf.mxu0  ;;  %v5970_v15 = vmul.f32 0.5, %v5938_v5  ;;  %v6470_v45 = vld [vmem:[#allocation3 + $0x77] ss:$2 sm:$0xff]  ;;  %v5822_v37 = vld [vmem:[#allocation3 + $0x84] ss:$2 sm:$0xff] }
 0x4cd   : > { %9411 = vmatmul.mubr.msk.bf16.vlgmr.msra.gmra.mxu1 %vm4696_vm4, %v6583_v52  ;;  %7311 = vmatpush1.bf16.msra.mxu0 %v7301_v28  ;;  %v5670_v27 = vpop.f32.mrf.mxu1  ;;  %v5884_v28 = vld [vmem:[#allocation3 + $0x75] ss:$2 sm:$0xff]  ;;  %v6526_v21 = vadd.f32 %v6470_v45, %v6406_v57  ;;  %v6414_v10 = vld [vmem:[#allocation3 + $0xb6] ss:$2 sm:$0xff] }
 0x4ce   : > { %v12642_v26 = vadd.f32 %v5670_v27, %v5368_v4  ;;  %6176 = vmatprep.mubr.bf16.mxu0 %v13842_v2  ;;  %6762 = vmatprep.mubr.bf16.mxu1 %v13842_v2  ;;  %v6464_v4 = vld [vmem:[#allocation3 + $0x47] ss:$2 sm:$0xff]  ;;  %v12664_v63 = vpop.f32.mrf.mxu0  ;;  %v9863_v5 = vld [vmem:[%s13790_s4 + $0x160] ss:$8 sps:$4 sm:$0xff]  }
 0x4cf   : > { %v12649_v34 = vpop.f32.mrf.mxu1  ;;  %7312 = vmatprep.subr.bf16.mxu0 %v9853_v49  ;;  %v6523_v14 = vadd.f32 %v6464_v4, %v6400_v1  ;;  %14272 = vst [vmem:[#allocation105_spill] sm:$0xff] %v12664_v63  ;;  %v5882_v27 = vld [vmem:[#allocation3 + $0x65] ss:$2 sm:$0xff]  ;;  %v6558_v1 = vmul.f32 0.5, %v6526_v21  ;;  %v5824_v4 = vld [vmem:[#allocation3 + $0x94] ss:$2 sm:$0xff] }
 0x4d0   : > { %14271 = vst [vmem:[#allocation94_spill] sm:$0xff] %v12649_v34  ;;  %v5939_v13 = vadd.f32 %v5882_v27, %v5818_v60  ;;  %v5828_v60 = vld [vmem:[#allocation3 + $0xb4] ss:$2 sm:$0xff]  ;;  %v5892_v27 = vld [vmem:[#allocation3 + $0xb5] ss:$2 sm:$0xff]  ;;  %v7717_v63 = vld [vmem:[%s13792_s6 + $0x70] sm:$0xff] }
 0x4d1   : > { %v5676_v19 = vpop.f32.mrf.mxu1  ;;  %7313 = vmatpush1.bf16.msra.mxu0 %v9851_v32  ;;  %v6555_v49 = vmul.f32 0.5, %v6523_v14 }
 0x4d2   : > { %v12651_v43 = vadd.f32 %v5676_v19, %v5374_v48  ;;  %7314 = vmatprep.subr.bf16.mxu0 %v9856_v17  ;;  %v5820_v48 = vld [vmem:[#allocation3 + $0x74] ss:$2 sm:$0xff]  ;;  %v9860_v17 = vld [vmem:[%s13790_s4 + $0x170] ss:$8 sps:$4 sm:$0xff]  }
 0x4d3   : > { %v5678_v39 = vpop.f32.mrf.mxu1  ;;  %v5940_v6 = vadd.f32 %v5884_v28, %v5820_v48  ;;  %v6585_v16 = vpack.c.bf16 %v6556_v33, %v6555_v49  ;;  %v5942_v33 = vadd.f32 %v5888_v18, %v5824_v4  ;;  %v6472_v48 = vld [vmem:[#allocation3 + $0x87] ss:$2 sm:$0xff] }
 0x4d4   : > { %v12659_v47 = vadd.f32 %v5678_v39, %v5376_v59  ;;  %9372 = vmatmul.mubr.msk.bf16.gmra.mxu0 %vm4696_vm4, %v5998_v38  ;;  %v5999_v59 = vpack.c.bf16 %v5970_v15, %v5969_v62  ;;  %v6410_v39 = vld [vmem:[#allocation3 + $0x96] ss:$2 sm:$0xff] }
 0x4d5   : > { %9412 = vmatmul.mubr.msk.bf16.gmra.mxu1 %vm4696_vm4, %v6584_v35  ;;  %v5680_v30 = vpop.f32.mrf.mxu1  ;;  %6186 = vmatprep.mubr.bf16.mxu0 %v13842_v2  ;;  %v5972_v38 = vmul.f32 0.5, %v5940_v6  ;;  %v6474_v35 = vld [vmem:[#allocation3 + $0x97] ss:$2 sm:$0xff] }
 0x4d6   : > { %v12666_v9 = vadd.f32 %v5680_v30, %v5378_v40  ;;  %6772 = vmatprep.mubr.bf16.mxu1 %v13842_v2  ;;  %7315 = vmatpush1.bf16.msra.mxu0 %v9854_v53  ;;  %v5971_v53 = vmul.f32 0.5, %v5939_v13  ;;  %v5886_v30 = vld [vmem:[#allocation3 + $0x85] ss:$2 sm:$0xff] }
 0x4d7   : > { %v12672_v0 = vpop.f32.mrf.mxu1  ;;  %7316 = vmatprep.subr.bf16.mxu0 %v9859_v24  ;;  %v6557_v24 = vmul.f32 0.5, %v6525_v3  ;;  %v5941_v62 = vadd.f32 %v5886_v30, %v5822_v37  ;;  %v5944_v3 = vadd.f32 %v5892_v27, %v5828_v60  ;;  %v6416_v60 = vld [vmem:[#allocation3 + $0xc6] ss:$2 sm:$0xff]  ;;  %v6480_v27 = vld [vmem:[#allocation3 + $0xc7] ss:$2 sm:$0xff] }
 0x4d8   : > { %14273 = vst [vmem:[#allocation95_spill] sm:$0xff] %v12672_v0  ;;  %v5384_v51 = vpop.f32.mrf.mxu0  ;;  %v6000_v15 = vpack.c.bf16 %v5972_v38, %v5971_v53  ;;  %v6412_v38 = vld [vmem:[#allocation3 + $0xa6] ss:$2 sm:$0xff] }
 0x4d9   : > { %v5686_v52 = vpop.f32.mrf.mxu1  ;;  %v6586_v28 = vpack.c.bf16 %v6558_v1, %v6557_v24  ;;  %v5973_v23 = vmul.f32 0.5, %v5941_v62  ;;  %v5976_v37 = vmul.f32 0.5, %v5944_v3  ;;  %v5894_v62 = vld [vmem:[#allocation3 + $0xc5] ss:$2 sm:$0xff]  ;;  %v5836_v3 = vld [vmem:[#allocation3 + $0xf4] ss:$2 sm:$0xff] }
 0x4da   : > { %v12677_v11 = vadd.f32 %v5686_v52, %v5384_v51  ;;  %v12679_v32 = vpop.f32.mrf.mxu0  ;;  %7317 = vmatpush1.bf16.msra.mxu0 %v9857_v46  ;;  %v6408_v46 = vld [vmem:[#allocation3 + $0x86] ss:$2 sm:$0xff]  ;;  %v5974_v52 = vmul.f32 0.5, %v5942_v33  ;;  %v5896_v33 = vld [vmem:[#allocation3 + $0xd5] ss:$2 sm:$0xff] }
 0x4db   : > { %v12684_v12 = vpop.f32.mrf.mxu1  ;;  %7318 = vmatprep.subr.bf16.mxu0 %v9862_v50  ;;  %v6528_v50 = vadd.f32 %v6474_v35, %v6410_v39  ;;  %v6527_v57 = vadd.f32 %v6472_v48, %v6408_v46  ;;  %v6418_v48 = vld [vmem:[#allocation3 + $0xd6] ss:$2 sm:$0xff] }
 0x4dc   : > { %v5388_v19 = vpop.f32.mrf.mxu0  ;;  %9373 = vmatmul.mubr.msk.bf16.gmra.mxu0 %vm4696_vm4, %v5999_v59 }
 0x4dd   : > { %9413 = vmatmul.mubr.msk.bf16.gmra.mxu1 %vm4696_vm4, %v6585_v16  ;;  %v5690_v20 = vpop.f32.mrf.mxu1  ;;  %6196 = vmatprep.mubr.bf16.mxu0 %v13842_v2  ;;  %v6560_v49 = vmul.f32 0.5, %v6528_v50  ;;  %v6559_v21 = vmul.f32 0.5, %v6527_v57 }
 0x4de   : > { %v12692_v40 = vadd.f32 %v5690_v20, %v5388_v19  ;;  %6782 = vmatprep.mubr.bf16.mxu1 %v13842_v2  ;;  %7319 = vmatpush1.bf16.msra.mxu0 %v9860_v17  ;;  %v12704_v45 = vpop.f32.mrf.mxu0  ;;  %v6478_v17 = vld [vmem:[#allocation3 + $0xb7] ss:$2 sm:$0xff]  ;;  %v6001_v20 = vpack.c.bf16 %v5974_v52, %v5973_v23 }
 0x4df   : > { %7320 = vmatprep.subr.bf16.mxu0 %v9865_v25  ;;  %v12698_v14 = vpop.f32.mrf.mxu1  ;;  %14275 = vst [vmem:[#allocation96_spill] sm:$0xff] %v12704_v45  ;;  %v5826_v25 = vld [vmem:[#allocation3 + $0xa4] ss:$2 sm:$0xff]  ;;  %v5890_v19 = vld [vmem:[#allocation3 + $0xa5] ss:$2 sm:$0xff]  ;;  %v6587_v1 = vpack.c.bf16 %v6560_v49, %v6559_v21  ;;  %v6530_v4 = vadd.f32 %v6478_v17, %v6414_v10  ;;  %v6531_v21 = vadd.f32 %v6480_v27, %v6416_v60 }
 0x4e0   : > { %14274 = vst [vmem:[#allocation106_spill] sm:$0xff] %v12698_v14  ;;  %v5943_v39 = vadd.f32 %v5890_v19, %v5826_v25 }
 0x4e1   : > { %v6562_v30 = vmul.f32 0.5, %v6530_v4 }
 0x4e2   : > { %7321 = vmatpush1.bf16.msra.mxu0 %v9863_v5  ;;  %v6476_v5 = vld [vmem:[#allocation3 + $0xa7] ss:$2 sm:$0xff]  ;;  %v5975_v46 = vmul.f32 0.5, %v5943_v39 }
 0x4e3   : > { %9636 = vmatprep.subr.bf16.mxu0 %v14152_v7  ;;  %v6529_v24 = vadd.f32 %v6476_v5, %v6412_v38  ;;  %v5900_v38 = vld [vmem:[#allocation3 + $0xf5] ss:$2 sm:$0xff] }
 0x4e4   : > { %v5696_v51 = vpop.f32.mrf.mxu1  ;;  %9374 = vmatmul.mubr.msk.bf16.gmra.mxu0 %vm4696_vm4, %v6000_v15  ;;  %v5832_v15 = vld [vmem:[#allocation3 + $0xd4] ss:$2 sm:$0xff]  ;;  %v6002_v52 = vpack.c.bf16 %v5976_v37, %v5975_v46  ;;  %v5834_v37 = vld [vmem:[#allocation3 + $0xe4] ss:$2 sm:$0xff]  ;;  %v5948_v46 = vadd.f32 %v5900_v38, %v5836_v3 }
 0x4e5   : > { %9414 = vmatmul.mubr.msk.bf16.gmra.mxu1 %vm4696_vm4, %v6586_v28  ;;  %6206 = vmatprep.mubr.bf16.mxu0 %v13842_v2  ;;  %v6482_v28 = vld [vmem:[#allocation3 + $0xd7] ss:$2 sm:$0xff]  ;;  %v6561_v50 = vmul.f32 0.5, %v6529_v24  ;;  %v5946_v49 = vadd.f32 %v5896_v33, %v5832_v15  ;;  %v6563_v24 = vmul.f32 0.5, %v6531_v21  ;;  %v5838_v38 = vld [vmem:[#allocation3 + $0x104] ss:$2 sm:$0xff] }
 0x4e6   : > { %6792 = vmatprep.mubr.bf16.mxu1 %v13842_v2  ;;  %v12707_v59 = vpop.f32.mrf.mxu1  ;;  %v6532_v23 = vadd.f32 %v6482_v28, %v6418_v48  ;;  %v6420_v48 = vld [vmem:[#allocation3 + $0xe6] ss:$2 sm:$0xff]  ;;  %v6484_v28 = vld [vmem:[#allocation3 + $0xe7] ss:$2 sm:$0xff] }
 0x4e7   : > { %v5978_v19 = vmul.f32 0.5, %v5946_v49  ;;  %v6533_v27 = vadd.f32 %v6484_v28, %v6420_v48 }
 0x4e8   : > { %v5394_v6 = vpop.f32.mrf.mxu0  ;;  %v5700_v18 = vpop.f32.mrf.mxu1 }
 0x4e9   : > { %v12709_v16 = vadd.f32 %v5696_v51, %v5394_v6  ;;  %v5830_v51 = vld [vmem:[#allocation3 + $0xc4] ss:$2 sm:$0xff]  ;;  %v6588_v6 = vpack.c.bf16 %v6562_v30, %v6561_v50  ;;  %v5898_v30 = vld [vmem:[#allocation3 + $0xe5] ss:$2 sm:$0xff]  ;;  %v6565_v3 = vmul.f32 0.5, %v6533_v27 }
 0x4ea   : > { %v12711_v13 = vpop.f32.mrf.mxu0  ;;  %v12719_v57 = vpop.f32.mrf.mxu1  ;;  %v5945_v17 = vadd.f32 %v5894_v62, %v5830_v51  ;;  %v5947_v49 = vadd.f32 %v5898_v30, %v5834_v37  ;;  %v6488_v37 = vld [vmem:[#allocation3 + $0x107] ss:$2 sm:$0xff] }
 0x4eb   : > { %14276 = vst [vmem:[#allocation107_spill] sm:$0xff] %v12719_v57 }
 0x4ec   : > { %v5398_v53 = vpop.f32.mrf.mxu0  ;;  %9375 = vmatmul.mubr.msk.bf16.gmra.mxu0 %vm4696_vm4, %v6001_v20  ;;  %v6564_v20 = vmul.f32 0.5, %v6532_v23  ;;  %v5977_v4 = vmul.f32 0.5, %v5945_v17  ;;  %v5904_v17 = vld [vmem:[#allocation3 + $0x115] ss:$2 sm:$0xff]  ;;  %v5979_v21 = vmul.f32 0.5, %v5947_v49 }
 0x4ed   : > { %v12714_v35 = vadd.f32 %v5700_v18, %v5398_v53  ;;  %9415 = vmatmul.mubr.msk.bf16.gmra.mxu1 %vm4696_vm4, %v6587_v1  ;;  %6216 = vmatprep.mubr.bf16.mxu0 %v13842_v2  ;;  %v6422_v18 = vld [vmem:[#allocation3 + $0xf6] ss:$2 sm:$0xff]  ;;  %v6486_v53 = vld [vmem:[#allocation3 + $0xf7] ss:$2 sm:$0xff] }
 0x4ee   : > { %6802 = vmatprep.mubr.bf16.mxu1 %v13842_v2  ;;  %v12724_v25 = vpop.f32.mrf.mxu0  ;;  %v6003_v33 = vpack.c.bf16 %v5978_v19, %v5977_v4  ;;  %v6589_v50 = vpack.c.bf16 %v6564_v20, %v6563_v24  ;;  %v6534_v51 = vadd.f32 %v6486_v53, %v6422_v18  ;;  %v6426_v19 = vld [vmem:[#allocation3 + $0x116] ss:$2 sm:$0xff]  ;;  %v6490_v20 = vld [vmem:[#allocation3 + $0x117] ss:$2 sm:$0xff]  ;;  %v6424_v24 = vld [vmem:[#allocation3 + $0x106] ss:$2 sm:$0xff] }
 0x4ef   : > { %14277 = vst [vmem:[#allocation97_spill] sm:$0xff] %v12724_v25  ;;  %v6535_v28 = vadd.f32 %v6488_v37, %v6424_v24  ;;  %v5908_v49 = vld [vmem:[#allocation3 + $0x135] ss:$2 sm:$0xff]  ;;  %v6428_v24 = vld [vmem:[#allocation3 + $0x126] ss:$2 sm:$0xff] }
 0x4f0   : > { %v6566_v23 = vmul.f32 0.5, %v6534_v51 }
 0x4f2   : > { %v6590_v30 = vpack.c.bf16 %v6566_v23, %v6565_v3  ;;  %v5906_v3 = vld [vmem:[#allocation3 + $0x125] ss:$2 sm:$0xff] }
 0x4f4   : > { %v5706_v10 = vpop.f32.mrf.mxu1  ;;  %9376 = vmatmul.mubr.msk.bf16.gmra.mxu0 %vm4696_vm4, %v6002_v52 }
 0x4f5   : > { %9416 = vmatmul.mubr.msk.bf16.gmra.mxu1 %vm4696_vm4, %v6588_v6  ;;  %6226 = vmatprep.mubr.bf16.mxu0 %v13842_v2  ;;  %v5980_v6 = vmul.f32 0.5, %v5948_v46 }
 0x4f6   : > { %6812 = vmatprep.mubr.bf16.mxu1 %v13842_v2  ;;  %v12727_v5 = vpop.f32.mrf.mxu1 }
 0x4f7   : > { %v6004_v18 = vpack.c.bf16 %v5980_v6, %v5979_v21 }
 0x4f8   : > { %v5404_v1 = vpop.f32.mrf.mxu0  ;;  %v5710_v62 = vpop.f32.mrf.mxu1 }
 0x4f9   : > { %v12729_v39 = vadd.f32 %v5706_v10, %v5404_v1  ;;  %v5840_v10 = vld [vmem:[#allocation3 + $0x114] ss:$2 sm:$0xff]  ;;  %v5902_v1 = vld [vmem:[#allocation3 + $0x105] ss:$2 sm:$0xff] }
 0x4fa   : > { %v12731_v15 = vpop.f32.mrf.mxu0  ;;  %v12739_v4 = vpop.f32.mrf.mxu1  ;;  %v5950_v53 = vadd.f32 %v5904_v17, %v5840_v10  ;;  %v5949_v46 = vadd.f32 %v5902_v1, %v5838_v38  ;;  %v6430_v10 = vld [vmem:[#allocation3 + $0x136] ss:$2 sm:$0xff]  ;;  %v6494_v17 = vld [vmem:[#allocation3 + $0x137] ss:$2 sm:$0xff] }
 0x4fb   : > { %14278 = vst [vmem:[#allocation108_spill] sm:$0xff] %v12739_v4 }
 0x4fc   : > { %v5408_v52 = vpop.f32.mrf.mxu0  ;;  %9377 = vmatmul.mubr.msk.bf16.gmra.mxu0 %vm4696_vm4, %v6003_v33  ;;  %v6536_v33 = vadd.f32 %v6490_v20, %v6426_v19  ;;  %v5982_v51 = vmul.f32 0.5, %v5950_v53  ;;  %v5981_v23 = vmul.f32 0.5, %v5949_v46  ;;  %v6567_v19 = vmul.f32 0.5, %v6535_v28  ;;  %v5842_v20 = vld [vmem:[#allocation3 + $0x124] ss:$2 sm:$0xff] }
 0x4fd   : > { %v12734_v60 = vadd.f32 %v5710_v62, %v5408_v52  ;;  %9417 = vmatmul.mubr.msk.bf16.gmra.mxu1 %vm4696_vm4, %v6589_v50  ;;  %6236 = vmatprep.mubr.bf16.mxu0 %v13842_v2  ;;  %v5844_v52 = vld [vmem:[#allocation3 + $0x134] ss:$2 sm:$0xff]  ;;  %v6492_v53 = vld [vmem:[#allocation3 + $0x127] ss:$2 sm:$0xff]  ;;  %v5951_v46 = vadd.f32 %v5906_v3, %v5842_v20 }
 0x4fe   : > { %6822 = vmatprep.mubr.bf16.mxu1 %v13842_v2  ;;  %v12744_v50 = vpop.f32.mrf.mxu0  ;;  %v6568_v62 = vmul.f32 0.5, %v6536_v33  ;;  %v6005_v1 = vpack.c.bf16 %v5982_v51, %v5981_v23  ;;  %v6498_v23 = vld [vmem:[#allocation3 + $0x157] ss:$2 sm:$0xff] }
 0x4ff   : > { %14279 = vst [vmem:[#allocation98_spill] sm:$0xff] %v12744_v50 }
 0x500   : > { %v6591_v37 = vpack.c.bf16 %v6568_v62, %v6567_v19  ;;  %v5983_v62 = vmul.f32 0.5, %v5951_v46  ;;  %v5910_v19 = vld [vmem:[#allocation3 + $0x145] ss:$2 sm:$0xff] }
 0x504   : > { %v5716_v48 = vpop.f32.mrf.mxu1  ;;  %9378 = vmatmul.mubr.msk.bf16.gmra.mxu0 %vm4696_vm4, %v6004_v18  ;;  %v5952_v18 = vadd.f32 %v5908_v49, %v5844_v52  ;;  %v5848_v52 = vld [vmem:[#allocation3 + $0x154] ss:$2 sm:$0xff]  ;;  %v5912_v49 = vld [vmem:[#allocation3 + $0x155] ss:$2 sm:$0xff] }
 0x505   : > { %9418 = vmatmul.mubr.msk.bf16.gmra.mxu1 %vm4696_vm4, %v6590_v30  ;;  %6246 = vmatprep.mubr.bf16.mxu0 %v13842_v2  ;;  %v6538_v30 = vadd.f32 %v6494_v17, %v6430_v10  ;;  %v5846_v17 = vld [vmem:[#allocation3 + $0x144] ss:$2 sm:$0xff]  ;;  %v5954_v3 = vadd.f32 %v5912_v49, %v5848_v52  ;;  %v5852_v52 = vld [vmem:[#allocation3 + $0x174] ss:$2 sm:$0xff]  ;;  %v5916_v49 = vld [vmem:[#allocation3 + $0x175] ss:$2 sm:$0xff] }
 0x506   : > { %6832 = vmatprep.mubr.bf16.mxu1 %v13842_v2  ;;  %v12747_v27 = vpop.f32.mrf.mxu1  ;;  %v5984_v28 = vmul.f32 0.5, %v5952_v18  ;;  %v5953_v18 = vadd.f32 %v5910_v19, %v5846_v17 }
 0x507   : > { %v6570_v51 = vmul.f32 0.5, %v6538_v30 }
 0x508   : > { %v5414_v6 = vpop.f32.mrf.mxu0  ;;  %v5720_v33 = vpop.f32.mrf.mxu1 }
 0x509   : > { %v12749_v21 = vadd.f32 %v5716_v48, %v5414_v6  ;;  %v6537_v48 = vadd.f32 %v6492_v53, %v6428_v24  ;;  %v6434_v6 = vld [vmem:[#allocation3 + $0x156] ss:$2 sm:$0xff] }
 0x50a   : > { %v12751_v38 = vpop.f32.mrf.mxu0  ;;  %v12759_v20 = vpop.f32.mrf.mxu1  ;;  %v6540_v24 = vadd.f32 %v6498_v23, %v6434_v6  ;;  %v5985_v6 = vmul.f32 0.5, %v5953_v18  ;;  %v6438_v23 = vld [vmem:[#allocation3 + $0x176] ss:$2 sm:$0xff] }
 0x50b   : > { %v6569_v10 = vmul.f32 0.5, %v6537_v48  ;;  %14280 = vst [vmem:[#allocation109_spill] sm:$0xff] %v12759_v20  ;;  %v5986_v48 = vmul.f32 0.5, %v5954_v3  ;;  %v5956_v20 = vadd.f32 %v5916_v49, %v5852_v52  ;;  %v6500_v3 = vld [vmem:[#allocation3 + $0x167] ss:$2 sm:$0xff] }
 0x50c   : > { %v5418_v4 = vpop.f32.mrf.mxu0  ;;  %9379 = vmatmul.mubr.msk.bf16.gmra.mxu0 %vm4696_vm4, %v6005_v1  ;;  %v6432_v1 = vld [vmem:[#allocation3 + $0x146] ss:$2 sm:$0xff]  ;;  %v5920_v49 = vld [vmem:[#allocation3 + $0x195] ss:$2 sm:$0xff] }
 0x50d   : > { %v12754_v50 = vadd.f32 %v5720_v33, %v5418_v4  ;;  %9419 = vmatmul.mubr.msk.bf16.gmra.mxu1 %vm4696_vm4, %v6591_v37  ;;  %6256 = vmatprep.mubr.bf16.mxu0 %v13842_v2  ;;  %v6006_v4 = vpack.c.bf16 %v5984_v28, %v5983_v62  ;;  %v6496_v37 = vld [vmem:[#allocation3 + $0x147] ss:$2 sm:$0xff]  ;;  %v6592_v33 = vpack.c.bf16 %v6570_v51, %v6569_v10  ;;  %v6572_v28 = vmul.f32 0.5, %v6540_v24  ;;  %v6502_v10 = vld [vmem:[#allocation3 + $0x177] ss:$2 sm:$0xff] }
 0x50e   : > { %6842 = vmatprep.mubr.bf16.mxu1 %v13842_v2  ;;  %v6539_v30 = vadd.f32 %v6496_v37, %v6432_v1  ;;  %v12764_v46 = vpop.f32.mrf.mxu0  ;;  %v6007_v37 = vpack.c.bf16 %v5986_v48, %v5985_v6  ;;  %v6542_v57 = vadd.f32 %v6502_v10, %v6438_v23  ;;  %v5856_v52 = vld [vmem:[#allocation3 + $0x194] ss:$2 sm:$0xff]  ;;  %v6506_v6 = vld [vmem:[#allocation3 + $0x197] ss:$2 sm:$0xff]  ;;  %v5854_v10 = vld [vmem:[#allocation3 + $0x184] ss:$2 sm:$0xff] }
 0x50f   : > { %14281 = vst [vmem:[#allocation99_spill] sm:$0xff] %v12764_v46  ;;  %v6436_v46 = vld [vmem:[#allocation3 + $0x166] ss:$2 sm:$0xff] }
 0x510   : > { %v6571_v19 = vmul.f32 0.5, %v6539_v30  ;;  %v5988_v30 = vmul.f32 0.5, %v5956_v20  ;;  %v6574_v48 = vmul.f32 0.5, %v6542_v57 }
 0x512   : > { %v6593_v24 = vpack.c.bf16 %v6572_v28, %v6571_v19  ;;  %v5918_v19 = vld [vmem:[#allocation3 + $0x185] ss:$2 sm:$0xff] }
 0x513   : > { %v5957_v57 = vadd.f32 %v5918_v19, %v5854_v10  ;;  %v6510_v10 = vld [vmem:[#allocation3 + $0x1b7] ss:$2 sm:$0xff] }
 0x514   : > { %v5726_v53 = vpop.f32.mrf.mxu1  ;;  %9380 = vmatmul.mubr.msk.bf16.gmra.mxu0 %vm4696_vm4, %v6006_v4  ;;  %v5850_v4 = vld [vmem:[#allocation3 + $0x164] ss:$2 sm:$0xff] }
 0x515   : > { %9420 = vmatmul.mubr.msk.bf16.gmra.mxu1 %vm4696_vm4, %v6592_v33  ;;  %6266 = vmatprep.mubr.bf16.mxu0 %v13842_v2  ;;  %v5914_v33 = vld [vmem:[#allocation3 + $0x165] ss:$2 sm:$0xff] }
 0x516   : > { %6852 = vmatprep.mubr.bf16.mxu1 %v13842_v2  ;;  %v12767_v62 = vpop.f32.mrf.mxu1  ;;  %v5955_v18 = vadd.f32 %v5914_v33, %v5850_v4  ;;  %v6440_v33 = vld [vmem:[#allocation3 + $0x186] ss:$2 sm:$0xff] }
 0x518   : > { %v5424_v51 = vpop.f32.mrf.mxu0  ;;  %v5730_v25 = vpop.f32.mrf.mxu1  ;;  %v5987_v28 = vmul.f32 0.5, %v5955_v18  ;;  %v7718_v18 = vld [vmem:[%s13792_s6 + $0x78] sm:$0xff] }
 0x519   : > { %v12769_v17 = vadd.f32 %v5726_v53, %v5424_v51  ;;  %v6541_v53 = vadd.f32 %v6500_v3, %v6436_v46  ;;  %v6442_v51 = vld [vmem:[#allocation3 + $0x196] ss:$2 sm:$0xff]  ;;  %7821 = vmatpush1.msra.mxu1 %v7718_v18 }
 0x51a   : > { %v12771_v1 = vpop.f32.mrf.mxu0  ;;  %v12779_v4 = vpop.f32.mrf.mxu1  ;;  %v6544_v46 = vadd.f32 %v6506_v6, %v6442_v51  ;;  %7822 = vmatprep.subr.mxu1 %v14152_v7  ;;  %v5989_v6 = vmul.f32 0.5, %v5957_v57 }
 0x51b   : > { %v6573_v23 = vmul.f32 0.5, %v6541_v53  ;;  %14282 = vst [vmem:[#allocation110_spill] sm:$0xff] %v12779_v4  ;;  %v6508_v4 = vld [vmem:[#allocation3 + $0x1a7] ss:$2 sm:$0xff]  ;;  %7823 = vmatpush1.msra.mxu1 %v7717_v63  ;;  %v5862_v63 = vld [vmem:[#allocation3 + $0x1c4] ss:$2 sm:$0xff] }
 0x51c   : > { %v5428_v14 = vpop.f32.mrf.mxu0  ;;  %9381 = vmatmul.mubr.msk.bf16.gmra.mxu0 %vm4696_vm4, %v6007_v37  ;;  %v6504_v37 = vld [vmem:[#allocation3 + $0x187] ss:$2 sm:$0xff]  ;;  %7824 = vmatprep.subr.mxu1 %v14152_v7 }
 0x51d   : > { %v12774_v45 = vadd.f32 %v5730_v25, %v5428_v14  ;;  %9421 = vmatmul.mubr.msk.bf16.gmra.mxu1 %vm4696_vm4, %v6593_v24  ;;  %6276 = vmatprep.mubr.bf16.mxu0 %v13842_v2  ;;  %v6008_v14 = vpack.c.bf16 %v5988_v30, %v5987_v28  ;;  %v5958_v25 = vadd.f32 %v5920_v49, %v5856_v52  ;;  %v5860_v52 = vld [vmem:[#allocation3 + $0x1b4] ss:$2 sm:$0xff]  ;;  %v5924_v49 = vld [vmem:[#allocation3 + $0x1b5] ss:$2 sm:$0xff] }
 0x51e   : > { %6862 = vmatprep.mubr.bf16.mxu1 %v13842_v2  ;;  %v6594_v24 = vpack.c.bf16 %v6574_v48, %v6573_v23  ;;  %v6543_v20 = vadd.f32 %v6504_v37, %v6440_v33  ;;  %v12787_v53 = vpop.f32.mrf.mxu0  ;;  %v6576_v48 = vmul.f32 0.5, %v6544_v46  ;;  %v6446_v23 = vld [vmem:[#allocation3 + $0x1b6] ss:$2 sm:$0xff]  ;;  %v5922_v37 = vld [vmem:[#allocation3 + $0x1a5] ss:$2 sm:$0xff]  ;;  %v5960_v18 = vadd.f32 %v5924_v49, %v5860_v52 }
 0x51f   : > { %14283 = vst [vmem:[#allocation100_spill] sm:$0xff] %v12787_v53  ;;  %v5990_v30 = vmul.f32 0.5, %v5958_v25  ;;  %v5858_v33 = vld [vmem:[#allocation3 + $0x1a4] ss:$2 sm:$0xff]  ;;  %v6546_v0 = vadd.f32 %v6510_v10, %v6446_v23  ;;  %v5864_v49 = vld [vmem:[#allocation3 + $0x1d4] ss:$2 sm:$0xff] }
 0x520   : > { %v6444_v46 = vld [vmem:[#allocation3 + $0x1a6] ss:$2 sm:$0xff]  ;;  %v6450_v23 = vld [vmem:[#allocation3 + $0x1d6] ss:$2 sm:$0xff]  ;;  %v6514_v10 = vld [vmem:[#allocation3 + $0x1d7] ss:$2 sm:$0xff] }
 0x521   : > { %v6009_v25 = vpack.c.bf16 %v5990_v30, %v5989_v6  ;;  %v6545_v30 = vadd.f32 %v6508_v4, %v6444_v46  ;;  %v6578_v52 = vmul.f32 0.5, %v6546_v0  ;;  %v6548_v46 = vadd.f32 %v6514_v10, %v6450_v23 }
 0x524   : > { %v5736_v3 = vpop.f32.mrf.mxu1  ;;  %9382 = vmatmul.mubr.msk.bf16.gmra.mxu0 %vm4696_vm4, %v6008_v14  ;;  %v6575_v14 = vmul.f32 0.5, %v6543_v20 }
 0x525   : > { %9422 = vmatmul.mubr.msk.bf16.gmra.mxu1 %vm4696_vm4, %v6594_v24  ;;  %6286 = vmatprep.mubr.bf16.mxu0 %v13842_v2 }
 0x526   : > { %6872 = vmatprep.mubr.bf16.mxu1 %v13842_v2  ;;  %v12791_v28 = vpop.f32.mrf.mxu1  ;;  %v6595_v53 = vpack.c.bf16 %v6576_v48, %v6575_v14  ;;  %v5992_v48 = vmul.f32 0.5, %v5960_v18  ;;  %v6577_v14 = vmul.f32 0.5, %v6545_v30  ;;  %v6512_v18 = vld [vmem:[#allocation3 + $0x1c7] ss:$2 sm:$0xff] }
 0x528   : > { %v5434_v51 = vpop.f32.mrf.mxu0  ;;  %v5740_v57 = vpop.f32.mrf.mxu1  ;;  %v6596_v0 = vpack.c.bf16 %v6578_v52, %v6577_v14  ;;  %v5932_v52 = vld [vmem:[#allocation3 + $0x1f5] ss:$2 sm:$0xff]  ;;  %v6454_v14 = vld [vmem:[#allocation3 + $0x1f6] ss:$2 sm:$0xff] }
 0x529   : > { %v12793_v19 = vadd.f32 %v5736_v3, %v5434_v51  ;;  %v5959_v3 = vadd.f32 %v5922_v37, %v5858_v33  ;;  %v5928_v51 = vld [vmem:[#allocation3 + $0x1d5] ss:$2 sm:$0xff] }
 0x52a   : > { %v12795_v24 = vpop.f32.mrf.mxu0  ;;  %v12810_v33 = vpop.f32.mrf.mxu1  ;;  %v5962_v37 = vadd.f32 %v5928_v51, %v5864_v49  ;;  %v6580_v49 = vmul.f32 0.5, %v6548_v46  ;;  %v5868_v51 = vld [vmem:[#allocation3 + $0x1f4] ss:$2 sm:$0xff] }
 0x52b   : > { %v5991_v6 = vmul.f32 0.5, %v5959_v3  ;;  %14284 = vst [vmem:[#allocation111_spill] sm:$0xff] %v12810_v33  ;;  %v5964_v46 = vadd.f32 %v5932_v52, %v5868_v51  ;;  %v6452_v33 = vld [vmem:[#allocation3 + $0x1e6] ss:$2 sm:$0xff] }
 0x52c   : > { %v5438_v34 = vpop.f32.mrf.mxu0  ;;  %9383 = vmatmul.mubr.msk.bf16.gmra.mxu0 %vm4696_vm4, %v6009_v25  ;;  %v6448_v25 = vld [vmem:[#allocation3 + $0x1c6] ss:$2 sm:$0xff] }
 0x52d   : > { %v12801_v20 = vadd.f32 %v5740_v57, %v5438_v34  ;;  %9423 = vmatmul.mubr.msk.bf16.gmra.mxu1 %vm4696_vm4, %v6595_v53  ;;  %6296 = vmatprep.mubr.bf16.mxu0 %v13842_v2  ;;  %v5926_v34 = vld [vmem:[#allocation3 + $0x1c5] ss:$2 sm:$0xff]  ;;  %v6010_v4 = vpack.c.bf16 %v5992_v48, %v5991_v6  ;;  %v6547_v30 = vadd.f32 %v6512_v18, %v6448_v25  ;;  %v5994_v48 = vmul.f32 0.5, %v5962_v37  ;;  %v7715_v25 = vld [vmem:[%s13792_s6 + $0x60] sm:$0xff] }
 0x52e   : > { %6882 = vmatprep.mubr.bf16.mxu1 %v13842_v2  ;;  %v7716_v53 = vld [vmem:[%s13792_s6 + $0x68] sm:$0xff]  ;;  %v5961_v3 = vadd.f32 %v5926_v34, %v5862_v63  ;;  %v12816_v56 = vpop.f32.mrf.mxu0  ;;  %v5996_v51 = vmul.f32 0.5, %v5964_v46 }
 0x52f   : > { %7825 = vmatpush1.msra.mxu1 %v7716_v53  ;;  %14285 = vst [vmem:[#allocation101_spill] sm:$0xff] %v12816_v56  ;;  %v6518_v53 = vld [vmem:[#allocation3 + $0x1f7] ss:$2 sm:$0xff]  ;;  %v6579_v34 = vmul.f32 0.5, %v6547_v30  ;;  %v6516_v56 = vld [vmem:[#allocation3 + $0x1e7] ss:$2 sm:$0xff] }
 0x530   : > { %7826 = vmatprep.subr.mxu1 %v14152_v7  ;;  %v5993_v10 = vmul.f32 0.5, %v5961_v3  ;;  %v6550_v3 = vadd.f32 %v6518_v53, %v6454_v14  ;;  %v7714_v14 = vld [vmem:[%s13792_s6 + $0x58] sm:$0xff] }
 0x531   : > { %7827 = vmatpush1.msra.mxu1 %v7715_v25  ;;  %v6597_v44 = vpack.c.bf16 %v6580_v49, %v6579_v34  ;;  %v6980_v49 = vld [vmem:[#allocation3 + $0x18] ss:$2 sm:$0xff] }
 0x532   : > { %v6011_v37 = vpack.c.bf16 %v5994_v48, %v5993_v10  ;;  %7828 = vmatprep.subr.mxu1 %v14152_v7  ;;  %v6549_v48 = vadd.f32 %v6516_v56, %v6452_v33  ;;  %v6582_v52 = vmul.f32 0.5, %v6550_v3  ;;  %v7044_v10 = vld [vmem:[#allocation3 + $0x19] ss:$2 sm:$0xff]  ;;  %v7713_v3 = vld [vmem:[%s13792_s6 + $0x50] sm:$0xff] }
 0x533   : > { %7829 = vmatpush1.msra.mxu1 %v7714_v14  ;;  %v7106_v33 = vadd.f32 %v7044_v10, %v6980_v49  ;;  %v6982_v14 = vld [vmem:[#allocation3 + $0x28] ss:$2 sm:$0xff] }
 0x534   : > { %v5746_v57 = vpop.f32.mrf.mxu1  ;;  %9384 = vmatmul.mubr.msk.bf16.gmra.mxu0 %vm4696_vm4, %v6010_v4  ;;  %v5866_v4 = vld [vmem:[#allocation3 + $0x1e4] ss:$2 sm:$0xff]  ;;  %v6581_v34 = vmul.f32 0.5, %v6549_v48  ;;  %7830 = vmatprep.subr.mxu1 %v14152_v7  ;;  %v7048_v48 = vld [vmem:[#allocation3 + $0x39] ss:$2 sm:$0xff] }
 0x535   : > { %9424 = vmatmul.mubr.msk.bf16.gmra.mxu1 %vm4696_vm4, %v6596_v0  ;;  %6306 = vmatprep.mubr.bf16.mxu0 %v13842_v2  ;;  %v5930_v0 = vld [vmem:[#allocation3 + $0x1e5] ss:$2 sm:$0xff] }
 0x536   : > { %6892 = vmatprep.mubr.bf16.mxu1 %v13842_v2  ;;  %v12819_v6 = vpop.f32.mrf.mxu1  ;;  %v5963_v30 = vadd.f32 %v5930_v0, %v5866_v4  ;;  %v6978_v4 = vld [vmem:[#allocation3 + $0x8] ss:$2 sm:$0xff]  ;;  %v7042_v0 = vld [vmem:[#allocation3 + $0x9] ss:$2 sm:$0xff]  ;;  %v6598_v25 = vpack.c.bf16 %v6582_v52, %v6581_v34  ;;  %7831 = vmatpush1.msra.mxu1 %v7713_v3 }
 0x537   : > { %v7105_v46 = vadd.f32 %v7042_v0, %v6978_v4  ;;  %7832 = vmatprep.subr.mxu1 %v14152_v7 }
 0x538   : > { %v5444_v23 = vpop.f32.mrf.mxu0  ;;  %v5995_v53 = vmul.f32 0.5, %v5963_v30  ;;  %v6984_v30 = vld [vmem:[#allocation3 + $0x38] ss:$2 sm:$0xff] }
 0x539   : > { %v12821_v63 = vadd.f32 %v5746_v57, %v5444_v23  ;;  %v5750_v57 = vpop.f32.mrf.mxu1  ;;  %v7137_v49 = vmul.f32 0.5, %v7105_v46  ;;  %v7108_v0 = vadd.f32 %v7048_v48, %v6984_v30  ;;  %v6988_v46 = vld [vmem:[#allocation3 + $0x58] ss:$2 sm:$0xff]  ;;  %v6986_v48 = vld [vmem:[#allocation3 + $0x48] ss:$2 sm:$0xff] }
 0x53a   : > { %v12826_v18 = vpop.f32.mrf.mxu0  ;;  %v6012_v56 = vpack.c.bf16 %v5996_v51, %v5995_v53  ;;  %v7046_v53 = vld [vmem:[#allocation3 + $0x29] ss:$2 sm:$0xff] }
 0x53b   : > { %v7107_v3 = vadd.f32 %v7046_v53, %v6982_v14 }
 0x53c   : > { %v5448_v23 = vpop.f32.mrf.mxu0  ;;  %9385 = vmatmul.mubr.msk.bf16.gmra.mxu0 %vm4696_vm4, %v6011_v37 }
 0x53d   : > { %v12830_v31 = vadd.f32 %v5750_v57, %v5448_v23  ;;  %9425 = vmatmul.mubr.msk.bf16.gmra.mxu1 %vm4696_vm4, %v6597_v44  ;;  %6316 = vmatprep.mubr.bf16.mxu0 %v13842_v2  ;;  %v12839_v44 = vpop.f32.mrf.mxu1  ;;  %v7138_v23 = vmul.f32 0.5, %v7106_v33  ;;  %v7139_v30 = vmul.f32 0.5, %v7107_v3  ;;  %v7056_v3 = vld [vmem:[#allocation3 + $0x79] ss:$2 sm:$0xff] }
 0x53e   : > { %6902 = vmatprep.mubr.bf16.mxu1 %v13842_v2  ;;  %v12847_v57 = vpop.f32.mrf.mxu0 }
 0x53f   : > { %v7169_v4 = vpack.c.bf16 %v7138_v23, %v7137_v49  ;;  %v7052_v23 = vld [vmem:[#allocation3 + $0x59] ss:$2 sm:$0xff] }
 0x540   : > { %v7711_v49 = vld [vmem:[%s13792_s6 + $0x40] sm:$0xff]  ;;  %v7110_v53 = vadd.f32 %v7052_v23, %v6988_v46  ;;  %v6990_v46 = vld [vmem:[#allocation3 + $0x68] ss:$2 sm:$0xff]  ;;  %v7054_v23 = vld [vmem:[#allocation3 + $0x69] ss:$2 sm:$0xff] }
 0x544   : > { %v5756_v37 = vpop.f32.mrf.mxu1  ;;  %9386 = vmatmul.mubr.msk.bf16.gmra.mxu0 %vm4696_vm4, %v6012_v56  ;;  %v7712_v56 = vld [vmem:[%s13792_s6 + $0x48] sm:$0xff] }
 0x545   : > { %9426 = vmatmul.mubr.msk.bf16.gmra.mxu1 %vm4696_vm4, %v6598_v25  ;;  %7338 = vmatprep.mubr.bf16.mxu0 %v13842_v2 }
 0x546   : > { %v12850_v51 = vpop.f32.mrf.mxu1  ;;  %7833 = vmatpush1.msra.mxu1 %v7712_v56 }
 0x547   : > { %7834 = vmatprep.subr.mxu1 %v14152_v7 }
 0x548   : > { %v5454_v52 = vpop.f32.mrf.mxu0  ;;  %v5760_v33 = vpop.f32.mrf.mxu1  ;;  %7835 = vmatpush1.msra.mxu1 %v7711_v49 }
 0x549   : > { %v12852_v10 = vadd.f32 %v5756_v37, %v5454_v52  ;;  %v7140_v37 = vmul.f32 0.5, %v7108_v0  ;;  %v7050_v52 = vld [vmem:[#allocation3 + $0x49] ss:$2 sm:$0xff]  ;;  %7836 = vmatprep.subr.mxu1 %v14152_v7 }
 0x54a   : > { %v12854_v34 = vpop.f32.mrf.mxu0  ;;  %v12867_v55 = vpop.f32.mrf.mxu1  ;;  %v7109_v0 = vadd.f32 %v7050_v52, %v6986_v48 }
 0x54b   : > { %14286 = vst [vmem:[#allocation112_spill] sm:$0xff] %v12852_v10  ;;  %14288 = vst [vmem:[#allocation113_spill] sm:$0xff] %v12867_v55  ;;  %v7170_v14 = vpack.c.bf16 %v7140_v37, %v7139_v30  ;;  %v7710_v30 = vld [vmem:[%s13792_s6 + $0x38] sm:$0xff] }
 0x54c   : > { %v5458_v25 = vpop.f32.mrf.mxu0  ;;  %9451 = vmatmul.mubr.msk.bf16.vlgmr.msra.gmra.mxu0 %vm4696_vm4, %v7169_v4  ;;  %v7141_v55 = vmul.f32 0.5, %v7109_v0  ;;  %7837 = vmatpush1.msra.mxu1 %v7710_v30  ;;  %v7111_v0 = vadd.f32 %v7054_v23, %v6990_v46 }
 0x54d   : > { %v12860_v8 = vadd.f32 %v5760_v33, %v5458_v25  ;;  %7348 = vmatprep.mubr.bf16.mxu0 %v13842_v2  ;;  %v7142_v33 = vmul.f32 0.5, %v7110_v53  ;;  %v6992_v25 = vld [vmem:[#allocation3 + $0x78] ss:$2 sm:$0xff]  ;;  %7838 = vmatprep.subr.mxu1 %v14152_v7 }
 0x54e   : > { %v12872_v56 = vpop.f32.mrf.mxu0  ;;  %v7112_v49 = vadd.f32 %v7056_v3, %v6992_v25  ;;  %v6994_v25 = vld [vmem:[#allocation3 + $0x88] ss:$2 sm:$0xff]  ;;  %v7058_v3 = vld [vmem:[#allocation3 + $0x89] ss:$2 sm:$0xff] }
 0x54f   : > { %14287 = vst [vmem:[#allocation102_spill] sm:$0xff] %v12860_v8  ;;  %14289 = vst [vmem:[#allocation103_spill] sm:$0xff] %v12872_v56  ;;  %v7171_v52 = vpack.c.bf16 %v7142_v33, %v7141_v55  ;;  %v7709_v55 = vld [vmem:[%s13792_s6 + $0x30] sm:$0xff]  ;;  %v7143_v33 = vmul.f32 0.5, %v7111_v0 }
 0x550   : > { %7839 = vmatpush1.msra.mxu1 %v7709_v55  ;;  %v7000_v55 = vld [vmem:[#allocation3 + $0xb8] ss:$2 sm:$0xff] }
 0x551   : > { %7840 = vmatprep.subr.mxu1 %v14152_v7 }
 0x554   : > { %v5766_v4 = vpop.f32.mrf.mxu1  ;;  %9452 = vmatmul.mubr.msk.bf16.gmra.mxu0 %vm4696_vm4, %v7170_v14 }
 0x555   : > { %7358 = vmatprep.mubr.bf16.mxu0 %v13842_v2 }
 0x556   : > { %v12874_v8 = vpop.f32.mrf.mxu1 }
 0x557   : > { %14290 = vst [vmem:[#allocation114_spill] sm:$0xff] %v12874_v8  ;;  %v7060_v8 = vld [vmem:[#allocation3 + $0x99] ss:$2 sm:$0xff] }
 0x558   : > { %v5464_v10 = vpop.f32.mrf.mxu0  ;;  %v5770_v14 = vpop.f32.mrf.mxu1 }
 0x559   : > { %v12876_v37 = vadd.f32 %v5766_v4, %v5464_v10  ;;  %v7144_v4 = vmul.f32 0.5, %v7112_v49  ;;  %v7113_v49 = vadd.f32 %v7058_v3, %v6994_v25  ;;  %v6998_v25 = vld [vmem:[#allocation3 + $0xa8] ss:$2 sm:$0xff]  ;;  %v7062_v3 = vld [vmem:[#allocation3 + $0xa9] ss:$2 sm:$0xff] }
 0x55a   : > { %v12881_v48 = vpop.f32.mrf.mxu0  ;;  %v12892_v30 = vpop.f32.mrf.mxu1  ;;  %v7115_v56 = vadd.f32 %v7062_v3, %v6998_v25 }
 0x55b   : > { %14291 = vst [vmem:[#allocation104_spill] sm:$0xff] %v12876_v37  ;;  %14292 = vst [vmem:[#allocation115_spill] sm:$0xff] %v12881_v48  ;;  %v6996_v37 = vld [vmem:[#allocation3 + $0x98] ss:$2 sm:$0xff]  ;;  %v7172_v46 = vpack.c.bf16 %v7144_v4, %v7143_v33 }
 0x55c   : > { %v5468_v53 = vpop.f32.mrf.mxu0  ;;  %9453 = vmatmul.mubr.msk.bf16.gmra.mxu0 %vm4696_vm4, %v7171_v52  ;;  %14294 = vst [vmem:[#allocation116_spill] sm:$0xff] %v12892_v30  ;;  %v7114_v23 = vadd.f32 %v7060_v8, %v6996_v37  ;;  %v7145_v37 = vmul.f32 0.5, %v7113_v49  ;;  %v7004_v49 = vld [vmem:[#allocation3 + $0xd8] ss:$2 sm:$0xff] }
 0x55d   : > { %v12885_v10 = vadd.f32 %v5770_v14, %v5468_v53  ;;  %7368 = vmatprep.mubr.bf16.mxu0 %v13842_v2  ;;  %v7708_v14 = vld [vmem:[%s13792_s6 + $0x28] sm:$0xff] }
 0x55e   : > { %v12899_v53 = vpop.f32.mrf.mxu0  ;;  %v7146_v0 = vmul.f32 0.5, %v7114_v23  ;;  %7841 = vmatpush1.msra.mxu1 %v7708_v14  ;;  %v7707_v23 = vld [vmem:[%s13792_s6 + $0x20] sm:$0xff] }
 0x55f   : > { %14293 = vst [vmem:[#allocation5_spill] sm:$0xff] %v12885_v10  ;;  %14295 = vst [vmem:[#allocation6_spill] sm:$0xff] %v12899_v53  ;;  %v7064_v10 = vld [vmem:[#allocation3 + $0xb9] ss:$2 sm:$0xff]  ;;  %7842 = vmatprep.subr.mxu1 %v14152_v7 }
 0x560   : > { %v7173_v30 = vpack.c.bf16 %v7146_v0, %v7145_v37  ;;  %v7116_v48 = vadd.f32 %v7064_v10, %v7000_v55  ;;  %7843 = vmatpush1.msra.mxu1 %v7707_v23  ;;  %v7068_v0 = vld [vmem:[#allocation3 + $0xd9] ss:$2 sm:$0xff]  ;;  %v7147_v10 = vmul.f32 0.5, %v7115_v56  ;;  %v7002_v55 = vld [vmem:[#allocation3 + $0xc8] ss:$2 sm:$0xff] }
 0x561   : > { %7844 = vmatprep.subr.mxu1 %v14152_v7  ;;  %v7706_v37 = vld [vmem:[%s13792_s6 + $0x18] sm:$0xff]  ;;  %v7118_v25 = vadd.f32 %v7068_v0, %v7004_v49  ;;  %v7008_v23 = vld [vmem:[#allocation3 + $0xf8] ss:$2 sm:$0xff] }
 0x562   : > { %7845 = vmatpush1.msra.mxu1 %v7706_v37  ;;  %v7006_v49 = vld [vmem:[#allocation3 + $0xe8] ss:$2 sm:$0xff]  ;;  %v7070_v0 = vld [vmem:[#allocation3 + $0xe9] ss:$2 sm:$0xff] }
 0x563   : > { %7846 = vmatprep.subr.mxu1 %v14152_v7  ;;  %v7150_v3 = vmul.f32 0.5, %v7118_v25 }
 0x564   : > { %v5776_v52 = vpop.f32.mrf.mxu1  ;;  %9454 = vmatmul.mubr.msk.bf16.gmra.mxu0 %vm4696_vm4, %v7172_v46 }
 0x565   : > { %7378 = vmatprep.mubr.bf16.mxu0 %v13842_v2 }
 0x566   : > { %v12902_v4 = vpop.f32.mrf.mxu1 }
 0x567   : > { %14296 = vst [vmem:[#allocation117_spill] sm:$0xff] %v12902_v4 }
 0x568   : > { %v5474_v8 = vpop.f32.mrf.mxu0  ;;  %v5780_v14 = vpop.f32.mrf.mxu1 }
 0x569   : > { %v12904_v33 = vadd.f32 %v5776_v52, %v5474_v8  ;;  %v7148_v52 = vmul.f32 0.5, %v7116_v48  ;;  %v7066_v8 = vld [vmem:[#allocation3 + $0xc9] ss:$2 sm:$0xff] }
 0x56a   : > { %v12906_v46 = vpop.f32.mrf.mxu0  ;;  %v7117_v48 = vadd.f32 %v7066_v8, %v7002_v55 }
 0x56b   : > { %14297 = vst [vmem:[#allocation7_spill] sm:$0xff] %v12904_v33  ;;  %14298 = vst [vmem:[#allocation118_spill] sm:$0xff] %v12906_v46  ;;  %v12919_v33 = vpop.f32.mrf.mxu1 }
 0x56c   : > { %v5478_v53 = vpop.f32.mrf.mxu0  ;;  %9455 = vmatmul.mubr.msk.bf16.gmra.mxu0 %vm4696_vm4, %v7173_v30  ;;  %14300 = vst [vmem:[#allocation119_spill] sm:$0xff] %v12919_v33  ;;  %v7174_v30 = vpack.c.bf16 %v7148_v52, %v7147_v10  ;;  %v7149_v33 = vmul.f32 0.5, %v7117_v48  ;;  %v7705_v10 = vld [vmem:[%s13792_s6 + $0x10] sm:$0xff]  ;;  %v7119_v48 = vadd.f32 %v7070_v0, %v7006_v49 }
 0x56d   : > { %v12912_v4 = vadd.f32 %v5780_v14, %v5478_v53  ;;  %7388 = vmatprep.mubr.bf16.mxu0 %v13842_v2  ;;  %v7072_v14 = vld [vmem:[#allocation3 + $0xf9] ss:$2 sm:$0xff]  ;;  %7847 = vmatpush1.msra.mxu1 %v7705_v10 }
 0x56e   : > { %v12924_v56 = vpop.f32.mrf.mxu0  ;;  %v7175_v8 = vpack.c.bf16 %v7150_v3, %v7149_v33  ;;  %v7120_v37 = vadd.f32 %v7072_v14, %v7008_v23  ;;  %7848 = vmatprep.subr.mxu1 %v14152_v7  ;;  %v7704_v33 = vld [vmem:[%s13792_s6 + $0x8] sm:$0xff]  ;;  %v7151_v3 = vmul.f32 0.5, %v7119_v48  ;;  %v7010_v23 = vld [vmem:[#allocation3 + $0x108] ss:$2 sm:$0xff]  ;;  %v7074_v14 = vld [vmem:[#allocation3 + $0x109] ss:$2 sm:$0xff] }
 0x56f   : > { %14299 = vst [vmem:[#allocation8_spill] sm:$0xff] %v12912_v4  ;;  %14301 = vst [vmem:[#allocation9_spill] sm:$0xff] %v12924_v56  ;;  %7849 = vmatpush1.msra.mxu1 %v7704_v33  ;;  %v7703_v48 = vld [vmem:[%s13792_s6] sm:$0xff] }
 0x570   : > { %7850 = vmatprep.subr.mxu1 %v14152_v7 }
 0x571   : > { %7851 = vmatpush1.msra.mxu1 %v7703_v48 }
 0x572   : > { %7876 = vmatprep.subr.mxu1 %v14152_v7 }
 0x574   : > { %v5786_v53 = vpop.f32.mrf.mxu1  ;;  %9456 = vmatmul.mubr.msk.bf16.gmra.mxu0 %vm4696_vm4, %v7174_v30 }
 0x575   : > { %7398 = vmatprep.mubr.bf16.mxu0 %v13842_v2 }
 0x576   : > { %v12926_v4 = vpop.f32.mrf.mxu1 }
 0x577   : > { %14302 = vst [vmem:[#allocation120_spill] sm:$0xff] %v12926_v4  ;;  %v7076_v4 = vld [vmem:[#allocation3 + $0x119] ss:$2 sm:$0xff] }
 0x578   : > { %v5484_v46 = vpop.f32.mrf.mxu0  ;;  %v5790_v30 = vpop.f32.mrf.mxu1 }
 0x579   : > { %v12928_v52 = vadd.f32 %v5786_v53, %v5484_v46  ;;  %v7152_v53 = vmul.f32 0.5, %v7120_v37  ;;  %v7121_v37 = vadd.f32 %v7074_v14, %v7010_v23 }
 0x57a   : > { %v12933_v55 = vpop.f32.mrf.mxu0 }
 0x57b   : > { %14303 = vst [vmem:[#allocation10_spill] sm:$0xff] %v12928_v52  ;;  %14304 = vst [vmem:[#allocation121_spill] sm:$0xff] %v12933_v55  ;;  %v7012_v52 = vld [vmem:[#allocation3 + $0x118] ss:$2 sm:$0xff]  ;;  %v7176_v49 = vpack.c.bf16 %v7152_v53, %v7151_v3  ;;  %v7080_v53 = vld [vmem:[#allocation3 + $0x139] ss:$2 sm:$0xff] }
 0x57c   : > { %v5488_v25 = vpop.f32.mrf.mxu0  ;;  %9457 = vmatmul.mubr.msk.bf16.gmra.mxu0 %vm4696_vm4, %v7175_v8  ;;  %v7122_v0 = vadd.f32 %v7076_v4, %v7012_v52  ;;  %v12946_v8 = vpop.f32.mrf.mxu1  ;;  %v7016_v52 = vld [vmem:[#allocation3 + $0x138] ss:$2 sm:$0xff]  ;;  %v7153_v23 = vmul.f32 0.5, %v7121_v37 }
 0x57d   : > { %v12937_v46 = vadd.f32 %v5790_v30, %v5488_v25  ;;  %7408 = vmatprep.mubr.bf16.mxu0 %v13842_v2  ;;  %14307 = vst [vmem:[#allocation12_spill] sm:$0xff] %v12946_v8  ;;  %v7078_v8 = vld [vmem:[#allocation3 + $0x129] ss:$2 sm:$0xff] }
 0x57e   : > { %v12944_v10 = vpop.f32.mrf.mxu0 }
 0x57f   : > { %14305 = vst [vmem:[#allocation11_spill] sm:$0xff] %v12937_v46  ;;  %14306 = vst [vmem:[#allocation122_spill] sm:$0xff] %v12944_v10  ;;  %v7154_v10 = vmul.f32 0.5, %v7122_v0  ;;  %v7722_v0 = vld [vmem:[%s13792_s6 + $0x98] sm:$0xff] }
 0x580   : > { %7877 = vmatpush2.msra.mxu1 %v7722_v0  ;;  %v7082_v0 = vld [vmem:[#allocation3 + $0x149] ss:$2 sm:$0xff] }
 0x581   : > { %7878 = vmatprep.subr.mxu1 %v14152_v7 }
 0x584   : > { %v5494_v30 = vpop.f32.mrf.mxu0  ;;  %9458 = vmatmul.mubr.msk.bf16.gmra.mxu0 %vm4696_vm4, %v7176_v49  ;;  %v7014_v49 = vld [vmem:[#allocation3 + $0x128] ss:$2 sm:$0xff] }
 0x585   : > { %v5796_v25 = vpop.f32.mrf.mxu1  ;;  %7418 = vmatprep.mubr.bf16.mxu0 %v13842_v2 }
 0x586   : > { %v12953_v33 = vadd.f32 %v5796_v25, %v5494_v30  ;;  %v12955_v46 = vpop.f32.mrf.mxu0  ;;  %v7177_v30 = vpack.c.bf16 %v7154_v10, %v7153_v23  ;;  %v7124_v25 = vadd.f32 %v7080_v53, %v7016_v52  ;;  %v7020_v23 = vld [vmem:[#allocation3 + $0x158] ss:$2 sm:$0xff] }
 0x587   : > { %v12957_v4 = vpop.f32.mrf.mxu1 }
 0x588   : > { %14308 = vst [vmem:[#allocation123_spill] sm:$0xff] %v12953_v33  ;;  %14309 = vst [vmem:[#allocation13_spill] sm:$0xff] %v12957_v4  ;;  %v5498_v3 = vpop.f32.mrf.mxu0  ;;  %v7123_v4 = vadd.f32 %v7078_v8, %v7014_v49  ;;  %v7156_v52 = vmul.f32 0.5, %v7124_v25 }
 0x589   : > { %v5800_v14 = vpop.f32.mrf.mxu1 }
 0x58a   : > { %v12960_v55 = vadd.f32 %v5800_v14, %v5498_v3  ;;  %v12962_v56 = vpop.f32.mrf.mxu0  ;;  %v7084_v14 = vld [vmem:[#allocation3 + $0x159] ss:$2 sm:$0xff]  ;;  %v7155_v49 = vmul.f32 0.5, %v7123_v4 }
 0x58b   : > { %v12964_v33 = vpop.f32.mrf.mxu1 }
 0x58c   : > { %14310 = vst [vmem:[#allocation124_spill] sm:$0xff] %v12960_v55  ;;  %v6168_v48 = vpop.f32.mrf.mxu0  ;;  %9459 = vmatmul.mubr.msk.bf16.gmra.mxu0 %vm4696_vm4, %v7177_v30  ;;  %v7018_v30 = vld [vmem:[#allocation3 + $0x148] ss:$2 sm:$0xff] }
 0x58d   : > { %v12971_v37 = vadd.f32 %v6168_v48, %v12605_v22  ;;  %v12973_v3 = vpop.f32.mrf.mxu1  ;;  %7428 = vmatprep.mubr.bf16.mxu0 %v13842_v2 }
 0x58e   : > { %14312 = vst [vmem:[#allocation125_spill] sm:$0xff] %v12973_v3  ;;  %v6170_v10 = vpop.f32.mrf.mxu0  ;;  %v7178_v3 = vpack.c.bf16 %v7156_v52, %v7155_v49 }
 0x58f   : > { %14311 = vst [vmem:[#allocation14_spill] sm:$0xff] %v12971_v37  ;;  %v12978_v53 = vadd.f32 %v6170_v10, %v12607_v42  ;;  %v12980_v55 = vpop.f32.mrf.mxu1  ;;  %v7126_v37 = vadd.f32 %v7084_v14, %v7020_v23  ;;  %v7721_v42 = vld [vmem:[%s13792_s6 + $0x90] sm:$0xff]  ;;  %v7024_v14 = vld [vmem:[#allocation3 + $0x178] ss:$2 sm:$0xff] }
 0x590   : > { %14313 = vst [vmem:[#allocation15_spill] sm:$0xff] %v12980_v55  ;;  %v6172_v8 = vpop.f32.mrf.mxu0  ;;  %v7125_v55 = vadd.f32 %v7082_v0, %v7018_v30  ;;  %7879 = vmatpush2.msra.mxu1 %v7721_v42  ;;  %v7086_v0 = vld [vmem:[#allocation3 + $0x169] ss:$2 sm:$0xff] }
 0x591   : > { %v12983_v22 = vadd.f32 %v6172_v8, %v12609_v54  ;;  %v12990_v25 = vpop.f32.mrf.mxu1  ;;  %7880 = vmatprep.subr.mxu1 %v14152_v7  ;;  %v7158_v52 = vmul.f32 0.5, %v7126_v37  ;;  %v7088_v8 = vld [vmem:[#allocation3 + $0x179] ss:$2 sm:$0xff] }
 0x592   : > { %v12985_v48 = vpop.f32.mrf.mxu0  ;;  %14314 = vst [vmem:[#allocation126_spill] sm:$0xff] %v12990_v25 }
 0x593   : > { %v13001_v49 = vpop.f32.mrf.mxu1 }
 0x594   : > { %v6178_v10 = vpop.f32.mrf.mxu0  ;;  %9460 = vmatmul.mubr.msk.bf16.gmra.mxu0 %vm4696_vm4, %v7178_v3  ;;  %v7157_v3 = vmul.f32 0.5, %v7125_v55 }
 0x595   : > { %v12994_v54 = vadd.f32 %v6178_v10, %v12613_v41  ;;  %7438 = vmatprep.mubr.bf16.mxu0 %v13842_v2  ;;  %v7022_v41 = vld [vmem:[#allocation3 + $0x168] ss:$2 sm:$0xff]  ;;  %v13011_v37 = vpop.f32.mrf.mxu1 }
 0x596   : > { %v6180_v4 = vpop.f32.mrf.mxu0  ;;  %v7179_v10 = vpack.c.bf16 %v7158_v52, %v7157_v3 }
 0x597   : > { %14315 = vst [vmem:[#allocation16_spill] sm:$0xff] %v12994_v54  ;;  %v12999_v23 = vadd.f32 %v6180_v4, %v12615_v61  ;;  %v7128_v54 = vadd.f32 %v7088_v8, %v7024_v14  ;;  %v7720_v61 = vld [vmem:[%s13792_s6 + $0x88] sm:$0xff]  ;;  %v13022_v3 = vpop.f32.mrf.mxu1 }
 0x598   : > { %v6182_v25 = vpop.f32.mrf.mxu0  ;;  %7881 = vmatpush2.msra.mxu1 %v7720_v61  ;;  %v7028_v14 = vld [vmem:[#allocation3 + $0x198] ss:$2 sm:$0xff]  ;;  %v7092_v8 = vld [vmem:[#allocation3 + $0x199] ss:$2 sm:$0xff] }
 0x599   : > { %14316 = vst [vmem:[#allocation127_spill] sm:$0xff] %v12999_v23  ;;  %v13004_v30 = vadd.f32 %v6182_v25, %v12620_v58  ;;  %v7127_v23 = vadd.f32 %v7086_v0, %v7022_v41  ;;  %7882 = vmatprep.subr.mxu1 %v14152_v7  ;;  %v7160_v25 = vmul.f32 0.5, %v7128_v54  ;;  %v7090_v0 = vld [vmem:[#allocation3 + $0x189] ss:$2 sm:$0xff]  ;;  %v7719_v61 = vld [vmem:[%s13792_s6 + $0x80] sm:$0xff] }
 0x59a   : > { %v13006_v42 = vpop.f32.mrf.mxu0  ;;  %7883 = vmatpush2.msra.mxu1 %v7719_v61 }
 0x59b   : > { %14317 = vst [vmem:[#allocation17_spill] sm:$0xff] %v13004_v30  ;;  %9650 = vmatprep.subr.bf16.mxu1 %v14152_v7 }
 0x59c   : > { %v6188_v4 = vpop.f32.mrf.mxu0  ;;  %9461 = vmatmul.mubr.msk.bf16.gmra.mxu0 %vm4696_vm4, %v7179_v10  ;;  %v7159_v10 = vmul.f32 0.5, %v7127_v23 }
 0x59d   : > { %v13015_v58 = vadd.f32 %v6188_v4, %v12629_v36  ;;  %7448 = vmatprep.mubr.bf16.mxu0 %v13842_v2  ;;  %v7026_v36 = vld [vmem:[#allocation3 + $0x188] ss:$2 sm:$0xff] }
 0x59e   : > { %v6190_v55 = vpop.f32.mrf.mxu0  ;;  %v7180_v54 = vpack.c.bf16 %v7160_v25, %v7159_v10  ;;  %v7032_v25 = vld [vmem:[#allocation3 + $0x1b8] ss:$2 sm:$0xff] }
 0x59f   : > { %v13020_v52 = vadd.f32 %v6190_v55, %v12635_v29  ;;  %v7130_v29 = vadd.f32 %v7092_v8, %v7028_v14  ;;  %v13033_v55 = vpop.f32.mrf.mxu1  ;;  %v7096_v14 = vld [vmem:[#allocation3 + $0x1b9] ss:$2 sm:$0xff] }
 0x5a0   : > { %v6192_v30 = vpop.f32.mrf.mxu0 }
 0x5a1   : > { %14318 = vst [vmem:[#allocation128_spill] sm:$0xff] %v13020_v52  ;;  %v13025_v41 = vadd.f32 %v6192_v30, %v12642_v26  ;;  %v7129_v26 = vadd.f32 %v7090_v0, %v7026_v36  ;;  %v13043_v8 = vpop.f32.mrf.mxu1  ;;  %v7030_v36 = vld [vmem:[#allocation3 + $0x1a8] ss:$2 sm:$0xff]  ;;  %v7094_v0 = vld [vmem:[#allocation3 + $0x1a9] ss:$2 sm:$0xff] }
 0x5a2   : > { %v13030_v4 = vpop.f32.mrf.mxu0 }
 0x5a3   : > { %14319 = vst [vmem:[#allocation18_spill] sm:$0xff] %v13025_v41  ;;  %14320 = vst [vmem:[#allocation129_spill] sm:$0xff] %v13030_v4  ;;  %v7162_v41 = vmul.f32 0.5, %v7130_v29  ;;  %v7161_v61 = vmul.f32 0.5, %v7129_v26 }
 0x5a4   : > { %v6198_v52 = vpop.f32.mrf.mxu0  ;;  %9462 = vmatmul.mubr.msk.bf16.gmra.mxu0 %vm4696_vm4, %v7180_v54  ;;  %v7132_v54 = vadd.f32 %v7096_v14, %v7032_v25  ;;  %v7100_v25 = vld [vmem:[#allocation3 + $0x1d9] ss:$2 sm:$0xff] }
 0x5a5   : > { %v13037_v23 = vadd.f32 %v6198_v52, %v12651_v43  ;;  %7458 = vmatprep.mubr.bf16.mxu0 %v13842_v2  ;;  %v7181_v52 = vpack.c.bf16 %v7162_v41, %v7161_v61  ;;  %v7036_v41 = vld [vmem:[#allocation3 + $0x1d8] ss:$2 sm:$0xff] }
 0x5a6   : > { %v6200_v30 = vpop.f32.mrf.mxu0 }
 0x5a7   : > { %14321 = vst [vmem:[#allocation19_spill] sm:$0xff] %v13037_v23  ;;  %v13041_v4 = vadd.f32 %v6200_v30, %v12659_v47  ;;  %v13050_v23 = vpop.f32.mrf.mxu1  ;;  %v7131_v47 = vadd.f32 %v7094_v0, %v7030_v36  ;;  %v5689_v30 = vadd.f32 %v12684_v12, %v12679_v32  ;;  %v7034_v0 = vld [vmem:[#allocation3 + $0x1c8] ss:$2 sm:$0xff]  ;;  %v7098_v32 = vld [vmem:[#allocation3 + $0x1c9] ss:$2 sm:$0xff] }
 0x5a8   : > { %v6202_v10 = vpop.f32.mrf.mxu0 }
 0x5a9   : > { %v13046_v7 = vadd.f32 %v6202_v10, %v12666_v9  ;;  %v7164_v10 = vmul.f32 0.5, %v7132_v54  ;;  %v13061_v14 = vpop.f32.mrf.mxu1 }
 0x5aa   : > { %v13048_v43 = vpop.f32.mrf.mxu0 }
 0x5ab   : > { %14322 = vst [vmem:[#allocation130_spill] sm:$0xff] %v13046_v7  ;;  %14323 = vst [vmem:[#allocation20_spill] sm:$0xff] %v13048_v43  ;;  %v7163_v43 = vmul.f32 0.5, %v7131_v47 }
 0x5ac   : > { %v6208_v29 = vpop.f32.mrf.mxu0  ;;  %9463 = vmatmul.mubr.msk.bf16.gmra.mxu0 %vm4696_vm4, %v7181_v52  ;;  %v7134_v52 = vadd.f32 %v7100_v25, %v7036_v41 }
 0x5ad   : > { %v13056_v26 = vadd.f32 %v6208_v29, %v12677_v11  ;;  %7468 = vmatprep.mubr.bf16.mxu0 %v13842_v2  ;;  %v7182_v11 = vpack.c.bf16 %v7164_v10, %v7163_v43  ;;  %v13068_v29 = vpop.f32.mrf.mxu1  ;;  %v7040_v43 = vld [vmem:[#allocation3 + $0x1f8] ss:$2 sm:$0xff]  ;;  %v7104_v10 = vld [vmem:[#allocation3 + $0x1f9] ss:$2 sm:$0xff] }
 0x5ae   : > { %v6210_v9 = vpop.f32.mrf.mxu0 }
 0x5af   : > { %v13059_v7 = vadd.f32 %v6210_v9, %v5689_v30  ;;  %v7133_v30 = vadd.f32 %v7098_v32, %v7034_v0  ;;  %v5699_v9 = vadd.f32 %v12707_v59, %v12711_v13  ;;  %v13079_v41 = vpop.f32.mrf.mxu1  ;;  %v7038_v32 = vld [vmem:[#allocation3 + $0x1e8] ss:$2 sm:$0xff]  ;;  %v7102_v59 = vld [vmem:[#allocation3 + $0x1e9] ss:$2 sm:$0xff] }
 0x5b0   : > { %v6212_v61 = vpop.f32.mrf.mxu0 }
 0x5b1   : > { %v13064_v36 = vadd.f32 %v6212_v61, %v12692_v40  ;;  %v7166_v61 = vmul.f32 0.5, %v7134_v52 }
 0x5b2   : > { %v13066_v12 = vpop.f32.mrf.mxu0 }
 0x5b3   : > { %14324 = vst [vmem:[#allocation131_spill] sm:$0xff] %v13064_v36  ;;  %14325 = vst [vmem:[#allocation21_spill] sm:$0xff] %v13066_v12  ;;  %v7165_v12 = vmul.f32 0.5, %v7133_v30 }
 0x5b4   : > { %v6218_v54 = vpop.f32.mrf.mxu0  ;;  %9464 = vmatmul.mubr.msk.bf16.gmra.mxu0 %vm4696_vm4, %v7182_v11  ;;  %v7136_v11 = vadd.f32 %v7104_v10, %v7040_v43 }
 0x5b5   : > { %v13074_v47 = vadd.f32 %v6218_v54, %v12709_v16  ;;  %7478 = vmatprep.mubr.bf16.mxu0 %v13842_v2  ;;  %v7183_v16 = vpack.c.bf16 %v7166_v61, %v7165_v12  ;;  %v13086_v54 = vpop.f32.mrf.mxu1 }
 0x5b6   : > { %v6220_v40 = vpop.f32.mrf.mxu0 }
 0x5b7   : > { %v13077_v36 = vadd.f32 %v6220_v40, %v5699_v9  ;;  %v7135_v9 = vadd.f32 %v7102_v59, %v7038_v32  ;;  %v5709_v40 = vadd.f32 %v12727_v5, %v12731_v15  ;;  %v13097_v12 = vpop.f32.mrf.mxu1 }
 0x5b8   : > { %v6222_v25 = vpop.f32.mrf.mxu0 }
 0x5b9   : > { %v13082_v0 = vadd.f32 %v6222_v25, %v12714_v35  ;;  %v7168_v25 = vmul.f32 0.5, %v7136_v11  ;;  %v7167_v43 = vmul.f32 0.5, %v7135_v9  ;;  %v13104_v5 = vpop.f32.mrf.mxu1 }
 0x5ba   : > { %v13084_v13 = vpop.f32.mrf.mxu0 }
 0x5bb   : > { %14326 = vst [vmem:[#allocation132_spill] sm:$0xff] %v13082_v0  ;;  %v7184_v59 = vpack.c.bf16 %v7168_v25, %v7167_v43 }
 0x5bc   : > { %v6228_v52 = vpop.f32.mrf.mxu0  ;;  %9465 = vmatmul.mubr.msk.bf16.gmra.mxu0 %vm4696_vm4, %v7183_v16 }
 0x5bd   : > { %v13092_v30 = vadd.f32 %v6228_v52, %v12729_v39  ;;  %7488 = vmatprep.mubr.bf16.mxu0 %v13842_v2  ;;  %v5719_v2 = vadd.f32 %v12747_v27, %v12751_v38  ;;  %v13114_v52 = vpop.f32.mrf.mxu1  ;;  %v5729_v27 = vadd.f32 %v12767_v62, %v12771_v1  ;;  %v5739_v62 = vadd.f32 %v12791_v28, %v12795_v24 }
 0x5be   : > { %v6230_v35 = vpop.f32.mrf.mxu0  ;;  %v5749_v28 = vadd.f32 %v12819_v6, %v12826_v18  ;;  %v14341_v18 = vld [vmem:[#allocation112_spill] sm:$0xff] }
 0x5bf   : > { %v13095_v0 = vadd.f32 %v6230_v35, %v5709_v40  ;;  %v13121_v35 = vpop.f32.mrf.mxu1 }
 0x5c0   : > { %v6232_v61 = vpop.f32.mrf.mxu0 }
 0x5c1   : > { %v13100_v10 = vadd.f32 %v6232_v61, %v12734_v60  ;;  %v13130_v43 = vpop.f32.mrf.mxu1 }
 0x5c2   : > { %v13102_v32 = vpop.f32.mrf.mxu0 }
 0x5c4   : > { %v6238_v39 = vpop.f32.mrf.mxu0  ;;  %9466 = vmatmul.mubr.msk.bf16.gmra.mxu0 %vm4696_vm4, %v7184_v59 }
 0x5c5   : > { %v13110_v15 = vadd.f32 %v6238_v39, %v12749_v21 }
 0x5c6   : > { %v6240_v16 = vpop.f32.mrf.mxu0 }
 0x5c7   : > { %v13112_v11 = vadd.f32 %v6240_v16, %v5719_v2  ;;  %v13137_v2 = vpop.f32.mrf.mxu1 }
 0x5c8   : > { %v6242_v60 = vpop.f32.mrf.mxu0 }
 0x5c9   : > { %v13117_v9 = vadd.f32 %v6242_v60, %v12754_v50 }
 0x5ca   : > { %v13119_v40 = vpop.f32.mrf.mxu0 }
 0x5cb   : > { %14327 = vst [vmem:[#allocation22_spill] sm:$0xff] %v13117_v9  ;;  %14328 = vst [vmem:[#allocation133_spill] sm:$0xff] %v13119_v40 }
 0x5cc   : > { %v6248_v25 = vpop.f32.mrf.mxu0 }
 0x5cd   : > { %v13126_v21 = vadd.f32 %v6248_v25, %v12769_v17  ;;  %v13146_v25 = vpop.f32.mrf.mxu1 }
 0x5ce   : > { %v6250_v38 = vpop.f32.mrf.mxu0 }
 0x5cf   : > { %14329 = vst [vmem:[#allocation23_spill] sm:$0xff] %v13126_v21  ;;  %v13128_v61 = vadd.f32 %v6250_v38, %v5729_v27 }
 0x5d0   : > { %v6252_v59 = vpop.f32.mrf.mxu0 }
 0x5d1   : > { %14330 = vst [vmem:[#allocation134_spill] sm:$0xff] %v13128_v61  ;;  %v13133_v50 = vadd.f32 %v6252_v59, %v12774_v45  ;;  %v13153_v59 = vpop.f32.mrf.mxu1 }
 0x5d2   : > { %v13135_v39 = vpop.f32.mrf.mxu0 }
 0x5d3   : > { %14331 = vst [vmem:[#allocation24_spill] sm:$0xff] %v13133_v50  ;;  %14332 = vst [vmem:[#allocation135_spill] sm:$0xff] %v13135_v39 }
 0x5d4   : > { %v6258_v16 = vpop.f32.mrf.mxu0 }
 0x5d5   : > { %v13142_v17 = vadd.f32 %v6258_v16, %v12793_v19 }
 0x5d6   : > { %v6260_v1 = vpop.f32.mrf.mxu0 }
 0x5d7   : > { %14333 = vst [vmem:[#allocation25_spill] sm:$0xff] %v13142_v17  ;;  %v13144_v60 = vadd.f32 %v6260_v1, %v5739_v62  ;;  %v13162_v62 = vpop.f32.mrf.mxu1 }
 0x5d8   : > { %v6262_v27 = vpop.f32.mrf.mxu0 }
 0x5d9   : > { %14334 = vst [vmem:[#allocation136_spill] sm:$0xff] %v13144_v60  ;;  %v13149_v45 = vadd.f32 %v6262_v27, %v12801_v20  ;;  %v5753_v20 = vadd.f32 %v12839_v44, %v12847_v57  ;;  %v13171_v60 = vpop.f32.mrf.mxu1  ;;  %v14345_v57 = vld [vmem:[#allocation113_spill] sm:$0xff] }
 0x5da   : > { %v13151_v38 = vpop.f32.mrf.mxu0 }
 0x5db   : > { %14335 = vst [vmem:[#allocation26_spill] sm:$0xff] %v13149_v45  ;;  %14336 = vst [vmem:[#allocation137_spill] sm:$0xff] %v13151_v38 }
 0x5dc   : > { %v6268_v50 = vpop.f32.mrf.mxu0 }
 0x5dd   : > { %v13158_v19 = vadd.f32 %v6268_v50, %v12821_v63  ;;  %v5759_v63 = vadd.f32 %v12850_v51, %v12854_v34  ;;  %v14349_v34 = vld [vmem:[#allocation115_spill] sm:$0xff] }
 0x5de   : > { %v6270_v24 = vpop.f32.mrf.mxu0 }
 0x5df   : > { %14337 = vst [vmem:[#allocation27_spill] sm:$0xff] %v13158_v19  ;;  %v13160_v16 = vadd.f32 %v6270_v24, %v5749_v28 }
 0x5e0   : > { %v6272_v1 = vpop.f32.mrf.mxu0 }
 0x5e1   : > { %14338 = vst [vmem:[#allocation138_spill] sm:$0xff] %v13160_v16  ;;  %v13167_v27 = vadd.f32 %v6272_v1, %v12830_v31  ;;  %v13180_v16 = vpop.f32.mrf.mxu1  ;;  %v14344_v31 = vld [vmem:[#allocation103_spill] sm:$0xff] }
 0x5e2   : > { %v6274_v45 = vpop.f32.mrf.mxu0  ;;  %v5763_v1 = vadd.f32 %v14345_v57, %v14344_v31  ;;  %v14355_v57 = vld [vmem:[#allocation116_spill] sm:$0xff] }
 0x5e3   : > { %14339 = vst [vmem:[#allocation28_spill] sm:$0xff] %v13167_v27  ;;  %v13169_v38 = vadd.f32 %v6274_v45, %v5753_v20  ;;  %v14346_v45 = vld [vmem:[#allocation102_spill] sm:$0xff]  ;;  %v13189_v19 = vpop.f32.mrf.mxu1 }
 0x5e4   : > { %v6278_v6 = vpop.f32.mrf.mxu0 }
 0x5e5   : > { %14340 = vst [vmem:[#allocation139_spill] sm:$0xff] %v13169_v38  ;;  %v13176_v50 = vadd.f32 %v6278_v6, %v14341_v18  ;;  %v14350_v6 = vld [vmem:[#allocation114_spill] sm:$0xff]  ;;  %v13198_v17 = vpop.f32.mrf.mxu1 }
 0x5e6   : > { %v6280_v28 = vpop.f32.mrf.mxu0  ;;  %v5769_v18 = vadd.f32 %v14350_v6, %v14349_v34  ;;  %v14360_v6 = vld [vmem:[#allocation117_spill] sm:$0xff] }
 0x5e7   : > { %14342 = vst [vmem:[#allocation29_spill] sm:$0xff] %v13176_v50  ;;  %v13178_v24 = vadd.f32 %v6280_v28, %v5759_v63  ;;  %v14351_v63 = vld [vmem:[#allocation104_spill] sm:$0xff]  ;;  %v13207_v39 = vpop.f32.mrf.mxu1 }
 0x5e8   : > { %v6282_v44 = vpop.f32.mrf.mxu0 }
 0x5e9   : > { %14343 = vst [vmem:[#allocation140_spill] sm:$0xff] %v13178_v24  ;;  %v13185_v20 = vadd.f32 %v6282_v44, %v14346_v45  ;;  %v14354_v44 = vld [vmem:[#allocation6_spill] sm:$0xff]  ;;  %v13216_v61 = vpop.f32.mrf.mxu1 }
 0x5ea   : > { %v6284_v38 = vpop.f32.mrf.mxu0  ;;  %v5773_v45 = vadd.f32 %v14355_v57, %v14354_v44  ;;  %v14365_v57 = vld [vmem:[#allocation119_spill] sm:$0xff] }
 0x5eb   : > { %14347 = vst [vmem:[#allocation30_spill] sm:$0xff] %v13185_v20  ;;  %v13187_v27 = vadd.f32 %v6284_v38, %v5763_v1  ;;  %v14356_v38 = vld [vmem:[#allocation5_spill] sm:$0xff]  ;;  %v13225_v21 = vpop.f32.mrf.mxu1 }
 0x5ec   : > { %v6288_v51 = vpop.f32.mrf.mxu0 }
 0x5ed   : > { %14348 = vst [vmem:[#allocation141_spill] sm:$0xff] %v13187_v27  ;;  %v13194_v28 = vadd.f32 %v6288_v51, %v14351_v63  ;;  %v14359_v51 = vld [vmem:[#allocation118_spill] sm:$0xff]  ;;  %v13234_v9 = vpop.f32.mrf.mxu1 }
 0x5ee   : > { %v6290_v24 = vpop.f32.mrf.mxu0  ;;  %v5779_v63 = vadd.f32 %v14360_v6, %v14359_v51  ;;  %v14370_v6 = vld [vmem:[#allocation120_spill] sm:$0xff] }
 0x5ef   : > { %14352 = vst [vmem:[#allocation31_spill] sm:$0xff] %v13194_v28  ;;  %v13196_v50 = vadd.f32 %v6290_v24, %v5769_v18  ;;  %v14361_v24 = vld [vmem:[#allocation7_spill] sm:$0xff]  ;;  %v13243_v40 = vpop.f32.mrf.mxu1 }
 0x5f0   : > { %v6292_v31 = vpop.f32.mrf.mxu0  ;;  %14379 = vst [vmem:[#allocation38_spill] sm:$0xff] %v13243_v40 }
 0x5f1   : > { %14353 = vst [vmem:[#allocation142_spill] sm:$0xff] %v13196_v50  ;;  %v13203_v1 = vadd.f32 %v6292_v31, %v14356_v38  ;;  %v14364_v31 = vld [vmem:[#allocation9_spill] sm:$0xff] }
 0x5f2   : > { %v6294_v27 = vpop.f32.mrf.mxu0  ;;  %v5783_v38 = vadd.f32 %v14365_v57, %v14364_v31  ;;  %v14375_v57 = vld [vmem:[#allocation12_spill] sm:$0xff] }
 0x5f3   : > { %14357 = vst [vmem:[#allocation32_spill] sm:$0xff] %v13203_v1  ;;  %v13205_v20 = vadd.f32 %v6294_v27, %v5773_v45  ;;  %v14366_v27 = vld [vmem:[#allocation8_spill] sm:$0xff] }
 0x5f4   : > { %v6298_v34 = vpop.f32.mrf.mxu0 }
 0x5f5   : > { %14358 = vst [vmem:[#allocation143_spill] sm:$0xff] %v13205_v20  ;;  %v13212_v18 = vadd.f32 %v6298_v34, %v14361_v24  ;;  %v14369_v34 = vld [vmem:[#allocation121_spill] sm:$0xff] }
 0x5f6   : > { %v6300_v50 = vpop.f32.mrf.mxu0  ;;  %v5789_v24 = vadd.f32 %v14370_v6, %v14369_v34 }
 0x5f7   : > { %14362 = vst [vmem:[#allocation33_spill] sm:$0xff] %v13212_v18  ;;  %v13214_v28 = vadd.f32 %v6300_v50, %v5779_v63  ;;  %v14371_v50 = vld [vmem:[#allocation10_spill] sm:$0xff] }
 0x5f8   : > { %v6302_v44 = vpop.f32.mrf.mxu0 }
 0x5f9   : > { %14363 = vst [vmem:[#allocation144_spill] sm:$0xff] %v13214_v28  ;;  %v13221_v45 = vadd.f32 %v6302_v44, %v14366_v27  ;;  %v14374_v44 = vld [vmem:[#allocation122_spill] sm:$0xff] }
 0x5fa   : > { %v6304_v20 = vpop.f32.mrf.mxu0  ;;  %v5793_v27 = vadd.f32 %v14375_v57, %v14374_v44 }
 0x5fb   : > { %14367 = vst [vmem:[#allocation34_spill] sm:$0xff] %v13221_v45  ;;  %v13223_v1 = vadd.f32 %v6304_v20, %v5783_v38  ;;  %v14376_v20 = vld [vmem:[#allocation11_spill] sm:$0xff] }
 0x5fc   : > { %v6308_v51 = vpop.f32.mrf.mxu0 }
 0x5fd   : > { %14368 = vst [vmem:[#allocation146_spill] sm:$0xff] %v13223_v1  ;;  %v13230_v63 = vadd.f32 %v6308_v51, %v14371_v50  ;;  %v14380_v51 = vld [vmem:[#allocation13_spill] sm:$0xff] }
 0x5fe   : > { %v6310_v28 = vpop.f32.mrf.mxu0  ;;  %v5799_v6 = vadd.f32 %v14380_v51, %v12955_v46 }
 0x5ff   : > { %14372 = vst [vmem:[#allocation35_spill] sm:$0xff] %v13230_v63  ;;  %v13232_v18 = vadd.f32 %v6310_v28, %v5789_v24  ;;  %v14381_v28 = vld [vmem:[#allocation123_spill] sm:$0xff]  ;;  %v13252_v63 = vpop.f32.mrf.mxu1 }
 0x600   : > { %v6312_v31 = vpop.f32.mrf.mxu0  ;;  %14384 = vst [vmem:[#allocation41_spill] sm:$0xff] %v13252_v63 }
 0x601   : > { %14373 = vst [vmem:[#allocation147_spill] sm:$0xff] %v13232_v18  ;;  %v13239_v38 = vadd.f32 %v6312_v31, %v14376_v20  ;;  %v5803_v31 = vadd.f32 %v12964_v33, %v12962_v56  ;;  %v14387_v20 = vld [vmem:[#allocation89_spill] sm:$0xff] }
 0x602   : > { %v6314_v1 = vpop.f32.mrf.mxu0  ;;  %v14393_v56 = vld [vmem:[#allocation145_spill] sm:$0xff] }
 0x603   : > { %14377 = vst [vmem:[#allocation36_spill] sm:$0xff] %v13239_v38  ;;  %v13241_v45 = vadd.f32 %v6314_v1, %v5793_v27  ;;  %v14385_v1 = vld [vmem:[#allocation124_spill] sm:$0xff]  ;;  %v7563_v27 = vld [vmem:[%s13791_s5] sm:$0x3]  ;;  %v14394_v33 = vsub.s32 0, %v14393_v56 }
 0x604   : > { %v6318_v34 = vpop.f32.mrf.mxu0 }
 0x605   : > { %14378 = vst [vmem:[#allocation37_spill] sm:$0xff] %v13241_v45  ;;  %v13248_v24 = vadd.f32 %v6318_v34, %v14381_v28  ;;  %v14388_v34 = vld [vmem:[#allocation91_spill] sm:$0xff]  ;;  %v14389_v28 = vld [vmem:[#allocation14_spill] sm:$0xff] }
 0x606   : > { %v6320_v50 = vpop.f32.mrf.mxu0  ;;  %v5653_v51 = vadd.f32 %v14388_v34, %v14387_v20  ;;  %v14396_v20 = vsub.s32 1, %v14393_v56  ;;  %v14400_v56 = vld [vmem:[#allocation16_spill] sm:$0xff] }
 0x607   : > { %14382 = vst [vmem:[#allocation39_spill] sm:$0xff] %v13248_v24  ;;  %v13250_v18 = vadd.f32 %v6320_v50, %v5799_v6  ;;  %v14390_v6 = vld [vmem:[#allocation125_spill] sm:$0xff]  ;;  %v13268_v24 = vpop.f32.mrf.mxu1 }
 0x608   : > { %v6322_v44 = vpop.f32.mrf.mxu0  ;;  %v6913_v50 = vadd.f32 %v14390_v6, %v14389_v28  ;;  %14392 = vst [vmem:[#allocation44_spill] sm:$0xff] %v13268_v24  ;;  %v6330_v38 = vadd.f32 %v12985_v48, %v5653_v51  ;;  %v13279_v34 = vrot.slane %v7563_v27, %v14396_v20  ;;  %v14398_v51 = vld [vmem:[#allocation90_spill] sm:$0xff] }
 0x609   : > { %14383 = vst [vmem:[#allocation40_spill] sm:$0xff] %v13250_v18  ;;  %v13257_v57 = vadd.f32 %v6322_v44, %v14385_v1  ;;  %v13272_v44 = vrot.slane %v7563_v27, %v14394_v33  ;;  %v14395_v1 = vld [vmem:[#allocation15_spill] sm:$0xff] }
 0x60a   : > { %v6324_v46 = vpop.f32.mrf.mxu0  ;;  %v6916_v40 = vadd.f32 %v13001_v49, %v6330_v38 }
 0x60b   : > { %14386 = vst [vmem:[#allocation42_spill] sm:$0xff] %v13257_v57  ;;  %v13266_v18 = vadd.f32 %v6324_v46, %v5803_v31  ;;  %v6914_v57 = vadd.f32 %v14395_v1, %v12978_v53  ;;  %v14397_v31 = vld [vmem:[#allocation126_spill] sm:$0xff]  ;;  %v6917_v1 = vadd.f32 %v13011_v37, %v14400_v56 }
 0x60c   : > { %v7340_v45 = vpop.f32.mrf.mxu0  ;;  %v6915_v46 = vadd.f32 %v14397_v31, %v12983_v22 }
 0x60d   : > { %14391 = vst [vmem:[#allocation43_spill] sm:$0xff] %v13266_v18  ;;  %v7499_v63 = vadd.f32 %v7340_v45, %v6913_v50  ;;  %v13283_v18 = vpop.f32.mrf.mxu1  ;;  %v14399_v50 = vld [vmem:[#allocation92_spill] sm:$0xff] }
 0x60e   : > { %v7342_v28 = vpop.f32.mrf.mxu0  ;;  %v5663_v27 = vadd.f32 %v14399_v50, %v14398_v51  ;;  %v14403_v50 = vld [vmem:[#allocation93_spill] sm:$0xff] }
 0x60f   : > { %v7500_v6 = vadd.f32 %v7342_v28, %v6914_v57  ;;  %v7575_v33 = vadd.f32 %v13272_v44, %v7499_v63  ;;  %v13292_v57 = vpop.f32.mrf.mxu1  ;;  %v14401_v28 = vld [vmem:[#allocation127_spill] sm:$0xff] }
 0x610   : > { %v7344_v24 = vpop.f32.mrf.mxu0  ;;  %v6918_v49 = vadd.f32 %v13022_v3, %v14401_v28  ;;  %v6334_v38 = vadd.f32 %v13006_v42, %v5663_v27  ;;  %v14404_v27 = vld [vmem:[#allocation94_spill] sm:$0xff]  ;;  %v14405_v28 = vld [vmem:[#allocation128_spill] sm:$0xff] }
 0x611   : > { %v7576_v53 = vadd.f32 %v13279_v34, %v7500_v6  ;;  %v7501_v48 = vadd.f32 %v7344_v24, %v6915_v46  ;;  %v14402_v6 = vld [vmem:[#allocation17_spill] sm:$0xff]  ;;  %v5673_v56 = vadd.f32 %v14404_v27, %v14403_v50  ;;  %v14409_v50 = vld [vmem:[#allocation95_spill] sm:$0xff] }
 0x612   : > { %v7346_v45 = vpop.f32.mrf.mxu0  ;;  %v6919_v37 = vadd.f32 %v13033_v55, %v14402_v6  ;;  %v6921_v55 = vadd.f32 %v13050_v23, %v13015_v58  ;;  %v14407_v6 = vld [vmem:[#allocation18_spill] sm:$0xff] }
 0x613   : > { %10161 = vtanh.f32 %v7576_v53  ;;  %v7502_v22 = vadd.f32 %v7346_v45, %v6916_v40  ;;  %v7577_v63 = vadd.f32 %v13272_v44, %v7501_v48  ;;  %v13301_v53 = vpop.f32.mrf.mxu1  ;;  %v6920_v45 = vadd.f32 %v13043_v8, %v6334_v38 }
 0x614   : > { %10163 = vtanh.f32 %v7575_v33  ;;  %v7350_v20 = vpop.f32.mrf.mxu0  ;;  %v6922_v8 = vadd.f32 %v13061_v14, %v14405_v28  ;;  %v6923_v58 = vadd.f32 %v13068_v29, %v14407_v6  ;;  %v14408_v29 = vld [vmem:[#allocation105_spill] sm:$0xff]  ;;  %v14412_v6 = vld [vmem:[#allocation130_spill] sm:$0xff] }
 0x615   : > { %v7578_v24 = vadd.f32 %v13279_v34, %v7502_v22  ;;  %v7503_v31 = vadd.f32 %v7350_v20, %v6917_v1  ;;  %v13310_v22 = vpop.f32.mrf.mxu1  ;;  %v5683_v27 = vadd.f32 %v14409_v50, %v14408_v29  ;;  %v6929_v50 = vadd.f32 %v13121_v35, %v13056_v26  ;;  %v14416_v35 = vld [vmem:[#allocation131_spill] sm:$0xff] }
 0x616   : > { %v7352_v46 = vpop.f32.mrf.mxu0 }
 0x617   : > { %10165 = vtanh.f32 %v7578_v24  ;;  %v7504_v40 = vadd.f32 %v7352_v46, %v6918_v49  ;;  %v7579_v33 = vadd.f32 %v13272_v44, %v7503_v31  ;;  %v14406_v49 = vld [vmem:[#allocation129_spill] sm:$0xff] }
 0x618   : > { %10167 = vtanh.f32 %v7577_v63  ;;  %v7354_v48 = vpop.f32.mrf.mxu0  ;;  %v6338_v38 = vadd.f32 %v14406_v49, %v5673_v56  ;;  %v14410_v56 = vld [vmem:[#allocation19_spill] sm:$0xff]  ;;  %v6926_v49 = vadd.f32 %v13097_v12, %v13041_v4 }
 0x619   : > { %v7580_v3 = vadd.f32 %v13279_v34, %v7504_v40  ;;  %v7505_v42 = vadd.f32 %v7354_v48, %v6919_v37  ;;  %v13319_v40 = vpop.f32.mrf.mxu1 }
 0x61a   : > { %v7356_v51 = vpop.f32.mrf.mxu0 }
 0x61b   : > { %10169 = vtanh.f32 %v7580_v3  ;;  %v7506_v1 = vadd.f32 %v7356_v51, %v6920_v45  ;;  %v7581_v63 = vadd.f32 %v13272_v44, %v7505_v42  ;;  %v6924_v45 = vadd.f32 %v13079_v41, %v6338_v38  ;;  %v14411_v38 = vld [vmem:[#allocation20_spill] sm:$0xff] }
 0x61c   : > { %10171 = vtanh.f32 %v7579_v33  ;;  %v7360_v20 = vpop.f32.mrf.mxu0 }
 0x61d   : > { %v7582_v24 = vadd.f32 %v13279_v34, %v7506_v1  ;;  %v7507_v31 = vadd.f32 %v7360_v20, %v6921_v55  ;;  %v6925_v55 = vadd.f32 %v13086_v54, %v14410_v56  ;;  %v13329_v20 = vpop.f32.mrf.mxu1 }
 0x61e   : > { %v7362_v46 = vpop.f32.mrf.mxu0 }
 0x61f   : > { %10173 = vtanh.f32 %v7582_v24  ;;  %v7508_v23 = vadd.f32 %v7362_v46, %v6922_v8  ;;  %v7583_v33 = vadd.f32 %v13272_v44, %v7507_v31  ;;  %v6342_v24 = vadd.f32 %v14411_v38, %v5683_v27 }
 0x620   : > { %v10162_v37 = vpop.eup %10161  ;;  %10175 = vtanh.f32 %v7581_v63  ;;  %v7364_v48 = vpop.f32.mrf.mxu0 }
 0x621   : > { %v10164_v14 = vpop.eup %10163  ;;  %v7584_v3 = vadd.f32 %v13279_v34, %v7508_v23  ;;  %v7509_v42 = vadd.f32 %v7364_v48, %v6923_v58  ;;  %9467 = vmatprep.mubr.msk.f32.mxu1 %vm7723_vm5, %v10162_v37  ;;  %v6927_v58 = vadd.f32 %v13104_v5, %v14412_v6  ;;  %v14413_v5 = vld [vmem:[#allocation96_spill] sm:$0xff] }
 0x622   : > { %v7366_v51 = vpop.f32.mrf.mxu0  ;;  %7885 = vmatmul.mubr.f32.vlgmr.msra.gmra.mxu1 %v10164_v14  ;;  %v6928_v14 = vadd.f32 %v13114_v52, %v6342_v24  ;;  %v6931_v24 = vadd.f32 %v13137_v2, %v14416_v35  ;;  %v14417_v2 = vld [vmem:[#allocation97_spill] sm:$0xff] }
 0x623   : > { %10177 = vtanh.f32 %v7584_v3  ;;  %v7510_v1 = vadd.f32 %v7366_v51, %v6924_v45  ;;  %v7585_v41 = vadd.f32 %v13272_v44, %v7509_v42  ;;  %v14414_v51 = vld [vmem:[#allocation106_spill] sm:$0xff] }
 0x624   : > { %v10166_v63 = vpop.eup %10165  ;;  %10179 = vtanh.f32 %v7583_v33  ;;  %v7370_v28 = vpop.f32.mrf.mxu0  ;;  %v5693_v29 = vadd.f32 %v14414_v51, %v14413_v5 }
 0x625   : > { %v10168_v8 = vpop.eup %10167  ;;  %v7586_v31 = vadd.f32 %v13279_v34, %v7510_v1  ;;  %v7511_v46 = vadd.f32 %v7370_v28, %v6925_v55  ;;  %9468 = vmatprep.mubr.msk.f32.mxu1 %vm7723_vm5, %v10166_v63  ;;  %v13339_v33 = vpop.f32.mrf.mxu1  ;;  %v14415_v28 = vld [vmem:[#allocation21_spill] sm:$0xff] }
 0x626   : > { %v7372_v54 = vpop.f32.mrf.mxu0  ;;  %7890 = vmatmul.mubr.f32.gmra.mxu1 %v10168_v8  ;;  %v6346_v8 = vadd.f32 %v14415_v28, %v5693_v29  ;;  %v6934_v29 = vadd.f32 %v13162_v62, %v13077_v36 }
 0x627   : > { %10181 = vtanh.f32 %v7586_v31  ;;  %v7512_v23 = vadd.f32 %v7372_v54, %v6926_v49  ;;  %v7587_v4 = vadd.f32 %v13272_v44, %v7511_v46  ;;  %v13349_v55 = vpop.f32.mrf.mxu1 }
 0x628   : > { %v10170_v37 = vpop.eup %10169  ;;  %10183 = vtanh.f32 %v7585_v41  ;;  %v7374_v12 = vpop.f32.mrf.mxu0  ;;  %v6930_v41 = vadd.f32 %v13130_v43, %v13059_v7 }
 0x629   : > { %v10172_v48 = vpop.eup %10171  ;;  %v7588_v45 = vadd.f32 %v13279_v34, %v7512_v23  ;;  %v7513_v3 = vadd.f32 %v7374_v12, %v6927_v58  ;;  %9469 = vmatprep.mubr.msk.f32.mxu1 %vm7723_vm5, %v10170_v37  ;;  %v13359_v54 = vpop.f32.mrf.mxu1  ;;  %v6932_v58 = vadd.f32 %v13146_v25, %v6346_v8  ;;  %v14418_v12 = vld [vmem:[#allocation107_spill] sm:$0xff] }
 0x62a   : > { %v7376_v42 = vpop.f32.mrf.mxu0  ;;  %7895 = vmatmul.mubr.f32.gmra.mxu1 %v10172_v48  ;;  %v5703_v48 = vadd.f32 %v14418_v12, %v14417_v2 }
 0x62b   : > { %10185 = vtanh.f32 %v7588_v45  ;;  %v7514_v27 = vadd.f32 %v7376_v42, %v6928_v14  ;;  %v7589_v52 = vadd.f32 %v13272_v44, %v7513_v3  ;;  %v6933_v14 = vadd.f32 %v13153_v59, %v13074_v47  ;;  %v13369_v42 = vpop.f32.mrf.mxu1  ;;  %v14419_v59 = vld [vmem:[#allocation132_spill] sm:$0xff] }
 0x62c   : > { %v10174_v56 = vpop.eup %10173  ;;  %10187 = vtanh.f32 %v7587_v4  ;;  %v7380_v1 = vpop.f32.mrf.mxu0 }
 0x62d   : > { %v10176_v63 = vpop.eup %10175  ;;  %v7590_v49 = vadd.f32 %v13279_v34, %v7514_v27  ;;  %v7515_v38 = vadd.f32 %v7380_v1, %v6929_v50  ;;  %9470 = vmatprep.mubr.msk.f32.mxu1 %vm7723_vm5, %v10174_v56  ;;  %v6350_v50 = vadd.f32 %v13084_v13, %v5703_v48 }
 0x62e   : > { %v7382_v26 = vpop.f32.mrf.mxu0  ;;  %7900 = vmatmul.mubr.f32.gmra.mxu1 %v10176_v63 }
 0x62f   : > { %10189 = vtanh.f32 %v7590_v49  ;;  %v7516_v31 = vadd.f32 %v7382_v26, %v6930_v41  ;;  %v7591_v7 = vadd.f32 %v13272_v44, %v7515_v38  ;;  %v13379_v41 = vpop.f32.mrf.mxu1  ;;  %v6936_v28 = vadd.f32 %v13180_v16, %v6350_v50  ;;  %v14421_v26 = vld [vmem:[#allocation108_spill] sm:$0xff] }
 0x630   : > { %v10178_v46 = vpop.eup %10177  ;;  %10191 = vtanh.f32 %v7589_v52  ;;  %v7384_v43 = vpop.f32.mrf.mxu0  ;;  %v6935_v52 = vadd.f32 %v13171_v60, %v14419_v59  ;;  %v14420_v60 = vld [vmem:[#allocation98_spill] sm:$0xff]  ;;  %v6942_v59 = vadd.f32 %v13234_v9, %v13112_v11 }
 0x631   : > { %v10180_v6 = vpop.eup %10179  ;;  %v7592_v23 = vadd.f32 %v13279_v34, %v7516_v31  ;;  %v7517_v37 = vadd.f32 %v7384_v43, %v6931_v24  ;;  %9471 = vmatprep.mubr.msk.f32.mxu1 %vm7723_vm5, %v10178_v46  ;;  %v5713_v35 = vadd.f32 %v14421_v26, %v14420_v60  ;;  %v6937_v24 = vadd.f32 %v13189_v19, %v13092_v30  ;;  %v14427_v60 = vld [vmem:[#allocation41_spill] sm:$0xff] }
 0x632   : > { %v7386_v4 = vpop.f32.mrf.mxu0  ;;  %7905 = vmatmul.mubr.f32.gmra.mxu1 %v10180_v6  ;;  %v6939_v19 = vadd.f32 %v13207_v39, %v13100_v10  ;;  %v14422_v10 = vld [vmem:[#allocation99_spill] sm:$0xff]  ;;  %v14423_v39 = vld [vmem:[#allocation109_spill] sm:$0xff] }
 0x633   : > { %10193 = vtanh.f32 %v7592_v23  ;;  %v7518_v45 = vadd.f32 %v7386_v4, %v6932_v58  ;;  %v7593_v25 = vadd.f32 %v13272_v44, %v7517_v37  ;;  %v6938_v58 = vadd.f32 %v13198_v17, %v13095_v0 }
 0x634   : > { %v10182_v3 = vpop.eup %10181  ;;  %10195 = vtanh.f32 %v7591_v7  ;;  %v7390_v5 = vpop.f32.mrf.mxu0  ;;  %v6354_v23 = vadd.f32 %v13102_v32, %v5713_v35 }
 0x635   : > { %v10184_v51 = vpop.eup %10183  ;;  %v7594_v27 = vadd.f32 %v13279_v34, %v7518_v45  ;;  %v7519_v56 = vadd.f32 %v7390_v5, %v6933_v14  ;;  %9472 = vmatprep.mubr.msk.f32.mxu1 %vm7723_vm5, %v10182_v3  ;;  %v13389_v7 = vpop.f32.mrf.mxu1  ;;  %v5723_v5 = vadd.f32 %v14423_v39, %v14422_v10  ;;  %v14434_v10 = vld [vmem:[#allocation24_spill] sm:$0xff] }
 0x636   : > { %v7392_v47 = vpop.f32.mrf.mxu0  ;;  %7910 = vmatmul.mubr.f32.gmra.mxu1 %v10184_v51  ;;  %v6940_v14 = vadd.f32 %v13216_v61, %v6354_v23  ;;  %v6941_v51 = vadd.f32 %v13225_v21, %v13110_v15  ;;  %v14425_v21 = vld [vmem:[#allocation22_spill] sm:$0xff]  ;;  %v6947_v39 = vadd.f32 %v13292_v57, %v14434_v10  ;;  %v14435_v57 = vld [vmem:[#allocation101_spill] sm:$0xff] }
 0x637   : > { %10197 = vtanh.f32 %v7594_v27  ;;  %v7520_v1 = vadd.f32 %v7392_v47, %v6934_v29  ;;  %v7595_v36 = vadd.f32 %v13272_v44, %v7519_v56  ;;  %v13399_v48 = vpop.f32.mrf.mxu1 }
 0x638   : > { %v10186_v63 = vpop.eup %10185  ;;  %10199 = vtanh.f32 %v7593_v25  ;;  %v7394_v62 = vpop.f32.mrf.mxu0 }
 0x639   : > { %v10188_v13 = vpop.eup %10187  ;;  %v7596_v8 = vadd.f32 %v13279_v34, %v7520_v1  ;;  %v7521_v49 = vadd.f32 %v7394_v62, %v6935_v52  ;;  %9473 = vmatprep.mubr.msk.f32.mxu1 %vm7723_vm5, %v10186_v63  ;;  %v13409_v27 = vpop.f32.mrf.mxu1  ;;  %v14424_v52 = vld [vmem:[#allocation133_spill] sm:$0xff]  ;;  %v14426_v62 = vld [vmem:[#allocation38_spill] sm:$0xff] }
 0x63a   : > { %v7396_v38 = vpop.f32.mrf.mxu0  ;;  %7915 = vmatmul.mubr.f32.gmra.mxu1 %v10188_v13  ;;  %v6358_v1 = vadd.f32 %v14424_v52, %v5723_v5  ;;  %v6943_v13 = vadd.f32 %v14426_v62, %v14425_v21 }
 0x63b   : > { %10201 = vtanh.f32 %v7596_v8  ;;  %v7522_v31 = vadd.f32 %v7396_v38, %v6936_v28  ;;  %v7597_v16 = vadd.f32 %v13272_v44, %v7521_v49  ;;  %v13419_v49 = vpop.f32.mrf.mxu1 }
 0x63c   : > { %v10190_v46 = vpop.eup %10189  ;;  %10203 = vtanh.f32 %v7595_v36  ;;  %v7400_v43 = vpop.f32.mrf.mxu0  ;;  %v6944_v26 = vadd.f32 %v14427_v60, %v6358_v1  ;;  %v14436_v1 = vld [vmem:[#allocation111_spill] sm:$0xff] }
 0x63d   : > { %v10192_v6 = vpop.eup %10191  ;;  %v7598_v37 = vadd.f32 %v13279_v34, %v7522_v31  ;;  %v7523_v4 = vadd.f32 %v7400_v43, %v6937_v24  ;;  %9474 = vmatprep.mubr.msk.f32.mxu1 %vm7723_vm5, %v10190_v46  ;;  %v14428_v46 = vld [vmem:[#allocation100_spill] sm:$0xff] }
 0x63e   : > { %v7402_v30 = vpop.f32.mrf.mxu0  ;;  %7920 = vmatmul.mubr.f32.gmra.mxu1 %v10192_v6  ;;  %v14430_v6 = vld [vmem:[#allocation23_spill] sm:$0xff] }
 0x63f   : > { %10205 = vtanh.f32 %v7598_v37  ;;  %v7524_v2 = vadd.f32 %v7402_v30, %v6938_v58  ;;  %v7599_v0 = vadd.f32 %v13272_v44, %v7523_v4  ;;  %v14431_v58 = vld [vmem:[#allocation44_spill] sm:$0xff]  ;;  %v13429_v30 = vpop.f32.mrf.mxu1 }
 0x640   : > { %v10194_v12 = vpop.eup %10193  ;;  %10207 = vtanh.f32 %v7597_v16  ;;  %v7404_v17 = vpop.f32.mrf.mxu0  ;;  %v14429_v16 = vld [vmem:[#allocation110_spill] sm:$0xff]  ;;  %v6945_v23 = vadd.f32 %v14431_v58, %v14430_v6 }
 0x641   : > { %v10196_v32 = vpop.eup %10195  ;;  %v7600_v45 = vadd.f32 %v13279_v34, %v7524_v2  ;;  %v7525_v3 = vadd.f32 %v7404_v17, %v6939_v19  ;;  %9475 = vmatprep.mubr.msk.f32.mxu1 %vm7723_vm5, %v10194_v12  ;;  %v5733_v43 = vadd.f32 %v14429_v16, %v14428_v46 }
 0x642   : > { %v7406_v25 = vpop.f32.mrf.mxu0  ;;  %7925 = vmatmul.mubr.f32.gmra.mxu1 %v10196_v32  ;;  %v14433_v32 = vld [vmem:[#allocation135_spill] sm:$0xff] }
 0x643   : > { %10209 = vtanh.f32 %v7600_v45  ;;  %v7526_v29 = vadd.f32 %v7406_v25, %v6940_v14  ;;  %v7601_v61 = vadd.f32 %v13272_v44, %v7525_v3  ;;  %v6362_v14 = vadd.f32 %v14433_v32, %v5733_v43 }
 0x644   : > { %v10198_v50 = vpop.eup %10197  ;;  %10211 = vtanh.f32 %v7599_v0  ;;  %v7410_v56 = vpop.f32.mrf.mxu0  ;;  %v14432_v0 = vld [vmem:[#allocation134_spill] sm:$0xff] }
 0x645   : > { %v10200_v47 = vpop.eup %10199  ;;  %v7602_v63 = vadd.f32 %v13279_v34, %v7526_v29  ;;  %v7527_v36 = vadd.f32 %v7410_v56, %v6941_v51  ;;  %9476 = vmatprep.mubr.msk.f32.mxu1 %vm7723_vm5, %v10198_v50  ;;  %v6946_v17 = vadd.f32 %v13283_v18, %v14432_v0  ;;  %v13439_v29 = vpop.f32.mrf.mxu1  ;;  %v6948_v56 = vadd.f32 %v13301_v53, %v6362_v14 }
 0x646   : > { %v7412_v15 = vpop.f32.mrf.mxu0  ;;  %7930 = vmatmul.mubr.f32.gmra.mxu1 %v10200_v47 }
 0x647   : > { %10213 = vtanh.f32 %v7602_v63  ;;  %v7528_v28 = vadd.f32 %v7412_v15, %v6942_v59  ;;  %v7603_v11 = vadd.f32 %v13272_v44, %v7527_v36  ;;  %v5743_v63 = vadd.f32 %v14436_v1, %v14435_v57  ;;  %v14437_v36 = vld [vmem:[#allocation25_spill] sm:$0xff] }
 0x648   : > { %v10202_v8 = vpop.eup %10201  ;;  %10215 = vtanh.f32 %v7601_v61  ;;  %v7414_v9 = vpop.f32.mrf.mxu0  ;;  %v6949_v15 = vadd.f32 %v13310_v22, %v14437_v36 }
 0x649   : > { %v10204_v38 = vpop.eup %10203  ;;  %v7604_v35 = vadd.f32 %v13279_v34, %v7528_v28  ;;  %v7529_v24 = vadd.f32 %v7414_v9, %v6943_v13  ;;  %9477 = vmatprep.mubr.msk.f32.mxu1 %vm7723_vm5, %v10202_v8  ;;  %v13449_v13 = vpop.f32.mrf.mxu1 }
 0x64a   : > { %v7416_v31 = vpop.f32.mrf.mxu0  ;;  %7935 = vmatmul.mubr.f32.gmra.mxu1 %v10204_v38  ;;  %v14439_v38 = vld [vmem:[#allocation137_spill] sm:$0xff] }
 0x64b   : > { %10217 = vtanh.f32 %v7604_v35  ;;  %v7530_v37 = vadd.f32 %v7416_v31, %v6944_v26  ;;  %v7605_v19 = vadd.f32 %v13272_v44, %v7529_v24  ;;  %v6366_v60 = vadd.f32 %v14439_v38, %v5743_v63  ;;  %v14440_v24 = vld [vmem:[#allocation26_spill] sm:$0xff]  ;;  %v13459_v43 = vpop.f32.mrf.mxu1 }
 0x64c   : > { %v10206_v4 = vpop.eup %10205  ;;  %10219 = vtanh.f32 %v7603_v11  ;;  %v7420_v2 = vpop.f32.mrf.mxu0  ;;  %v14438_v11 = vld [vmem:[#allocation136_spill] sm:$0xff]  ;;  %v6951_v31 = vadd.f32 %v13329_v20, %v14440_v24  ;;  %v14441_v20 = vld [vmem:[#allocation27_spill] sm:$0xff] }
 0x64d   : > { %v10208_v12 = vpop.eup %10207  ;;  %v7606_v45 = vadd.f32 %v13279_v34, %v7530_v37  ;;  %v7531_v3 = vadd.f32 %v7420_v2, %v6945_v23  ;;  %9478 = vmatprep.mubr.msk.f32.mxu1 %vm7723_vm5, %v10206_v4  ;;  %v6950_v9 = vadd.f32 %v13319_v40, %v14438_v11  ;;  %v6952_v23 = vadd.f32 %v13339_v33, %v6366_v60 }
 0x64e   : > { %v7422_v25 = vpop.f32.mrf.mxu0  ;;  %7940 = vmatmul.mubr.f32.gmra.mxu1 %v10208_v12  ;;  %v6953_v2 = vadd.f32 %v13349_v55, %v14441_v20  ;;  %v14443_v55 = vld [vmem:[#allocation28_spill] sm:$0xff] }
 0x64f   : > { %10221 = vtanh.f32 %v7606_v45  ;;  %v7532_v5 = vadd.f32 %v7422_v25, %v6946_v17  ;;  %v7607_v18 = vadd.f32 %v13272_v44, %v7531_v3  ;;  %v13467_v17 = vpop.f32.mrf.mxu1  ;;  %v14442_v45 = vld [vmem:[#allocation138_spill] sm:$0xff] }
 0x650   : > { %v10210_v51 = vpop.eup %10209  ;;  %10223 = vtanh.f32 %v7605_v19  ;;  %v7424_v50 = vpop.f32.mrf.mxu0  ;;  %v6954_v3 = vadd.f32 %v13359_v54, %v14442_v45 }
 0x651   : > { %v10212_v61 = vpop.eup %10211  ;;  %v7608_v47 = vadd.f32 %v13279_v34, %v7532_v5  ;;  %v7533_v59 = vadd.f32 %v7424_v50, %v6947_v39  ;;  %9479 = vmatprep.mubr.msk.f32.mxu1 %vm7723_vm5, %v10210_v51  ;;  %v6955_v5 = vadd.f32 %v13369_v42, %v14443_v55  ;;  %v13476_v50 = vpop.f32.mrf.mxu1  ;;  %v14445_v42 = vld [vmem:[#allocation29_spill] sm:$0xff] }
 0x652   : > { %v7426_v52 = vpop.f32.mrf.mxu0  ;;  %7945 = vmatmul.mubr.f32.gmra.mxu1 %v10212_v61  ;;  %v6957_v63 = vadd.f32 %v13389_v7, %v14445_v42  ;;  %v14447_v7 = vld [vmem:[#allocation30_spill] sm:$0xff] }
 0x653   : > { %10225 = vtanh.f32 %v7608_v47  ;;  %v7534_v21 = vadd.f32 %v7426_v52, %v6948_v56  ;;  %v7609_v53 = vadd.f32 %v13272_v44, %v7533_v59  ;;  %v14444_v47 = vld [vmem:[#allocation139_spill] sm:$0xff]  ;;  %v6959_v60 = vadd.f32 %v13409_v27, %v14447_v7 }
 0x654   : > { %v10214_v62 = vpop.eup %10213  ;;  %10227 = vtanh.f32 %v7607_v18  ;;  %v7430_v28 = vpop.f32.mrf.mxu0  ;;  %v6956_v59 = vadd.f32 %v13379_v41, %v14444_v47  ;;  %v14449_v27 = vld [vmem:[#allocation31_spill] sm:$0xff] }
 0x655   : > { %v10216_v8 = vpop.eup %10215  ;;  %v7610_v26 = vadd.f32 %v13279_v34, %v7534_v21  ;;  %v7535_v35 = vadd.f32 %v7430_v28, %v6949_v15  ;;  %9480 = vmatprep.mubr.msk.f32.mxu1 %vm7723_vm5, %v10214_v62  ;;  %v13485_v21 = vpop.f32.mrf.mxu1  ;;  %v14446_v28 = vld [vmem:[#allocation140_spill] sm:$0xff] }
 0x656   : > { %v7432_v22 = vpop.f32.mrf.mxu0  ;;  %7950 = vmatmul.mubr.f32.gmra.mxu1 %v10216_v8  ;;  %v6958_v8 = vadd.f32 %v13399_v48, %v14446_v28 }
 0x657   : > { %10229 = vtanh.f32 %v7610_v26  ;;  %v7536_v46 = vadd.f32 %v7432_v22, %v6950_v9  ;;  %v7611_v40 = vadd.f32 %v13272_v44, %v7535_v35  ;;  %v13494_v22 = vpop.f32.mrf.mxu1 }
 0x658   : > { %v10218_v16 = vpop.eup %10217  ;;  %10231 = vtanh.f32 %v7609_v53  ;;  %v7434_v6 = vpop.f32.mrf.mxu0 }
 0x659   : > { %v10220_v58 = vpop.eup %10219  ;;  %v7612_v37 = vadd.f32 %v13279_v34, %v7536_v46  ;;  %v7537_v4 = vadd.f32 %v7434_v6, %v6951_v31  ;;  %9481 = vmatprep.mubr.msk.f32.mxu1 %vm7723_vm5, %v10218_v16  ;;  %v14448_v46 = vld [vmem:[#allocation141_spill] sm:$0xff] }
 0x65a   : > { %v7436_v19 = vpop.f32.mrf.mxu0  ;;  %7955 = vmatmul.mubr.f32.gmra.mxu1 %v10220_v58  ;;  %v6960_v16 = vadd.f32 %v13419_v49, %v14448_v46  ;;  %v14450_v49 = vld [vmem:[#allocation142_spill] sm:$0xff] }
 0x65b   : > { %10233 = vtanh.f32 %v7612_v37  ;;  %v7538_v12 = vadd.f32 %v7436_v19, %v6952_v23  ;;  %v7613_v32 = vadd.f32 %v13272_v44, %v7537_v4  ;;  %v6961_v23 = vadd.f32 %v13429_v30, %v14449_v27  ;;  %v6894_v19 = vpop.f32.mrf.mxu1  ;;  %v14451_v30 = vld [vmem:[#allocation32_spill] sm:$0xff] }
 0x65c   : > { %v10222_v0 = vpop.eup %10221  ;;  %10235 = vtanh.f32 %v7611_v40  ;;  %v7440_v14 = vpop.f32.mrf.mxu0  ;;  %v6963_v45 = vadd.f32 %v13449_v13, %v14451_v30  ;;  %v14453_v13 = vld [vmem:[#allocation33_spill] sm:$0xff] }
 0x65d   : > { %v10224_v33 = vpop.eup %10223  ;;  %v7614_v25 = vadd.f32 %v13279_v34, %v7538_v12  ;;  %v7539_v10 = vadd.f32 %v7440_v14, %v6953_v2  ;;  %9482 = vmatprep.mubr.msk.f32.mxu1 %vm7723_vm5, %v10222_v0  ;;  %v6962_v0 = vadd.f32 %v13439_v29, %v14450_v49  ;;  %v14452_v29 = vld [vmem:[#allocation143_spill] sm:$0xff]  ;;  %v14461_v30 = vld [vmem:[#allocation37_spill] sm:$0xff] }
 0x65e   : > { %v7442_v39 = vpop.f32.mrf.mxu0  ;;  %7960 = vmatmul.mubr.f32.gmra.mxu1 %v10224_v33 }
 0x65f   : > { %10237 = vtanh.f32 %v7614_v25  ;;  %v7540_v51 = vadd.f32 %v7442_v39, %v6954_v3  ;;  %v7615_v61 = vadd.f32 %v13272_v44, %v7539_v10  ;;  %v6896_v10 = vpop.f32.mrf.mxu1 }
 0x660   : > { %v10226_v18 = vpop.eup %10225  ;;  %10239 = vtanh.f32 %v7613_v32  ;;  %v7444_v56 = vpop.f32.mrf.mxu0 }
 0x661   : > { %v10228_v54 = vpop.eup %10227  ;;  %v7616_v52 = vadd.f32 %v13279_v34, %v7540_v51  ;;  %v7541_v57 = vadd.f32 %v7444_v56, %v6955_v5  ;;  %9483 = vmatprep.mubr.msk.f32.mxu1 %vm7723_vm5, %v10226_v18  ;;  %v6964_v51 = vadd.f32 %v13459_v43, %v14452_v29  ;;  %v9867_v29 = vld [vmem:[%s13793_s7 + $0x20] sm:$0xff]  }
 0x662   : > { %v7446_v1 = vpop.f32.mrf.mxu0  ;;  %7965 = vmatmul.mubr.f32.gmra.mxu1 %v10228_v54  ;;  %v6965_v54 = vadd.f32 %v13467_v17, %v14453_v13  ;;  %v9868_v13 = vld [vmem:[%s13793_s7 + $0x40] sm:$0xff]  }
 0x663   : > { %10241 = vtanh.f32 %v7616_v52  ;;  %v7542_v36 = vadd.f32 %v7446_v1, %v6956_v59  ;;  %v7617_v62 = vadd.f32 %v13272_v44, %v7541_v57  ;;  %v9866_v59 = vld [vmem:[%s13793_s7 + $0x48] sm:$0xff]   ;;  %v6898_v57 = vpop.f32.mrf.mxu1  ;;  %9651 = vmatpush3.bf16.msra.mxu1 %v9867_v29 }
 0x664   : > { %v10230_v15 = vpop.eup %10229  ;;  %10243 = vtanh.f32 %v7615_v61  ;;  %v7450_v53 = vpop.f32.mrf.mxu0  ;;  %9637 = vmatpush3.bf16.msra.mxu0 %v9866_v59 }
 0x665   : > { %v10232_v41 = vpop.eup %10231  ;;  %v7618_v11 = vadd.f32 %v13279_v34, %v7542_v36  ;;  %v7543_v9 = vadd.f32 %v7450_v53, %v6957_v63  ;;  %9484 = vmatprep.mubr.msk.f32.mxu1 %vm7723_vm5, %v10230_v15  ;;  %v14454_v63 = vld [vmem:[#allocation144_spill] sm:$0xff]  ;;  %v14455_v53 = vmov 0.0  }
 0x666   : > { %v7452_v38 = vpop.f32.mrf.mxu0  ;;  %7970 = vmatmul.mubr.f32.gmra.mxu1 %v10232_v41  ;;  %v6966_v36 = vadd.f32 %v13476_v50, %v14454_v63  ;;  %9638 = vmatprep.subr.bf16.mxu0 %v14455_v53  ;;  %v14456_v41 = vld [vmem:[#allocation34_spill] sm:$0xff] }
 0x667   : > { %10245 = vtanh.f32 %v7618_v11  ;;  %v7544_v26 = vadd.f32 %v7452_v38, %v6958_v8  ;;  %v7619_v24 = vadd.f32 %v13272_v44, %v7543_v9  ;;  %v6967_v28 = vadd.f32 %v13485_v21, %v14456_v41  ;;  %v6900_v9 = vpop.f32.mrf.mxu1  ;;  %v14458_v21 = vld [vmem:[#allocation35_spill] sm:$0xff]  ;;  %9652 = vmatprep.subr.bf16.mxu1 %v14455_v53  ;;  %9646 = vmatprep.mubr.msk.bf16.mxu0 %vm10311_vm7, %v14455_v53 }
 0x668   : > { %v10234_v35 = vpop.eup %10233  ;;  %10247 = vtanh.f32 %v7617_v62  ;;  %v7454_v31 = vpop.f32.mrf.mxu0  ;;  %9639 = vmatpush3.bf16.msra.mxu0 %v9868_v13 }
 0x669   : > { %v10236_v48 = vpop.eup %10235  ;;  %v7620_v40 = vadd.f32 %v13279_v34, %v7544_v26  ;;  %v7545_v6 = vadd.f32 %v7454_v31, %v6959_v60  ;;  %9485 = vmatprep.mubr.msk.f32.mxu1 %vm7723_vm5, %v10234_v35  ;;  %v14457_v60 = vld [vmem:[#allocation146_spill] sm:$0xff]  ;;  %9640 = vmatprep.subr.bf16.mxu0 %v14455_v53 }
 0x66a   : > { %v7456_v58 = vpop.f32.mrf.mxu0  ;;  %7975 = vmatmul.mubr.f32.gmra.mxu1 %v10236_v48  ;;  %v6968_v26 = vadd.f32 %v13494_v22, %v14457_v60  ;;  %v6969_v48 = vadd.f32 %v6894_v19, %v14458_v21 }
 0x66b   : > { %10249 = vtanh.f32 %v7620_v40  ;;  %v7546_v37 = vadd.f32 %v7456_v58, %v6960_v16  ;;  %v7621_v20 = vadd.f32 %v13272_v44, %v7545_v6  ;;  %v6904_v40 = vpop.f32.mrf.mxu1 }
 0x66c   : > { %v10238_v4 = vpop.eup %10237  ;;  %10251 = vtanh.f32 %v7619_v24  ;;  %v7460_v2 = vpop.f32.mrf.mxu0 }
 0x66d   : > { %v10240_v12 = vpop.eup %10239  ;;  %v7622_v32 = vadd.f32 %v13279_v34, %v7546_v37  ;;  %v7547_v14 = vadd.f32 %v7460_v2, %v6961_v23  ;;  %9486 = vmatprep.mubr.msk.f32.mxu1 %vm7723_vm5, %v10238_v4  ;;  %v14459_v23 = vld [vmem:[#allocation147_spill] sm:$0xff]  ;;  %v14460_v2 = vld [vmem:[#allocation36_spill] sm:$0xff] }
 0x66e   : > { %v7462_v33 = vpop.f32.mrf.mxu0  ;;  %7980 = vmatmul.mubr.f32.gmra.mxu1 %v10240_v12  ;;  %v6970_v22 = vadd.f32 %v6896_v10, %v14459_v23  ;;  %v6971_v19 = vadd.f32 %v6898_v57, %v14460_v2  ;;  %v9873_v23 = vld [vmem:[%s13793_s7 + $0x8] sm:$0xff]  }
 0x66f   : > { %10253 = vtanh.f32 %v7622_v32  ;;  %v7548_v3 = vadd.f32 %v7462_v33, %v6962_v0  ;;  %v7623_v39 = vadd.f32 %v13272_v44, %v7547_v14  ;;  %v6906_v0 = vpop.f32.mrf.mxu1 }
 0x670   : > { %v10242_v25 = vpop.eup %10241  ;;  %10255 = vtanh.f32 %v7621_v20  ;;  %v7464_v55 = vpop.f32.mrf.mxu0 }
 0x671   : > { %v10244_v5 = vpop.eup %10243  ;;  %v7624_v18 = vadd.f32 %v13279_v34, %v7548_v3  ;;  %v7549_v61 = vadd.f32 %v7464_v55, %v6963_v45  ;;  %9487 = vmatprep.mubr.msk.f32.mxu1 %vm7723_vm5, %v10242_v25  ;;  %v6972_v45 = vadd.f32 %v6900_v9, %v14461_v30 }
 0x672   : > { %v7466_v56 = vpop.f32.mrf.mxu0  ;;  %7985 = vmatmul.mubr.f32.gmra.mxu1 %v10244_v5 }
 0x673   : > { %10257 = vtanh.f32 %v7624_v18  ;;  %v7550_v47 = vadd.f32 %v7466_v56, %v6964_v51  ;;  %v7625_v43 = vadd.f32 %v13272_v44, %v7549_v61  ;;  %v6908_v18 = vpop.f32.mrf.mxu1 }
 0x674   : > { %v10246_v52 = vpop.eup %10245  ;;  %10259 = vtanh.f32 %v7623_v39  ;;  %v7470_v1 = vpop.f32.mrf.mxu0  ;;  %v14462_v39 = vld [vmem:[#allocation39_spill] sm:$0xff] }
 0x675   : > { %v10248_v42 = vpop.eup %10247  ;;  %v7626_v15 = vadd.f32 %v13279_v34, %v7550_v47  ;;  %v7551_v62 = vadd.f32 %v7470_v1, %v6965_v54  ;;  %9488 = vmatprep.mubr.msk.f32.mxu1 %vm7723_vm5, %v10246_v52  ;;  %v6973_v55 = vadd.f32 %v6904_v40, %v14462_v39  ;;  %v14463_v47 = vld [vmem:[#allocation40_spill] sm:$0xff]  ;;  %v14464_v1 = vld [vmem:[#allocation42_spill] sm:$0xff] }
 0x676   : > { %v7472_v17 = vpop.f32.mrf.mxu0  ;;  %7990 = vmatmul.mubr.f32.gmra.mxu1 %v10248_v42  ;;  %v6974_v59 = vadd.f32 %v6906_v0, %v14463_v47  ;;  %v6975_v42 = vadd.f32 %v6908_v18, %v14464_v1 }
 0x677   : > { %10261 = vtanh.f32 %v7626_v15  ;;  %v7552_v8 = vadd.f32 %v7472_v17, %v6966_v36  ;;  %v7627_v50 = vadd.f32 %v13272_v44, %v7551_v62  ;;  %v6910_v15 = vpop.f32.mrf.mxu1 }
 0x678   : > { %v10250_v11 = vpop.eup %10249  ;;  %10263 = vtanh.f32 %v7625_v43  ;;  %v7474_v38 = vpop.f32.mrf.mxu0 }
 0x679   : > { %v10252_v7 = vpop.eup %10251  ;;  %v7628_v35 = vadd.f32 %v13279_v34, %v7552_v8  ;;  %v7553_v24 = vadd.f32 %v7474_v38, %v6967_v28  ;;  %9489 = vmatprep.mubr.msk.f32.mxu1 %vm7723_vm5, %v10250_v11  ;;  %v14465_v28 = vld [vmem:[#allocation43_spill] sm:$0xff] }
 0x67a   : > { %v7476_v31 = vpop.f32.mrf.mxu0  ;;  %7995 = vmatmul.mubr.f32.gmra.mxu1 %v10252_v7  ;;  %v6976_v8 = vadd.f32 %v6910_v15, %v14465_v28 }
 0x67b   : > { %10265 = vtanh.f32 %v7628_v35  ;;  %v7554_v46 = vadd.f32 %v7476_v31, %v6968_v26  ;;  %v7629_v6 = vadd.f32 %v13272_v44, %v7553_v24 }
 0x67c   : > { %v10254_v16 = vpop.eup %10253  ;;  %10267 = vtanh.f32 %v7627_v50  ;;  %v7480_v58 = vpop.f32.mrf.mxu0 }
 0x67d   : > { %v10256_v27 = vpop.eup %10255  ;;  %v7630_v37 = vadd.f32 %v13279_v34, %v7554_v46  ;;  %v7555_v4 = vadd.f32 %v7480_v58, %v6969_v48  ;;  %9490 = vmatprep.mubr.msk.f32.mxu1 %vm7723_vm5, %v10254_v16  ;;  %v9871_v58 = vld [vmem:[%s13793_s7 + $0x10] sm:$0xff]  }
 0x67e   : > { %v7482_v20 = vpop.f32.mrf.mxu0  ;;  %8000 = vmatmul.mubr.f32.gmra.mxu1 %v10256_v27  ;;  %v9872_v27 = vld [vmem:[%s13793_s7 + $0x30] sm:$0xff]  }
 0x67f   : > { %10269 = vtanh.f32 %v7630_v37  ;;  %v7556_v12 = vadd.f32 %v7482_v20, %v6970_v22  ;;  %v7631_v32 = vadd.f32 %v13272_v44, %v7555_v4  ;;  %v9874_v22 = vld [vmem:[%s13793_s7 + $0x28] sm:$0xff]   ;;  %v9875_v37 = vld [vmem:[%s13793_s7] sm:$0xff]  }
 0x680   : > { %v10258_v49 = vpop.eup %10257  ;;  %10271 = vtanh.f32 %v7629_v6  ;;  %v7484_v14 = vpop.f32.mrf.mxu0  ;;  %v9870_v6 = vld [vmem:[%s13793_s7 + $0x38] sm:$0xff]  }
 0x681   : > { %v10260_v33 = vpop.eup %10259  ;;  %v7632_v3 = vadd.f32 %v13279_v34, %v7556_v12  ;;  %v7557_v25 = vadd.f32 %v7484_v14, %v6971_v19  ;;  %9491 = vmatprep.mubr.msk.f32.mxu1 %vm7723_vm5, %v10258_v49  ;;  %9641 = vmatpush3.bf16.msra.mxu0 %v9870_v6 }
 0x682   : > { %v7486_v10 = vpop.f32.mrf.mxu0  ;;  %8005 = vmatmul.mubr.f32.gmra.mxu1 %v10260_v33  ;;  %9642 = vmatprep.subr.bf16.mxu0 %v14455_v53 }
 0x683   : > { %10273 = vtanh.f32 %v7632_v3  ;;  %v7558_v5 = vadd.f32 %v7486_v10, %v6972_v45  ;;  %v7633_v61 = vadd.f32 %v13272_v44, %v7557_v25 }
 0x684   : > { %v10262_v51 = vpop.eup %10261  ;;  %10275 = vtanh.f32 %v7631_v32  ;;  %v7490_v56 = vpop.f32.mrf.mxu0 }
 0x685   : > { %v10264_v54 = vpop.eup %10263  ;;  %v7634_v52 = vadd.f32 %v13279_v34, %v7558_v5  ;;  %v7559_v57 = vadd.f32 %v7490_v56, %v6973_v55  ;;  %9492 = vmatprep.mubr.msk.f32.mxu1 %vm7723_vm5, %v10262_v51  ;;  %9643 = vmatpush3.bf16.msra.mxu0 %v9872_v27 }
 0x686   : > { %v7492_v43 = vpop.f32.mrf.mxu0  ;;  %8010 = vmatmul.mubr.f32.gmra.mxu1 %v10264_v54  ;;  %9644 = vmatprep.subr.bf16.mxu0 %v14455_v53 }
 0x687   : > { %10277 = vtanh.f32 %v7634_v52  ;;  %v7560_v63 = vadd.f32 %v7492_v43, %v6974_v59  ;;  %v7635_v62 = vadd.f32 %v13272_v44, %v7559_v57 }
 0x688   : > { %v10266_v36 = vpop.eup %10265  ;;  %10279 = vtanh.f32 %v7633_v61  ;;  %v7494_v17 = vpop.f32.mrf.mxu0 }
 0x689   : > { %v10268_v41 = vpop.eup %10267  ;;  %v7636_v11 = vadd.f32 %v13279_v34, %v7560_v63  ;;  %v7561_v9 = vadd.f32 %v7494_v17, %v6975_v42  ;;  %9493 = vmatprep.mubr.msk.f32.mxu1 %vm7723_vm5, %v10266_v36  ;;  %9645 = vmatpush3.bf16.msra.mxu0 %v9874_v22 }
 0x68a   : > { %v7496_v50 = vpop.f32.mrf.mxu0  ;;  %8015 = vmatmul.mubr.f32.gmra.mxu1 %v10268_v41  ;;  %9664 = vmatprep.subr.bf16.mxu0 %v14455_v53 }
 0x68b   : > { %10281 = vtanh.f32 %v7636_v11  ;;  %v7562_v38 = vadd.f32 %v7496_v50, %v6976_v8  ;;  %v7637_v60 = vadd.f32 %v13272_v44, %v7561_v9  ;;  %v9869_v44 = vld [vmem:[%s13793_s7 + $0x18] sm:$0xff]  }
 0x68c   : > { %v10270_v7 = vpop.eup %10269  ;;  %10283 = vtanh.f32 %v7635_v62  ;;  %9653 = vmatpush3.bf16.msra.mxu1 %v9869_v44 }
 0x68d   : > { %v10272_v26 = vpop.eup %10271  ;;  %v7638_v35 = vadd.f32 %v13279_v34, %v7562_v38  ;;  %9494 = vmatprep.mubr.msk.f32.mxu1 %vm7723_vm5, %v10270_v7  ;;  %9654 = vmatprep.subr.bf16.mxu1 %v14455_v53 }
 0x68e   : > { %8020 = vmatmul.mubr.f32.gmra.mxu1 %v10272_v26 }
 0x68f   : > { %10285 = vtanh.f32 %v7638_v35 }
 0x690   : > { %v10274_v24 = vpop.eup %10273  ;;  %10287 = vtanh.f32 %v7637_v60  ;;  %9655 = vmatpush3.bf16.msra.mxu1 %v9871_v58 }
 0x691   : > { %v10276_v31 = vpop.eup %10275  ;;  %9495 = vmatprep.mubr.msk.f32.mxu1 %vm7723_vm5, %v10274_v24  ;;  %9656 = vmatprep.subr.bf16.mxu1 %v14455_v53 }
 0x692   : > { %8025 = vmatmul.mubr.f32.gmra.mxu1 %v10276_v31 }
 0x694   : > { %v10278_v21 = vpop.eup %10277  ;;  %9657 = vmatpush3.bf16.msra.mxu1 %v9873_v23 }
 0x695   : > { %v10280_v48 = vpop.eup %10279  ;;  %9496 = vmatprep.mubr.msk.f32.mxu1 %vm7723_vm5, %v10278_v21  ;;  %9658 = vmatprep.subr.bf16.mxu1 %v14455_v53 }
 0x696   : > { %8030 = vmatmul.mubr.f32.gmra.mxu1 %v10280_v48 }
 0x698   : > { %v10282_v34 = vpop.eup %10281  ;;  %9659 = vmatpush3.bf16.msra.mxu1 %v9875_v37 }
 0x699   : > { %v10284_v46 = vpop.eup %10283  ;;  %9497 = vmatprep.mubr.msk.f32.mxu1 %vm7723_vm5, %v10282_v34  ;;  %9678 = vmatprep.subr.bf16.mxu1 %v14455_v53 }
 0x69a   : > { %8035 = vmatmul.mubr.f32.gmra.mxu1 %v10284_v46 }
 0x69c   : > { %v10286_v16 = vpop.eup %10285 }
 0x69d   : > { %v10288_v40 = vpop.eup %10287  ;;  %9498 = vmatprep.mubr.msk.f32.mxu1 %vm7723_vm5, %v10286_v16 }
 0x69e   : > { %8040 = vmatmul.mubr.f32.gmra.mxu1 %v10288_v40 }
 0x69f   : > { %9660 = vmatprep.mubr.msk.bf16.mxu1 %vm10311_vm7, %v14455_v53 }
 0x6e2   : > { %v7886_v4 = vpop.f32.mrf.mxu1 }
 0x6e3   : > { %8046 = vst.msk [vmem:[#allocation4] sm:$0xff] %vm8045_vm6, %v7886_v4 }
 0x6e4   : > { %v7888_v20 = vpop.f32.mrf.mxu1 }
 0x6e6   : > { %v7891_v2 = vpop.f32.mrf.mxu1 }
 0x6e7   : > { %8047 = vst.msk [vmem:[#allocation4 + $0x8] sm:$0xff] %vm8045_vm6, %v7891_v2 }
 0x6e8   : > { %v7893_v19 = vpop.f32.mrf.mxu1 }
 0x6ea   : > { %v7896_v12 = vpop.f32.mrf.mxu1 }
 0x6eb   : > { %8048 = vst.msk [vmem:[#allocation4 + $0x10] sm:$0xff] %vm8045_vm6, %v7896_v12 }
 0x6ec   : > { %v7898_v49 = vpop.f32.mrf.mxu1 }
 0x6ee   : > { %v7901_v0 = vpop.f32.mrf.mxu1 }
 0x6ef   : > { %8049 = vst.msk [vmem:[#allocation4 + $0x18] sm:$0xff] %vm8045_vm6, %v7901_v0 }
 0x6f0   : > { %v7903_v32 = vpop.f32.mrf.mxu1 }
 0x6f2   : > { %v7906_v14 = vpop.f32.mrf.mxu1  ;;  %v8125_v4 = vld [vmem:[#allocation4 + $0x2] ss:$16 sm:$0x3]  ;;  %v8141_v20 = vld [vmem:[#allocation4 + $0x3] ss:$16 sm:$0x3] }
 0x6f3   : > { %8050 = vst.msk [vmem:[#allocation4 + $0x20] sm:$0xff] %vm8045_vm6, %v7906_v14  ;;  %v8078_v49 = vld [vmem:[#allocation4] ss:$16 sm:$0x3] }
 0x6f4   : > { %v7908_v33 = vpop.f32.mrf.mxu1  ;;  %v8094_v0 = vld [vmem:[#allocation4 + $0x1] ss:$16 sm:$0x3] }
 0x6f6   : > { %v7911_v30 = vpop.f32.mrf.mxu1 }
 0x6f7   : > { %8051 = vst.msk [vmem:[#allocation4 + $0x28] sm:$0xff] %vm8045_vm6, %v7911_v30 }
 0x6f8   : > { %v7913_v45 = vpop.f32.mrf.mxu1 }
 0x6fa   : > { %v7916_v3 = vpop.f32.mrf.mxu1 }
 0x6fb   : > { %8052 = vst.msk [vmem:[#allocation4 + $0x30] sm:$0xff] %vm8045_vm6, %v7916_v3 }
 0x6fc   : > { %v7918_v25 = vpop.f32.mrf.mxu1 }
 0x6fe   : > { %v7921_v10 = vpop.f32.mrf.mxu1 }
 0x6ff   : > { %8053 = vst.msk [vmem:[#allocation4 + $0x38] sm:$0xff] %vm8045_vm6, %v7921_v10 }
 0x700   : > { %v7923_v39 = vpop.f32.mrf.mxu1 }
 0x702   : > { %v7926_v55 = vpop.f32.mrf.mxu1  ;;  %v8079_v27 = vld [vmem:[#allocation4] ss:$16 sm:$0xc]  ;;  %v8095_v23 = vld [vmem:[#allocation4 + $0x1] ss:$16 sm:$0xc] }
 0x703   : > { %8054 = vst.msk [vmem:[#allocation4 + $0x40] sm:$0xff] %vm8045_vm6, %v7926_v55  ;;  %v8126_v22 = vld [vmem:[#allocation4 + $0x2] ss:$16 sm:$0xc] }
 0x704   : > { %v7928_v5 = vpop.f32.mrf.mxu1  ;;  %v8142_v37 = vld [vmem:[#allocation4 + $0x3] ss:$16 sm:$0xc]  ;;  %v8127_v3 = vor.u32 %v8126_v22, %v8125_v4 }
 0x705   : > { %v8143_v25 = vor.u32 %v8142_v37, %v8141_v20 }
 0x706   : > { %v7931_v29 = vpop.f32.mrf.mxu1 }
 0x707   : > { %8055 = vst.msk [vmem:[#allocation4 + $0x48] sm:$0xff] %vm8045_vm6, %v7931_v29 }
 0x708   : > { %v7933_v51 = vpop.f32.mrf.mxu1 }
 0x70a   : > { %v7936_v18 = vpop.f32.mrf.mxu1 }
 0x70b   : > { %8056 = vst.msk [vmem:[#allocation4 + $0x50] sm:$0xff] %vm8045_vm6, %v7936_v18 }
 0x70c   : > { %v7938_v61 = vpop.f32.mrf.mxu1 }
 0x70d   : > { %v8080_v61 = vor.u32 %v8079_v27, %v8078_v49  ;;  %v8322_v49 = vld [vmem:[#allocation4 + $0x4] ss:$16 sm:$0xc] }
 0x70e   : > { %v7941_v56 = vpop.f32.mrf.mxu1 }
 0x70f   : > { %8057 = vst.msk [vmem:[#allocation4 + $0x58] sm:$0xff] %vm8045_vm6, %v7941_v56  ;;  %v8096_v56 = vor.u32 %v8095_v23, %v8094_v0 }
 0x710   : > { %v7943_v13 = vpop.f32.mrf.mxu1 }
 0x712   : > { %v7946_v54 = vpop.f32.mrf.mxu1  ;;  %v8128_v19 = vld [vmem:[#allocation4 + $0x2] ss:$16 sm:$0x30]  ;;  %v8144_v12 = vld [vmem:[#allocation4 + $0x3] ss:$16 sm:$0x30] }
 0x713   : > { %8058 = vst.msk [vmem:[#allocation4 + $0x60] sm:$0xff] %vm8045_vm6, %v7946_v54  ;;  %v8081_v32 = vld [vmem:[#allocation4] ss:$16 sm:$0x30] }
 0x714   : > { %v7948_v47 = vpop.f32.mrf.mxu1  ;;  %v8097_v14 = vld [vmem:[#allocation4 + $0x1] ss:$16 sm:$0x30] }
 0x716   : > { %v7951_v59 = vpop.f32.mrf.mxu1 }
 0x717   : > { %8059 = vst.msk [vmem:[#allocation4 + $0x68] sm:$0xff] %vm8045_vm6, %v7951_v59 }
 0x718   : > { %v7953_v52 = vpop.f32.mrf.mxu1 }
 0x719   : > { %v8129_v52 = vor.u32 %v8128_v19, %v8127_v3 }
 0x71a   : > { %v7956_v57 = vpop.f32.mrf.mxu1 }
 0x71b   : > { %8060 = vst.msk [vmem:[#allocation4 + $0x70] sm:$0xff] %vm8045_vm6, %v7956_v57  ;;  %v8145_v57 = vor.u32 %v8144_v12, %v8143_v25  ;;  %v9877_v12 = vld [vmem:[%s13793_s7 + $0x98] sm:$0xff]   ;;  %v8446_v25 = vld [vmem:[#allocation4 + $0x6] ss:$16 sm:$0xc] }
 0x71c   : > { %v7958_v43 = vpop.f32.mrf.mxu1 }
 0x71e   : > { %v7961_v1 = vpop.f32.mrf.mxu1 }
 0x71f   : > { %8061 = vst.msk [vmem:[#allocation4 + $0x78] sm:$0xff] %vm8045_vm6, %v7961_v1 }
 0x720   : > { %v7963_v42 = vpop.f32.mrf.mxu1 }
 0x722   : > { %v7966_v63 = vpop.f32.mrf.mxu1  ;;  %v8130_v30 = vld [vmem:[#allocation4 + $0x2] ss:$16 sm:$0xc0]  ;;  %v8146_v45 = vld [vmem:[#allocation4 + $0x3] ss:$16 sm:$0xc0] }
 0x723   : > { %8062 = vst.msk [vmem:[#allocation4 + $0x80] sm:$0xff] %vm8045_vm6, %v7966_v63  ;;  %v8083_v10 = vld [vmem:[#allocation4] ss:$16 sm:$0xc0]  ;;  %v8082_v63 = vor.u32 %v8081_v32, %v8080_v61  ;;  %v9878_v32 = vld [vmem:[%s13793_s7 + $0x68] sm:$0xff]  }
 0x724   : > { %v7968_v36 = vpop.f32.mrf.mxu1  ;;  %v8099_v39 = vld [vmem:[#allocation4 + $0x1] ss:$16 sm:$0xc0] }
 0x725   : > { %v8098_v36 = vor.u32 %v8097_v14, %v8096_v56 }
 0x726   : > { %v7971_v15 = vpop.f32.mrf.mxu1 }
 0x727   : > { %8063 = vst.msk [vmem:[#allocation4 + $0x88] sm:$0xff] %vm8045_vm6, %v7971_v15  ;;  %v8131_v15 = vor.u32 %v8130_v30, %v8129_v52  ;;  %v8338_v30 = vld [vmem:[#allocation4 + $0x5] ss:$16 sm:$0xc] }
 0x728   : > { %v7973_v62 = vpop.f32.mrf.mxu1 }
 0x72a   : > { %v7976_v17 = vpop.f32.mrf.mxu1 }
 0x72b   : > { %8064 = vst.msk [vmem:[#allocation4 + $0x90] sm:$0xff] %vm8045_vm6, %v7976_v17  ;;  %v8147_v17 = vor.u32 %v8146_v45, %v8145_v57 }
 0x72c   : > { %v7978_v41 = vpop.f32.mrf.mxu1 }
 0x72e   : > { %v7981_v28 = vpop.f32.mrf.mxu1 }
 0x72f   : > { %8065 = vst.msk [vmem:[#allocation4 + $0x98] sm:$0xff] %vm8045_vm6, %v7981_v28 }
 0x730   : > { %v7983_v8 = vpop.f32.mrf.mxu1 }
 0x732   : > { %v7986_v11 = vpop.f32.mrf.mxu1  ;;  %v8133_v55 = vld [vmem:[#allocation4 + $0x82] ss:$16 sm:$0x3]  ;;  %v8149_v5 = vld [vmem:[#allocation4 + $0x83] ss:$16 sm:$0x3] }
 0x733   : > { %8066 = vst.msk [vmem:[#allocation4 + $0xa0] sm:$0xff] %vm8045_vm6, %v7986_v11  ;;  %v8086_v13 = vld [vmem:[#allocation4 + $0x80] ss:$16 sm:$0x3] }
 0x734   : > { %v7988_v9 = vpop.f32.mrf.mxu1  ;;  %v8102_v54 = vld [vmem:[#allocation4 + $0x81] ss:$16 sm:$0x3]  ;;  %v8329_v14 = vld [vmem:[#allocation4 + $0x84] ss:$16 sm:$0x3] }
 0x735   : > { %v8084_v9 = vor.u32 %v8083_v10, %v8082_v63  ;;  %v8345_v45 = vld [vmem:[#allocation4 + $0x85] ss:$16 sm:$0x3]  ;;  %v8464_v63 = vld [vmem:[#allocation4 + $0x7] ss:$16 sm:$0x30] }
 0x736   : > { %v7991_v50 = vpop.f32.mrf.mxu1  ;;  %v9879_v10 = vld [vmem:[%s13793_s7 + $0x90] sm:$0xff]  }
 0x737   : > { %8067 = vst.msk [vmem:[#allocation4 + $0xa8] sm:$0xff] %vm8045_vm6, %v7991_v50 }
 0x738   : > { %v7993_v38 = vpop.f32.mrf.mxu1 }
 0x739   : > { %v8100_v38 = vor.u32 %v8099_v39, %v8098_v36  ;;  %v8321_v39 = vld [vmem:[#allocation4 + $0x4] ss:$16 sm:$0x3] }
 0x73a   : > { %v7996_v7 = vpop.f32.mrf.mxu1 }
 0x73b   : > { %8068 = vst.msk [vmem:[#allocation4 + $0xb0] sm:$0xff] %vm8045_vm6, %v7996_v7 }
 0x73c   : > { %v7998_v60 = vpop.f32.mrf.mxu1 }
 0x73e   : > { %v8001_v26 = vpop.f32.mrf.mxu1 }
 0x73f   : > { %8069 = vst.msk [vmem:[#allocation4 + $0xb8] sm:$0xff] %vm8045_vm6, %v8001_v26 }
 0x740   : > { %v8003_v35 = vpop.f32.mrf.mxu1 }
 0x742   : > { %v8006_v24 = vpop.f32.mrf.mxu1  ;;  %v8134_v29 = vld [vmem:[#allocation4 + $0x82] ss:$16 sm:$0xc]  ;;  %v8150_v51 = vld [vmem:[#allocation4 + $0x83] ss:$16 sm:$0xc] }
 0x743   : > { %8070 = vst.msk [vmem:[#allocation4 + $0xc0] sm:$0xff] %vm8045_vm6, %v8006_v24  ;;  %v8087_v47 = vld [vmem:[#allocation4 + $0x80] ss:$16 sm:$0xc]  ;;  %v8135_v62 = vor.u32 %v8134_v29, %v8133_v55  ;;  %v8151_v41 = vor.u32 %v8150_v51, %v8149_v5 }
 0x744   : > { %v8008_v31 = vpop.f32.mrf.mxu1  ;;  %v8103_v59 = vld [vmem:[#allocation4 + $0x81] ss:$16 sm:$0xc]  ;;  %v8088_v50 = vor.u32 %v8087_v47, %v8086_v13  ;;  %v8346_v3 = vld [vmem:[#allocation4 + $0x85] ss:$16 sm:$0xc] }
 0x745   : > { %v8104_v7 = vor.u32 %v8103_v59, %v8102_v54  ;;  %v8324_v55 = vld [vmem:[#allocation4 + $0x4] ss:$16 sm:$0x30]  ;;  %v8453_v5 = vld [vmem:[#allocation4 + $0x86] ss:$16 sm:$0x3]  ;;  %v8347_v57 = vor.u32 %v8346_v3, %v8345_v45 }
 0x746   : > { %v8011_v21 = vpop.f32.mrf.mxu1  ;;  %v8454_v29 = vld [vmem:[#allocation4 + $0x86] ss:$16 sm:$0xc]  ;;  %v8462_v51 = vld [vmem:[#allocation4 + $0x7] ss:$16 sm:$0xc] }
 0x747   : > { %8071 = vst.msk [vmem:[#allocation4 + $0xc8] sm:$0xff] %vm8045_vm6, %v8011_v21  ;;  %v8470_v61 = vld [vmem:[#allocation4 + $0x87] ss:$16 sm:$0xc] }
 0x748   : > { %v8013_v48 = vpop.f32.mrf.mxu1  ;;  %v8337_v13 = vld [vmem:[#allocation4 + $0x5] ss:$16 sm:$0x3]  ;;  %v8445_v59 = vld [vmem:[#allocation4 + $0x6] ss:$16 sm:$0x3] }
 0x749   : > { %v8340_v54 = vld [vmem:[#allocation4 + $0x5] ss:$16 sm:$0x30] }
 0x74a   : > { %v8016_v44 = vpop.f32.mrf.mxu1 }
 0x74b   : > { %8072 = vst.msk [vmem:[#allocation4 + $0xd0] sm:$0xff] %vm8045_vm6, %v8016_v44 }
 0x74c   : > { %v8018_v34 = vpop.f32.mrf.mxu1 }
 0x74d   : > { %v8156_v34 = vadd.f32 %v8147_v17, %v8131_v15  ;;  %v9880_v15 = vld [vmem:[%s13793_s7 + $0x60] sm:$0xff]  }
 0x74e   : > { %v8021_v46 = vpop.f32.mrf.mxu1 }
 0x74f   : > { %8073 = vst.msk [vmem:[#allocation4 + $0xd8] sm:$0xff] %vm8045_vm6, %v8021_v46  ;;  %v8158_v22 = vmul.f32 0.5, %v8156_v34 }
 0x750   : > { %v8023_v16 = vpop.f32.mrf.mxu1 }
 0x752   : > { %v8026_v40 = vpop.f32.mrf.mxu1  ;;  %v8136_v1 = vld [vmem:[#allocation4 + $0x82] ss:$16 sm:$0x30]  ;;  %v8152_v42 = vld [vmem:[#allocation4 + $0x83] ss:$16 sm:$0x30] }
 0x753   : > { %8074 = vst.msk [vmem:[#allocation4 + $0xe0] sm:$0xff] %vm8045_vm6, %v8026_v40  ;;  %v8089_v28 = vld [vmem:[#allocation4 + $0x80] ss:$16 sm:$0x30]  ;;  %v8137_v60 = vor.u32 %v8136_v1, %v8135_v62  ;;  %v8153_v26 = vor.u32 %v8152_v42, %v8151_v41  ;;  %v8323_v62 = vor.u32 %v8322_v49, %v8321_v39 }
 0x754   : > { %v8028_v6 = vpop.f32.mrf.mxu1  ;;  %v8105_v8 = vld [vmem:[#allocation4 + $0x81] ss:$16 sm:$0x30]  ;;  %v8090_v31 = vor.u32 %v8089_v28, %v8088_v50  ;;  %v8332_v56 = vld [vmem:[#allocation4 + $0x84] ss:$16 sm:$0x30]  ;;  %v8455_v28 = vor.u32 %v8454_v29, %v8453_v5  ;;  %v8339_v50 = vor.u32 %v8338_v30, %v8337_v13 }
 0x755   : > { %v8106_v21 = vor.u32 %v8105_v8, %v8104_v7  ;;  %v8348_v47 = vld [vmem:[#allocation4 + $0x85] ss:$16 sm:$0x30]  ;;  %v8456_v1 = vld [vmem:[#allocation4 + $0x86] ss:$16 sm:$0x30]  ;;  %v8447_v7 = vor.u32 %v8446_v25, %v8445_v59 }
 0x756   : > { %v8031_v58 = vpop.f32.mrf.mxu1  ;;  %v8461_v42 = vld [vmem:[#allocation4 + $0x7] ss:$16 sm:$0x3]  ;;  %v9885_v30 = vld [vmem:[%s13793_s7 + $0x78] sm:$0xff]  }
 0x757   : > { %8075 = vst.msk [vmem:[#allocation4 + $0xe8] sm:$0xff] %vm8045_vm6, %v8031_v58  ;;  %v8109_v58 = vadd.f32 %v8100_v38, %v8084_v9  ;;  %v8472_v36 = vld [vmem:[#allocation4 + $0x87] ss:$16 sm:$0x30]  ;;  %v8349_v38 = vor.u32 %v8348_v47, %v8347_v57  ;;  %v9887_v29 = vld [vmem:[%s13793_s7 + $0xb8] sm:$0xff]  }
 0x758   : > { %v8033_v2 = vpop.f32.mrf.mxu1  ;;  %v9886_v39 = vld [vmem:[%s13793_s7 + $0xc0] sm:$0xff]   ;;  %v8577_v13 = vld [vmem:[#allocation4 + $0x88] ss:$16 sm:$0x3] }
 0x759   : > { %v8111_v4 = vmul.f32 0.5, %v8109_v58  ;;  %v9876_v2 = vld [vmem:[%s13793_s7 + $0x70] sm:$0xff]   ;;  %v8569_v47 = vld [vmem:[#allocation4 + $0x8] ss:$16 sm:$0x3] }
 0x75a   : > { %v8036_v33 = vpop.f32.mrf.mxu1  ;;  %v8580_v59 = vld [vmem:[#allocation4 + $0x88] ss:$16 sm:$0x30]  ;;  %v8596_v57 = vld [vmem:[#allocation4 + $0x89] ss:$16 sm:$0x30] }
 0x75b   : > { %8076 = vst.msk [vmem:[#allocation4 + $0xf0] sm:$0xff] %vm8045_vm6, %v8036_v33  ;;  %v8330_v33 = vld [vmem:[#allocation4 + $0x84] ss:$16 sm:$0xc] }
 0x75c   : > { %v8038_v18 = vpop.f32.mrf.mxu1  ;;  %v8331_v52 = vor.u32 %v8330_v33, %v8329_v14  ;;  %v9884_v14 = vld [vmem:[%s13793_s7 + $0x50] sm:$0xff]  }
 0x75d   : > { %v8469_v18 = vld [vmem:[#allocation4 + $0x87] ss:$16 sm:$0x3] }
 0x75e   : > { %v8041_v43 = vpop.f32.mrf.mxu1  ;;  %v8471_v8 = vor.u32 %v8470_v61, %v8469_v18  ;;  %v8333_v9 = vor.u32 %v8332_v56, %v8331_v52  ;;  %v8578_v18 = vld [vmem:[#allocation4 + $0x88] ss:$16 sm:$0xc]  ;;  %v8586_v61 = vld [vmem:[#allocation4 + $0x9] ss:$16 sm:$0xc] }
 0x75f   : > { %8077 = vst.msk [vmem:[#allocation4 + $0xf8] sm:$0xff] %vm8045_vm6, %v8041_v43  ;;  %v8448_v43 = vld [vmem:[#allocation4 + $0x6] ss:$16 sm:$0x30] }
 0x760   : > { %v8043_v11 = vpop.f32.mrf.mxu1  ;;  %v8449_v58 = vor.u32 %v8448_v43, %v8447_v7  ;;  %v8594_v56 = vld [vmem:[#allocation4 + $0x89] ss:$16 sm:$0xc]  ;;  %v8572_v43 = vld [vmem:[#allocation4 + $0x8] ss:$16 sm:$0x30] }
 0x761   : > { %v9881_v11 = vld [vmem:[%s13793_s7 + $0x88] sm:$0xff]  }
 0x762   : > { %v8138_v35 = vld [vmem:[#allocation4 + $0x82] ss:$16 sm:$0xc0]  ;;  %v8154_v24 = vld [vmem:[#allocation4 + $0x83] ss:$16 sm:$0xc0] }
 0x763   : > { %v8139_v48 = vor.u32 %v8138_v35, %v8137_v60  ;;  %v8155_v44 = vor.u32 %v8154_v24, %v8153_v26  ;;  %v8091_v46 = vld [vmem:[#allocation4 + $0x80] ss:$16 sm:$0xc0]  ;;  %v8107_v16 = vld [vmem:[#allocation4 + $0x81] ss:$16 sm:$0xc0]  ;;  %v8325_v35 = vor.u32 %v8324_v55, %v8323_v62 }
 0x764   : > { %v8092_v40 = vor.u32 %v8091_v46, %v8090_v31  ;;  %v8108_v6 = vor.u32 %v8107_v16, %v8106_v21  ;;  %v8334_v17 = vld [vmem:[#allocation4 + $0x84] ss:$16 sm:$0xc0]  ;;  %v8350_v41 = vld [vmem:[#allocation4 + $0x85] ss:$16 sm:$0xc0]  ;;  %v8457_v21 = vor.u32 %v8456_v1, %v8455_v28  ;;  %v8341_v46 = vor.u32 %v8340_v54, %v8339_v50 }
 0x765   : > { %v8157_v27 = vadd.f32 %v8155_v44, %v8139_v48  ;;  %v8458_v60 = vld [vmem:[#allocation4 + $0x86] ss:$16 sm:$0xc0]  ;;  %v8474_v26 = vld [vmem:[#allocation4 + $0x87] ss:$16 sm:$0xc0]  ;;  %v8463_v48 = vor.u32 %v8462_v51, %v8461_v42  ;;  %v8473_v44 = vor.u32 %v8472_v36, %v8471_v8  ;;  %v8335_v34 = vor.u32 %v8334_v17, %v8333_v9 }
 0x766   : > { %v8110_v23 = vadd.f32 %v8108_v6, %v8092_v40  ;;  %v8326_v24 = vld [vmem:[#allocation4 + $0x4] ss:$16 sm:$0xc0]  ;;  %v8342_v31 = vld [vmem:[#allocation4 + $0x5] ss:$16 sm:$0xc0]  ;;  %v8351_v16 = vor.u32 %v8350_v41, %v8349_v38  ;;  %v8579_v1 = vor.u32 %v8578_v18, %v8577_v13 }
 0x767   : > { %v8159_v37 = vmul.f32 0.5, %v8157_v27  ;;  %v8450_v40 = vld [vmem:[#allocation4 + $0x6] ss:$16 sm:$0xc0]  ;;  %v8459_v27 = vor.u32 %v8458_v60, %v8457_v21 }
 0x768   : > { %v8112_v20 = vmul.f32 0.5, %v8110_v23  ;;  %v8466_v6 = vld [vmem:[#allocation4 + $0x7] ss:$16 sm:$0xc0]  ;;  %v8465_v23 = vor.u32 %v8464_v63, %v8463_v48  ;;  %v8353_v49 = vadd.f32 %v8351_v16, %v8335_v34  ;;  %v8581_v41 = vor.u32 %v8580_v59, %v8579_v1  ;;  %v9891_v16 = vld [vmem:[%s13795_s9 + $0x38] ss:$0 sps:$4 sm:$0xff]  }
 0x769   : > { %v8160_v19 = vpack.c.bf16 %v8159_v37, %v8158_v22  ;;  %v8475_v22 = vor.u32 %v8474_v26, %v8473_v44  ;;  %v8327_v37 = vor.u32 %v8326_v24, %v8325_v35  ;;  %v8570_v51 = vld [vmem:[#allocation4 + $0x8] ss:$16 sm:$0xc]  ;;  %v8593_v54 = vld [vmem:[#allocation4 + $0x89] ss:$16 sm:$0x3] }
 0x76a   : > { %v8113_v0 = vpack.c.bf16 %v8112_v20, %v8111_v4  ;;  %v8343_v4 = vor.u32 %v8342_v31, %v8341_v46  ;;  %v9882_v20 = vld [vmem:[%s13793_s7 + $0x58] sm:$0xff]   ;;  %v8355_v45 = vmul.f32 0.5, %v8353_v49  ;;  %v8595_v63 = vor.u32 %v8594_v56, %v8593_v54  ;;  %v9888_v62 = vld [vmem:[%s13793_s7 + $0xb0] sm:$0xff]   ;;  %v9889_v24 = vld [vmem:[%s13793_s7 + $0xa8] sm:$0xff]  }
 0x76b   : > { %9647 = vmatmul.mubr.msk.bf16.vlgmr.msra.gmra.mxu0 %vm8045_vm6, %v8160_v19  ;;  %v8467_v19 = vor.u32 %v8466_v6, %v8465_v23  ;;  %v8585_v52 = vld [vmem:[#allocation4 + $0x9] ss:$16 sm:$0x3]  ;;  %v8582_v36 = vld [vmem:[#allocation4 + $0x88] ss:$16 sm:$0xc0]  ;;  %v8571_v17 = vor.u32 %v8570_v51, %v8569_v47 }
 0x76c   : > { %9661 = vmatmul.mubr.msk.bf16.vlgmr.msra.gmra.mxu1 %vm8045_vm6, %v8113_v0  ;;  %9665 = vmatpush3.bf16.msra.mxu0 %v9876_v2  ;;  %v8451_v2 = vor.u32 %v8450_v40, %v8449_v58  ;;  %v8477_v0 = vadd.f32 %v8475_v22, %v8459_v27  ;;  %v8588_v42 = vld [vmem:[#allocation4 + $0x9] ss:$16 sm:$0x30]  ;;  %v8587_v28 = vor.u32 %v8586_v61, %v8585_v52  ;;  %v9890_v48 = vld [vmem:[%s13793_s7 + $0xa0] sm:$0xff]   ;;  %v8775_v40 = vsel %vm8773_vm8, %v9891_v16, 0  ;;  %v9892_v6 = vld [vmem:[%s13795_s9 + $0x30] sm:$0xff]  }
 0x76d   : > { %9679 = vmatpush3.bf16.msra.mxu1 %v9877_v12  ;;  %9666 = vmatprep.subr.bf16.mxu0 %v14455_v53  ;;  %v9883_v12 = vld [vmem:[%s13793_s7 + $0x80] sm:$0xff]   ;;  %v8597_v8 = vor.u32 %v8596_v57, %v8595_v63  ;;  %v8590_v9 = vld [vmem:[#allocation4 + $0x9] ss:$16 sm:$0xc0]  ;;  %v8573_v50 = vor.u32 %v8572_v43, %v8571_v17  ;;  %v8583_v38 = vor.u32 %v8582_v36, %v8581_v41  ;;  %v9896_v22 = vld [vmem:[%s13795_s9 + $0x10] sm:$0xff]  }
 0x76e   : > { %9680 = vmatprep.subr.bf16.mxu1 %v14455_v53  ;;  %9674 = vmatprep.mubr.msk.bf16.mxu0 %vm10311_vm7, %v14455_v53  ;;  %v8476_v33 = vadd.f32 %v8467_v19, %v8451_v2  ;;  %v8479_v3 = vmul.f32 0.5, %v8477_v0  ;;  %v8589_v7 = vor.u32 %v8588_v42, %v8587_v28  ;;  %v9893_v58 = vld [vmem:[%s13795_s9 + $0x28] sm:$0xff]   ;;  %v9894_v27 = vld [vmem:[%s13795_s9 + $0x20] sm:$0xff]   ;;  %v9895_v23 = vld [vmem:[%s13795_s9 + $0x18] sm:$0xff]  }
 0x76f   : > { %9688 = vmatprep.mubr.msk.bf16.mxu1 %vm10311_vm7, %v14455_v53  ;;  %v9569_v59 = vld [vmem:[%s13794_s8] ss:$0 sm:$0xff]  ;;  %v9899_v36 = vld [vmem:[%s13797_s11 + $0x28] ss:$0 sps:$4 sm:$0x33]   ;;  %v9901_v17 = vld [vmem:[%s13797_s11 + $0x18] sm:$0xff]  }
 0x770   : > { %9667 = vmatpush3.bf16.msra.mxu0 %v9878_v32  ;;  %v8352_v32 = vadd.f32 %v8343_v4, %v8327_v37  ;;  %v8591_v35 = vor.u32 %v8590_v9, %v8589_v7  ;;  %v9897_v37 = vld [vmem:[%s13795_s9 + $0x8] sm:$0xff]   ;;  %v9898_v4 = vld [vmem:[%s13795_s9] sm:$0xff]   ;;  %v9902_v41 = vld [vmem:[%s13797_s11 + $0x10] sm:$0xff]  }
 0x771   : > { %9681 = vmatpush3.bf16.msra.mxu1 %v9879_v10  ;;  %9668 = vmatprep.subr.bf16.mxu0 %v14455_v53  ;;  %v8478_v10 = vmul.f32 0.5, %v8476_v33  ;;  %v9903_v28 = vld [vmem:[%s13797_s11 + $0x8] sm:$0xff]  }
 0x772   : > { %9682 = vmatprep.subr.bf16.mxu1 %v14455_v53  ;;  %v8354_v25 = vmul.f32 0.5, %v8352_v32 }
 0x773   : > { %v8480_v5 = vpack.c.bf16 %v8479_v3, %v8478_v10 }
 0x774   : > { %9669 = vmatpush3.bf16.msra.mxu0 %v9880_v15  ;;  %v8356_v55 = vpack.c.bf16 %v8355_v45, %v8354_v25  ;;  %v8598_v15 = vld [vmem:[#allocation4 + $0x89] ss:$16 sm:$0xc0] }
 0x775   : > { %9683 = vmatpush3.bf16.msra.mxu1 %v9881_v11  ;;  %9670 = vmatprep.subr.bf16.mxu0 %v14455_v53  ;;  %v8574_v11 = vld [vmem:[#allocation4 + $0x8] ss:$16 sm:$0xc0]  ;;  %v8599_v60 = vor.u32 %v8598_v15, %v8597_v8  ;;  %v8876_v15 = vsel %vm5303_vm2, %v9899_v36, 0  ;;  %v9904_v8 = vld [vmem:[%s13797_s11] sm:$0xff]  }
 0x776   : > { %9684 = vmatprep.subr.bf16.mxu1 %v14455_v53  ;;  %v8575_v26 = vor.u32 %v8574_v11, %v8573_v50  ;;  %v9570_v11 = vld [vmem:[%s13796_s10] ss:$0 sm:$0xff] }
 0x777   : > { %v8601_v31 = vadd.f32 %v8599_v60, %v8583_v38 }
 0x778   : > { %9671 = vmatpush3.bf16.msra.mxu0 %v9882_v20  ;;  %v8600_v21 = vadd.f32 %v8591_v35, %v8575_v26 }
 0x779   : > { %9685 = vmatpush3.bf16.msra.mxu1 %v9883_v12  ;;  %9672 = vmatprep.subr.bf16.mxu0 %v14455_v53  ;;  %v8603_v44 = vmul.f32 0.5, %v8601_v31 }
 0x77a   : > { %9686 = vmatprep.subr.bf16.mxu1 %v14455_v53  ;;  %v8602_v34 = vmul.f32 0.5, %v8600_v21 }
 0x77c   : > { %9673 = vmatpush3.bf16.msra.mxu0 %v9884_v14  ;;  %v8604_v46 = vpack.c.bf16 %v8603_v44, %v8602_v34 }
 0x77d   : > { %9687 = vmatpush3.bf16.msra.mxu1 %v9885_v30  ;;  %9692 = vmatprep.subr.bf16.mxu0 %v14455_v53 }
 0x77e   : > { %9706 = vmatprep.subr.bf16.mxu1 %v14455_v53 }
 0x77f   : > { %9675 = vmatmul.mubr.msk.bf16.vlgmr.msra.gmra.mxu0 %vm8045_vm6, %v8356_v55 }
 0x780   : > { %9689 = vmatmul.mubr.msk.bf16.vlgmr.msra.gmra.mxu1 %vm8045_vm6, %v8480_v5  ;;  %9693 = vmatpush3.bf16.msra.mxu0 %v9886_v39 }
 0x781   : > { %9694 = vmatprep.subr.bf16.mxu0 %v14455_v53  ;;  %9702 = vmatprep.mubr.msk.bf16.mxu0 %vm10311_vm7, %v14455_v53 }
 0x782   : > { %9722 = vmatprep.mubr.msk.bf16.mxu1 %vm10311_vm7, %v14455_v53  ;;  %9707 = vmatpush3.bf16.msra.mxu1 %v8775_v40 }
 0x783   : > { %9708 = vmatprep.subr.bf16.mxu1 %v14455_v53 }
 0x784   : > { %9695 = vmatpush3.bf16.msra.mxu0 %v9887_v29 }
 0x785   : > { %9696 = vmatprep.subr.bf16.mxu0 %v14455_v53 }
 0x786   : > { %9709 = vmatpush3.bf16.msra.mxu1 %v9892_v6 }
 0x787   : > { %9710 = vmatprep.subr.bf16.mxu1 %v14455_v53 }
 0x788   : > { %9697 = vmatpush3.bf16.msra.mxu0 %v9888_v62  ;;  %v9900_v62 = vld [vmem:[%s13797_s11 + $0x20] sm:$0xff]  }
 0x789   : > { %9698 = vmatprep.subr.bf16.mxu0 %v14455_v53 }
 0x78a   : > { %9711 = vmatpush3.bf16.msra.mxu1 %v9893_v58 }
 0x78b   : > { %9712 = vmatprep.subr.bf16.mxu1 %v14455_v53 }
 0x78c   : > { %9699 = vmatpush3.bf16.msra.mxu0 %v9889_v24 }
 0x78d   : > { %9700 = vmatprep.subr.bf16.mxu0 %v14455_v53 }
 0x78e   : > { %9713 = vmatpush3.bf16.msra.mxu1 %v9894_v27 }
 0x78f   : > { %9714 = vmatprep.subr.bf16.mxu1 %v14455_v53 }
 0x790   : > { %9701 = vmatpush3.bf16.msra.mxu0 %v9890_v48 }
 0x791   : > { %9726 = vmatprep.subr.bf16.mxu0 %v14455_v53 }
 0x792   : > { %9715 = vmatpush3.bf16.msra.mxu1 %v9895_v23 }
 0x793   : > { %9703 = vmatmul.mubr.msk.bf16.vlgmr.msra.gmra.mxu0 %vm8045_vm6, %v8604_v46  ;;  %9716 = vmatprep.subr.bf16.mxu1 %v14455_v53 }
 0x794   : > { %9738 = vmatprep.mubr.msk.bf16.mxu0 %vm10311_vm7, %v14455_v53  ;;  %9727 = vmatpush3.bf16.msra.mxu0 %v8876_v15 }
 0x795   : > { %9728 = vmatprep.subr.bf16.mxu0 %v14455_v53 }
 0x796   : > { %9717 = vmatpush3.bf16.msra.mxu1 %v9896_v22 }
 0x797   : > { %9718 = vmatprep.subr.bf16.mxu1 %v14455_v53 }
 0x798   : > { %9729 = vmatpush3.bf16.msra.mxu0 %v9900_v62 }
 0x799   : > { %9730 = vmatprep.subr.bf16.mxu0 %v14455_v53 }
 0x79a   : > { %9719 = vmatpush3.bf16.msra.mxu1 %v9897_v37 }
 0x79b   : > { %9720 = vmatprep.subr.bf16.mxu1 %v14455_v53 }
 0x79c   : > { %9731 = vmatpush3.bf16.msra.mxu0 %v9901_v17 }
 0x79d   : > { %9732 = vmatprep.subr.bf16.mxu0 %v14455_v53 }
 0x79e   : > { %9721 = vmatpush3.bf16.msra.mxu1 %v9898_v4 }
 0x7a0   : > { %9733 = vmatpush3.bf16.msra.mxu0 %v9902_v41 }
 0x7a1   : > { %9734 = vmatprep.subr.bf16.mxu0 %v14455_v53 }
 0x7a4   : > { %9735 = vmatpush3.bf16.msra.mxu0 %v9903_v28 }
 0x7a5   : > { %9736 = vmatprep.subr.bf16.mxu0 %v14455_v53  ;;  %v9580_v53 = vld [vmem:[%s13798_s12] ss:$0 sm:$0xff] }
 0x7a8   : > { %9737 = vmatpush3.bf16.msra.mxu0 %v9904_v8 }
 0x82b   : > { %v8239_v20 = vpop.f32.mrf.mxu0 }
 0x82c   : > { %v8313_v2 = vpop.f32.mrf.mxu1 }
 0x82d   : > { %v9648_v19 = vpop.f32.mrf.mxu0  ;;  %v8314_v5 = vadd.f32 %v8313_v2, %v8239_v20 }
 0x82e   : > { %v9662_v12 = vpop.f32.mrf.mxu1 }
 0x82f   : > { %v8242_v49 = vpop.f32.mrf.mxu0 }
 0x830   : > { %v8316_v0 = vpop.f32.mrf.mxu1 }
 0x831   : > { %v9649_v32 = vpop.f32.mrf.mxu0  ;;  %v8317_v29 = vadd.f32 %v8316_v0, %v8242_v49 }
 0x832   : > { %v9663_v14 = vpop.f32.mrf.mxu1 }
 0x83f   : > { %v8435_v33 = vpop.f32.mrf.mxu0 }
 0x840   : > { %v8559_v30 = vpop.f32.mrf.mxu1  ;;  %v8442_v51 = vadd.f32 %v8435_v33, %v8314_v5 }
 0x841   : > { %v9676_v45 = vpop.f32.mrf.mxu0 }
 0x842   : > { %v9690_v3 = vpop.f32.mrf.mxu1  ;;  %v8566_v56 = vadd.f32 %v8559_v30, %v8442_v51 }
 0x843   : > { %v8438_v25 = vpop.f32.mrf.mxu0 }
 0x844   : > { %v8562_v10 = vpop.f32.mrf.mxu1  ;;  %v8443_v18 = vadd.f32 %v8438_v25, %v8317_v29 }
 0x845   : > { %v9677_v39 = vpop.f32.mrf.mxu0 }
 0x846   : > { %v9691_v55 = vpop.f32.mrf.mxu1  ;;  %v8567_v54 = vadd.f32 %v8562_v10, %v8443_v18 }
 0x853   : > { %v8683_v61 = vpop.f32.mrf.mxu0 }
 0x854   : > { %v8690_v47 = vadd.f32 %v8683_v61, %v8566_v56 }
 0x855   : > { %v9704_v13 = vpop.f32.mrf.mxu0 }
 0x856   : > { %v8699_v1 = vadd.f32 %v9569_v59, %v8690_v47 }
 0x857   : > { %v8686_v52 = vpop.f32.mrf.mxu0 }
 0x858   : > { %v8691_v57 = vadd.f32 %v8686_v52, %v8567_v54 }
 0x859   : > { %v9705_v43 = vpop.f32.mrf.mxu0 }
 0x85a   : > { %v8700_v42 = vadd.f32 %v9569_v59, %v8691_v57 }
 0x85c   : > { %v8701_v63 = vpack.c.bf16 %v8700_v42, %v8699_v1 }
 0x85e   : > { %9723 = vmatmul.mubr.msk.bf16.vlgmr.msra.gmra.mxu1 %vm8769_vm9, %v8701_v63 }
 0x91e   : > { %v8811_v9 = vpop.f32.mrf.mxu1 }
 0x91f   : > { %v8812_v50 = vadd.f32 %v9570_v11, %v8811_v9 }
 0x920   : > { %v9724_v38 = vpop.f32.mrf.mxu1 }
 0x921   : > { %10289 = vtanh.f32 %v8812_v50 }
 0x922   : > { %v8814_v7 = vpop.f32.mrf.mxu1 }
 0x923   : > { %v8815_v60 = vadd.f32 %v9570_v11, %v8814_v7 }
 0x924   : > { %v9725_v26 = vpop.f32.mrf.mxu1 }
 0x925   : > { %10291 = vtanh.f32 %v8815_v60 }
 0x92e   : > { %v10290_v35 = vpop.eup %10289 }
 0x932   : > { %v10292_v24 = vpop.eup %10291 }
 0x933   : > { %v8820_v31 = vpack.c.bf16 %v10292_v24, %v10290_v35 }
 0x935   : > { %9739 = vmatmul.mubr.msk.bf16.vlgmr.msra.gmra.mxu0 %vm4696_vm4, %v8820_v31 }
 0x9f5   : > { %v8912_v21 = vpop.f32.mrf.mxu0 }
 0x9f6   : > { %v8913_v48 = vadd.f32 %v9580_v53, %v8912_v21 }
 0x9f7   : > { %v9740_v44 = vpop.f32.mrf.mxu0 }
 0x9f8   : > { %v8920_v34 = vsel %vm8919_vm10, %v8913_v48, -inf }
 0x9f9   : > { %8921 = vmax.xlane.f32.xlu0 %v8920_v34  ;;  %v8915_v46 = vpop.f32.mrf.mxu0 }
 0x9fa   : > { %v8916_v16 = vadd.f32 %v9580_v53, %v8915_v46 }
 0x9fb   : > { %v9741_v40 = vpop.f32.mrf.mxu0 }
 0x9fc   : > { %v8923_v6 = vsel %vm8919_vm10, %v8916_v16, -inf }
 0x9fd   : > { %8924 = vmax.xlane.f32.xlu0 %v8923_v6 }
 0xa82   : > { %v8922_v58 = vpop.xlane.xlu0 %8921 }
 0xa83   : > { %v8926_v27 = vsub.f32 %v8913_v48, %v8922_v58 }
 0xa85   : > { %v8928_v23 = vmul.f32 1.442695, %v8926_v27 }
 0xa86   : > { %v8925_v22 = vpop.xlane.xlu0 %8924 }
 0xa87   : > { %10293 = vpow2.f32 %v8928_v23  ;;  %v8927_v37 = vsub.f32 %v8916_v16, %v8925_v22 }
 0xa89   : > { %v8930_v4 = vmul.f32 1.442695, %v8927_v37 }
 0xa8b   : > { %10295 = vpow2.f32 %v8930_v4 }
 0xa94   : > { %v10294_v20 = vpop.eup %10293 }
 0xa95   : > { %v8932_v2 = vsel %vm8919_vm10, %v10294_v20, 0.0 }
 0xa96   : > { %8933 = vadd.xlane.f32.xlu1 %v8932_v2 }
 0xa98   : > { %v10296_v19 = vpop.eup %10295 }
 0xa99   : > { %v8935_v12 = vsel %vm8919_vm10, %v10296_v19, 0.0 }
 0xa9a   : > { %8936 = vadd.xlane.f32.xlu1 %v8935_v12 }
 0xb1f   : > { %v8934_v49 = vpop.xlane.xlu1 %8933 }
 0xb20   : > { %10297 = vlog2.f32 %v8934_v49 }
 0xb23   : > { %v8937_v0 = vpop.xlane.xlu1 %8936 }
 0xb24   : > { %10299 = vlog2.f32 %v8937_v0 }
 0xb2d   : > { %v10298_v32 = vpop.eup %10297 }
 0xb2e   : > { %v8939_v14 = vmul.f32 0.6931472, %v10298_v32 }
 0xb30   : > { %v8942_v33 = vadd.f32 %v8939_v14, %v8922_v58 }
 0xb31   : > { %v10300_v30 = vpop.eup %10299 }
 0xb32   : > { %v8944_v45 = vsub.f32 %v8913_v48, %v8942_v33  ;;  %v8941_v3 = vmul.f32 0.6931472, %v10300_v30 }
 0xb34   : > { %8946 = vst.msk [vmem:[%s442_s28] sm:$0xff] %vm8919_vm10, %v8944_v45  ;;  %v8943_v25 = vadd.f32 %v8941_v3, %v8925_v22 }
 0xb36   : > { %v8945_v10 = vsub.f32 %v8916_v16, %v8943_v25 }
 0xb38   : > { %8947 = vst.msk [vmem:[%s442_s28 + $0x8] sm:$0xff] %vm8919_vm10, %v8945_v10 }
 0xb39 PF: > { %s23_s25 = sadd.s32 1, %s10307_s25  }
 0xb3a   : > { %p20_p5 = scmp.ge.s32.totalorder %s23_s25, 4  }
 0xb3c   :  { %22 = sbr.rel (!%p20_p5) target bundleno = 1 (0x1), region = 452 }

</bundles_post_ra>
